<compile_context>
chip_gen: v7x
topology: tpu7x:2x2x1
jax: 0.10.0
libtpu: 0.0.40
codegen_flags: <defaults>
</compile_context>

<pallas_src>
import functools

import numpy as np
import jax
import jax.numpy as jnp
from jax.experimental import pallas as pl
from jax.experimental.pallas import tpu as pltpu

# Conv matmul operand dtype (MXU-native on every TPU generation); accumulation
# stays f32 via preferred_element_type.  Set to jnp.float32 for bit-parity.
CONV_MM_DTYPE = jnp.bfloat16


# ----------------------------------------------------------------------------
# Kernel 1: fused LocalizationNetwork + GridGenerator
# ----------------------------------------------------------------------------
def _loc_gridgen_kernel(*refs, B, layer_dims, num_fiducial):
    nlayers = len(layer_dims)
    x_ref = refs[0]
    w_refs = refs[1:1 + 2 * nlayers:2]          # folded conv weights (9*Cin, Cout)
    s_refs = refs[2:2 + 2 * nlayers:2]          # folded BN shifts     (1, Cout)
    (fc1w_ref, fc1b_ref, fc2w_ref, fc2b_ref,
     ggw_ref, ggb_ref, invdct_ref, phatT_ref) = refs[1 + 2 * nlayers:-1]
    o_ref = refs[-1]                            # (B, 2, H*W)

    def pad_hw(a):                              # (B,H,W,C) -> (B,H+2,W+2,C)
        Bb, H, W, C = a.shape
        zc = jnp.zeros((Bb, H, 1, C), a.dtype)
        a = jnp.concatenate([zc, a, zc], axis=2)      # pad W
        zr = jnp.zeros((Bb, 1, W + 2, C), a.dtype)
        return jnp.concatenate([zr, a, zr], axis=1)   # pad H

    a = x_ref[...]
    feat = None
    for li, (H, W, Cin, Cout) in enumerate(layer_dims):
        pad = pad_hw(a)
        # im2col: one (B*H*W, 9*Cin) slab -> single MXU matmul with K = 9*Cin.
        taps = [pad[:, dy:dy + H, dx:dx + W, :].reshape(B * H * W, Cin)
                for dy in range(3) for dx in range(3)]
        col = jnp.concatenate(taps, axis=-1)
        y = jnp.dot(col.astype(w_refs[li].dtype), w_refs[li][...],
                    preferred_element_type=jnp.float32)
        y = jnp.maximum(y + s_refs[li][...], 0.0)       # folded-BN shift + ReLU
        if li < nlayers - 1:
            # 2x2 max pool, stride 2 (batch folded into the row dimension).
            y = y.reshape(B * (H // 2), 2 * W, Cout)
            y = jnp.maximum(y[:, :W, :], y[:, W:, :])
            y = y.reshape(B * (H // 2) * (W // 2), 2, Cout)
            y = jnp.max(y, axis=1)
            a = y.reshape(B, H // 2, W // 2, Cout)
        else:
            # AdaptiveAvgPool2d(1) == mean over all spatial positions.
            feat = jnp.mean(y.reshape(B, H * W, Cout), axis=1)   # (B, Cout)

    # Localization head (kept f32 -- control points are precision sensitive).
    h = jnp.dot(feat, fc1w_ref[...], preferred_element_type=jnp.float32) + fc1b_ref[...]
    h = jnp.maximum(h, 0.0)
    # fc2 was column-permuted host-side so cp is coordinate-major:
    #   cp = [x_0..x_{F-1}, y_0..y_{F-1}] per batch row (== C'^T rows).
    cp = jnp.dot(h, fc2w_ref[...], preferred_element_type=jnp.float32) + fc2b_ref[...]
    # GridGenerator fc (weights row/col-permuted to the same ordering).
    ex = jnp.dot(cp, ggw_ref[...], preferred_element_type=jnp.float32) + ggb_ref[...]

    Fd = num_fiducial
    cztx = jnp.concatenate([cp[:, :Fd], ex[:, :3]], axis=-1)     # (B, F+3)  x row of Cz^T
    czty = jnp.concatenate([cp[:, Fd:], ex[:, 3:]], axis=-1)     # (B, F+3)  y row of Cz^T
    # T^T = Cz^T @ invDeltaC^T ;  P'^T = T^T @ P_hat^T   (lane-dense, N = H*W)
    ppx = jnp.dot(jnp.dot(cztx, invdct_ref[...], preferred_element_type=jnp.float32),
                  phatT_ref[...], preferred_element_type=jnp.float32)
    ppy = jnp.dot(jnp.dot(czty, invdct_ref[...], preferred_element_type=jnp.float32),
                  phatT_ref[...], preferred_element_type=jnp.float32)
    o_ref[:, 0, :] = ppx
    o_ref[:, 1, :] = ppy


def loc_gridgen(x_nhwc, prep, num_fiducial):
    B, H, W, Cin = x_nhwc.shape
    n_out = H * W
    layer_dims = []
    h, w, cin = H, W, Cin
    for wmat, _ in prep["conv"]:
        cout = wmat.shape[1]
        layer_dims.append((h, w, cin, cout))
        h, w, cin = h // 2, w // 2, cout

    args = [x_nhwc]
    for wmat, shift in prep["conv"]:
        args += [wmat, shift]
    args += [prep["fc1_w"], prep["fc1_b"], prep["fc2_w"], prep["fc2_b"],
             prep["gg_w"], prep["gg_b"], prep["inv_delta_C_T"], prep["P_hat_T"]]

    kernel = functools.partial(_loc_gridgen_kernel, B=B,
                               layer_dims=tuple(layer_dims),
                               num_fiducial=num_fiducial)
    # No grid: whole problem (weights + activations, <1 MB small model) lives
    # in VMEM for the single fused invocation.
    return pl.pallas_call(
        kernel,
        out_shape=jax.ShapeDtypeStruct((B, 2, n_out), jnp.float32),
    )(*args)


# ----------------------------------------------------------------------------
# Kernel 2: bilinear grid_sample, padding_mode='border', align_corners=False
#           out^T = x^T @ Wmat^T  (NCHW-flat, lane-dense output tiles)
# ----------------------------------------------------------------------------
def _grid_sample_kernel(g_ref, x_ref, o_ref, *, H, W):
    g = g_ref[0]                                   # (2, TQ): row0 = x, row1 = y
    TQ = g.shape[1]
    n_in = x_ref.shape[2]
    gx = g[0:1, :]
    gy = g[1:2, :]
    # unnormalize (align_corners=False), then clamp (border padding).
    ix = jnp.clip(((gx + 1.0) * W - 1.0) * 0.5, 0.0, float(W - 1))
    iy = jnp.clip(((gy + 1.0) * H - 1.0) * 0.5, 0.0, float(H - 1))
    x0 = jnp.floor(ix)
    y0 = jnp.floor(iy)
    fx = ix - x0
    fy = iy - y0
    x1 = jnp.minimum(x0 + 1.0, float(W - 1))
    y1 = jnp.minimum(y0 + 1.0, float(H - 1))
    x0i = x0.astype(jnp.int32)
    x1i = x1.astype(jnp.int32)
    y0i = y0.astype(jnp.int32)
    y1i = y1.astype(jnp.int32)

    rows = jax.lax.broadcasted_iota(jnp.int32, (n_in, TQ), 0)

    def onehot(idx):                               # idx: (1, TQ) int32
        return (rows == idx).astype(jnp.float32)

    wmat = ((1.0 - fx) * (1.0 - fy) * onehot(y0i * W + x0i)
            + fx * (1.0 - fy) * onehot(y0i * W + x1i)
            + (1.0 - fx) * fy * onehot(y1i * W + x0i)
            + fx * fy * onehot(y1i * W + x1i))     # (n_in, TQ)
    # (C, n_in) @ (n_in, TQ) -> (C, TQ): lane-dense unmasked stores, NCHW order.
    o_ref[0] = jnp.dot(x_ref[0], wmat, preferred_element_type=jnp.float32)


def grid_sample_border_T(x_cfirst, grid_T, H, W):
    """x_cfirst: (B, C, H*W) NCHW-flat; grid_T: (B, 2, H*W); returns (B, C, H*W)."""
    B, C, n_in = x_cfirst.shape
    n_out = grid_T.shape[-1]
    # Output-pixel tile: bounds the (n_in x TQ) interpolation slab in VMEM and
    # gives >=2 parallel grid steps for megacore when B == 1.
    TQ = n_out
    for cand in (512, 256, 128):
        if n_out > cand and n_out % cand == 0:
            TQ = cand
            break
    kernel = functools.partial(_grid_sample_kernel, H=H, W=W)
    return pl.pallas_call(
        kernel,
        out_shape=jax.ShapeDtypeStruct((B, C, n_out), jnp.float32),
        grid=(B, n_out // TQ),
        in_specs=[
            pl.BlockSpec((1, 2, TQ), lambda b, q: (b, 0, q)),
            pl.BlockSpec((1, C, n_in), lambda b, q: (b, 0, 0)),
        ],
        out_specs=pl.BlockSpec((1, C, TQ), lambda b, q: (b, 0, q)),
        compiler_params=pltpu.CompilerParams(
            dimension_semantics=("parallel", "parallel")),
    )(grid_T, x_cfirst)


# ----------------------------------------------------------------------------
# GridGenerator constants (host-side numpy, identical to the torch module)
# ----------------------------------------------------------------------------
def _build_C(F):
    ctrl_pts_x = np.linspace(-1.0, 1.0, int(F / 2))
    ctrl_pts_y_top = -1 * np.ones(int(F / 2))
    ctrl_pts_y_bottom = np.ones(int(F / 2))
    ctrl_pts_top = np.stack([ctrl_pts_x, ctrl_pts_y_top], axis=1)
    ctrl_pts_bottom = np.stack([ctrl_pts_x, ctrl_pts_y_bottom], axis=1)
    return np.concatenate([ctrl_pts_top, ctrl_pts_bottom], axis=0)


def _build_inv_delta_C(F, C):
    hat_C = np.zeros((F, F), dtype=float)
    for i in range(F):
        for j in range(i, F):
            r = np.linalg.norm(C[i] - C[j])
            hat_C[i, j] = r
            hat_C[j, i] = r
    np.fill_diagonal(hat_C, 1)
    hat_C = (hat_C ** 2) * np.log(hat_C)
    delta_C = np.concatenate([
        np.concatenate([np.ones((F, 1)), C, hat_C], axis=1),
        np.concatenate([np.zeros((2, 3)), np.transpose(C)], axis=1),
        np.concatenate([np.zeros((1, 3)), np.ones((1, F))], axis=1)], axis=0)
    # TODO(synk): matrix inverse has no Pallas equivalent; done host-side (the
    #             torch module also builds it in numpy).
    return np.linalg.inv(delta_C)


def _build_P(I_r_size):
    I_r_height, I_r_width = I_r_size
    gx = (np.arange(-I_r_width, I_r_width, 2) + 1.0) / I_r_width
    gy = (np.arange(-I_r_height, I_r_height, 2) + 1.0) / I_r_height
    P = np.stack(np.meshgrid(gx, gy), axis=2)
    return P.reshape([-1, 2])


def _build_P_hat(F, eps, C, P):
    n = P.shape[0]
    P_tile = np.tile(np.expand_dims(P, axis=1), (1, F, 1))
    C_tile = np.expand_dims(C, axis=0)
    P_diff = P_tile - C_tile
    rbf_norm = np.linalg.norm(P_diff, ord=2, axis=2)
    rbf = np.square(rbf_norm) * np.log(rbf_norm + eps)
    return np.concatenate([np.ones((n, 1)), P, rbf], axis=1)


# ----------------------------------------------------------------------------
# Parameter init (deterministic, synthetic) -- matches the torch module layout
# ----------------------------------------------------------------------------
def init_params(key, in_channels, num_fiducial, I_r_size, model_name="small"):
    if model_name == "large":
        num_filters_list = [64, 128, 256, 512]
        fc_dim = 256
    else:
        num_filters_list = [16, 32, 64, 128]
        fc_dim = 64
    Fn = num_fiducial
    keys = jax.random.split(key, 32)
    k = iter(range(32))

    conv = []
    cin = in_channels
    for cout in num_filters_list:
        w = jax.random.normal(keys[next(k)], (3, 3, cin, cout), jnp.float32) / np.sqrt(9 * cin)
        gamma = 1.0 + 0.1 * jax.random.normal(keys[next(k)], (cout,), jnp.float32)
        beta = 0.1 * jax.random.normal(keys[next(k)], (cout,), jnp.float32)
        rmean = 0.1 * jax.random.normal(keys[next(k)], (cout,), jnp.float32)
        rvar = 0.5 + jnp.abs(jax.random.normal(keys[next(k)], (cout,), jnp.float32))
        conv.append(dict(w=w, gamma=gamma, beta=beta, rmean=rmean, rvar=rvar))
        cin = cout

    fc1_w = jax.random.normal(keys[next(k)], (cin, fc_dim), jnp.float32) / np.sqrt(cin)
    fc1_b = 0.1 * jax.random.normal(keys[next(k)], (fc_dim,), jnp.float32)

    # loc_fc2: module inits weight to 0 + fiducial bias; use a tiny random
    # weight instead so the whole path is numerically exercised.
    fc2_w = 0.01 * jax.random.normal(keys[next(k)], (fc_dim, Fn * 2), jnp.float32)
    ctrl_pts_x = np.linspace(-1.0, 1.0, int(Fn / 2))
    ctrl_pts_y_top = np.linspace(0.0, -1.0, num=int(Fn / 2))
    ctrl_pts_y_bottom = np.linspace(1.0, 0.0, num=int(Fn / 2))
    initial_bias = np.concatenate(
        [np.stack([ctrl_pts_x, ctrl_pts_y_top], axis=1),
         np.stack([ctrl_pts_x, ctrl_pts_y_bottom], axis=1)], axis=0).reshape(-1)
    fc2_b = jnp.asarray(initial_bias, jnp.float32)

    gg_fc_w = jax.random.normal(keys[next(k)], (Fn * 2, 6), jnp.float32) / np.sqrt(Fn * 2)
    gg_fc_b = 0.1 * jax.random.normal(keys[next(k)], (6,), jnp.float32)

    C = _build_C(Fn)
    P = _build_P(I_r_size)
    inv_delta_C = jnp.asarray(_build_inv_delta_C(Fn, C), jnp.float32)   # (F+3, F+3)
    P_hat = jnp.asarray(_build_P_hat(Fn, 1e-6, C, P), jnp.float32)      # (H*W, F+3)

    return dict(conv=conv, fc1_w=fc1_w, fc1_b=fc1_b, fc2_w=fc2_w, fc2_b=fc2_b,
                gg_fc_w=gg_fc_w, gg_fc_b=gg_fc_b,
                inv_delta_C=inv_delta_C, P_hat=P_hat)


def prepare_params(params, num_fiducial):
    """One-time host-side prep: fold BN, reshape/cast conv weights, permute the
    fc2 / gg fc so control points come out coordinate-major, pre-transpose the
    TPS constant matrices."""
    Fd = num_fiducial
    conv = []
    for blk in params["conv"]:
        scale = blk["gamma"] / jnp.sqrt(blk["rvar"] + 1e-5)      # eval-mode BN
        shift = blk["beta"] - blk["rmean"] * scale
        cin, cout = blk["w"].shape[2], blk["w"].shape[3]
        w = (blk["w"] * scale[None, None, None, :]).reshape(9 * cin, cout)
        conv.append((w.astype(CONV_MM_DTYPE), shift.reshape(1, cout).astype(jnp.float32)))

    # coord-major reorder: output column i = original column perm[i]
    perm = np.arange(2 * Fd).reshape(Fd, 2).T.reshape(-1)        # [0,2,..,1,3,..]
    perm6 = np.arange(6).reshape(3, 2).T.reshape(-1)             # [0,2,4,1,3,5]
    fc2_w = params["fc2_w"][:, perm]
    fc2_b = params["fc2_b"][perm]
    gg_w = params["gg_fc_w"][perm, :][:, perm6]                  # rows follow fc2 perm
    gg_b = params["gg_fc_b"][perm6]

    return dict(
        conv=conv,
        fc1_w=params["fc1_w"], fc1_b=params["fc1_b"].reshape(1, -1),
        fc2_w=fc2_w, fc2_b=fc2_b.reshape(1, -1),
        gg_w=gg_w, gg_b=gg_b.reshape(1, -1),
        inv_delta_C_T=params["inv_delta_C"].T,                   # (F+3, F+3)
        P_hat_T=params["P_hat"].T,                               # (F+3, H*W)
    )


# ----------------------------------------------------------------------------
# Full TPS forward (NCHW in, NCHW out, like the torch module)
# ----------------------------------------------------------------------------
def tps_forward(prep, x_nchw, num_fiducial):
    B, C, H, W = x_nchw.shape
    x = x_nchw.astype(jnp.float32)
    x_nhwc = jnp.transpose(x, (0, 2, 3, 1))                      # conv backbone in NHWC
    grid_T = loc_gridgen(x_nhwc, prep, num_fiducial)             # (B, 2, H*W), lane-dense
    out = grid_sample_border_T(x.reshape(B, C, H * W), grid_T, H, W)  # (B, C, H*W)
    return out.reshape(B, C, H, W)                               # already NCHW


if __name__ == "__main__":
    B, C, H, W = 2, 4, 16, 16
    F_fid = 20
    key = jax.random.PRNGKey(0)
    kx, kp = jax.random.split(key)
    x = jax.random.normal(kx, (B, C, H, W), dtype=jnp.float32)
    raw = init_params(kp, in_channels=C, num_fiducial=F_fid, I_r_size=(H, W))
    prep = prepare_params(raw, F_fid)

    out = tps_forward(prep, x, F_fid)
    out = jax.block_until_ready(out)
    assert out.shape == (B, C, H, W), out.shape
    assert bool(jnp.all(jnp.isfinite(out)))
    print("KERNEL_OK")
</pallas_src>

<mosaic_0001>
module attributes {stable_mosaic.version = 11 : i64} {
  func.func @_loc_gridgen_kernel(%arg0: memref<2x16x16x4xf32, #tpu.memory_space<vmem>>, %arg1: memref<36x16xbf16, #tpu.memory_space<vmem>>, %arg2: memref<1x16xf32, #tpu.memory_space<vmem>>, %arg3: memref<144x32xbf16, #tpu.memory_space<vmem>>, %arg4: memref<1x32xf32, #tpu.memory_space<vmem>>, %arg5: memref<288x64xbf16, #tpu.memory_space<vmem>>, %arg6: memref<1x64xf32, #tpu.memory_space<vmem>>, %arg7: memref<576x128xbf16, #tpu.memory_space<vmem>>, %arg8: memref<1x128xf32, #tpu.memory_space<vmem>>, %arg9: memref<128x64xf32, #tpu.memory_space<vmem>>, %arg10: memref<1x64xf32, #tpu.memory_space<vmem>>, %arg11: memref<64x40xf32, #tpu.memory_space<vmem>>, %arg12: memref<1x40xf32, #tpu.memory_space<vmem>>, %arg13: memref<40x6xf32, #tpu.memory_space<vmem>>, %arg14: memref<1x6xf32, #tpu.memory_space<vmem>>, %arg15: memref<23x23xf32, #tpu.memory_space<vmem>>, %arg16: memref<23x256xf32, #tpu.memory_space<vmem>>, %arg17: memref<2x2x256xf32, #tpu.memory_space<vmem>>) attributes {dimension_semantics = [], scalar_prefetch = 0 : i64, scratch_operands = 0 : i64, tpu.core_type = #tpu.core_type<tc>} {
    %c0 = arith.constant 0 : index
    %c0_0 = arith.constant 0 : index
    %c0_1 = arith.constant 0 : index
    %c0_2 = arith.constant 0 : index
    %0 = vector.load %arg0[%c0, %c0_0, %c0_1, %c0_2] : memref<2x16x16x4xf32, #tpu.memory_space<vmem>>, vector<2x16x16x4xf32>
    %cst = arith.constant 0.000000e+00 : f32
    %1 = vector.broadcast %cst : f32 to vector<2x16x1x4xf32>
    %2 = tpu.concatenate %1, %0, %1 in 2 : vector<2x16x1x4xf32>, vector<2x16x16x4xf32>, vector<2x16x1x4xf32> -> vector<2x16x18x4xf32>
    %cst_3 = arith.constant 0.000000e+00 : f32
    %3 = vector.broadcast %cst_3 : f32 to vector<2x1x18x4xf32>
    %4 = tpu.concatenate %3, %2, %3 in 1 : vector<2x1x18x4xf32>, vector<2x16x18x4xf32>, vector<2x1x18x4xf32> -> vector<2x18x18x4xf32>
    %5 = vector.extract_strided_slice %4 {offsets = [0, 0, 0, 0], sizes = [2, 16, 16, 4], strides = [1, 1, 1, 1]} : vector<2x18x18x4xf32> to vector<2x16x16x4xf32>
    %6 = vector.shape_cast %5 : vector<2x16x16x4xf32> to vector<512x4xf32>
    %7 = vector.extract_strided_slice %4 {offsets = [0, 0, 1, 0], sizes = [2, 16, 16, 4], strides = [1, 1, 1, 1]} : vector<2x18x18x4xf32> to vector<2x16x16x4xf32>
    %8 = vector.shape_cast %7 : vector<2x16x16x4xf32> to vector<512x4xf32>
    %9 = vector.extract_strided_slice %4 {offsets = [0, 0, 2, 0], sizes = [2, 16, 16, 4], strides = [1, 1, 1, 1]} : vector<2x18x18x4xf32> to vector<2x16x16x4xf32>
    %10 = vector.shape_cast %9 : vector<2x16x16x4xf32> to vector<512x4xf32>
    %11 = vector.extract_strided_slice %4 {offsets = [0, 1, 0, 0], sizes = [2, 16, 16, 4], strides = [1, 1, 1, 1]} : vector<2x18x18x4xf32> to vector<2x16x16x4xf32>
    %12 = vector.shape_cast %11 : vector<2x16x16x4xf32> to vector<512x4xf32>
    %13 = vector.extract_strided_slice %4 {offsets = [0, 1, 1, 0], sizes = [2, 16, 16, 4], strides = [1, 1, 1, 1]} : vector<2x18x18x4xf32> to vector<2x16x16x4xf32>
    %14 = vector.shape_cast %13 : vector<2x16x16x4xf32> to vector<512x4xf32>
    %15 = vector.extract_strided_slice %4 {offsets = [0, 1, 2, 0], sizes = [2, 16, 16, 4], strides = [1, 1, 1, 1]} : vector<2x18x18x4xf32> to vector<2x16x16x4xf32>
    %16 = vector.shape_cast %15 : vector<2x16x16x4xf32> to vector<512x4xf32>
    %17 = vector.extract_strided_slice %4 {offsets = [0, 2, 0, 0], sizes = [2, 16, 16, 4], strides = [1, 1, 1, 1]} : vector<2x18x18x4xf32> to vector<2x16x16x4xf32>
    %18 = vector.shape_cast %17 : vector<2x16x16x4xf32> to vector<512x4xf32>
    %19 = vector.extract_strided_slice %4 {offsets = [0, 2, 1, 0], sizes = [2, 16, 16, 4], strides = [1, 1, 1, 1]} : vector<2x18x18x4xf32> to vector<2x16x16x4xf32>
    %20 = vector.shape_cast %19 : vector<2x16x16x4xf32> to vector<512x4xf32>
    %21 = vector.extract_strided_slice %4 {offsets = [0, 2, 2, 0], sizes = [2, 16, 16, 4], strides = [1, 1, 1, 1]} : vector<2x18x18x4xf32> to vector<2x16x16x4xf32>
    %22 = vector.shape_cast %21 : vector<2x16x16x4xf32> to vector<512x4xf32>
    %23 = tpu.concatenate %6, %8, %10, %12, %14, %16, %18, %20, %22 in 1 : vector<512x4xf32>, vector<512x4xf32>, vector<512x4xf32>, vector<512x4xf32>, vector<512x4xf32>, vector<512x4xf32>, vector<512x4xf32>, vector<512x4xf32>, vector<512x4xf32> -> vector<512x36xf32>
    %24 = arith.truncf %23 : vector<512x36xf32> to vector<512x36xbf16>
    %c0_4 = arith.constant 0 : index
    %c0_5 = arith.constant 0 : index
    %25 = vector.load %arg1[%c0_4, %c0_5] : memref<36x16xbf16, #tpu.memory_space<vmem>>, vector<36x16xbf16>
    %cst_6 = arith.constant dense<0.000000e+00> : vector<512x16xf32>
    %26 = tpu.matmul %24, %25, %cst_6 {dimension_numbers = #tpu.dot_dimension_numbers<[1], [0], [0], [1], [0, 0, 1, 1], [], []>} : vector<512x36xbf16>, vector<36x16xbf16>, vector<512x16xf32> -> vector<512x16xf32>
    %c0_7 = arith.constant 0 : index
    %c0_8 = arith.constant 0 : index
    %27 = vector.load %arg2[%c0_7, %c0_8] : memref<1x16xf32, #tpu.memory_space<vmem>>, vector<1x16xf32>
    %28 = vector.broadcast %27 : vector<1x16xf32> to vector<512x16xf32>
    %29 = arith.addf %26, %28 : vector<512x16xf32>
    %cst_9 = arith.constant 0.000000e+00 : f32
    %30 = vector.broadcast %cst_9 : f32 to vector<512x16xf32>
    %31 = arith.maximumf %29, %30 : vector<512x16xf32>
    %32 = vector.shape_cast %31 : vector<512x16xf32> to vector<16x32x16xf32>
    %33 = vector.extract_strided_slice %32 {offsets = [0, 0, 0], sizes = [16, 16, 16], strides = [1, 1, 1]} : vector<16x32x16xf32> to vector<16x16x16xf32>
    %34 = vector.extract_strided_slice %32 {offsets = [0, 16, 0], sizes = [16, 16, 16], strides = [1, 1, 1]} : vector<16x32x16xf32> to vector<16x16x16xf32>
    %35 = arith.maximumf %33, %34 : vector<16x16x16xf32>
    %36 = vector.shape_cast %35 : vector<16x16x16xf32> to vector<128x2x16xf32>
    %cst_10 = arith.constant dense<0xFF800000> : vector<128x16xf32>
    %37 = vector.multi_reduction <maximumf>, %36, %cst_10 [1] : vector<128x2x16xf32> to vector<128x16xf32>
    %38 = vector.shape_cast %37 : vector<128x16xf32> to vector<2x8x8x16xf32>
    %cst_11 = arith.constant 0.000000e+00 : f32
    %39 = vector.broadcast %cst_11 : f32 to vector<2x8x1x16xf32>
    %40 = tpu.concatenate %39, %38, %39 in 2 : vector<2x8x1x16xf32>, vector<2x8x8x16xf32>, vector<2x8x1x16xf32> -> vector<2x8x10x16xf32>
    %cst_12 = arith.constant 0.000000e+00 : f32
    %41 = vector.broadcast %cst_12 : f32 to vector<2x1x10x16xf32>
    %42 = tpu.concatenate %41, %40, %41 in 1 : vector<2x1x10x16xf32>, vector<2x8x10x16xf32>, vector<2x1x10x16xf32> -> vector<2x10x10x16xf32>
    %43 = vector.extract_strided_slice %42 {offsets = [0, 0, 0, 0], sizes = [2, 8, 8, 16], strides = [1, 1, 1, 1]} : vector<2x10x10x16xf32> to vector<2x8x8x16xf32>
    %44 = vector.shape_cast %43 : vector<2x8x8x16xf32> to vector<128x16xf32>
    %45 = vector.extract_strided_slice %42 {offsets = [0, 0, 1, 0], sizes = [2, 8, 8, 16], strides = [1, 1, 1, 1]} : vector<2x10x10x16xf32> to vector<2x8x8x16xf32>
    %46 = vector.shape_cast %45 : vector<2x8x8x16xf32> to vector<128x16xf32>
    %47 = vector.extract_strided_slice %42 {offsets = [0, 0, 2, 0], sizes = [2, 8, 8, 16], strides = [1, 1, 1, 1]} : vector<2x10x10x16xf32> to vector<2x8x8x16xf32>
    %48 = vector.shape_cast %47 : vector<2x8x8x16xf32> to vector<128x16xf32>
    %49 = vector.extract_strided_slice %42 {offsets = [0, 1, 0, 0], sizes = [2, 8, 8, 16], strides = [1, 1, 1, 1]} : vector<2x10x10x16xf32> to vector<2x8x8x16xf32>
    %50 = vector.shape_cast %49 : vector<2x8x8x16xf32> to vector<128x16xf32>
    %51 = vector.extract_strided_slice %42 {offsets = [0, 1, 1, 0], sizes = [2, 8, 8, 16], strides = [1, 1, 1, 1]} : vector<2x10x10x16xf32> to vector<2x8x8x16xf32>
    %52 = vector.shape_cast %51 : vector<2x8x8x16xf32> to vector<128x16xf32>
    %53 = vector.extract_strided_slice %42 {offsets = [0, 1, 2, 0], sizes = [2, 8, 8, 16], strides = [1, 1, 1, 1]} : vector<2x10x10x16xf32> to vector<2x8x8x16xf32>
    %54 = vector.shape_cast %53 : vector<2x8x8x16xf32> to vector<128x16xf32>
    %55 = vector.extract_strided_slice %42 {offsets = [0, 2, 0, 0], sizes = [2, 8, 8, 16], strides = [1, 1, 1, 1]} : vector<2x10x10x16xf32> to vector<2x8x8x16xf32>
    %56 = vector.shape_cast %55 : vector<2x8x8x16xf32> to vector<128x16xf32>
    %57 = vector.extract_strided_slice %42 {offsets = [0, 2, 1, 0], sizes = [2, 8, 8, 16], strides = [1, 1, 1, 1]} : vector<2x10x10x16xf32> to vector<2x8x8x16xf32>
    %58 = vector.shape_cast %57 : vector<2x8x8x16xf32> to vector<128x16xf32>
    %59 = vector.extract_strided_slice %42 {offsets = [0, 2, 2, 0], sizes = [2, 8, 8, 16], strides = [1, 1, 1, 1]} : vector<2x10x10x16xf32> to vector<2x8x8x16xf32>
    %60 = vector.shape_cast %59 : vector<2x8x8x16xf32> to vector<128x16xf32>
    %61 = tpu.concatenate %44, %46, %48, %50, %52, %54, %56, %58, %60 in 1 : vector<128x16xf32>, vector<128x16xf32>, vector<128x16xf32>, vector<128x16xf32>, vector<128x16xf32>, vector<128x16xf32>, vector<128x16xf32>, vector<128x16xf32>, vector<128x16xf32> -> vector<128x144xf32>
    %62 = arith.truncf %61 : vector<128x144xf32> to vector<128x144xbf16>
    %c0_13 = arith.constant 0 : index
    %c0_14 = arith.constant 0 : index
    %63 = vector.load %arg3[%c0_13, %c0_14] : memref<144x32xbf16, #tpu.memory_space<vmem>>, vector<144x32xbf16>
    %cst_15 = arith.constant dense<0.000000e+00> : vector<128x32xf32>
    %64 = tpu.matmul %62, %63, %cst_15 {dimension_numbers = #tpu.dot_dimension_numbers<[1], [0], [0], [1], [0, 0, 1, 1], [], []>} : vector<128x144xbf16>, vector<144x32xbf16>, vector<128x32xf32> -> vector<128x32xf32>
    %c0_16 = arith.constant 0 : index
    %c0_17 = arith.constant 0 : index
    %65 = vector.load %arg4[%c0_16, %c0_17] : memref<1x32xf32, #tpu.memory_space<vmem>>, vector<1x32xf32>
    %66 = vector.broadcast %65 : vector<1x32xf32> to vector<128x32xf32>
    %67 = arith.addf %64, %66 : vector<128x32xf32>
    %cst_18 = arith.constant 0.000000e+00 : f32
    %68 = vector.broadcast %cst_18 : f32 to vector<128x32xf32>
    %69 = arith.maximumf %67, %68 : vector<128x32xf32>
    %70 = vector.shape_cast %69 : vector<128x32xf32> to vector<8x16x32xf32>
    %71 = vector.extract_strided_slice %70 {offsets = [0, 0, 0], sizes = [8, 8, 32], strides = [1, 1, 1]} : vector<8x16x32xf32> to vector<8x8x32xf32>
    %72 = vector.extract_strided_slice %70 {offsets = [0, 8, 0], sizes = [8, 8, 32], strides = [1, 1, 1]} : vector<8x16x32xf32> to vector<8x8x32xf32>
    %73 = arith.maximumf %71, %72 : vector<8x8x32xf32>
    %74 = vector.shape_cast %73 : vector<8x8x32xf32> to vector<32x2x32xf32>
    %cst_19 = arith.constant dense<0xFF800000> : vector<32x32xf32>
    %75 = vector.multi_reduction <maximumf>, %74, %cst_19 [1] : vector<32x2x32xf32> to vector<32x32xf32>
    %76 = vector.shape_cast %75 : vector<32x32xf32> to vector<2x4x4x32xf32>
    %cst_20 = arith.constant 0.000000e+00 : f32
    %77 = vector.broadcast %cst_20 : f32 to vector<2x4x1x32xf32>
    %78 = tpu.concatenate %77, %76, %77 in 2 : vector<2x4x1x32xf32>, vector<2x4x4x32xf32>, vector<2x4x1x32xf32> -> vector<2x4x6x32xf32>
    %cst_21 = arith.constant 0.000000e+00 : f32
    %79 = vector.broadcast %cst_21 : f32 to vector<2x1x6x32xf32>
    %80 = tpu.concatenate %79, %78, %79 in 1 : vector<2x1x6x32xf32>, vector<2x4x6x32xf32>, vector<2x1x6x32xf32> -> vector<2x6x6x32xf32>
    %81 = vector.extract_strided_slice %80 {offsets = [0, 0, 0, 0], sizes = [2, 4, 4, 32], strides = [1, 1, 1, 1]} : vector<2x6x6x32xf32> to vector<2x4x4x32xf32>
    %82 = vector.shape_cast %81 : vector<2x4x4x32xf32> to vector<32x32xf32>
    %83 = vector.extract_strided_slice %80 {offsets = [0, 0, 1, 0], sizes = [2, 4, 4, 32], strides = [1, 1, 1, 1]} : vector<2x6x6x32xf32> to vector<2x4x4x32xf32>
    %84 = vector.shape_cast %83 : vector<2x4x4x32xf32> to vector<32x32xf32>
    %85 = vector.extract_strided_slice %80 {offsets = [0, 0, 2, 0], sizes = [2, 4, 4, 32], strides = [1, 1, 1, 1]} : vector<2x6x6x32xf32> to vector<2x4x4x32xf32>
    %86 = vector.shape_cast %85 : vector<2x4x4x32xf32> to vector<32x32xf32>
    %87 = vector.extract_strided_slice %80 {offsets = [0, 1, 0, 0], sizes = [2, 4, 4, 32], strides = [1, 1, 1, 1]} : vector<2x6x6x32xf32> to vector<2x4x4x32xf32>
    %88 = vector.shape_cast %87 : vector<2x4x4x32xf32> to vector<32x32xf32>
    %89 = vector.extract_strided_slice %80 {offsets = [0, 1, 1, 0], sizes = [2, 4, 4, 32], strides = [1, 1, 1, 1]} : vector<2x6x6x32xf32> to vector<2x4x4x32xf32>
    %90 = vector.shape_cast %89 : vector<2x4x4x32xf32> to vector<32x32xf32>
    %91 = vector.extract_strided_slice %80 {offsets = [0, 1, 2, 0], sizes = [2, 4, 4, 32], strides = [1, 1, 1, 1]} : vector<2x6x6x32xf32> to vector<2x4x4x32xf32>
    %92 = vector.shape_cast %91 : vector<2x4x4x32xf32> to vector<32x32xf32>
    %93 = vector.extract_strided_slice %80 {offsets = [0, 2, 0, 0], sizes = [2, 4, 4, 32], strides = [1, 1, 1, 1]} : vector<2x6x6x32xf32> to vector<2x4x4x32xf32>
    %94 = vector.shape_cast %93 : vector<2x4x4x32xf32> to vector<32x32xf32>
    %95 = vector.extract_strided_slice %80 {offsets = [0, 2, 1, 0], sizes = [2, 4, 4, 32], strides = [1, 1, 1, 1]} : vector<2x6x6x32xf32> to vector<2x4x4x32xf32>
    %96 = vector.shape_cast %95 : vector<2x4x4x32xf32> to vector<32x32xf32>
    %97 = vector.extract_strided_slice %80 {offsets = [0, 2, 2, 0], sizes = [2, 4, 4, 32], strides = [1, 1, 1, 1]} : vector<2x6x6x32xf32> to vector<2x4x4x32xf32>
    %98 = vector.shape_cast %97 : vector<2x4x4x32xf32> to vector<32x32xf32>
    %99 = tpu.concatenate %82, %84, %86, %88, %90, %92, %94, %96, %98 in 1 : vector<32x32xf32>, vector<32x32xf32>, vector<32x32xf32>, vector<32x32xf32>, vector<32x32xf32>, vector<32x32xf32>, vector<32x32xf32>, vector<32x32xf32>, vector<32x32xf32> -> vector<32x288xf32>
    %100 = arith.truncf %99 : vector<32x288xf32> to vector<32x288xbf16>
    %c0_22 = arith.constant 0 : index
    %c0_23 = arith.constant 0 : index
    %101 = vector.load %arg5[%c0_22, %c0_23] : memref<288x64xbf16, #tpu.memory_space<vmem>>, vector<288x64xbf16>
    %cst_24 = arith.constant dense<0.000000e+00> : vector<32x64xf32>
    %102 = tpu.matmul %100, %101, %cst_24 {dimension_numbers = #tpu.dot_dimension_numbers<[1], [0], [0], [1], [0, 0, 1, 1], [], []>} : vector<32x288xbf16>, vector<288x64xbf16>, vector<32x64xf32> -> vector<32x64xf32>
    %c0_25 = arith.constant 0 : index
    %c0_26 = arith.constant 0 : index
    %103 = vector.load %arg6[%c0_25, %c0_26] : memref<1x64xf32, #tpu.memory_space<vmem>>, vector<1x64xf32>
    %104 = vector.broadcast %103 : vector<1x64xf32> to vector<32x64xf32>
    %105 = arith.addf %102, %104 : vector<32x64xf32>
    %cst_27 = arith.constant 0.000000e+00 : f32
    %106 = vector.broadcast %cst_27 : f32 to vector<32x64xf32>
    %107 = arith.maximumf %105, %106 : vector<32x64xf32>
    %108 = vector.shape_cast %107 : vector<32x64xf32> to vector<4x8x64xf32>
    %109 = vector.extract_strided_slice %108 {offsets = [0, 0, 0], sizes = [4, 4, 64], strides = [1, 1, 1]} : vector<4x8x64xf32> to vector<4x4x64xf32>
    %110 = vector.extract_strided_slice %108 {offsets = [0, 4, 0], sizes = [4, 4, 64], strides = [1, 1, 1]} : vector<4x8x64xf32> to vector<4x4x64xf32>
    %111 = arith.maximumf %109, %110 : vector<4x4x64xf32>
    %112 = vector.shape_cast %111 : vector<4x4x64xf32> to vector<8x2x64xf32>
    %cst_28 = arith.constant dense<0xFF800000> : vector<8x64xf32>
    %113 = vector.multi_reduction <maximumf>, %112, %cst_28 [1] : vector<8x2x64xf32> to vector<8x64xf32>
    %114 = vector.shape_cast %113 : vector<8x64xf32> to vector<2x2x2x64xf32>
    %cst_29 = arith.constant 0.000000e+00 : f32
    %115 = vector.broadcast %cst_29 : f32 to vector<2x2x1x64xf32>
    %116 = tpu.concatenate %115, %114, %115 in 2 : vector<2x2x1x64xf32>, vector<2x2x2x64xf32>, vector<2x2x1x64xf32> -> vector<2x2x4x64xf32>
    %cst_30 = arith.constant 0.000000e+00 : f32
    %117 = vector.broadcast %cst_30 : f32 to vector<2x1x4x64xf32>
    %118 = tpu.concatenate %117, %116, %117 in 1 : vector<2x1x4x64xf32>, vector<2x2x4x64xf32>, vector<2x1x4x64xf32> -> vector<2x4x4x64xf32>
    %119 = vector.extract_strided_slice %118 {offsets = [0, 0, 0, 0], sizes = [2, 2, 2, 64], strides = [1, 1, 1, 1]} : vector<2x4x4x64xf32> to vector<2x2x2x64xf32>
    %120 = vector.shape_cast %119 : vector<2x2x2x64xf32> to vector<8x64xf32>
    %121 = vector.extract_strided_slice %118 {offsets = [0, 0, 1, 0], sizes = [2, 2, 2, 64], strides = [1, 1, 1, 1]} : vector<2x4x4x64xf32> to vector<2x2x2x64xf32>
    %122 = vector.shape_cast %121 : vector<2x2x2x64xf32> to vector<8x64xf32>
    %123 = vector.extract_strided_slice %118 {offsets = [0, 0, 2, 0], sizes = [2, 2, 2, 64], strides = [1, 1, 1, 1]} : vector<2x4x4x64xf32> to vector<2x2x2x64xf32>
    %124 = vector.shape_cast %123 : vector<2x2x2x64xf32> to vector<8x64xf32>
    %125 = vector.extract_strided_slice %118 {offsets = [0, 1, 0, 0], sizes = [2, 2, 2, 64], strides = [1, 1, 1, 1]} : vector<2x4x4x64xf32> to vector<2x2x2x64xf32>
    %126 = vector.shape_cast %125 : vector<2x2x2x64xf32> to vector<8x64xf32>
    %127 = vector.extract_strided_slice %118 {offsets = [0, 1, 1, 0], sizes = [2, 2, 2, 64], strides = [1, 1, 1, 1]} : vector<2x4x4x64xf32> to vector<2x2x2x64xf32>
    %128 = vector.shape_cast %127 : vector<2x2x2x64xf32> to vector<8x64xf32>
    %129 = vector.extract_strided_slice %118 {offsets = [0, 1, 2, 0], sizes = [2, 2, 2, 64], strides = [1, 1, 1, 1]} : vector<2x4x4x64xf32> to vector<2x2x2x64xf32>
    %130 = vector.shape_cast %129 : vector<2x2x2x64xf32> to vector<8x64xf32>
    %131 = vector.extract_strided_slice %118 {offsets = [0, 2, 0, 0], sizes = [2, 2, 2, 64], strides = [1, 1, 1, 1]} : vector<2x4x4x64xf32> to vector<2x2x2x64xf32>
    %132 = vector.shape_cast %131 : vector<2x2x2x64xf32> to vector<8x64xf32>
    %133 = vector.extract_strided_slice %118 {offsets = [0, 2, 1, 0], sizes = [2, 2, 2, 64], strides = [1, 1, 1, 1]} : vector<2x4x4x64xf32> to vector<2x2x2x64xf32>
    %134 = vector.shape_cast %133 : vector<2x2x2x64xf32> to vector<8x64xf32>
    %135 = vector.extract_strided_slice %118 {offsets = [0, 2, 2, 0], sizes = [2, 2, 2, 64], strides = [1, 1, 1, 1]} : vector<2x4x4x64xf32> to vector<2x2x2x64xf32>
    %136 = vector.shape_cast %135 : vector<2x2x2x64xf32> to vector<8x64xf32>
    %137 = tpu.concatenate %120, %122, %124, %126, %128, %130, %132, %134, %136 in 1 : vector<8x64xf32>, vector<8x64xf32>, vector<8x64xf32>, vector<8x64xf32>, vector<8x64xf32>, vector<8x64xf32>, vector<8x64xf32>, vector<8x64xf32>, vector<8x64xf32> -> vector<8x576xf32>
    %138 = arith.truncf %137 : vector<8x576xf32> to vector<8x576xbf16>
    %c0_31 = arith.constant 0 : index
    %c0_32 = arith.constant 0 : index
    %139 = vector.load %arg7[%c0_31, %c0_32] : memref<576x128xbf16, #tpu.memory_space<vmem>>, vector<576x128xbf16>
    %cst_33 = arith.constant dense<0.000000e+00> : vector<8x128xf32>
    %140 = tpu.matmul %138, %139, %cst_33 {dimension_numbers = #tpu.dot_dimension_numbers<[1], [0], [0], [1], [0, 0, 1, 1], [], []>} : vector<8x576xbf16>, vector<576x128xbf16>, vector<8x128xf32> -> vector<8x128xf32>
    %c0_34 = arith.constant 0 : index
    %c0_35 = arith.constant 0 : index
    %141 = vector.load %arg8[%c0_34, %c0_35] : memref<1x128xf32, #tpu.memory_space<vmem>>, vector<1x128xf32>
    %142 = vector.broadcast %141 : vector<1x128xf32> to vector<8x128xf32>
    %143 = arith.addf %140, %142 : vector<8x128xf32>
    %cst_36 = arith.constant 0.000000e+00 : f32
    %144 = vector.broadcast %cst_36 : f32 to vector<8x128xf32>
    %145 = arith.maximumf %143, %144 : vector<8x128xf32>
    %146 = vector.shape_cast %145 : vector<8x128xf32> to vector<2x4x128xf32>
    %cst_37 = arith.constant dense<0.000000e+00> : vector<2x128xf32>
    %147 = vector.multi_reduction <add>, %146, %cst_37 [1] : vector<2x4x128xf32> to vector<2x128xf32>
    %cst_38 = arith.constant 4.000000e+00 : f32
    %148 = vector.broadcast %cst_38 : f32 to vector<2x128xf32>
    %149 = arith.divf %147, %148 : vector<2x128xf32>
    %c0_39 = arith.constant 0 : index
    %c0_40 = arith.constant 0 : index
    %150 = vector.load %arg9[%c0_39, %c0_40] : memref<128x64xf32, #tpu.memory_space<vmem>>, vector<128x64xf32>
    %cst_41 = arith.constant dense<0.000000e+00> : vector<2x64xf32>
    %151 = tpu.matmul %149, %150, %cst_41 {dimension_numbers = #tpu.dot_dimension_numbers<[1], [0], [0], [1], [0, 0, 1, 1], [], []>} : vector<2x128xf32>, vector<128x64xf32>, vector<2x64xf32> -> vector<2x64xf32>
    %c0_42 = arith.constant 0 : index
    %c0_43 = arith.constant 0 : index
    %152 = vector.load %arg10[%c0_42, %c0_43] : memref<1x64xf32, #tpu.memory_space<vmem>>, vector<1x64xf32>
    %153 = vector.broadcast %152 : vector<1x64xf32> to vector<2x64xf32>
    %154 = arith.addf %151, %153 : vector<2x64xf32>
    %cst_44 = arith.constant 0.000000e+00 : f32
    %155 = vector.broadcast %cst_44 : f32 to vector<2x64xf32>
    %156 = arith.maximumf %154, %155 : vector<2x64xf32>
    %c0_45 = arith.constant 0 : index
    %c0_46 = arith.constant 0 : index
    %157 = vector.load %arg11[%c0_45, %c0_46] : memref<64x40xf32, #tpu.memory_space<vmem>>, vector<64x40xf32>
    %cst_47 = arith.constant dense<0.000000e+00> : vector<2x40xf32>
    %158 = tpu.matmul %156, %157, %cst_47 {dimension_numbers = #tpu.dot_dimension_numbers<[1], [0], [0], [1], [0, 0, 1, 1], [], []>} : vector<2x64xf32>, vector<64x40xf32>, vector<2x40xf32> -> vector<2x40xf32>
    %c0_48 = arith.constant 0 : index
    %c0_49 = arith.constant 0 : index
    %159 = vector.load %arg12[%c0_48, %c0_49] : memref<1x40xf32, #tpu.memory_space<vmem>>, vector<1x40xf32>
    %160 = vector.broadcast %159 : vector<1x40xf32> to vector<2x40xf32>
    %161 = arith.addf %158, %160 : vector<2x40xf32>
    %c0_50 = arith.constant 0 : index
    %c0_51 = arith.constant 0 : index
    %162 = vector.load %arg13[%c0_50, %c0_51] : memref<40x6xf32, #tpu.memory_space<vmem>>, vector<40x6xf32>
    %cst_52 = arith.constant dense<0.000000e+00> : vector<2x6xf32>
    %163 = tpu.matmul %161, %162, %cst_52 {dimension_numbers = #tpu.dot_dimension_numbers<[1], [0], [0], [1], [0, 0, 1, 1], [], []>} : vector<2x40xf32>, vector<40x6xf32>, vector<2x6xf32> -> vector<2x6xf32>
    %c0_53 = arith.constant 0 : index
    %c0_54 = arith.constant 0 : index
    %164 = vector.load %arg14[%c0_53, %c0_54] : memref<1x6xf32, #tpu.memory_space<vmem>>, vector<1x6xf32>
    %165 = vector.broadcast %164 : vector<1x6xf32> to vector<2x6xf32>
    %166 = arith.addf %163, %165 : vector<2x6xf32>
    %167 = vector.extract_strided_slice %161 {offsets = [0, 0], sizes = [2, 20], strides = [1, 1]} : vector<2x40xf32> to vector<2x20xf32>
    %168 = vector.extract_strided_slice %166 {offsets = [0, 0], sizes = [2, 3], strides = [1, 1]} : vector<2x6xf32> to vector<2x3xf32>
    %169 = tpu.concatenate %167, %168 in 1 : vector<2x20xf32>, vector<2x3xf32> -> vector<2x23xf32>
    %170 = vector.extract_strided_slice %161 {offsets = [0, 20], sizes = [2, 20], strides = [1, 1]} : vector<2x40xf32> to vector<2x20xf32>
    %171 = vector.extract_strided_slice %166 {offsets = [0, 3], sizes = [2, 3], strides = [1, 1]} : vector<2x6xf32> to vector<2x3xf32>
    %172 = tpu.concatenate %170, %171 in 1 : vector<2x20xf32>, vector<2x3xf32> -> vector<2x23xf32>
    %c0_55 = arith.constant 0 : index
    %c0_56 = arith.constant 0 : index
    %173 = vector.load %arg15[%c0_55, %c0_56] : memref<23x23xf32, #tpu.memory_space<vmem>>, vector<23x23xf32>
    %cst_57 = arith.constant dense<0.000000e+00> : vector<2x23xf32>
    %174 = tpu.matmul %169, %173, %cst_57 {dimension_numbers = #tpu.dot_dimension_numbers<[1], [0], [0], [1], [0, 0, 1, 1], [], []>} : vector<2x23xf32>, vector<23x23xf32>, vector<2x23xf32> -> vector<2x23xf32>
    %c0_58 = arith.constant 0 : index
    %c0_59 = arith.constant 0 : index
    %175 = vector.load %arg16[%c0_58, %c0_59] : memref<23x256xf32, #tpu.memory_space<vmem>>, vector<23x256xf32>
    %cst_60 = arith.constant dense<0.000000e+00> : vector<2x256xf32>
    %176 = tpu.matmul %174, %175, %cst_60 {dimension_numbers = #tpu.dot_dimension_numbers<[1], [0], [0], [1], [0, 0, 1, 1], [], []>} : vector<2x23xf32>, vector<23x256xf32>, vector<2x256xf32> -> vector<2x256xf32>
    %c0_61 = arith.constant 0 : index
    %c0_62 = arith.constant 0 : index
    %177 = vector.load %arg15[%c0_61, %c0_62] : memref<23x23xf32, #tpu.memory_space<vmem>>, vector<23x23xf32>
    %cst_63 = arith.constant dense<0.000000e+00> : vector<2x23xf32>
    %178 = tpu.matmul %172, %177, %cst_63 {dimension_numbers = #tpu.dot_dimension_numbers<[1], [0], [0], [1], [0, 0, 1, 1], [], []>} : vector<2x23xf32>, vector<23x23xf32>, vector<2x23xf32> -> vector<2x23xf32>
    %c0_64 = arith.constant 0 : index
    %c0_65 = arith.constant 0 : index
    %179 = vector.load %arg16[%c0_64, %c0_65] : memref<23x256xf32, #tpu.memory_space<vmem>>, vector<23x256xf32>
    %cst_66 = arith.constant dense<0.000000e+00> : vector<2x256xf32>
    %180 = tpu.matmul %178, %179, %cst_66 {dimension_numbers = #tpu.dot_dimension_numbers<[1], [0], [0], [1], [0, 0, 1, 1], [], []>} : vector<2x23xf32>, vector<23x256xf32>, vector<2x256xf32> -> vector<2x256xf32>
    %c0_67 = arith.constant 0 : index
    %c0_68 = arith.constant 0 : index
    %c0_69 = arith.constant 0 : index
    %181 = vector.load %arg17[%c0_67, %c0_68, %c0_69] : memref<2x2x256xf32, #tpu.memory_space<vmem>>, vector<2x1x256xf32>
    %182 = vector.shape_cast %181 : vector<2x1x256xf32> to vector<2x256xf32>
    %183 = vector.shape_cast %176 : vector<2x256xf32> to vector<2x1x256xf32>
    tpu.vector_store %arg17[%c0_67, %c0_68, %c0_69], %183 {strides = array<i32>} : memref<2x2x256xf32, #tpu.memory_space<vmem>>, vector<2x1x256xf32>,
    %c0_70 = arith.constant 0 : index
    %c1 = arith.constant 1 : index
    %c0_71 = arith.constant 0 : index
    %184 = vector.load %arg17[%c0_70, %c1, %c0_71] : memref<2x2x256xf32, #tpu.memory_space<vmem>>, vector<2x1x256xf32>
    %185 = vector.shape_cast %184 : vector<2x1x256xf32> to vector<2x256xf32>
    %186 = vector.shape_cast %180 : vector<2x256xf32> to vector<2x1x256xf32>
    tpu.vector_store %arg17[%c0_70, %c1, %c0_71], %186 {strides = array<i32>} : memref<2x2x256xf32, #tpu.memory_space<vmem>>, vector<2x1x256xf32>,
    return
  }
}

</mosaic_0001>

<bundles_post_ra>
// kernel: tpu_custom_call.1
= control target key start
LH: loop header
LB: loop body
LE: loop exit
PB: predicated region body
PF: predicated region fallthrough
CT: control target
= control target key end

     0   :  { %s16717_s0 = inlined_call_operand.vmem [shape: f32[2,16,16,4], index: 0, kind: input, shape index: {}]   ;;  %s16718_s1 = inlined_call_operand.vmem [shape: bf16[36,16], index: 1, kind: input, shape index: {}]   ;;  %s16719_s2 = inlined_call_operand.vmem [shape: f32[1,16], index: 2, kind: input, shape index: {}]   ;;  %s16720_s3 = inlined_call_operand.vmem [shape: bf16[144,32], index: 3, kind: input, shape index: {}]   ;;  %s16721_s4 = inlined_call_operand.vmem [shape: f32[1,32], index: 4, kind: input, shape index: {}]   ;;  %s16722_s5 = inlined_call_operand.vmem [shape: bf16[288,64], index: 5, kind: input, shape index: {}]   ;;  %s16723_s6 = inlined_call_operand.vmem [shape: f32[1,64], index: 6, kind: input, shape index: {}]   ;;  %s16724_s7 = inlined_call_operand.vmem [shape: bf16[576,128], index: 7, kind: input, shape index: {}]   ;;  %s16725_s8 = inlined_call_operand.vmem [shape: f32[1,128], index: 8, kind: input, shape index: {}]   ;;  %s16726_s9 = inlined_call_operand.vmem [shape: f32[128,64], index: 9, kind: input, shape index: {}]   ;;  %s16727_s10 = inlined_call_operand.vmem [shape: f32[1,64], index: 10, kind: input, shape index: {}]   ;;  %s16728_s11 = inlined_call_operand.vmem [shape: f32[64,40], index: 11, kind: input, shape index: {}]   ;;  %s16729_s12 = inlined_call_operand.vmem [shape: f32[1,40], index: 12, kind: input, shape index: {}]   ;;  %s16730_s13 = inlined_call_operand.vmem [shape: f32[40,6], index: 13, kind: input, shape index: {}]   ;;  %s16731_s14 = inlined_call_operand.vmem [shape: f32[1,6], index: 14, kind: input, shape index: {}]   ;;  %s16732_s15 = inlined_call_operand.vmem [shape: f32[23,23], index: 15, kind: input, shape index: {}]   ;;  %s16733_s16 = inlined_call_operand.vmem [shape: f32[23,256], index: 16, kind: input, shape index: {}]   ;;  %s16734_s17 = inlined_call_operand.hbm [shape: f32[2,2,256], index: 17, kind: output, shape index: {}]  }
   0x1   :  { %16919 = sst [smem:[#allocation64_spill]] %s16717_s0 }
   0x2   :  { %16920 = sst [smem:[#allocation65_spill]] %s16718_s1 }
   0x3   :  { %s16921_s26 = sld [smem:[#allocation64_spill]]  ;;  %vm186_vm0 = vcmask 1040384   ;;  %vm16867_vm1 = vcmask 1045504   ;;  %v16739_v5 = vmov 0.0   ;;  %vm16862_vm2 = vcmask 1046528   ;;  %s10804_s19 = smov 8  }
   0x4   :  { %v10925_v6 = vrot.slane %v16739_v5, 2  ;;  %v10928_v7 = vrot.slane %v16739_v5, 1  ;;  %s10805_s1 = smov 4   ;;  %s16737_s24 = smov 12   ;;  %vm16858_vm3 = vcmask 1041408  }
   0x5   :  { %s16924_s18 = sld [smem:[#allocation65_spill]]  ;;  %s10807_s20 = smov 16  }
   0x6   :  { %16922 = vst [vmem:[#allocation5_spill] sm:$0xff] %v10925_v6  ;;  %16923 = vst [vmem:[#allocation6_spill] sm:$0xff] %v10928_v7  ;;  %s16834_s23 = smov 20   ;;  %s16799_s25 = smov 24  }
   0x7   :  { %s10810_s27 = smov 28   ;;  %s10811_s28 = smov 32  }
   0x8   :  { %s16928_s0 = smov 12  }
   0x9   :  { %v58_v0 = vld [vmem:[%s16921_s26] sm:$0xff]  ;;  %v59_v1 = vld [vmem:[%s16921_s26 + $0x8] sm:$0xff]  ;;  %v60_v4 = vld [vmem:[%s16921_s26 + $0x10] sm:$0xff] }
   0xa   :  { %v187_v2 = vrot.slane %v58_v0, 7  ;;  %v188_v3 = vrot.slane %v59_v1, 7  ;;  %v61_v8 = vld [vmem:[%s16921_s26 + $0x18] sm:$0xff]  ;;  %v190_v9 = vrot.slane %v60_v4, 7  ;;  %v62_v37 = vld [vmem:[%s16921_s26 + $0x20] sm:$0xff]  ;;  %v63_v39 = vld [vmem:[%s16921_s26 + $0x28] sm:$0xff] }
   0xb   :  { %v191_v13 = vrot.slane %v61_v8, 7  ;;  %v193_v44 = vrot.slane %v62_v37, 7  ;;  %v194_v45 = vrot.slane %v63_v39, 7  ;;  %v64_v50 = vld [vmem:[%s16921_s26 + $0x30] sm:$0xff]  ;;  %v65_v53 = vld [vmem:[%s16921_s26 + $0x38] sm:$0xff]  ;;  %v10708_v54 = vld [vmem:[%s16924_s18] sm:$0xff]  }
   0xc   :  { %v10934_v10 = vsel %vm186_vm0, %v187_v2, %v188_v3  ;;  %v10937_v11 = vsel %vm186_vm0, 0.0, %v187_v2  ;;  %v409_v12 = vsel %vm186_vm0, %v188_v3, 0.0  ;;  %v10948_v21 = vsel %vm186_vm0, 0.0, %v190_v9  ;;  %8894 = vmatprep.subr.bf16.mxu0 %v10708_v54  ;;  %v10709_v62 = vld [vmem:[%s16924_s18 + $0x8] sm:$0xff]  }
   0xd   :  { %v658_v14 = vrot.slane %v10937_v11, 2  ;;  %v659_v15 = vrot.slane %v10934_v10, 2  ;;  %v661_v16 = vrot.slane %v409_v12, 2  ;;  %v505_v17 = vrot.slane %v10937_v11, 1  ;;  %8895 = vmatpush3.bf16.msra.mxu0 %v10708_v54 }
   0xe   :  { %v506_v18 = vrot.slane %v10934_v10, 1  ;;  %v508_v19 = vrot.slane %v409_v12, 1  ;;  %v10945_v20 = vsel %vm186_vm0, %v190_v9, %v191_v13  ;;  %v663_v24 = vrot.slane %v10948_v21, 2  ;;  %8896 = vmatprep.subr.bf16.mxu0 %v10709_v62 }
   0xf   :  { %v660_v22 = vsel %vm16867_vm1, %v658_v14, %v659_v15  ;;  %v662_v23 = vsel %vm16867_vm1, %v659_v15, %v661_v16  ;;  %v664_v25 = vrot.slane %v10945_v20, 2  ;;  %v510_v30 = vrot.slane %v10948_v21, 1 }
  0x10   :  { %v9163_v26 = vpack.i.bf16 %v660_v22, %v10925_v6  ;;  %v507_v27 = vsel %vm16862_vm2, %v505_v17, %v506_v18  ;;  %v509_v31 = vsel %vm16862_vm2, %v506_v18, %v508_v19  ;;  %v511_v33 = vrot.slane %v10945_v20, 1 }
  0x11   :  { %v9148_v28 = vpack.i.bf16 %v507_v27, %v10928_v7  ;;  %v665_v29 = vsel %vm16867_vm1, %v663_v24, %v664_v25  ;;  %v410_v34 = vsel %vm186_vm0, %v191_v13, 0.0  ;;  %v9173_v40 = vpack.i.bf16 %v10945_v20, %v10948_v21  ;;  %8897 = vmatpush3.bf16.msra.mxu0 %v10709_v62 }
  0x12   :  { %9164 = vrot.lane.b32.xlu1 %v9163_v26, %s10804_s19  ;;  %v9168_v32 = vpack.i.bf16 %v665_v29, %v662_v23  ;;  %v512_v35 = vsel %vm16862_vm2, %v510_v30, %v511_v33  ;;  %v513_v36 = vrot.slane %v410_v34, 1  ;;  %v9158_v41 = vpack.i.bf16 %v10934_v10, %v10937_v11  ;;  %v66_v30 = vld [vmem:[%s16921_s26 + $0x40] sm:$0xff] }
  0x13   :  { %9149 = vrot.lane.b32.xlu0 %v9148_v28, %s10805_s1  ;;  %v9153_v38 = vpack.i.bf16 %v512_v35, %v509_v31  ;;  %v666_v43 = vrot.slane %v410_v34, 2  ;;  %v9178_v47 = vpack.i.bf16 %v509_v31, %v507_v27  ;;  %v10984_v49 = vsel %vm186_vm0, 0.0, %v193_v44  ;;  %v67_v31 = vld [vmem:[%s16921_s26 + $0x48] sm:$0xff] }
  0x14   :  { %v514_v42 = vsel %vm16862_vm2, %v511_v33, %v513_v36  ;;  %v10990_v51 = vsel %vm186_vm0, %v193_v44, %v194_v45  ;;  %v411_v52 = vsel %vm186_vm0, %v194_v45, 0.0  ;;  %v515_v56 = vrot.slane %v10984_v49, 1 }
  0x15   :  { %v9183_v46 = vpack.i.bf16 %v514_v42, %v512_v35  ;;  %v10981_v48 = vsel %vm16867_vm1, %v664_v25, %v666_v43  ;;  %v196_v57 = vrot.slane %v64_v50, 7  ;;  %v9188_v58 = vpack.i.bf16 %v662_v23, %v660_v22  ;;  %v69_v43 = vld [vmem:[%s16921_s26 + $0x58] sm:$0xff] }
  0x16   :  { %9169 = vrot.lane.b32.xlu1 %v9168_v32, %s10804_s19  ;;  %v9193_v55 = vpack.i.bf16 %v10981_v48, %v665_v29  ;;  %v516_v59 = vrot.slane %v10990_v51, 1  ;;  %v518_v60 = vrot.slane %v411_v52, 1  ;;  %v197_v61 = vrot.slane %v65_v53, 7 }
  0x17   :  { %9154 = vrot.lane.b32.xlu0 %v9153_v38, %s10805_s1  ;;  %v9203_v63 = vpack.i.bf16 %v10990_v51, %v10984_v49  ;;  %v11011_v0 = vsel %vm186_vm0, 0.0, %v196_v57  ;;  %v668_v12 = vrot.slane %v10984_v49, 2  ;;  %v669_v13 = vrot.slane %v10990_v51, 2 }
  0x18   :  { %v517_v1 = vsel %vm16862_vm2, %v515_v56, %v516_v59  ;;  %v519_v2 = vsel %vm16862_vm2, %v516_v59, %v518_v60  ;;  %v11017_v3 = vsel %vm186_vm0, %v196_v57, %v197_v61  ;;  %v520_v4 = vrot.slane %v11011_v0, 1 }
  0x19   :  { %16925 = vst [vmem:[#allocation7_spill] sm:$0xff] %v11017_v3  ;;  %v9213_v8 = vpack.i.bf16 %v519_v2, %v517_v1  ;;  %v521_v9 = vrot.slane %v11017_v3, 1  ;;  %v671_v14 = vrot.slane %v411_v52, 2  ;;  %v9223_v15 = vpack.i.bf16 %v517_v1, %v514_v42  ;;  %v68_v42 = vld [vmem:[%s16921_s26 + $0x50] sm:$0xff] }
  0x1a   :  { %9174 = vrot.lane.b32.xlu1 %v9173_v40, %s16737_s24  ;;  %v673_v17 = vrot.slane %v11011_v0, 2  ;;  %v674_v18 = vrot.slane %v11017_v3, 2  ;;  %v670_v19 = vsel %vm16867_vm1, %v668_v12, %v669_v13  ;;  %v412_v26 = vsel %vm186_vm0, %v197_v61, 0.0  ;;  %v10710_v52 = vld [vmem:[%s16924_s18 + $0x10] ss:$0 sps:$4 sm:$0x33]  }
  0x1b   :  { %9159 = vrot.lane.b32.xlu0 %v9158_v41, %s16737_s24  ;;  %v522_v16 = vsel %vm16862_vm2, %v520_v4, %v521_v9  ;;  %v672_v22 = vsel %vm16867_vm1, %v669_v13, %v671_v14  ;;  %v523_v28 = vrot.slane %v412_v26, 1  ;;  %v9238_v29 = vpack.i.bf16 %v670_v19, %v10981_v48  ;;  %9125 = vmatprep.subr.msk.bf16.mxu0 %vm16858_vm3, %v10710_v52 }
  0x1c   :  { %v9233_v23 = vpack.i.bf16 %v522_v16, %v519_v2  ;;  %v9228_v24 = vpack.i.bf16 %v672_v22, %v670_v19  ;;  %v675_v25 = vsel %vm16867_vm1, %v673_v17, %v674_v18  ;;  %v9253_v32 = vpack.i.bf16 %v11017_v3, %v11011_v0  ;;  %v70_v19 = vld [vmem:[%s16921_s26 + $0x60] sm:$0xff] }
  0x1d   :  { %v9243_v27 = vpack.i.bf16 %v675_v25, %v672_v22  ;;  %v524_v33 = vsel %vm16862_vm2, %v521_v9, %v523_v28  ;;  %v676_v34 = vrot.slane %v412_v26, 2  ;;  %v199_v35 = vrot.slane %v66_v30, 7 }
  0x1e   :  { %9184 = vrot.lane.b32.xlu1 %v9183_v46, %s10807_s20  ;;  %v200_v36 = vrot.slane %v67_v31, 7  ;;  %v9263_v37 = vpack.i.bf16 %v524_v33, %v522_v16  ;;  %v202_v48 = vrot.slane %v68_v42, 7  ;;  %v203_v50 = vrot.slane %v69_v43, 7 }
  0x1f   :  { %9179 = vrot.lane.b32.xlu0 %v9178_v47, %s10807_s20  ;;  %v677_v38 = vsel %vm16867_vm1, %v674_v18, %v676_v34  ;;  %v2995_v62 = vsel %vm16858_vm3, %v10710_v52, 0 }
  0x20   :  { %v11054_v39 = vsel %vm186_vm0, %v199_v35, %v200_v36  ;;  %v413_v41 = vsel %vm186_vm0, %v200_v36, 0.0  ;;  %v9273_v44 = vpack.i.bf16 %v677_v38, %v675_v25  ;;  %v11080_v56 = vsel %vm186_vm0, %v202_v48, %v203_v50  ;;  %8899 = vmatpush3.bf16.msra.mxu0 %v2995_v62  ;;  %v73_v36 = vld [vmem:[%s16921_s26 + $0x78] sm:$0xff] }
  0x21   :  { %v528_v47 = vrot.slane %v413_v41, 1  ;;  %16926 = vst [vmem:[#allocation8_spill] sm:$0xff] %v11080_v56  ;;  %v11083_v57 = vsel %vm186_vm0, 0.0, %v202_v48  ;;  %v531_v60 = vrot.slane %v11080_v56, 1  ;;  %v681_v1 = vrot.slane %v413_v41, 2 }
  0x22   :  { %9194 = vrot.lane.b32.xlu1 %v9193_v55, %s16834_s23  ;;  %16927 = vst [vmem:[#allocation9_spill] sm:$0xff] %v11083_v57  ;;  %v530_v59 = vrot.slane %v11083_v57, 1  ;;  %v684_v9 = vrot.slane %v11080_v56, 2  ;;  %v414_v17 = vsel %vm186_vm0, %v203_v50, 0.0  ;;  %v9333_v26 = vpack.i.bf16 %v11080_v56, %v11083_v57 }
  0x23   :  { %9189 = vrot.lane.b32.xlu0 %v9188_v58, %s16834_s23  ;;  %v686_v25 = vrot.slane %v414_v17, 2 }
  0x24   :  { %v532_v4 = vsel %vm16862_vm2, %v530_v59, %v531_v60 }
  0x25   :  { %v687_v31 = vsel %vm16867_vm1, %v684_v9, %v686_v25 }
  0x26   :  { %9204 = vrot.lane.b32.xlu1 %v9203_v63, %s16799_s25 }
  0x27   :  { %9199 = vrot.lane.b32.xlu0 %v9173_v40, %s16799_s25  ;;  %v11057_v40 = vsel %vm186_vm0, 0.0, %v199_v35  ;;  %v72_v35 = vld [vmem:[%s16921_s26 + $0x70] sm:$0xff] }
  0x28   :  { %v525_v45 = vrot.slane %v11057_v40, 1  ;;  %v9283_v53 = vpack.i.bf16 %v11054_v39, %v11057_v40  ;;  %v678_v61 = vrot.slane %v11057_v40, 2 }
  0x2a   :  { %9214 = vrot.lane.b32.xlu1 %v9213_v8, %s10810_s27 }
  0x2b   :  { %9209 = vrot.lane.b32.xlu0 %v9183_v46, %s10810_s27  ;;  %v526_v46 = vrot.slane %v11054_v39, 1 }
  0x2d   :  { %v527_v54 = vsel %vm16862_vm2, %v525_v45, %v526_v46 }
  0x2e   :  { %9224 = vrot.lane.b32.xlu1 %v9223_v15, %s10805_s1  ;;  %v9303_v2 = vpack.i.bf16 %v527_v54, %v524_v33 }
  0x2f   :  { %9219 = vrot.lane.b32.xlu0 %v9193_v55, %s10811_s28  ;;  %v529_v55 = vsel %vm16862_vm2, %v526_v46, %v528_v47 }
  0x30   :  { %v9293_v58 = vpack.i.bf16 %v529_v55, %v527_v54  ;;  %v9313_v14 = vpack.i.bf16 %v532_v4, %v529_v55 }
  0x32   :  { %9234 = vrot.lane.b32.xlu1 %v9233_v23, %s10805_s1  ;;  %v533_v23 = vrot.slane %v414_v17, 1 }
  0x33   :  { %9229 = vrot.lane.b32.xlu0 %v9228_v24, %s10811_s28 }
  0x36   :  { %9244 = vrot.lane.b32.xlu1 %v9243_v27, %s10804_s19  ;;  %v205_v27 = vrot.slane %v70_v19, 7 }
  0x37   :  { %9239 = vrot.lane.b32.xlu0 %v9238_v29, %s10804_s19  ;;  %v534_v29 = vsel %vm16862_vm2, %v531_v60, %v533_v23 }
  0x38   :  { %v9343_v30 = vpack.i.bf16 %v534_v29, %v532_v4 }
  0x3a   :  { %9254 = vrot.lane.b32.xlu1 %v9253_v32, %s16737_s24 }
  0x3b   :  { %9249 = vrot.lane.b32.xlu0 %v9203_v63, %s16737_s24  ;;  %v679_v63 = vrot.slane %v11054_v39, 2 }
  0x3d   :  { %v680_v12 = vsel %vm16867_vm1, %v678_v61, %v679_v63  ;;  %v682_v13 = vsel %vm16867_vm1, %v679_v63, %v681_v1 }
  0x3e   :  { %9264 = vrot.lane.b32.xlu1 %v9263_v37, %s10807_s20  ;;  %v9308_v15 = vpack.i.bf16 %v682_v13, %v680_v12  ;;  %v9318_v22 = vpack.i.bf16 %v680_v12, %v677_v38 }
  0x3f   :  { %9259 = vrot.lane.b32.xlu0 %v9213_v8, %s10807_s20  ;;  %v683_v8 = vrot.slane %v11083_v57, 2 }
  0x41   :  { %v685_v16 = vsel %vm16867_vm1, %v683_v8, %v684_v9 }
  0x42   :  { %9274 = vrot.lane.b32.xlu1 %v9273_v44, %s16834_s23  ;;  %v9323_v18 = vpack.i.bf16 %v685_v16, %v682_v13 }
  0x43   :  { %9269 = vrot.lane.b32.xlu0 %v9228_v24, %s16834_s23  ;;  %v71_v24 = vld [vmem:[%s16921_s26 + $0x68] sm:$0xff] }
  0x44   :  { %v206_v28 = vrot.slane %v71_v24, 7 }
  0x46   :  { %9284 = vrot.lane.b32.xlu1 %v9283_v53, %s16799_s25  ;;  %v415_v33 = vsel %vm186_vm0, %v206_v28, 0.0  ;;  %v11125_v34 = vsel %vm186_vm0, %v205_v27, %v206_v28 }
  0x47   :  { %9279 = vrot.lane.b32.xlu0 %v9253_v32, %s16799_s25  ;;  %v11121_v32 = vsel %vm186_vm0, 0.0, %v205_v27  ;;  %16930 = vst [vmem:[#allocation11_spill] sm:$0xff] %v11125_v34 }
  0x48   :  { %16929 = vst [vmem:[#allocation10_spill] sm:$0xff] %v11121_v32 }
  0x4a   :  { %9294 = vrot.lane.b32.xlu1 %v9293_v58, %s10810_s27 }
  0x4b   :  { %9289 = vrot.lane.b32.xlu0 %v9263_v37, %s10810_s27 }
  0x4e   :  { %9304 = vrot.lane.b32.xlu1 %v9303_v2, %s10805_s1 }
  0x4f   :  { %9299 = vrot.lane.b32.xlu0 %v9273_v44, %s10811_s28 }
  0x52   :  { %9314 = vrot.lane.b32.xlu1 %v9313_v14, %s10805_s1 }
  0x53   :  { %9309 = vrot.lane.b32.xlu0 %v9308_v15, %s10811_s28 }
  0x56   :  { %9324 = vrot.lane.b32.xlu1 %v9323_v18, %s10804_s19 }
  0x57   :  { %9319 = vrot.lane.b32.xlu0 %v9318_v22, %s10804_s19 }
  0x5a   :  { %9334 = vrot.lane.b32.xlu1 %v9333_v26, %s16928_s0 }
  0x5b   :  { %9329 = vrot.lane.b32.xlu0 %v9283_v53, %s16928_s0 }
  0x5c   :  { %22 = vsyncpa [#allocation3], 0  ;;  %v9353_v37 = vpack.i.bf16 %v687_v31, %v685_v16  ;;  %v535_v38 = vrot.slane %v11121_v32, 1  ;;  %v536_v41 = vrot.slane %v11125_v34, 1  ;;  %v538_v42 = vrot.slane %v415_v33, 1  ;;  %v74_v16 = vld [vmem:[%s16921_s26 + $0x80] sm:$0xff] }
  0x5d   :  { %v208_v43 = vrot.slane %v72_v35, 7  ;;  %v209_v44 = vrot.slane %v73_v36, 7  ;;  %v9363_v45 = vpack.i.bf16 %v11125_v34, %v11121_v32  ;;  %v688_v55 = vrot.slane %v11121_v32, 2  ;;  %v75_v17 = vld [vmem:[%s16921_s26 + $0x88] sm:$0xff]  ;;  %s17094_s24 = smov 24   ;;  %s17170_s30 = smov 20  }
  0x5e   :  { %9344 = vrot.lane.b32.xlu1 %v9343_v30, %s10807_s20  ;;  %v537_v46 = vsel %vm16862_vm2, %v535_v38, %v536_v41  ;;  %v539_v47 = vsel %vm16862_vm2, %v536_v41, %v538_v42  ;;  %v691_v59 = vrot.slane %v415_v33, 2  ;;  %v211_v23 = vrot.slane %v74_v16, 7  ;;  %v78_v42 = vld [vmem:[%s16921_s26 + $0xa0] sm:$0xff] }
  0x5f   :  { %9339 = vrot.lane.b32.xlu0 %v9293_v58, %s10807_s20  ;;  %v11144_v48 = vsel %vm186_vm0, %v208_v43, %v209_v44  ;;  %v11147_v50 = vsel %vm186_vm0, 0.0, %v208_v43  ;;  %v9373_v52 = vpack.i.bf16 %v539_v47, %v537_v46  ;;  %v689_v58 = vrot.slane %v11125_v34, 2 }
  0x60   :  { %16931 = vst [vmem:[#allocation12_spill] sm:$0xff] %v11144_v48  ;;  %16932 = vst [vmem:[#allocation13_spill] sm:$0xff] %v11147_v50  ;;  %v540_v53 = vrot.slane %v11147_v50, 1  ;;  %v541_v54 = vrot.slane %v11144_v48, 1  ;;  %v9383_v60 = vpack.i.bf16 %v537_v46, %v534_v29  ;;  %v693_v62 = vrot.slane %v11147_v50, 2 }
  0x61   :  { %v694_v63 = vrot.slane %v11144_v48, 2  ;;  %v690_v1 = vsel %vm16867_vm1, %v688_v55, %v689_v58  ;;  %v692_v2 = vsel %vm16867_vm1, %v689_v58, %v691_v59  ;;  %v416_v12 = vsel %vm186_vm0, %v209_v44, 0.0 }
  0x62   :  { %9354 = vrot.lane.b32.xlu1 %v9353_v37, %s16834_s23  ;;  %v542_v61 = vsel %vm16862_vm2, %v540_v53, %v541_v54  ;;  %v9388_v8 = vpack.i.bf16 %v692_v2, %v690_v1  ;;  %v9398_v14 = vpack.i.bf16 %v690_v1, %v687_v31  ;;  %v9413_v18 = vpack.i.bf16 %v11144_v48, %v11147_v50  ;;  %v77_v31 = vld [vmem:[%s16921_s26 + $0x98] sm:$0xff] }
  0x63   :  { %9349 = vrot.lane.b32.xlu0 %v9308_v15, %s16834_s23  ;;  %v9393_v4 = vpack.i.bf16 %v542_v61, %v539_v47  ;;  %v695_v9 = vsel %vm16867_vm1, %v693_v62, %v694_v63  ;;  %v543_v15 = vrot.slane %v416_v12, 1  ;;  %v696_v22 = vrot.slane %v416_v12, 2  ;;  %v79_v47 = vld [vmem:[%s16921_s26 + $0xa8] sm:$0xff]  ;;  %v80_v62 = vld [vmem:[%s16921_s26 + $0xb0] sm:$0xff] }
  0x64   :  { %v9403_v13 = vpack.i.bf16 %v695_v9, %v692_v2  ;;  %v212_v24 = vrot.slane %v75_v17, 7  ;;  %v11191_v28 = vsel %vm186_vm0, 0.0, %v211_v23  ;;  %v215_v41 = vrot.slane %v77_v31, 7 }
  0x65   :  { %v11179_v19 = vsel %vm16862_vm2, %v541_v54, %v543_v15  ;;  %16934 = vst [vmem:[#allocation15_spill] sm:$0xff] %v11191_v28  ;;  %v545_v35 = vrot.slane %v11191_v28, 1  ;;  %v217_v59 = vrot.slane %v78_v42, 7  ;;  %v220_v17 = vrot.slane %v80_v62, 7 }
  0x66   :  { %9364 = vrot.lane.b32.xlu1 %v9363_v45, %s16799_s25  ;;  %v9423_v25 = vpack.i.bf16 %v11179_v19, %v542_v61  ;;  %v11188_v27 = vsel %vm186_vm0, %v211_v23, %v212_v24  ;;  %v417_v29 = vsel %vm186_vm0, %v212_v24, 0.0  ;;  %v218_v61 = vrot.slane %v79_v47, 7 }
  0x67   :  { %9359 = vrot.lane.b32.xlu0 %v9333_v26, %s16799_s25  ;;  %v11185_v26 = vsel %vm16867_vm1, %v694_v63, %v696_v22  ;;  %16933 = vst [vmem:[#allocation14_spill] sm:$0xff] %v11188_v27  ;;  %v546_v36 = vrot.slane %v11188_v27, 1  ;;  %v11214_v43 = vpack.i.bf16 %v11188_v27, %v11191_v28  ;;  %v699_v46 = vrot.slane %v11188_v27, 2  ;;  %v11242_v63 = vld [vmem:[%s16921_s26 + $0xb8] sm:$0xff] }
  0x68   :  { %v11202_v33 = vpack.i.bf16 %v11185_v26, %v695_v9  ;;  %v701_v55 = vrot.slane %v417_v29, 2  ;;  %v418_v15 = vsel %vm186_vm0, %v215_v41, 0.0  ;;  %v11264_v16 = vsel %vm186_vm0, 0.0, %v217_v59 }
  0x69   :  { %v547_v44 = vsel %vm16862_vm2, %v545_v35, %v546_v36  ;;  %16937 = vst [vmem:[#allocation18_spill] sm:$0xff] %v11264_v16  ;;  %v11270_v23 = vsel %vm186_vm0, %v217_v59, %v218_v61  ;;  %v419_v24 = vsel %vm186_vm0, %v218_v61, 0.0  ;;  %vm2323_vm4 = vcmask 31744  }
  0x6a   :  { %9374 = vrot.lane.b32.xlu1 %v9373_v52, %s10810_s27  ;;  %v11256_v9 = vsel %vm16867_vm1, %v699_v46, %v701_v55  ;;  %16938 = vst [vmem:[#allocation19_spill] sm:$0xff] %v11270_v23  ;;  %v708_v47 = vrot.slane %v11264_v16, 2  ;;  %v709_v55 = vrot.slane %v11270_v23, 2  ;;  %v711_v59 = vrot.slane %v419_v24, 2 }
  0x6b   :  { %9369 = vrot.lane.b32.xlu0 %v9343_v30, %s10810_s27  ;;  %v76_v30 = vld [vmem:[%s16921_s26 + $0x90] sm:$0xff]  ;;  %vm2385_vm5 = vcmask 64512   ;;  %vm2447_vm6 = vcmask 97280   ;;  %vm16914_vm7 = vcmask 130048   ;;  %vm16915_vm8 = vcmask 162816  }
  0x6c   :  { %v214_v38 = vrot.slane %v76_v30, 7  ;;  %vm16882_vm9 = vcmask 195584   ;;  %vm2707_vm10 = vcmask 228352   ;;  %vm2772_vm11 = vcmask 261120  }
  0x6d   :  { %vm2896_vm12 = vcmask 293888   ;;  %vm4086_vm13 = vcmask 123904   ;;  %vm5111_vm14 = vcmask 1042434   ;;  %vm5113_vm15 = vcmask 1043459  }
  0x6e   :  { %9384 = vrot.lane.b32.xlu1 %v9383_v60, %s10805_s1  ;;  %v11227_v53 = vsel %vm186_vm0, %v214_v38, %v215_v41  ;;  %v11230_v54 = vsel %vm186_vm0, 0.0, %v214_v38  ;;  %v706_v38 = vrot.slane %v418_v15, 2  ;;  %v555_v41 = vrot.slane %v11264_v16, 1 }
  0x6f   :  { %9379 = vrot.lane.b32.xlu0 %v9353_v37, %s10811_s28  ;;  %v548_v37 = vrot.slane %v417_v29, 1  ;;  %16935 = vst [vmem:[#allocation16_spill] sm:$0xff] %v11227_v53  ;;  %16936 = vst [vmem:[#allocation17_spill] sm:$0xff] %v11230_v54  ;;  %v550_v2 = vrot.slane %v11230_v54, 1  ;;  %v703_v12 = vrot.slane %v11230_v54, 2  ;;  %v9463_v29 = vpack.i.bf16 %v547_v44, %v11179_v19 }
  0x70   :  { %v556_v19 = vrot.slane %v11270_v23, 1  ;;  %vm5115_vm3 = vcmask 1044484  }
  0x72   :  { %9394 = vrot.lane.b32.xlu1 %v9393_v4, %s10805_s1  ;;  %v551_v4 = vrot.slane %v11227_v53, 1 }
  0x73   :  { %9389 = vrot.lane.b32.xlu0 %v9388_v8, %s10811_s28 }
  0x74   :  { %v552_v30 = vsel %vm16862_vm2, %v550_v2, %v551_v4 }
  0x76   :  { %9404 = vrot.lane.b32.xlu1 %v9403_v13, %s10804_s19  ;;  %v704_v13 = vrot.slane %v11227_v53, 2 }
  0x77   :  { %9399 = vrot.lane.b32.xlu0 %v9398_v14, %s10804_s19 }
  0x78   :  { %v11312_v2 = vsel %vm16867_vm1, %v704_v13, %v706_v38  ;;  %v11343_v38 = vpack.i.bf16 %v11270_v23, %v11264_v16 }
  0x7a   :  { %9414 = vrot.lane.b32.xlu1 %v9413_v18, %s16928_s0 }
  0x7b   :  { %9409 = vrot.lane.b32.xlu0 %v9363_v45, %s16928_s0  ;;  %v698_v45 = vrot.slane %v11191_v28, 2 }
  0x7e   :  { %9424 = vrot.lane.b32.xlu1 %v9423_v25, %s10807_s20 }
  0x7f   :  { %9419 = vrot.lane.b32.xlu0 %v9373_v52, %s10807_s20  ;;  %v11224_v52 = vsel %vm16862_vm2, %v546_v36, %v548_v37  ;;  %v705_v36 = vsel %vm16867_vm1, %v703_v12, %v704_v13  ;;  %v553_v37 = vrot.slane %v418_v15, 1  ;;  %v11329_v13 = vsel %vm16867_vm1, %v708_v47, %v709_v55 }
  0x80   :  { %v11247_v1 = vpack.i.bf16 %v11224_v52, %v547_v44  ;;  %v558_v44 = vrot.slane %v419_v24, 1  ;;  %v9473_v61 = vpack.i.bf16 %v552_v30, %v11224_v52  ;;  %v9483_v62 = vpack.i.bf16 %v705_v36, %v11256_v9 }
  0x81   :  { %v11319_v52 = vsel %vm16862_vm2, %v555_v41, %v556_v19  ;;  %v11332_v24 = vsel %vm16867_vm1, %v709_v55, %v711_v59 }
  0x82   :  { %9434 = vrot.lane.b32.xlu1 %v11202_v33, %s16834_s23  ;;  %v11366_v55 = vpack.i.bf16 %v11332_v24, %v11329_v13 }
  0x83   :  { %9429 = vrot.lane.b32.xlu0 %v9388_v8, %s16834_s23  ;;  %v11253_v8 = vsel %vm16867_vm1, %v698_v45, %v699_v46  ;;  %v11293_v46 = vsel %vm186_vm0, 0.0, %v220_v17 }
  0x84   :  { %v11232_v58 = vpop.permute.xlu1 %9164  ;;  %v11279_v31 = vpack.i.bf16 %v11256_v9, %v11253_v8  ;;  %v9478_v35 = vpack.i.bf16 %v11253_v8, %v11185_v26  ;;  %16940 = vst [vmem:[#allocation21_spill] sm:$0xff] %v11293_v46  ;;  %v560_v8 = vrot.slane %v11293_v46, 1  ;;  %v11322_v9 = vsel %vm16862_vm2, %v556_v19, %v558_v44 }
  0x85   :  { %v11234_v60 = vpop.permute.xlu0 %9149  ;;  %v11349_v41 = vpack.i.bf16 %v11322_v9, %v11319_v52 }
  0x86   :  { %9444 = vrot.lane.b32.xlu1 %v11214_v43, %s16799_s25 }
  0x87   :  { %9439 = vrot.lane.b32.xlu0 %v9413_v18, %s16799_s25  ;;  %v221_v18 = vrot.slane %v11242_v63, 7  ;;  %v11309_v63 = vsel %vm16862_vm2, %v551_v4, %v553_v37  ;;  %v11339_v37 = vpack.i.bf16 %v11312_v2, %v705_v36  ;;  %v9151_v36 = vunpack.i.l.bf16 %v11234_v60 }
  0x88   :  { %v11260_v14 = vpop.permute.xlu1 %9169 }
  0x89   :  { %v11267_v22 = vpop.permute.xlu0 %9154  ;;  %v11290_v45 = vsel %vm186_vm0, %v220_v17, %v221_v18 }
  0x8a   :  { %9454 = vrot.lane.b32.xlu1 %v11247_v1, %s10810_s27  ;;  %16939 = vst [vmem:[#allocation20_spill] sm:$0xff] %v11290_v45  ;;  %v16741_v12 = vrot.slane %v11290_v45, 1  ;;  %v16742_v4 = vrot.slane %v11290_v45, 2  ;;  %v9156_v5 = vunpack.i.l.bf16 %v11267_v22 }
  0x8b   :  { %9449 = vrot.lane.b32.xlu0 %v9423_v25, %s10810_s27  ;;  %v11299_v25 = vpack.i.bf16 %v11227_v53, %v11230_v54  ;;  %v9166_v53 = vunpack.i.l.bf16 %v11232_v58 }
  0x8c   :  { %v11286_v42 = vpop.permute.xlu1 %9174  ;;  %v11354_v19 = vsel %vm16862_vm2, %v560_v8, %v16741_v12  ;;  %v9152_v8 = vunpack.i.h.bf16 %v11234_v60  ;;  %v9171_v60 = vunpack.i.l.bf16 %v11260_v14 }
  0x8d   :  { %v11295_v26 = vpop.permute.xlu0 %9159  ;;  %v9177_v12 = vunpack.i.h.bf16 %v11286_v42  ;;  %v9176_v48 = vunpack.i.l.bf16 %v11286_v42 }
  0x8e   :  { %9464 = vrot.lane.b32.xlu1 %v9463_v29, %s10805_s1  ;;  %v11336_v29 = vpack.i.bf16 %v11309_v63, %v552_v30  ;;  %v11357_v30 = vsel %vm186_vm0, %v221_v18, 0.0  ;;  %v82_v18 = vld [vmem:[%s16921_s26 + $0xc0] sm:$0xff]  ;;  %v9161_v28 = vunpack.i.l.bf16 %v11295_v26 }
  0x8f   :  { %9459 = vrot.lane.b32.xlu0 %v11202_v33, %s10811_s28  ;;  %v713_v33 = vrot.slane %v11293_v46, 2  ;;  %v223_v16 = vrot.slane %v82_v18, 7  ;;  %v2325_v18 = vsel %vm2323_vm4, %v10937_v11, %v9152_v8 }
  0x90   :  { %v11316_v15 = vpop.permute.xlu1 %9184 }
  0x91   :  { %v11326_v17 = vpop.permute.xlu0 %9179  ;;  %v11371_v59 = vsel %vm16867_vm1, %v713_v33, %v16742_v4  ;;  %v11387_v33 = vpack.i.bf16 %v11290_v45, %v11293_v46  ;;  %v11400_v46 = vld [vmem:[%s16921_s26 + $0xd0] sm:$0xff]  ;;  %v2324_v4 = vsel %vm2323_vm4, 0.0, %v9151_v36  ;;  %v9162_v36 = vunpack.i.h.bf16 %v11295_v26 }
  0x92   :  { %9474 = vrot.lane.b32.xlu1 %v9473_v61, %s10805_s1  ;;  %v83_v61 = vld [vmem:[%s16921_s26 + $0xc8] sm:$0xff]  ;;  %v11420_v11 = vsel %vm2385_vm5, %v2324_v4, %v9166_v53  ;;  %v9181_v53 = vunpack.i.l.bf16 %v11326_v17 }
  0x93   :  { %9469 = vrot.lane.b32.xlu0 %v11279_v31, %s10811_s28  ;;  %v224_v23 = vrot.slane %v83_v61, 7  ;;  %v2326_v61 = vsel %vm2323_vm4, %v10934_v10, %v9156_v5  ;;  %16941 = vst [vmem:[#allocation22_spill] sm:$0xff] %v11420_v11  ;;  %v11428_v10 = vsel %vm186_vm0, 0.0, %v223_v16 }
  0x94   :  { %v11360_v44 = vpop.permute.xlu1 %9194  ;;  %16943 = vst [vmem:[#allocation24_spill] sm:$0xff] %v11428_v10  ;;  %v2388_v8 = vsel %vm2385_vm5, %v2326_v61, %v9171_v60  ;;  %v2449_v60 = vsel %vm2447_vm6, %v11420_v11, %v9162_v36 }
  0x95   :  { %v11381_v47 = vpop.permute.xlu0 %9189  ;;  %v11425_v5 = vsel %vm186_vm0, %v223_v16, %v224_v23  ;;  %v11431_v42 = vsel %vm186_vm0, %v224_v23, 0.0  ;;  %v2451_v27 = vsel %vm2447_vm6, %v2388_v8, %v9177_v12  ;;  %v9186_v12 = vunpack.i.l.bf16 %v11316_v15 }
  0x96   :  { %9484 = vrot.lane.b32.xlu1 %v9483_v62, %s10804_s19  ;;  %v9167_v62 = vunpack.i.h.bf16 %v11232_v58  ;;  %16942 = vst [vmem:[#allocation23_spill] sm:$0xff] %v11425_v5  ;;  %v9192_v16 = vunpack.i.h.bf16 %v11381_v47  ;;  %v9191_v50 = vunpack.i.l.bf16 %v11381_v47  ;;  %v9197_v36 = vunpack.i.h.bf16 %v11360_v44 }
  0x97   :  { %9479 = vrot.lane.b32.xlu0 %v9478_v35, %s10804_s19  ;;  %v9182_v35 = vunpack.i.h.bf16 %v11326_v17 }
  0x98   :  { %v11405_v54 = vpop.permute.xlu1 %9204  ;;  %v2387_v26 = vsel %vm2385_vm5, %v2325_v18, %v9167_v62  ;;  %v2448_v62 = vsel %vm2447_vm6, %v11420_v11, %v9161_v28 }
  0x99   :  { %v9200_v58 = vpop.permute.xlu0 %9199  ;;  %v2513_v47 = vsel %vm16914_vm7, %v2448_v62, %v9181_v53  ;;  %v2514_v28 = vsel %vm16914_vm7, %v2449_v60, %v9182_v35 }
  0x9a   :  { %9494 = vrot.lane.b32.xlu1 %v11299_v25, %s16928_s0  ;;  %v9202_v18 = vunpack.i.h.bf16 %v9200_v58  ;;  %v9201_v61 = vunpack.i.l.bf16 %v9200_v58  ;;  %v9196_v58 = vunpack.i.l.bf16 %v11360_v44  ;;  %v2578_v11 = vsel %vm16915_vm8, %v2513_v47, %v9191_v50  ;;  %v85_v50 = vld [vmem:[%s16921_s26 + $0xd8] sm:$0xff] }
  0x9b   :  { %9489 = vrot.lane.b32.xlu0 %v11214_v43, %s16928_s0  ;;  %v2450_v43 = vsel %vm2447_vm6, %v2387_v26, %v9176_v48  ;;  %v9187_v48 = vunpack.i.h.bf16 %v11316_v15  ;;  %v2579_v56 = vsel %vm16915_vm8, %v2514_v28, %v9192_v16  ;;  %v9207_v15 = vunpack.i.h.bf16 %v11405_v54 }
  0x9c   :  { %v9215_v4 = vpop.permute.xlu1 %9214  ;;  %v2643_v35 = vsel %vm16882_vm9, %v2578_v11, %v9201_v61  ;;  %v2644_v44 = vsel %vm16882_vm9, %v2579_v56, %v9202_v18  ;;  %v2515_v62 = vsel %vm16914_vm7, %v2450_v43, %v9186_v12  ;;  %v227_v28 = vrot.slane %v85_v50, 7  ;;  %v86_v50 = vld [vmem:[%s16921_s26 + $0xe0] sm:$0xff] }
  0x9d   :  { %v9210_v23 = vpop.permute.xlu0 %9209  ;;  %v9217_v53 = vunpack.i.h.bf16 %v9215_v4  ;;  %v9216_v16 = vunpack.i.l.bf16 %v9215_v4  ;;  %v2516_v60 = vsel %vm16914_vm7, %v2451_v27, %v9187_v48  ;;  %v2580_v61 = vsel %vm16915_vm8, %v2515_v62, %v9196_v58 }
  0x9e   :  { %9504 = vrot.lane.b32.xlu1 %v11336_v29, %s10807_s20  ;;  %v9212_v17 = vunpack.i.h.bf16 %v9210_v23  ;;  %v9211_v26 = vunpack.i.l.bf16 %v9210_v23  ;;  %v9206_v23 = vunpack.i.l.bf16 %v11405_v54  ;;  %v2581_v4 = vsel %vm16915_vm8, %v2516_v60, %v9197_v36 }
  0x9f   :  { %9499 = vrot.lane.b32.xlu0 %v11247_v1, %s10807_s20  ;;  %v16944_v48 = vrot.slane %v11357_v30, 1  ;;  %v16945_v36 = vrot.slane %v11290_v45, 1  ;;  %v16947_v62 = vrot.slane %v11290_v45, 2 }
  0xa0   :  { %v11455_v8 = vpop.permute.xlu1 %9224  ;;  %v2708_v54 = vsel %vm2707_vm10, %v2643_v35, %v9211_v26  ;;  %v2645_v26 = vsel %vm16882_vm9, %v2580_v61, %v9206_v23 }
  0xa1   :  { %v9220_v32 = vpop.permute.xlu0 %9219  ;;  %v11494_v58 = vsel %vm16862_vm2, %v16945_v36, %v16944_v48  ;;  %v9227_v57 = vunpack.i.h.bf16 %v11455_v8  ;;  %v9226_v6 = vunpack.i.l.bf16 %v11455_v8 }
  0xa2   :  { %v9222_v1 = vunpack.i.h.bf16 %v9220_v32  ;;  %v9221_v34 = vunpack.i.l.bf16 %v9220_v32  ;;  %9514 = vrot.lane.b32.xlu1 %v11339_v37, %s16834_s23  ;;  %v2709_v32 = vsel %vm2707_vm10, %v2644_v44, %v9212_v17  ;;  %v2646_v17 = vsel %vm16882_vm9, %v2581_v4, %v9207_v15 }
  0xa3   :  { %9509 = vrot.lane.b32.xlu0 %v11279_v31, %s16834_s23  ;;  %v2711_v27 = vsel %vm2707_vm10, %v2646_v17, %v9217_v53  ;;  %v565_v15 = vrot.slane %v11428_v10, 1  ;;  %v566_v44 = vrot.slane %v11425_v5, 1  ;;  %v87_v53 = vld [vmem:[%s16921_s26 + $0xe8] sm:$0xff]  ;;  %v229_v17 = vrot.slane %v86_v50, 7 }
  0xa4   :  { %v11474_v11 = vpop.permute.xlu1 %9234  ;;  %v2773_v56 = vsel %vm2772_vm11, %v2708_v54, %v9221_v34  ;;  %v2774_v18 = vsel %vm2772_vm11, %v2709_v32, %v9222_v1  ;;  %v2710_v34 = vsel %vm2707_vm10, %v2645_v26, %v9216_v16  ;;  %v16946_v32 = vrot.slane %v11357_v30, 2 }
  0xa5   :  { %v9230_v47 = vpop.permute.xlu0 %9229  ;;  %v2837_v31 = vpack.c.bf16 %v2774_v18, %v2773_v56  ;;  %v16948_v56 = vrot.slane %v11400_v46, 7  ;;  %v718_v30 = vrot.slane %v11428_v10, 2  ;;  %v11538_v26 = vpack.i.bf16 %v11494_v58, %v11354_v19 }
  0xa6   :  { %v9232_v43 = vunpack.i.h.bf16 %v9230_v47  ;;  %v9231_v12 = vunpack.i.l.bf16 %v9230_v47  ;;  %9524 = vrot.lane.b32.xlu1 %v11343_v38, %s16799_s25  ;;  %v11516_v60 = vsel %vm16867_vm1, %v16947_v62, %v16946_v32  ;;  %v719_v47 = vrot.slane %v11425_v5, 2 }
  0xa7   :  { %9519 = vrot.lane.b32.xlu0 %v11299_v25, %s16799_s25  ;;  %8900 = vmatprep.mubr.msk.bf16.mxu0 %vm2896_vm12, %v2837_v31  ;;  %v568_v25 = vrot.slane %v11431_v42, 1  ;;  %v11521_v18 = vsel %vm186_vm0, 0.0, %v16948_v56  ;;  %v16950_v61 = vmov %v16948_v56  ;;  %v721_v31 = vrot.slane %v11431_v42, 2 }
  0xa8   :  { %v2775_v23 = vsel %vm2772_vm11, %v2710_v34, %v9231_v12  ;;  %v2776_v1 = vsel %vm2772_vm11, %v2711_v27, %v9232_v43  ;;  %v11499_v35 = vpop.permute.xlu1 %9244  ;;  %16949 = vst [vmem:[#allocation25_spill] sm:$0xff] %v11521_v18  ;;  %v11528_v4 = vsel %vm186_vm0, %v16950_v61, %v227_v28  ;;  %v422_v46 = vsel %vm186_vm0, %v227_v28, 0.0  ;;  %v90_v27 = vld [vmem:[%s16921_s26 + $0x100] sm:$0xff]  ;;  %v11559_v28 = vld [vmem:[%s16921_s26 + $0x108] sm:$0xff] }
  0xa9   :  { %v11509_v16 = vpop.permute.xlu0 %9239  ;;  %v2838_v54 = vpack.c.bf16 %v2776_v1, %v2775_v23  ;;  %16951 = vst [vmem:[#allocation26_spill] sm:$0xff] %v11528_v4  ;;  %v230_v43 = vrot.slane %v87_v53, 7  ;;  %v11545_v34 = vpack.i.bf16 %v11516_v60, %v11371_v59  ;;  %v11548_v42 = vsel %vm16862_vm2, %v565_v15, %v566_v44 }
  0xaa   :  { %9534 = vrot.lane.b32.xlu1 %v11349_v41, %s10810_s27  ;;  %v570_v36 = vrot.slane %v11521_v18, 1  ;;  %v571_v23 = vrot.slane %v11528_v4, 1  ;;  %v723_v15 = vrot.slane %v11521_v18, 2  ;;  %v724_v1 = vrot.slane %v11528_v4, 2 }
  0xab   :  { %9529 = vrot.lane.b32.xlu0 %v11336_v29, %s10810_s27  ;;  %8901 = vmatmul.mubr.msk.bf16.vlgmr.msra.gmra.mrb[0].mxu0 %vm2896_vm12, %v2838_v54  ;;  %v11551_v29 = vsel %vm16862_vm2, %v566_v44, %v568_v25  ;;  %v16952_v44 = vpack.i.bf16 %v11319_v52, %v11309_v63  ;;  %v11572_v25 = vsel %vm16867_vm1, %v718_v30, %v719_v47  ;;  %v573_v53 = vrot.slane %v422_v46, 1 }
  0xac   :  { %v11541_v12 = vpop.permute.xlu1 %9254  ;;  %v11575_v50 = vsel %vm16867_vm1, %v719_v47, %v721_v31  ;;  %v726_v54 = vrot.slane %v422_v46, 2  ;;  %v11580_v32 = vsel %vm186_vm0, %v229_v17, %v230_v43  ;;  %v11583_v62 = vsel %vm186_vm0, 0.0, %v229_v17 }
  0xad   :  { %v11561_v48 = vpop.permute.xlu0 %9249  ;;  %16953 = vst [vmem:[#allocation27_spill] sm:$0xff] %v11580_v32  ;;  %16954 = vst [vmem:[#allocation28_spill] sm:$0xff] %v11583_v62  ;;  %v235_v56 = vrot.slane %v90_v27, 7  ;;  %v11590_v61 = vpack.i.bf16 %v11425_v5, %v11428_v10  ;;  %v11594_v30 = vpack.i.bf16 %v11551_v29, %v11548_v42  ;;  %v11601_v31 = vsel %vm16862_vm2, %v570_v36, %v571_v23 }
  0xae   :  { %9544 = vrot.lane.b32.xlu1 %v16952_v44, %s10805_s1  ;;  %v11605_v46 = vpack.i.bf16 %v11575_v50, %v11572_v25  ;;  %v11608_v17 = vsel %vm16867_vm1, %v723_v15, %v724_v1  ;;  %v16955_v44 = vpack.i.bf16 %v11354_v19, %v11322_v9  ;;  %v11620_v36 = vsel %vm16867_vm1, %v724_v1, %v726_v54 }
  0xaf   :  { %9539 = vrot.lane.b32.xlu0 %v11339_v37, %s10811_s28  ;;  %v11617_v37 = vsel %vm16862_vm2, %v571_v23, %v573_v53  ;;  %v575_v63 = vrot.slane %v11583_v62, 1  ;;  %v11628_v15 = vpack.i.bf16 %v11528_v4, %v11521_v18  ;;  %v11631_v9 = vsel %vm186_vm0, %v230_v43, 0.0 }
  0xb0   :  { %v11586_v52 = vpop.permute.xlu1 %9264  ;;  %v16956_v19 = vrot.slane %v11559_v28, 7  ;;  %v11639_v1 = vsel %vm186_vm0, 0.0, %v235_v56  ;;  %v9157_v53 = vunpack.i.h.bf16 %v11267_v22  ;;  %v9236_v54 = vunpack.i.l.bf16 %v11474_v11 }
  0xb1   :  { %v11598_v47 = vpop.permute.xlu0 %9259  ;;  %16958 = vst [vmem:[#allocation30_spill] sm:$0xff] %v11639_v1  ;;  %v16961_v22 = vpack.i.bf16 %v11371_v59, %v11332_v24  ;;  %v16962_v27 = vrot.slane %v11580_v32, 1  ;;  %v9172_v10 = vunpack.i.h.bf16 %v11260_v14  ;;  %v9246_v24 = vunpack.i.l.bf16 %v11499_v35  ;;  %v11687_v14 = vld [vmem:[%s16921_s26 + $0xf8] sm:$0xff] }
  0xb2   :  { %9554 = vrot.lane.b32.xlu1 %v16955_v44, %s10805_s1  ;;  %v11636_v23 = vsel %vm186_vm0, %v235_v56, %v16956_v19  ;;  %v11653_v19 = vpack.i.bf16 %v11617_v37, %v11601_v31  ;;  %v11657_v56 = vpack.i.bf16 %v11620_v36, %v11608_v17  ;;  %v16963_v59 = vpack.i.bf16 %v11329_v13, %v11312_v2 }
  0xb3   :  { %9549 = vrot.lane.b32.xlu0 %v11366_v55, %s10811_s28  ;;  %16957 = vst [vmem:[#allocation29_spill] sm:$0xff] %v11636_v23  ;;  %v11666_v4 = vsel %vm16862_vm2, %v575_v63, %v16962_v27  ;;  %v11682_v63 = vld [vmem:[%s16921_s26 + $0xf0] sm:$0xff]  ;;  %v2327_v8 = vsel %vm2323_vm4, %v10948_v21, %v9157_v53  ;;  %v2330_v27 = vsel %vm2323_vm4, %v10990_v51, %v9236_v54  ;;  %v9241_v2 = vunpack.i.l.bf16 %v11509_v16 }
  0xb4   :  { %v11643_v44 = vpop.permute.xlu1 %9274  ;;  %16959 = vst [vmem:[#allocation31_spill] sm:$0xff] %v11653_v19  ;;  %16960 = vst [vmem:[#allocation32_spill] sm:$0xff] %v11657_v56  ;;  %v9256_v18 = vunpack.i.l.bf16 %v11541_v12  ;;  %v9252_v21 = vunpack.i.h.bf16 %v11561_v48  ;;  %v9251_v53 = vunpack.i.l.bf16 %v11561_v48  ;;  %v2329_v54 = vsel %vm2323_vm4, %v10984_v49, %v9227_v57 }
  0xb5   :  { %v11647_v5 = vpop.permute.xlu0 %9269  ;;  %v2392_v43 = vsel %vm2385_vm5, %v2330_v27, %v9246_v24  ;;  %v2389_v56 = vsel %vm2385_vm5, %v2327_v8, %v9172_v10  ;;  %v9262_v51 = vunpack.i.h.bf16 %v11598_v47 }
  0xb6   :  { %9564 = vrot.lane.b32.xlu1 %v16961_v22, %s10804_s19  ;;  %v9242_v22 = vunpack.i.h.bf16 %v11509_v16  ;;  %v9261_v16 = vunpack.i.l.bf16 %v11598_v47  ;;  %v9271_v57 = vunpack.i.l.bf16 %v11647_v5  ;;  %v9267_v47 = vunpack.i.h.bf16 %v11586_v52 }
  0xb7   :  { %9559 = vrot.lane.b32.xlu0 %v16963_v59, %s10804_s19  ;;  %v9257_v59 = vunpack.i.h.bf16 %v11541_v12  ;;  %v2328_v12 = vsel %vm2323_vm4, %v10945_v20, %v9226_v6  ;;  %v9272_v20 = vunpack.i.h.bf16 %v11647_v5 }
  0xb8   :  { %v11695_v13 = vpop.permute.xlu1 %9284  ;;  %v2391_v48 = vsel %vm2385_vm5, %v2329_v54, %v9242_v22  ;;  %v2390_v19 = vsel %vm2385_vm5, %v2328_v12, %v9241_v2 }
  0xb9   :  { %v9280_v45 = vpop.permute.xlu0 %9279  ;;  %v2454_v49 = vsel %vm2447_vm6, %v2391_v48, %v9256_v18  ;;  %v2455_v6 = vsel %vm2447_vm6, %v2392_v43, %v9257_v59  ;;  %v2453_v24 = vsel %vm2447_vm6, %v2390_v19, %v9252_v21  ;;  %v9266_v18 = vunpack.i.l.bf16 %v11586_v52 }
  0xba   :  { %9574 = vrot.lane.b32.xlu1 %v11387_v33, %s16928_s0  ;;  %v9282_v8 = vunpack.i.h.bf16 %v9280_v45  ;;  %v9281_v27 = vunpack.i.l.bf16 %v9280_v45  ;;  %v9277_v19 = vunpack.i.h.bf16 %v11643_v44  ;;  %v9276_v45 = vunpack.i.l.bf16 %v11643_v44 }
  0xbb   :  { %9569 = vrot.lane.b32.xlu0 %v11343_v38, %s16928_s0  ;;  %v2452_v38 = vsel %vm2447_vm6, %v2389_v56, %v9251_v53  ;;  %v2518_v56 = vsel %vm16914_vm7, %v2453_v24, %v9262_v51  ;;  %v9287_v52 = vunpack.i.h.bf16 %v11695_v13  ;;  %v9286_v53 = vunpack.i.l.bf16 %v11695_v13 }
  0xbc   :  { %v9295_v3 = vpop.permute.xlu1 %9294  ;;  %v2517_v5 = vsel %vm16914_vm7, %v2452_v38, %v9261_v16  ;;  %v2583_v21 = vsel %vm16915_vm8, %v2518_v56, %v9272_v20  ;;  %v2519_v13 = vsel %vm16914_vm7, %v2454_v49, %v9266_v18  ;;  %v731_v18 = vrot.slane %v11631_v9, 2 }
  0xbd   :  { %v9290_v10 = vpop.permute.xlu0 %9289  ;;  %v2582_v59 = vsel %vm16915_vm8, %v2517_v5, %v9271_v57  ;;  %v2648_v16 = vsel %vm16882_vm9, %v2583_v21, %v9282_v8  ;;  %v9297_v44 = vunpack.i.h.bf16 %v9295_v3  ;;  %v9296_v48 = vunpack.i.l.bf16 %v9295_v3  ;;  %v92_v3 = vld [vmem:[%s16921_s26 + $0x110] sm:$0xff] }
  0xbe   :  { %9584 = vrot.lane.b32.xlu1 %v11538_v26, %s10807_s20  ;;  %v9292_v22 = vunpack.i.h.bf16 %v9290_v10  ;;  %v9291_v43 = vunpack.i.l.bf16 %v9290_v10  ;;  %v2520_v10 = vsel %vm16914_vm7, %v2455_v6, %v9267_v47 }
  0xbf   :  { %9579 = vrot.lane.b32.xlu0 %v11349_v41, %s10807_s20  ;;  %v2647_v41 = vsel %vm16882_vm9, %v2582_v59, %v9281_v27  ;;  %v11761_v27 = vld [vmem:[%s16921_s26 + $0x118] sm:$0xff]  ;;  %v2585_v49 = vsel %vm16915_vm8, %v2520_v10, %v9277_v19  ;;  %v238_v19 = vrot.slane %v92_v3, 7  ;;  %v16969_v10 = vrot.slane %v11636_v23, 1 }
  0xc0   :  { %v11735_v2 = vpop.permute.xlu1 %9304  ;;  %v2712_v57 = vsel %vm2707_vm10, %v2647_v41, %v9291_v43  ;;  %v2713_v20 = vsel %vm2707_vm10, %v2648_v16, %v9292_v22  ;;  %v2650_v43 = vsel %vm16882_vm9, %v2585_v49, %v9287_v52  ;;  %v16964_v41 = vrot.slane %v11687_v14, 7 }
  0xc1   :  { %v9300_v54 = vpop.permute.xlu0 %9299  ;;  %v2715_v21 = vsel %vm2707_vm10, %v2650_v43, %v9297_v44  ;;  %v16965_v16 = vrot.slane %v11682_v63, 7  ;;  %v16770_v14 = vrot.slane %v11636_v23, 2 }
  0xc2   :  { %v9302_v51 = vunpack.i.h.bf16 %v9300_v54  ;;  %v9301_v12 = vunpack.i.l.bf16 %v9300_v54  ;;  %9594 = vrot.lane.b32.xlu1 %v11545_v34, %s16834_s23  ;;  %v16971_v63 = vmov %v16964_v41 }
  0xc3   :  { %9589 = vrot.lane.b32.xlu0 %v11366_v55, %s16834_s23  ;;  %v2584_v55 = vsel %vm16915_vm8, %v2519_v13, %v9276_v45  ;;  %v239_v45 = vrot.slane %v11761_v27, 7  ;;  %v424_v3 = vsel %vm186_vm0, %v16971_v63, 0.0 }
  0xc4   :  { %v2777_v38 = vsel %vm2772_vm11, %v2712_v57, %v9301_v12  ;;  %v2778_v24 = vsel %vm2772_vm11, %v2713_v20, %v9302_v51  ;;  %v11753_v8 = vpop.permute.xlu1 %9314  ;;  %v2649_v22 = vsel %vm16882_vm9, %v2584_v55, %v9286_v53  ;;  %v234_v51 = vsel %vm186_vm0, %v16965_v16, %v16964_v41 }
  0xc5   :  { %v9310_v6 = vpop.permute.xlu0 %9309  ;;  %v2839_v47 = vpack.c.bf16 %v2778_v24, %v2777_v38  ;;  %v2714_v59 = vsel %vm2707_vm10, %v2649_v22, %v9296_v48  ;;  %v16966_v12 = vmov %v16965_v16  ;;  %v16967_v57 = vrot.slane %v11631_v9, 1 }
  0xc6   :  { %v9312_v5 = vunpack.i.h.bf16 %v9310_v6  ;;  %v9311_v56 = vunpack.i.l.bf16 %v9310_v6  ;;  %9604 = vrot.lane.b32.xlu1 %v11590_v61, %s16799_s25  ;;  %v16968_v20 = vrot.slane %v11580_v32, 1  ;;  %v16970_v38 = vrot.slane %v11639_v1, 1 }
  0xc7   :  { %9599 = vrot.lane.b32.xlu0 %v11387_v33, %s16799_s25  ;;  %8904 = vmatprep.mubr.msk.bf16.mxu0 %vm2896_vm12, %v2839_v47  ;;  %v392_v33 = vsel %vm186_vm0, 0.0, %v16966_v12  ;;  %v16972_v9 = vrot.slane %v11580_v32, 2  ;;  %v16973_v55 = vrot.slane %v11583_v62, 2  ;;  %v733_v22 = vrot.slane %v11639_v1, 2 }
  0xc8   :  { %v2780_v53 = vsel %vm2772_vm11, %v2715_v21, %v9312_v5  ;;  %v2779_v52 = vsel %vm2772_vm11, %v2714_v59, %v9311_v56  ;;  %v11778_v54 = vpop.permute.xlu1 %9324  ;;  %v11795_v13 = vsel %vm16862_vm2, %v16968_v20, %v16967_v57  ;;  %v11802_v24 = vsel %vm16862_vm2, %v16970_v38, %v16969_v10 }
  0xc9   :  { %v11788_v44 = vpop.permute.xlu0 %9319  ;;  %v2840_v48 = vpack.c.bf16 %v2780_v53, %v2779_v52  ;;  %v11814_v49 = vsel %vm16867_vm1, %v16973_v55, %v16972_v9  ;;  %v16974_v6 = vmov %v16972_v9  ;;  %v812_v43 = vrot.slane %v392_v33, 1 }
  0xca   :  { %9614 = vrot.lane.b32.xlu1 %v11594_v30, %s10810_s27  ;;  %v11819_v47 = vsel %vm16867_vm1, %v16974_v6, %v731_v18  ;;  %v813_v5 = vrot.slane %v234_v51, 1  ;;  %v11827_v56 = vsel %vm186_vm0, 0.0, %v238_v19  ;;  %v11832_v59 = vsel %vm186_vm0, %v238_v19, %v239_v45 }
  0xcb   :  { %9609 = vrot.lane.b32.xlu0 %v11538_v26, %s10810_s27  ;;  %8905 = vmatmul.mubr.msk.bf16.gmra.mrb[4].mxu0 %vm2896_vm12, %v2840_v48  ;;  %16975 = vst [vmem:[#allocation33_spill] sm:$0xff] %v11827_v56  ;;  %16976 = vst [vmem:[#allocation34_spill] sm:$0xff] %v11832_v59  ;;  %v815_v21 = vrot.slane %v424_v3, 1  ;;  %v822_v53 = vrot.slane %v392_v33, 2  ;;  %v823_v52 = vrot.slane %v234_v51, 2  ;;  %v825_v41 = vrot.slane %v424_v3, 2 }
  0xcc   :  { %v11834_v18 = vpop.permute.xlu1 %9334  ;;  %v11840_v26 = vpack.i.bf16 %v11580_v32, %v11583_v62  ;;  %v11844_v12 = vpack.i.bf16 %v11795_v13, %v11666_v4  ;;  %v16977_v19 = vpack.i.bf16 %v11548_v42, %v11494_v58  ;;  %v11853_v48 = vsel %vm16867_vm1, %v733_v22, %v16770_v14 }
  0xcd   :  { %v11836_v16 = vpop.permute.xlu0 %9329  ;;  %16978 = vst [vmem:[#allocation35_spill] sm:$0xff] %v11853_v48  ;;  %v585_v57 = vrot.slane %v11827_v56, 1  ;;  %v16769_v20 = vrot.slane %v11832_v59, 1  ;;  %v11865_v58 = vpack.i.bf16 %v11819_v47, %v11814_v49  ;;  %v814_v63 = vsel %vm16862_vm2, %v812_v43, %v813_v5 }
  0xce   :  { %9624 = vrot.lane.b32.xlu1 %v16977_v19, %s10805_s1  ;;  %v816_v3 = vsel %vm16862_vm2, %v813_v5, %v815_v21  ;;  %v824_v9 = vsel %vm16867_vm1, %v822_v53, %v823_v52  ;;  %v738_v19 = vrot.slane %v11827_v56, 2  ;;  %v16768_v38 = vrot.slane %v11832_v59, 2 }
  0xcf   :  { %9619 = vrot.lane.b32.xlu0 %v11545_v34, %s10811_s28  ;;  %v826_v34 = vsel %vm16867_vm1, %v823_v52, %v825_v41  ;;  %v16979_v43 = vpack.i.bf16 %v11601_v31, %v11551_v29  ;;  %v11885_v5 = vpack.i.bf16 %v234_v51, %v392_v33  ;;  %v11890_v21 = vsel %vm16862_vm2, %v585_v57, %v16769_v20  ;;  %v11906_v29 = vld [vmem:[%s16921_s26 + $0x120] sm:$0xff]  ;;  %v11911_v31 = vld [vmem:[%s16921_s26 + $0x128] sm:$0xff] }
  0xd0   :  { %v11867_v42 = vpop.permute.xlu1 %9344  ;;  %v16980_v53 = vrot.slane %v11559_v28, 7  ;;  %v11899_v41 = vpack.i.bf16 %v816_v3, %v814_v63  ;;  %v11901_v22 = vpack.i.bf16 %v826_v34, %v824_v9  ;;  %v9237_v28 = vunpack.i.h.bf16 %v11474_v11  ;;  %v11944_v9 = vld [vmem:[%s16921_s26 + $0x130] sm:$0xff] }
  0xd1   :  { %v11873_v55 = vpop.permute.xlu0 %9339  ;;  %v9316_v51 = vunpack.i.l.bf16 %v11753_v8  ;;  %v16981_v57 = vmov 0.0   ;;  %v11928_v34 = vsel %vm16867_vm1, %v738_v19, %v16768_v38  ;;  %v11939_v6 = vsel %vm186_vm0, %v239_v45, 0.0  ;;  %v16986_v19 = vld [vmem:[#allocation7_spill] sm:$0xff] }
  0xd2   :  { %9634 = vrot.lane.b32.xlu1 %v16979_v43, %s10805_s1  ;;  %v11895_v52 = vsel %vm186_vm0, %v16980_v53, 0.0  ;;  %v11919_v63 = vpack.i.bf16 %v11827_v56, %v16981_v57  ;;  %v16982_v43 = vpack.i.bf16 %v11608_v17, %v11575_v50  ;;  %v16772_v10 = vrot.slane %v11911_v31, 7 }
  0xd3   :  { %9629 = vrot.lane.b32.xlu0 %v11605_v46, %s10811_s28  ;;  %v9247_v38 = vunpack.i.h.bf16 %v11499_v35  ;;  %v9307_v50 = vunpack.i.h.bf16 %v11735_v2  ;;  %v9306_v17 = vunpack.i.l.bf16 %v11735_v2  ;;  %v9326_v27 = vunpack.i.l.bf16 %v11778_v54 }
  0xd4   :  { %v11915_v33 = vpop.permute.xlu1 %9354  ;;  %v16983_v45 = vpack.i.bf16 %v11572_v25, %v11516_v60  ;;  %v2331_v20 = vsel %vm2323_vm4, %v11011_v0, %v9237_v28  ;;  %v2334_v35 = vsel %vm2323_vm4, %v11054_v39, %v9316_v51  ;;  %v9322_v2 = vunpack.i.h.bf16 %v11788_v44 }
  0xd5   :  { %v11921_v3 = vpop.permute.xlu0 %9349  ;;  %v9321_v53 = vunpack.i.l.bf16 %v11788_v44  ;;  %v9337_v60 = vunpack.i.h.bf16 %v11834_v18  ;;  %v9336_v25 = vunpack.i.l.bf16 %v11834_v18  ;;  %v9332_v0 = vunpack.i.h.bf16 %v11836_v16 }
  0xd6   :  { %9644 = vrot.lane.b32.xlu1 %v16982_v43, %s10804_s19  ;;  %v11959_v43 = vld [vmem:[%s16921_s26 + $0x138] sm:$0xff]  ;;  %v9331_v28 = vunpack.i.l.bf16 %v11836_v16  ;;  %v16984_v39 = vrot.slane %v11906_v29, 7  ;;  %v2393_v51 = vsel %vm2385_vm5, %v2331_v20, %v9247_v38  ;;  %v2333_v11 = vsel %vm2323_vm4, %v11057_v40, %v9307_v50 }
  0xd7   :  { %9639 = vrot.lane.b32.xlu0 %v16983_v45, %s10804_s19  ;;  %v2332_v16 = vsel %vm2323_vm4, %v16986_v19, %v9306_v17  ;;  %v2396_v57 = vsel %vm2385_vm5, %v2334_v35, %v9326_v27  ;;  %v2395_v62 = vsel %vm2385_vm5, %v2333_v11, %v9322_v2  ;;  %v9341_v18 = vunpack.i.l.bf16 %v11873_v55  ;;  %v16987_v35 = vld [vmem:[#allocation31_spill] sm:$0xff] }
  0xd8   :  { %v11967_v14 = vpop.permute.xlu1 %9364  ;;  %v11982_v44 = vsel %vm186_vm0, %v16984_v39, %v16772_v10  ;;  %v2394_v39 = vsel %vm2385_vm5, %v2332_v16, %v9321_v53  ;;  %v9342_v10 = vunpack.i.h.bf16 %v11873_v55  ;;  %v2458_v38 = vsel %vm2447_vm6, %v2395_v62, %v9336_v25 }
  0xd9   :  { %v9360_v45 = vpop.permute.xlu0 %9359  ;;  %16985 = vst [vmem:[#allocation36_spill] sm:$0xff] %v11982_v44  ;;  %v2459_v40 = vsel %vm2447_vm6, %v2396_v57, %v9337_v60  ;;  %v9352_v19 = vunpack.i.h.bf16 %v11921_v3  ;;  %v9351_v50 = vunpack.i.l.bf16 %v11921_v3  ;;  %v2457_v11 = vsel %vm2447_vm6, %v2394_v39, %v9332_v0 }
  0xda   :  { %9654 = vrot.lane.b32.xlu1 %v11628_v15, %s16928_s0  ;;  %v9362_v27 = vunpack.i.h.bf16 %v9360_v45  ;;  %v9361_v53 = vunpack.i.l.bf16 %v9360_v45  ;;  %v9347_v55 = vunpack.i.h.bf16 %v11867_v42  ;;  %v9346_v62 = vunpack.i.l.bf16 %v11867_v42 }
  0xdb   :  { %9649 = vrot.lane.b32.xlu0 %v11590_v61, %s16928_s0  ;;  %v2456_v61 = vsel %vm2447_vm6, %v2393_v51, %v9331_v28  ;;  %v2522_v60 = vsel %vm16914_vm7, %v2457_v11, %v9342_v10  ;;  %v9357_v25 = vunpack.i.h.bf16 %v11915_v33  ;;  %v9356_v45 = vunpack.i.l.bf16 %v11915_v33 }
  0xdc   :  { %v9375_v20 = vpop.permute.xlu1 %9374  ;;  %v2521_v3 = vsel %vm16914_vm7, %v2456_v61, %v9341_v18  ;;  %v2587_v51 = vsel %vm16915_vm8, %v2522_v60, %v9352_v19  ;;  %v9367_v42 = vunpack.i.h.bf16 %v11967_v14  ;;  %v9366_v16 = vunpack.i.l.bf16 %v11967_v14  ;;  %v16988_v61 = vld [vmem:[#allocation32_spill] sm:$0xff] }
  0xdd   :  { %v9370_v17 = vpop.permute.xlu0 %9369  ;;  %v2586_v28 = vsel %vm16915_vm8, %v2521_v3, %v9351_v50  ;;  %v2652_v18 = vsel %vm16882_vm9, %v2587_v51, %v9362_v27  ;;  %v9377_v33 = vunpack.i.h.bf16 %v9375_v20  ;;  %v9376_v11 = vunpack.i.l.bf16 %v9375_v20 }
  0xde   :  { %9664 = vrot.lane.b32.xlu1 %v16987_v35, %s10807_s20  ;;  %v9372_v2 = vunpack.i.h.bf16 %v9370_v17  ;;  %v9371_v57 = vunpack.i.l.bf16 %v9370_v17  ;;  %v2523_v14 = vsel %vm16914_vm7, %v2458_v38, %v9346_v62  ;;  %v17013_v32 = vpack.i.bf16 %v11853_v48, %v11819_v47 }
  0xdf   :  { %9659 = vrot.lane.b32.xlu0 %v11594_v30, %s10807_s20  ;;  %v2651_v30 = vsel %vm16882_vm9, %v2586_v28, %v9361_v53  ;;  %v2524_v53 = vsel %vm16914_vm7, %v2459_v40, %v9347_v55  ;;  %v2588_v28 = vsel %vm16915_vm8, %v2523_v14, %v9356_v45  ;;  %v16997_v14 = vrot.slane %v11895_v52, 1 }
  0xe0   :  { %v12013_v0 = vpop.permute.xlu1 %9384  ;;  %v2716_v50 = vsel %vm2707_vm10, %v2651_v30, %v9371_v57  ;;  %v2717_v19 = vsel %vm2707_vm10, %v2652_v18, %v9372_v2  ;;  %v2589_v20 = vsel %vm16915_vm8, %v2524_v53, %v9357_v25  ;;  %v16989_v2 = vrot.slane %v11959_v43, 7 }
  0xe1   :  { %v9380_v39 = vpop.permute.xlu0 %9379  ;;  %v2653_v40 = vsel %vm16882_vm9, %v2588_v28, %v9366_v16  ;;  %v2654_v55 = vsel %vm16882_vm9, %v2589_v20, %v9367_v42  ;;  %v16994_v42 = vrot.slane %v11911_v31, 7  ;;  %v16998_v53 = vrot.slane %v11636_v23, 1 }
  0xe2   :  { %v9382_v10 = vunpack.i.h.bf16 %v9380_v39  ;;  %v9381_v17 = vunpack.i.l.bf16 %v9380_v39  ;;  %9674 = vrot.lane.b32.xlu1 %v16988_v61, %s16834_s23  ;;  %v2718_v25 = vsel %vm2707_vm10, %v2653_v40, %v9376_v11  ;;  %v2719_v45 = vsel %vm2707_vm10, %v2654_v55, %v9377_v33 }
  0xe3   :  { %9669 = vrot.lane.b32.xlu0 %v11605_v46, %s16834_s23  ;;  %v16990_v46 = vrot.slane %v11944_v9, 7  ;;  %v427_v18 = vsel %vm186_vm0, %v16994_v42, 0.0  ;;  %v16995_v33 = vrot.slane %v11895_v52, 2  ;;  %v741_v9 = vrot.slane %v11939_v6, 2 }
  0xe4   :  { %v2781_v27 = vsel %vm2772_vm11, %v2716_v50, %v9381_v17  ;;  %v2782_v3 = vsel %vm2772_vm11, %v2717_v19, %v9382_v10  ;;  %v12031_v60 = vpop.permute.xlu1 %9394  ;;  %v591_v20 = vrot.slane %v11982_v44, 1  ;;  %v17002_v40 = vrot.slane %v11939_v6, 1 }
  0xe5   :  { %v9390_v57 = vpop.permute.xlu0 %9389  ;;  %v2841_v51 = vpack.c.bf16 %v2782_v3, %v2781_v27  ;;  %v12040_v38 = vsel %vm186_vm0, %v16990_v46, %v16989_v2  ;;  %v16992_v30 = vmov %v16990_v46  ;;  %v12078_v27 = vsel %vm16862_vm2, %v16998_v53, %v16997_v14  ;;  %v17001_v2 = vld [vmem:[#allocation5_spill] sm:$0xff]  ;;  %v12187_v14 = vld [vmem:[%s16921_s26 + $0x158] sm:$0xff] }
  0xe6   :  { %16991 = vst [vmem:[#allocation7_spill] sm:$0xff] %v12040_v38  ;;  %v9392_v62 = vunpack.i.h.bf16 %v9390_v57  ;;  %v9391_v39 = vunpack.i.l.bf16 %v9390_v57  ;;  %9684 = vrot.lane.b32.xlu1 %v11840_v26, %s16799_s25  ;;  %v12054_v16 = vsel %vm186_vm0, 0.0, %v16992_v30  ;;  %v16999_v3 = vrot.slane %v11906_v29, 7 }
  0xe7   :  { %9679 = vrot.lane.b32.xlu0 %v11628_v15, %s16799_s25  ;;  %8908 = vmatprep.mubr.msk.bf16.mxu0 %vm2896_vm12, %v2841_v51  ;;  %16993 = vst [vmem:[#allocation31_spill] sm:$0xff] %v12054_v16  ;;  %v16996_v15 = vrot.slane %v11636_v23, 2  ;;  %v593_v57 = vrot.slane %v427_v18, 1  ;;  %v595_v51 = vrot.slane %v12054_v16, 1  ;;  %v596_v52 = vrot.slane %v12040_v38, 1 }
  0xe8   :  { %v2784_v10 = vsel %vm2772_vm11, %v2719_v45, %v9392_v62  ;;  %v2783_v17 = vsel %vm2772_vm11, %v2718_v25, %v9391_v39  ;;  %v12061_v11 = vpop.permute.xlu1 %9404  ;;  %v12083_v28 = vsel %vm186_vm0, 0.0, %v16999_v3  ;;  %v17003_v55 = vrot.slane %v11832_v59, 1 }
  0xe9   :  { %v12068_v50 = vsel %vm16867_vm1, %v16996_v15, %v16995_v33  ;;  %v12071_v19 = vpop.permute.xlu0 %9399  ;;  %v2842_v31 = vpack.c.bf16 %v2784_v10, %v2783_v17  ;;  %17000 = vst [vmem:[#allocation32_spill] sm:$0xff] %v12083_v28  ;;  %v17004_v25 = vrot.slane %v11832_v59, 2  ;;  %v590_v45 = vrot.slane %v12083_v28, 1 }
  0xea   :  { %9694 = vrot.lane.b32.xlu1 %v11844_v12, %s10810_s27  ;;  %v12102_v62 = vsel %vm16862_vm2, %v17003_v55, %v17002_v40  ;;  %v743_v30 = vrot.slane %v12083_v28, 2  ;;  %v744_v42 = vrot.slane %v11982_v44, 2  ;;  %v746_v17 = vrot.slane %v427_v18, 2 }
  0xeb   :  { %9689 = vrot.lane.b32.xlu0 %v16987_v35, %s10810_s27  ;;  %8909 = vmatmul.mubr.msk.bf16.gmra.mrb[8].mxu0 %vm2896_vm12, %v2842_v31  ;;  %v12109_v35 = vsel %vm16867_vm1, %v17004_v25, %v741_v9  ;;  %v748_v33 = vrot.slane %v12054_v16, 2  ;;  %v749_v15 = vrot.slane %v12040_v38, 2  ;;  %v17006_v9 = vpack.i.bf16 %v11666_v4, %v11617_v37  ;;  %v100_v4 = vld [vmem:[%s16921_s26 + $0x150] sm:$0xff] }
  0xec   :  { %v12104_v39 = vpop.permute.xlu1 %9414  ;;  %17005 = vst [vmem:[#allocation37_spill] sm:$0xff] %v12109_v35  ;;  %v12129_v53 = vsel %vm16862_vm2, %v591_v20, %v593_v57  ;;  %v12132_v18 = vsel %vm16862_vm2, %v595_v51, %v596_v52  ;;  %v17007_v40 = vrot.slane %v11959_v43, 7  ;;  %v98_v51 = vld [vmem:[%s16921_s26 + $0x140] sm:$0xff]  ;;  %v12158_v43 = vsel %vm16862_vm2, %v590_v45, %v591_v20 }
  0xed   :  { %v12114_v10 = vpop.permute.xlu0 %9409  ;;  %v12169_v3 = vpack.i.bf16 %v12132_v18, %v12129_v53  ;;  %v12172_v25 = vsel %vm16867_vm1, %v744_v42, %v746_v17  ;;  %v17009_v20 = vpack.i.bf16 %v11802_v24, %v11795_v13  ;;  %v12193_v13 = vpack.i.bf16 %v12158_v43, %v12102_v62 }
  0xee   :  { %9704 = vrot.lane.b32.xlu1 %v17006_v9, %s10805_s1  ;;  %v428_v57 = vsel %vm186_vm0, %v17007_v40, 0.0  ;;  %v12161_v40 = vsel %vm16867_vm1, %v743_v30, %v744_v42  ;;  %v12175_v9 = vsel %vm16867_vm1, %v748_v33, %v749_v15  ;;  %v247_v42 = vrot.slane %v98_v51, 7 }
  0xef   :  { %9699 = vrot.lane.b32.xlu0 %v16988_v61, %s10811_s28  ;;  %v99_v61 = vld [vmem:[%s16921_s26 + $0x148] sm:$0xff]  ;;  %17008 = vst [vmem:[#allocation38_spill] sm:$0xff] %v12169_v3  ;;  %v598_v45 = vrot.slane %v428_v57, 1  ;;  %v751_v30 = vrot.slane %v428_v57, 2  ;;  %17010 = vst [vmem:[#allocation39_spill] sm:$0xff] %v12193_v13  ;;  %v12197_v33 = vpack.i.bf16 %v12161_v40, %v12109_v35  ;;  %v9317_v57 = vunpack.i.h.bf16 %v11753_v8 }
  0xf0   :  { %v12151_v55 = vpop.permute.xlu1 %9424  ;;  %v248_v17 = vrot.slane %v99_v61, 7  ;;  %v12205_v51 = vpack.i.bf16 %v12175_v9, %v12172_v25  ;;  %v250_v46 = vrot.slane %v100_v4, 7  ;;  %v9327_v4 = vunpack.i.h.bf16 %v11778_v54 }
  0xf1   :  { %v12163_v37 = vpop.permute.xlu0 %9419  ;;  %17011 = vst [vmem:[#allocation40_spill] sm:$0xff] %v12197_v33  ;;  %v12217_v33 = vsel %vm16862_vm2, %v596_v52, %v598_v45  ;;  %v9387_v6 = vunpack.i.h.bf16 %v12013_v0  ;;  %v9386_v29 = vunpack.i.l.bf16 %v12013_v0  ;;  %v17015_v47 = vpack.i.bf16 %v11814_v49, %v11620_v36  ;;  %v17016_v52 = vld [vmem:[#allocation9_spill] sm:$0xff]  ;;  %v17017_v45 = vld [vmem:[#allocation11_spill] sm:$0xff] }
  0xf2   :  { %9714 = vrot.lane.b32.xlu1 %v17009_v20, %s10805_s1  ;;  %v9396_v20 = vunpack.i.l.bf16 %v12031_v60  ;;  %17012 = vst [vmem:[#allocation41_spill] sm:$0xff] %v12205_v51  ;;  %v12220_v51 = vsel %vm16867_vm1, %v749_v15, %v751_v30  ;;  %v12223_v13 = vsel %vm186_vm0, %v247_v42, %v248_v17  ;;  %v2335_v15 = vsel %vm2323_vm4, %v17016_v52, %v9317_v57 }
  0xf3   :  { %9709 = vrot.lane.b32.xlu0 %v11865_v58, %s10811_s28  ;;  %17014 = vst [vmem:[#allocation42_spill] sm:$0xff] %v12223_v13  ;;  %v9402_v8 = vunpack.i.h.bf16 %v12071_v19  ;;  %v9401_v54 = vunpack.i.l.bf16 %v12071_v19  ;;  %v9417_v0 = vunpack.i.h.bf16 %v12104_v39  ;;  %v9416_v28 = vunpack.i.l.bf16 %v12104_v39 }
  0xf4   :  { %v12201_v31 = vpop.permute.xlu1 %9434  ;;  %v2338_v30 = vsel %vm2323_vm4, %v17017_v45, %v9396_v20  ;;  %v17018_v36 = vrot.slane %v12187_v14, 7  ;;  %v12249_v57 = vsel %vm186_vm0, 0.0, %v247_v42  ;;  %v9412_v20 = vunpack.i.h.bf16 %v12114_v10  ;;  %v17022_v45 = vld [vmem:[#allocation10_spill] sm:$0xff]  ;;  %v17023_v42 = vld [vmem:[#allocation8_spill] sm:$0xff] }
  0xf5   :  { %v9430_v61 = vpop.permute.xlu0 %9429  ;;  %17020 = vst [vmem:[#allocation11_spill] sm:$0xff] %v12249_v57  ;;  %v12256_v19 = vsel %vm186_vm0, 0.0, %v250_v46  ;;  %v12259_v39 = vsel %vm186_vm0, %v248_v17, 0.0  ;;  %v2397_v52 = vsel %vm2385_vm5, %v2335_v15, %v9327_v4  ;;  %v2336_v16 = vsel %vm2323_vm4, %v17023_v42, %v9386_v29 }
  0xf6   :  { %9724 = vrot.lane.b32.xlu1 %v17013_v32, %s10804_s19  ;;  %v9406_v32 = vunpack.i.l.bf16 %v12061_v11  ;;  %v12246_v49 = vsel %vm186_vm0, %v250_v46, %v17018_v36  ;;  %17021 = vst [vmem:[#allocation43_spill] sm:$0xff] %v12256_v19  ;;  %v2337_v36 = vsel %vm2323_vm4, %v17022_v45, %v9387_v6  ;;  %v2398_v46 = vsel %vm2385_vm5, %v2336_v16, %v9401_v54 }
  0xf7   :  { %9719 = vrot.lane.b32.xlu0 %v17015_v47, %s10804_s19  ;;  %17019 = vst [vmem:[#allocation9_spill] sm:$0xff] %v12246_v49  ;;  %v9411_v47 = vunpack.i.l.bf16 %v12114_v10  ;;  %v2399_v10 = vsel %vm2385_vm5, %v2337_v36, %v9402_v8  ;;  %v9422_v17 = vunpack.i.h.bf16 %v12163_v37  ;;  %v9421_v35 = vunpack.i.l.bf16 %v12163_v37 }
  0xf8   :  { %v12239_v3 = vpop.permute.xlu1 %9444  ;;  %v2400_v48 = vsel %vm2385_vm5, %v2338_v30, %v9406_v32  ;;  %v2462_v15 = vsel %vm2447_vm6, %v2399_v10, %v9416_v28  ;;  %v9432_v45 = vunpack.i.h.bf16 %v9430_v61  ;;  %v9431_v29 = vunpack.i.l.bf16 %v9430_v61 }
  0xf9   :  { %v9440_v44 = vpop.permute.xlu0 %9439  ;;  %v2463_v6 = vsel %vm2447_vm6, %v2400_v48, %v9417_v0  ;;  %v2460_v32 = vsel %vm2447_vm6, %v2397_v52, %v9411_v47  ;;  %v9427_v16 = vunpack.i.h.bf16 %v12151_v55  ;;  %v9426_v37 = vunpack.i.l.bf16 %v12151_v55 }
  0xfa   :  { %9734 = vrot.lane.b32.xlu1 %v11885_v5, %s16928_s0  ;;  %v9442_v30 = vunpack.i.h.bf16 %v9440_v44  ;;  %v9441_v8 = vunpack.i.l.bf16 %v9440_v44  ;;  %v2525_v48 = vsel %vm16914_vm7, %v2460_v32, %v9421_v35  ;;  %v9437_v0 = vunpack.i.h.bf16 %v12201_v31 }
  0xfb   :  { %9729 = vrot.lane.b32.xlu0 %v11840_v26, %s16928_s0  ;;  %v2461_v26 = vsel %vm2447_vm6, %v2398_v46, %v9412_v20  ;;  %v9436_v44 = vunpack.i.l.bf16 %v12201_v31  ;;  %v2590_v47 = vsel %vm16915_vm8, %v2525_v48, %v9431_v29  ;;  %v9447_v55 = vunpack.i.h.bf16 %v12239_v3 }
  0xfc   :  { %v9455_v4 = vpop.permute.xlu1 %9454  ;;  %v2526_v61 = vsel %vm16914_vm7, %v2461_v26, %v9422_v17  ;;  %v9446_v36 = vunpack.i.l.bf16 %v12239_v3  ;;  %v2527_v3 = vsel %vm16914_vm7, %v2462_v15, %v9426_v37  ;;  %v2528_v32 = vsel %vm16914_vm7, %v2463_v6, %v9427_v16 }
  0xfd   :  { %v9450_v42 = vpop.permute.xlu0 %9449  ;;  %v2591_v52 = vsel %vm16915_vm8, %v2526_v61, %v9432_v45  ;;  %v9457_v31 = vunpack.i.h.bf16 %v9455_v4  ;;  %v2592_v48 = vsel %vm16915_vm8, %v2527_v3, %v9436_v44  ;;  %v605_v44 = vrot.slane %v12256_v19, 1 }
  0xfe   :  { %9744 = vrot.lane.b32.xlu1 %v11899_v41, %s10807_s20  ;;  %v9452_v54 = vunpack.i.h.bf16 %v9450_v42  ;;  %v9451_v28 = vunpack.i.l.bf16 %v9450_v42  ;;  %v2656_v35 = vsel %vm16882_vm9, %v2591_v52, %v9442_v30  ;;  %v9456_v42 = vunpack.i.l.bf16 %v9455_v4 }
  0xff   :  { %9739 = vrot.lane.b32.xlu0 %v11844_v12, %s10807_s20  ;;  %v2655_v12 = vsel %vm16882_vm9, %v2590_v47, %v9441_v8  ;;  %v2593_v4 = vsel %vm16915_vm8, %v2528_v32, %v9437_v0  ;;  %v603_v0 = vrot.slane %v12259_v39, 1  ;;  %v758_v3 = vrot.slane %v12256_v19, 2 }
 0x100   :  { %v12287_v20 = vpop.permute.xlu1 %9464  ;;  %v2720_v29 = vsel %vm2707_vm10, %v2655_v12, %v9451_v28  ;;  %v2721_v45 = vsel %vm2707_vm10, %v2656_v35, %v9452_v54  ;;  %v601_v54 = vrot.slane %v12223_v13, 1  ;;  %v2658_v15 = vsel %vm16882_vm9, %v2593_v4, %v9447_v55  ;;  %v103_v12 = vld [vmem:[%s16921_s26 + $0x168] sm:$0xff]  ;;  %v12355_v4 = vld [vmem:[%s16921_s26 + $0x178] sm:$0xff] }
 0x101   :  { %v9460_v10 = vpop.permute.xlu0 %9459  ;;  %v2723_v47 = vsel %vm2707_vm10, %v2658_v15, %v9457_v31  ;;  %v753_v31 = vrot.slane %v12249_v57, 2  ;;  %v759_v32 = vrot.slane %v12246_v49, 2 }
 0x102   :  { %v9462_v46 = vunpack.i.h.bf16 %v9460_v10  ;;  %v9461_v17 = vunpack.i.l.bf16 %v9460_v10  ;;  %9754 = vrot.lane.b32.xlu1 %v11901_v22, %s16834_s23  ;;  %v600_v10 = vrot.slane %v12249_v57, 1 }
 0x103   :  { %9749 = vrot.lane.b32.xlu0 %v11865_v58, %s16834_s23  ;;  %v2657_v58 = vsel %vm16882_vm9, %v2592_v48, %v9446_v36  ;;  %v104_v48 = vld [vmem:[%s16921_s26 + $0x170] sm:$0xff] }
 0x104   :  { %v2785_v26 = vsel %vm2772_vm11, %v2720_v29, %v9461_v17  ;;  %v2786_v30 = vsel %vm2772_vm11, %v2721_v45, %v9462_v46  ;;  %v12305_v8 = vpop.permute.xlu1 %9474  ;;  %v2722_v16 = vsel %vm2707_vm10, %v2657_v58, %v9456_v42  ;;  %v754_v42 = vrot.slane %v12223_v13, 2 }
 0x105   :  { %v9470_v28 = vpop.permute.xlu0 %9469  ;;  %v2843_v61 = vpack.c.bf16 %v2786_v30, %v2785_v26  ;;  %v17024_v29 = vpack.i.bf16 %v11890_v21, %v10928_v7  ;;  %v756_v45 = vrot.slane %v12259_v39, 2  ;;  %v17025_v26 = vrot.slane %v12187_v14, 7  ;;  %v17044_v39 = vld [vmem:[#allocation14_spill] sm:$0xff] }
 0x106   :  { %v9472_v37 = vunpack.i.h.bf16 %v9470_v28  ;;  %v9471_v6 = vunpack.i.l.bf16 %v9470_v28  ;;  %9764 = vrot.lane.b32.xlu1 %v11919_v63, %s16799_s25  ;;  %v606_v63 = vrot.slane %v12246_v49, 1  ;;  %v9397_v14 = vunpack.i.h.bf16 %v12031_v60 }
 0x107   :  { %9759 = vrot.lane.b32.xlu0 %v11885_v5, %s16799_s25  ;;  %8912 = vmatprep.mubr.msk.bf16.mxu0 %vm2896_vm12, %v2843_v61  ;;  %v102_v5 = vld [vmem:[%s16921_s26 + $0x160] sm:$0xff]  ;;  %v430_v30 = vsel %vm186_vm0, %v17025_v26, 0.0  ;;  %v254_v61 = vrot.slane %v103_v12, 7  ;;  %v9407_v7 = vunpack.i.h.bf16 %v12061_v11  ;;  %v9466_v11 = vunpack.i.l.bf16 %v12287_v20 }
 0x108   :  { %v2788_v52 = vsel %vm2772_vm11, %v2723_v47, %v9472_v37  ;;  %v2787_v55 = vsel %vm2772_vm11, %v2722_v16, %v9471_v6  ;;  %v12323_v36 = vpop.permute.xlu1 %9484  ;;  %v253_v28 = vrot.slane %v102_v5, 7  ;;  %v12369_v37 = vsel %vm16862_vm2, %v601_v54, %v603_v0 }
 0x109   :  { %v12333_v35 = vpop.permute.xlu0 %9479  ;;  %v2844_v46 = vpack.c.bf16 %v2788_v52, %v2787_v55  ;;  %17026 = vst [vmem:[#allocation10_spill] sm:$0xff] %v12369_v37  ;;  %v12375_v6 = vsel %vm16862_vm2, %v600_v10, %v601_v54  ;;  %v12380_v47 = vsel %vm16867_vm1, %v753_v31, %v754_v42  ;;  %v608_v52 = vrot.slane %v430_v30, 1 }
 0x10a   :  { %9774 = vrot.lane.b32.xlu1 %v17024_v29, %s10810_s27  ;;  %17028 = vst [vmem:[#allocation44_spill] sm:$0xff] %v12375_v6  ;;  %17029 = vst [vmem:[#allocation45_spill] sm:$0xff] %v12380_v47  ;;  %v256_v55 = vrot.slane %v104_v48, 7  ;;  %v16786_v5 = vrot.slane %v12355_v4, 7  ;;  %v17030_v0 = vpack.i.bf16 %v11928_v34, %v17001_v2  ;;  %v12390_v54 = vsel %vm16867_vm1, %v754_v42, %v756_v45 }
 0x10b   :  { %9769 = vrot.lane.b32.xlu0 %v11899_v41, %s10810_s27  ;;  %8913 = vmatmul.mubr.msk.bf16.gmra.mrb[12].mxu0 %vm2896_vm12, %v2844_v46  ;;  %v12372_v41 = vsel %vm16862_vm2, %v605_v44, %v606_v63  ;;  %17031 = vst [vmem:[#allocation46_spill] sm:$0xff] %v12390_v54  ;;  %v12393_v10 = vsel %vm16867_vm1, %v758_v3, %v759_v32  ;;  %v761_v12 = vrot.slane %v430_v30, 2  ;;  %v12407_v42 = vsel %vm186_vm0, %v254_v61, 0.0 }
 0x10c   :  { %v12364_v58 = vpop.permute.xlu1 %9494  ;;  %17027 = vst [vmem:[#allocation8_spill] sm:$0xff] %v12372_v41  ;;  %17032 = vst [vmem:[#allocation47_spill] sm:$0xff] %v12393_v10  ;;  %v12401_v31 = vpack.i.bf16 %v12372_v41, %v12369_v37  ;;  %v12404_v29 = vsel %vm186_vm0, %v253_v28, %v254_v61  ;;  %v12413_v3 = vpack.i.bf16 %v12375_v6, %v12217_v33  ;;  %v12444_v15 = vsel %vm186_vm0, 0.0, %v253_v28  ;;  %v17042_v6 = vld [vmem:[#allocation13_spill] sm:$0xff] }
 0x10d   :  { %v12377_v16 = vpop.permute.xlu0 %9489  ;;  %17033 = vst [vmem:[#allocation48_spill] sm:$0xff] %v12404_v29  ;;  %v12423_v30 = vpack.i.bf16 %v12393_v10, %v12390_v54  ;;  %v12426_v48 = vsel %vm16862_vm2, %v606_v63, %v608_v52  ;;  %v12431_v61 = vsel %vm186_vm0, %v256_v55, %v16786_v5  ;;  %v17036_v46 = vpack.i.bf16 %v11928_v34, %v12068_v50 }
 0x10e   :  { %9784 = vrot.lane.b32.xlu1 %v17030_v0, %s10811_s28  ;;  %17034 = vst [vmem:[#allocation49_spill] sm:$0xff] %v12431_v61  ;;  %v12434_v0 = vsel %vm186_vm0, 0.0, %v256_v55  ;;  %v12441_v44 = vsel %vm16867_vm1, %v759_v32, %v761_v12  ;;  %17038 = vst [vmem:[#allocation52_spill] sm:$0xff] %v12444_v15  ;;  %v611_v63 = vrot.slane %v12404_v29, 1  ;;  %v613_v52 = vrot.slane %v12407_v42, 1 }
 0x10f   :  { %9779 = vrot.lane.b32.xlu0 %v11901_v22, %s10811_s28  ;;  %v12417_v22 = vpack.i.bf16 %v12380_v47, %v12220_v51  ;;  %17035 = vst [vmem:[#allocation50_spill] sm:$0xff] %v12434_v0  ;;  %17037 = vst [vmem:[#allocation51_spill] sm:$0xff] %v12441_v44  ;;  %v17039_v55 = vpack.i.bf16 %v11890_v21, %v12078_v27  ;;  %v9476_v32 = vunpack.i.l.bf16 %v12305_v8  ;;  %v615_v17 = vrot.slane %v12434_v0, 1 }
 0x110   :  { %v12409_v45 = vpop.permute.xlu1 %9504  ;;  %v610_v2 = vrot.slane %v12444_v15, 1  ;;  %v17040_v28 = vpack.i.bf16 %v11832_v59, %v11827_v56  ;;  %v9467_v10 = vunpack.i.h.bf16 %v12287_v20  ;;  %v9486_v37 = vunpack.i.l.bf16 %v12323_v36 }
 0x111   :  { %v12419_v26 = vpop.permute.xlu0 %9499  ;;  %v2342_v5 = vsel %vm2323_vm4, %v17044_v39, %v9476_v32  ;;  %v9481_v56 = vunpack.i.l.bf16 %v12333_v35  ;;  %v9496_v54 = vunpack.i.l.bf16 %v12364_v58 }
 0x112   :  { %9794 = vrot.lane.b32.xlu1 %v17036_v46, %s10804_s19  ;;  %v2339_v46 = vsel %vm2323_vm4, %v17042_v6, %v9397_v14  ;;  %v17045_v14 = vrot.slane %v12431_v61, 1  ;;  %v9497_v6 = vunpack.i.h.bf16 %v12364_v58  ;;  %v17048_v58 = vld [vmem:[#allocation15_spill] sm:$0xff]  ;;  %v2404_v39 = vsel %vm2385_vm5, %v2342_v5, %v9486_v37 }
 0x113   :  { %9789 = vrot.lane.b32.xlu0 %v17039_v55, %s10805_s1  ;;  %v12481_v55 = vsel %vm16862_vm2, %v611_v63, %v613_v52  ;;  %v9482_v52 = vunpack.i.h.bf16 %v12333_v35  ;;  %v2401_v32 = vsel %vm2385_vm5, %v2339_v46, %v9407_v7  ;;  %v9492_v35 = vunpack.i.h.bf16 %v12377_v16 }
 0x114   :  { %v12456_v12 = vpop.permute.xlu1 %9514  ;;  %17041 = vst [vmem:[#allocation53_spill] sm:$0xff] %v12481_v55  ;;  %v12501_v20 = vsel %vm16862_vm2, %v615_v17, %v17045_v14  ;;  %v17047_v17 = vpack.i.bf16 %v12102_v62, %v11890_v21  ;;  %v764_v14 = vrot.slane %v12404_v29, 2  ;;  %v2341_v41 = vsel %vm2323_vm4, %v17048_v58, %v9467_v10 }
 0x115   :  { %v12462_v60 = vpop.permute.xlu0 %9509  ;;  %v17050_v7 = vpack.i.bf16 %v12078_v27, %v11802_v24  ;;  %v2403_v21 = vsel %vm2385_vm5, %v2341_v41, %v9482_v52  ;;  %v9502_v46 = vunpack.i.h.bf16 %v12419_v26  ;;  %v9501_v10 = vunpack.i.l.bf16 %v12419_v26 }
 0x116   :  { %9804 = vrot.lane.b32.xlu1 %v17040_v28, %s16928_s0  ;;  %v17043_v28 = vpack.i.bf16 %v11636_v23, %v11639_v1  ;;  %v9491_v1 = vunpack.i.l.bf16 %v12377_v16  ;;  %v766_v16 = vrot.slane %v12407_v42, 2  ;;  %v2467_v37 = vsel %vm2447_vm6, %v2404_v39, %v9497_v6 }
 0x117   :  { %v9512_v5 = vunpack.i.h.bf16 %v12462_v60  ;;  %v9511_v24 = vunpack.i.l.bf16 %v12462_v60  ;;  %v9506_v6 = vunpack.i.l.bf16 %v12409_v45  ;;  %v17053_v60 = vld [vmem:[#allocation35_spill] sm:$0xff] }
 0x118   :  { %9799 = vrot.lane.b32.xlu0 %v17043_v28, %s16928_s0  ;;  %v12496_v47 = vpop.permute.xlu1 %9524  ;;  %v12506_v28 = vsel %vm16862_vm2, %v610_v2, %v611_v63  ;;  %v17049_v2 = vld [vmem:[#allocation12_spill] sm:$0xff]  ;;  %v2464_v58 = vsel %vm2447_vm6, %v2401_v32, %v9491_v1  ;;  %v9517_v32 = vunpack.i.h.bf16 %v12456_v12 }
 0x119   :  { %v9520_v23 = vpop.permute.xlu0 %9519  ;;  %17046 = vst [vmem:[#allocation13_spill] sm:$0xff] %v12506_v28  ;;  %v2340_v63 = vsel %vm2323_vm4, %v17049_v2, %v9466_v11  ;;  %v2466_v11 = vsel %vm2447_vm6, %v2403_v21, %v9496_v54  ;;  %v17051_v2 = vld [vmem:[#allocation37_spill] sm:$0xff]  ;;  %v9507_v54 = vunpack.i.h.bf16 %v12409_v45  ;;  %v2529_v1 = vsel %vm16914_vm7, %v2464_v58, %v9501_v10 }
 0x11a   :  { %9814 = vrot.lane.b32.xlu1 %v17047_v17, %s10807_s20  ;;  %v2402_v62 = vsel %vm2385_vm5, %v2340_v63, %v9481_v56  ;;  %v9522_v52 = vunpack.i.h.bf16 %v9520_v23  ;;  %v9521_v56 = vunpack.i.l.bf16 %v9520_v23  ;;  %v17052_v26 = vpack.i.bf16 %v17051_v2, %v11928_v34 }
 0x11b   :  { %v2465_v41 = vsel %vm2447_vm6, %v2402_v62, %v9492_v35  ;;  %v9516_v34 = vunpack.i.l.bf16 %v12456_v12  ;;  %v2594_v21 = vsel %vm16915_vm8, %v2529_v1, %v9511_v24  ;;  %v9527_v62 = vunpack.i.h.bf16 %v12496_v47  ;;  %v17056_v12 = vld [vmem:[#allocation36_spill] sm:$0xff] }
 0x11c   :  { %9809 = vrot.lane.b32.xlu0 %v17050_v7, %s10807_s20  ;;  %v9535_v17 = vpop.permute.xlu1 %9534  ;;  %v17054_v7 = vpack.i.bf16 %v12068_v50, %v17053_v60  ;;  %v2530_v23 = vsel %vm16914_vm7, %v2465_v41, %v9502_v46  ;;  %v2659_v2 = vsel %vm16882_vm9, %v2594_v21, %v9521_v56  ;;  %v17055_v41 = vld [vmem:[#allocation31_spill] sm:$0xff]  ;;  %v2532_v56 = vsel %vm16914_vm7, %v2467_v37, %v9507_v54  ;;  %v107_v37 = vld [vmem:[%s16921_s26 + $0x188] sm:$0xff] }
 0x11d   :  { %v9530_v27 = vpop.permute.xlu0 %9529  ;;  %v2595_v45 = vsel %vm16915_vm8, %v2530_v23, %v9512_v5  ;;  %v9537_v60 = vunpack.i.h.bf16 %v9535_v17  ;;  %v9536_v24 = vunpack.i.l.bf16 %v9535_v17 }
 0x11e   :  { %9824 = vrot.lane.b32.xlu1 %v17052_v26, %s16834_s23  ;;  %v9532_v39 = vunpack.i.h.bf16 %v9530_v27  ;;  %v9531_v63 = vunpack.i.l.bf16 %v9530_v27  ;;  %v9526_v27 = vunpack.i.l.bf16 %v12496_v47  ;;  %v2660_v10 = vsel %vm16882_vm9, %v2595_v45, %v9522_v52  ;;  %v17058_v47 = vld [vmem:[#allocation32_spill] sm:$0xff] }
 0x11f   :  { %v17057_v26 = vpack.i.bf16 %v17055_v41, %v17056_v12  ;;  %v17059_v1 = vpack.i.bf16 %v17058_v47, %v11832_v59  ;;  %v2531_v52 = vsel %vm16914_vm7, %v2466_v11, %v9506_v6  ;;  %v106_v11 = vld [vmem:[%s16921_s26 + $0x180] sm:$0xff] }
 0x120   :  { %9819 = vrot.lane.b32.xlu0 %v17054_v7, %s16834_s23  ;;  %v12551_v35 = vpop.permute.xlu1 %9544  ;;  %v2724_v5 = vsel %vm2707_vm10, %v2659_v2, %v9531_v63  ;;  %v2725_v7 = vsel %vm2707_vm10, %v2660_v10, %v9532_v39  ;;  %v2596_v17 = vsel %vm16915_vm8, %v2531_v52, %v9516_v34  ;;  %v2597_v63 = vsel %vm16915_vm8, %v2532_v56, %v9517_v32  ;;  %v17060_v32 = vld [vmem:[#allocation38_spill] sm:$0xff] }
 0x121   :  { %v9540_v50 = vpop.permute.xlu0 %9539  ;;  %v768_v2 = vrot.slane %v12434_v0, 2  ;;  %v2661_v54 = vsel %vm16882_vm9, %v2596_v17, %v9526_v27  ;;  %v2662_v6 = vsel %vm16882_vm9, %v2597_v63, %v9527_v62  ;;  %v17061_v62 = vld [vmem:[#allocation39_spill] sm:$0xff]  ;;  %v17063_v63 = vrot.slane %v12444_v15, 2 }
 0x122   :  { %v9542_v46 = vunpack.i.h.bf16 %v9540_v50  ;;  %v9541_v58 = vunpack.i.l.bf16 %v9540_v50  ;;  %9834 = vrot.lane.b32.xlu1 %v17057_v26, %s16799_s25  ;;  %v2726_v26 = vsel %vm2707_vm10, %v2661_v54, %v9536_v24  ;;  %v2727_v27 = vsel %vm2707_vm10, %v2662_v6, %v9537_v60  ;;  %v17067_v6 = vld [vmem:[#allocation40_spill] sm:$0xff] }
 0x123   :  { %v259_v24 = vrot.slane %v106_v11, 7  ;;  %v12629_v54 = vpack.i.bf16 %v12506_v28, %v12426_v48  ;;  %v17077_v11 = vrot.slane %v12431_v61, 1  ;;  %v17083_v28 = vpack.i.bf16 %v12040_v38, %v17055_v41 }
 0x124   :  { %9829 = vrot.lane.b32.xlu0 %v17059_v1, %s16799_s25  ;;  %v2789_v23 = vsel %vm2772_vm11, %v2724_v5, %v9541_v58  ;;  %v2790_v21 = vsel %vm2772_vm11, %v2725_v7, %v9542_v46  ;;  %v12573_v45 = vpop.permute.xlu1 %9554  ;;  %v108_v46 = vld [vmem:[%s16921_s26 + $0x190] sm:$0xff]  ;;  %v12594_v58 = vld [vmem:[%s16921_s26 + $0x198] sm:$0xff]  ;;  %v769_v5 = vrot.slane %v12431_v61, 2  ;;  %v17062_v7 = vrot.slane %v12355_v4, 7 }
 0x125   :  { %v9550_v39 = vpop.permute.xlu0 %9549  ;;  %v2845_v50 = vpack.c.bf16 %v2790_v21, %v2789_v23  ;;  %v260_v21 = vrot.slane %v107_v37, 7  ;;  %v262_v4 = vrot.slane %v108_v46, 7  ;;  %v12625_v37 = vpack.i.bf16 %v12501_v20, %v12481_v55  ;;  %17066 = vst [vmem:[#allocation12_spill] sm:$0xff] %v12629_v54 }
 0x126   :  { %v9552_v10 = vunpack.i.h.bf16 %v9550_v39  ;;  %v9551_v34 = vunpack.i.l.bf16 %v9550_v39  ;;  %9844 = vrot.lane.b32.xlu1 %v17060_v32, %s10810_s27  ;;  %v432_v1 = vsel %vm186_vm0, %v17062_v7, 0.0  ;;  %v12616_v39 = vsel %vm16867_vm1, %v17063_v63, %v764_v14 }
 0x127   :  { %8916 = vmatprep.mubr.msk.bf16.mxu0 %vm2896_vm12, %v2845_v50  ;;  %17064 = vst [vmem:[#allocation14_spill] sm:$0xff] %v12616_v39  ;;  %v16801_v50 = vrot.slane %v12594_v58, 7  ;;  %17065 = vst [vmem:[#allocation15_spill] sm:$0xff] %v12625_v37  ;;  %v618_v46 = vrot.slane %v432_v1, 1  ;;  %v12651_v7 = vsel %vm186_vm0, %v259_v24, %v260_v21  ;;  %v12654_v42 = vsel %vm186_vm0, %v260_v21, 0.0 }
 0x128   :  { %9839 = vrot.lane.b32.xlu0 %v17061_v62, %s10810_s27  ;;  %v2792_v52 = vsel %vm2772_vm11, %v2727_v27, %v9552_v10  ;;  %v2791_v56 = vsel %vm2772_vm11, %v2726_v26, %v9551_v34  ;;  %v12607_v23 = vpop.permute.xlu1 %9564  ;;  %v12639_v10 = vsel %vm16867_vm1, %v764_v14, %v766_v16  ;;  %v12642_v34 = vsel %vm16867_vm1, %v768_v2, %v769_v5 }
 0x129   :  { %v12609_v60 = vpop.permute.xlu0 %9559  ;;  %v2846_v17 = vpack.c.bf16 %v2792_v52, %v2791_v56  ;;  %17068 = vst [vmem:[#allocation37_spill] sm:$0xff] %v12639_v10  ;;  %17069 = vst [vmem:[#allocation35_spill] sm:$0xff] %v12642_v34  ;;  %v12648_v27 = vpack.i.bf16 %v12616_v39, %v12441_v44  ;;  %v10812_v14 = vmov 1983009808   ;;  %v12661_v56 = vsel %vm186_vm0, %v262_v4, %v16801_v50 }
 0x12a   :  { %9854 = vrot.lane.b32.xlu1 %v17061_v62, %s10805_s1  ;;  %v771_v62 = vrot.slane %v432_v1, 2  ;;  %17071 = vst [vmem:[#allocation39_spill] sm:$0xff] %v12651_v7  ;;  %v3416_v16 = vunpack.c.l.s4 %v10812_v14  ;;  %17072 = vst [vmem:[#allocation40_spill] sm:$0xff] %v12661_v56  ;;  %v12670_v1 = vpack.i.bf16 %v12642_v34, %v12639_v10  ;;  %v12673_v21 = vsel %vm186_vm0, 0.0, %v259_v24  ;;  %v17076_v14 = vld [vmem:[#allocation41_spill] sm:$0xff] }
 0x12b   :  { %8917 = vmatmul.mubr.msk.bf16.gmra.mrb[16].mxu0 %vm2896_vm12, %v2846_v17  ;;  %17070 = vst [vmem:[#allocation38_spill] sm:$0xff] %v12648_v27  ;;  %v12664_v17 = vsel %vm186_vm0, 0.0, %v262_v4  ;;  %17075 = vst [vmem:[#allocation56_spill] sm:$0xff] %v12673_v21  ;;  %v9477_v63 = vunpack.i.h.bf16 %v12305_v8  ;;  %v12681_v4 = vsel %vm16862_vm2, %v17077_v11, %v618_v46  ;;  %v621_v50 = vrot.slane %v12651_v7, 1 }
 0x12c   :  { %9849 = vrot.lane.b32.xlu0 %v17067_v6, %s10811_s28  ;;  %v12644_v26 = vpop.permute.xlu1 %9574  ;;  %17073 = vst [vmem:[#allocation54_spill] sm:$0xff] %v12664_v17  ;;  %17074 = vst [vmem:[#allocation55_spill] sm:$0xff] %v12670_v1  ;;  %v12688_v59 = vsel %vm16867_vm1, %v769_v5, %v771_v62  ;;  %v625_v24 = vrot.slane %v12664_v17, 1  ;;  %v3417_v11 = vunpack.c.0.s8 %v3416_v16  ;;  %v17078_v46 = vlaneseq  ;;  %v17080_v16 = vld [vmem:[#allocation17_spill] sm:$0xff] }
 0x12d   :  { %v12656_v52 = vpop.permute.xlu0 %9569  ;;  %v620_v37 = vrot.slane %v12673_v21, 1  ;;  %v9487_v44 = vunpack.i.h.bf16 %v12323_v36  ;;  %v2343_v8 = vsel %vm2323_vm4, %v17080_v16, %v9477_v63  ;;  %v9556_v62 = vunpack.i.l.bf16 %v12573_v45 }
 0x12e   :  { %9864 = vrot.lane.b32.xlu1 %v17060_v32, %s10805_s1  ;;  %v623_v32 = vrot.slane %v12654_v42, 1  ;;  %v12697_v54 = vshrl.u32 %v17078_v46, 7  ;;  %v17081_v27 = vrot.slane %v12661_v56, 1  ;;  %v774_v16 = vrot.slane %v12651_v7, 2 }
 0x12f   :  { %v12738_v39 = vsel %vm16862_vm2, %v620_v37, %v621_v50  ;;  %v776_v10 = vrot.slane %v12654_v42, 2  ;;  %v9546_v34 = vunpack.i.l.bf16 %v12551_v35  ;;  %v9561_v37 = vunpack.i.l.bf16 %v12609_v60  ;;  %v17086_v42 = vld [vmem:[#allocation19_spill] sm:$0xff] }
 0x130   :  { %9859 = vrot.lane.b32.xlu0 %v17076_v14, %s10811_s28  ;;  %v12685_v2 = vpop.permute.xlu1 %9584  ;;  %17079 = vst [vmem:[#allocation41_spill] sm:$0xff] %v12697_v54  ;;  %v12718_v5 = vsel %vm16862_vm2, %v621_v50, %v623_v32  ;;  %v12726_v63 = vsel %vm16862_vm2, %v625_v24, %v17081_v27  ;;  %v2405_v27 = vsel %vm2385_vm5, %v2343_v8, %v9487_v44  ;;  %v9547_v24 = vunpack.i.h.bf16 %v12551_v35 }
 0x131   :  { %v12692_v1 = vpop.permute.xlu0 %9579  ;;  %v9566_v32 = vunpack.i.l.bf16 %v12607_v23  ;;  %v9562_v50 = vunpack.i.h.bf16 %v12609_v60  ;;  %v17084_v44 = vpack.i.bf16 %v17056_v12, %v17058_v47  ;;  %v12759_v35 = vpack.i.bf16 %v12726_v63, %v12718_v5 }
 0x132   :  { %9874 = vrot.lane.b32.xlu1 %v17076_v14, %s10804_s19  ;;  %v12733_v14 = vsub.s32 %v3417_v11, %v12697_v54  ;;  %v9576_v8 = vunpack.i.l.bf16 %v12644_v26  ;;  %v12768_v54 = vpack.i.bf16 %v12738_v39, %v12681_v4  ;;  %v9577_v12 = vunpack.i.h.bf16 %v12644_v26 }
 0x133   :  { %17085 = vst [vmem:[#allocation57_spill] sm:$0xff] %v12759_v35  ;;  %v9572_v26 = vunpack.i.h.bf16 %v12656_v52 }
 0x134   :  { %9869 = vrot.lane.b32.xlu0 %v17067_v6, %s10804_s19  ;;  %v12721_v46 = vpop.permute.xlu1 %9594  ;;  %v773_v6 = vrot.slane %v12673_v21, 2  ;;  %17082 = vst [vmem:[#allocation17_spill] sm:$0xff] %v12733_v14  ;;  %17087 = vst [vmem:[#allocation19_spill] sm:$0xff] %v12768_v54  ;;  %v17088_v54 = vld [vmem:[#allocation18_spill] sm:$0xff]  ;;  %v17089_v14 = vld [vmem:[#allocation16_spill] sm:$0xff] }
 0x135   :  { %v12730_v36 = vpop.permute.xlu0 %9589  ;;  %v2345_v35 = vsel %vm2323_vm4, %v17088_v54, %v9547_v24  ;;  %v2344_v55 = vsel %vm2323_vm4, %v17089_v14, %v9546_v34  ;;  %v9581_v24 = vunpack.i.l.bf16 %v12692_v1 }
 0x136   :  { %9884 = vrot.lane.b32.xlu1 %v17083_v28, %s16928_s0  ;;  %v2346_v28 = vsel %vm2323_vm4, %v17086_v42, %v9556_v62  ;;  %v12771_v60 = vsel %vm16867_vm1, %v773_v6, %v774_v16  ;;  %v12780_v62 = vsel %vm16867_vm1, %v774_v16, %v776_v10  ;;  %v12787_v6 = vld [vmem:[%s16921_s26 + $0x1a8] sm:$0xff]  ;;  %v9571_v10 = vunpack.i.l.bf16 %v12656_v52  ;;  %v12802_v42 = vld [vmem:[%s16921_s26 + $0x1b0] sm:$0xff] }
 0x137   :  { %v17090_v16 = vpack.i.bf16 %v12217_v33, %v12132_v18  ;;  %v2408_v47 = vsel %vm2385_vm5, %v2346_v28, %v9566_v32  ;;  %v2407_v54 = vsel %vm2385_vm5, %v2345_v35, %v9562_v50  ;;  %v2406_v34 = vsel %vm2385_vm5, %v2344_v55, %v9561_v37 }
 0x138   :  { %9879 = vrot.lane.b32.xlu0 %v17084_v44, %s16928_s0  ;;  %v12764_v11 = vpop.permute.xlu1 %9604  ;;  %v12776_v44 = vld [vmem:[%s16921_s26 + $0x1a0] sm:$0xff]  ;;  %v17091_v52 = vpack.i.bf16 %v12129_v53, %v12158_v43  ;;  %v2470_v18 = vsel %vm2447_vm6, %v2407_v54, %v9576_v8  ;;  %v9582_v33 = vunpack.i.h.bf16 %v12692_v1  ;;  %v266_v32 = vrot.slane %v12787_v6, 7 }
 0x139   :  { %v9600_v41 = vpop.permute.xlu0 %9599  ;;  %v265_v14 = vrot.slane %v12776_v44, 7  ;;  %v2471_v50 = vsel %vm2447_vm6, %v2408_v47, %v9577_v12  ;;  %v9592_v55 = vunpack.i.h.bf16 %v12730_v36  ;;  %v9591_v37 = vunpack.i.l.bf16 %v12730_v36 }
 0x13a   :  { %9894 = vrot.lane.b32.xlu1 %v17090_v16, %s10807_s20  ;;  %v268_v53 = vrot.slane %v12802_v42, 7  ;;  %v2468_v43 = vsel %vm2447_vm6, %v2405_v27, %v9571_v10  ;;  %v2469_v28 = vsel %vm2447_vm6, %v2406_v34, %v9572_v26  ;;  %v9602_v8 = vunpack.i.h.bf16 %v9600_v41 }
 0x13b   :  { %v9601_v54 = vunpack.i.l.bf16 %v9600_v41  ;;  %v17092_v1 = vpack.i.bf16 %v12220_v51, %v12175_v9  ;;  %v9587_v12 = vunpack.i.h.bf16 %v12685_v2  ;;  %v9586_v47 = vunpack.i.l.bf16 %v12685_v2 }
 0x13c   :  { %9889 = vrot.lane.b32.xlu0 %v17091_v52, %s10807_s20  ;;  %v9615_v16 = vpop.permute.xlu1 %9614  ;;  %v17093_v42 = vpack.i.bf16 %v12172_v25, %v12161_v40  ;;  %v2533_v27 = vsel %vm16914_vm7, %v2468_v43, %v9581_v24  ;;  %v2534_v41 = vsel %vm16914_vm7, %v2469_v28, %v9582_v33  ;;  %v9597_v26 = vunpack.i.h.bf16 %v12721_v46 }
 0x13d   :  { %v9610_v35 = vpop.permute.xlu0 %9609  ;;  %v9596_v9 = vunpack.i.l.bf16 %v12721_v46  ;;  %v2598_v10 = vsel %vm16915_vm8, %v2533_v27, %v9591_v37  ;;  %v2599_v2 = vsel %vm16915_vm8, %v2534_v41, %v9592_v55  ;;  %v9607_v34 = vunpack.i.h.bf16 %v12764_v11  ;;  %v12851_v55 = vld [vmem:[%s16921_s26 + $0x1b8] sm:$0xff] }
 0x13e   :  { %9904 = vrot.lane.b32.xlu1 %v17092_v1, %s16834_s23  ;;  %v9612_v52 = vunpack.i.h.bf16 %v9610_v35  ;;  %v9611_v36 = vunpack.i.l.bf16 %v9610_v35  ;;  %v9606_v35 = vunpack.i.l.bf16 %v12764_v11  ;;  %v2663_v40 = vsel %vm16882_vm9, %v2598_v10, %v9601_v54 }
 0x13f   :  { %v2664_v24 = vsel %vm16882_vm9, %v2599_v2, %v9602_v8  ;;  %v17095_v46 = vpack.i.bf16 %v12256_v19, %v12223_v13  ;;  %v9617_v37 = vunpack.i.h.bf16 %v9615_v16  ;;  %v9616_v28 = vunpack.i.l.bf16 %v9615_v16 }
 0x140   :  { %9899 = vrot.lane.b32.xlu0 %v17093_v42, %s16834_s23  ;;  %v12836_v51 = vpop.permute.xlu1 %9624  ;;  %v2728_v11 = vsel %vm2707_vm10, %v2663_v40, %v9611_v36  ;;  %v2729_v54 = vsel %vm2707_vm10, %v2664_v24, %v9612_v52  ;;  %v17096_v8 = vpack.i.bf16 %v12249_v57, %v12040_v38  ;;  %v2535_v1 = vsel %vm16914_vm7, %v2470_v18, %v9586_v47 }
 0x141   :  { %v9620_v25 = vpop.permute.xlu0 %9619  ;;  %v2536_v42 = vsel %vm16914_vm7, %v2471_v50, %v9587_v12  ;;  %v2600_v16 = vsel %vm16915_vm8, %v2535_v1, %v9596_v9  ;;  %v17098_v9 = vrot.slane %v12664_v17, 2  ;;  %v12911_v1 = vsel %vm186_vm0, 0.0, %v268_v53 }
 0x142   :  { %v9622_v33 = vunpack.i.h.bf16 %v9620_v25  ;;  %v9621_v43 = vunpack.i.l.bf16 %v9620_v25  ;;  %9914 = vrot.lane.b32.xlu1 %v17095_v46, %s17094_s24  ;;  %v2601_v36 = vsel %vm16915_vm8, %v2536_v42, %v9597_v26  ;;  %v16823_v25 = vrot.slane %v12851_v55, 7  ;;  %17103 = vst [vmem:[#allocation59_spill] sm:$0xff] %v12911_v1 }
 0x143   :  { %v2665_v40 = vsel %vm16882_vm9, %v2600_v16, %v9606_v35  ;;  %v2666_v18 = vsel %vm16882_vm9, %v2601_v36, %v9607_v34  ;;  %v17097_v26 = vrot.slane %v12661_v56, 2  ;;  %v17099_v35 = vrot.slane %v12594_v58, 7 }
 0x144   :  { %9909 = vrot.lane.b32.xlu0 %v17096_v8, %s17094_s24  ;;  %v2793_v27 = vsel %vm2772_vm11, %v2728_v11, %v9621_v43  ;;  %v2794_v41 = vsel %vm2772_vm11, %v2729_v54, %v9622_v33  ;;  %v12863_v10 = vpop.permute.xlu1 %9634  ;;  %v2730_v12 = vsel %vm2707_vm10, %v2665_v40, %v9616_v28  ;;  %v2731_v24 = vsel %vm2707_vm10, %v2666_v18, %v9617_v37  ;;  %v17104_v18 = vld [vmem:[#allocation21_spill] sm:$0xff] }
 0x145   :  { %v9630_v52 = vpop.permute.xlu0 %9629  ;;  %v2847_v2 = vpack.c.bf16 %v2794_v41, %v2793_v27  ;;  %v12882_v34 = vsel %vm16867_vm1, %v17098_v9, %v17097_v26  ;;  %v434_v33 = vsel %vm186_vm0, %v17099_v35, 0.0  ;;  %v12896_v28 = vsel %vm186_vm0, %v265_v14, %v266_v32 }
 0x146   :  { %v9632_v47 = vunpack.i.h.bf16 %v9630_v52  ;;  %v9631_v50 = vunpack.i.l.bf16 %v9630_v52  ;;  %9924 = vrot.lane.b32.xlu1 %v12401_v31, %s10810_s27  ;;  %17100 = vst [vmem:[#allocation18_spill] sm:$0xff] %v12896_v28  ;;  %v12901_v11 = vsel %vm186_vm0, 0.0, %v265_v14  ;;  %v12908_v8 = vsel %vm186_vm0, %v268_v53, %v16823_v25 }
 0x147   :  { %8920 = vmatprep.mubr.msk.bf16.mxu0 %vm2896_vm12, %v2847_v2  ;;  %17101 = vst [vmem:[#allocation16_spill] sm:$0xff] %v12901_v11  ;;  %17102 = vst [vmem:[#allocation58_spill] sm:$0xff] %v12908_v8  ;;  %v435_v42 = vsel %vm186_vm0, %v266_v32, 0.0  ;;  %v9557_v44 = vunpack.i.h.bf16 %v12573_v45  ;;  %v12921_v14 = vpack.i.bf16 %v12771_v60, %v12688_v59  ;;  %v12928_v53 = vpack.i.bf16 %v12882_v34, %v12780_v62 }
 0x148   :  { %9919 = vrot.lane.b32.xlu0 %v12413_v3, %s10810_s27  ;;  %v2796_v43 = vsel %vm2772_vm11, %v2731_v24, %v9632_v47  ;;  %v2795_v46 = vsel %vm2772_vm11, %v2730_v12, %v9631_v50  ;;  %v12889_v37 = vpop.permute.xlu1 %9644  ;;  %v628_v6 = vrot.slane %v434_v33, 1  ;;  %v781_v32 = vrot.slane %v434_v33, 2 }
 0x149   :  { %v12903_v58 = vpop.permute.xlu0 %9639  ;;  %v2848_v54 = vpack.c.bf16 %v2796_v43, %v2795_v46  ;;  %v631_v45 = vrot.slane %v12896_v28, 1  ;;  %v635_v41 = vrot.slane %v12911_v1, 1  ;;  %v16821_v16 = vrot.slane %v12908_v8, 1 }
 0x14a   :  { %9934 = vrot.lane.b32.xlu1 %v12413_v3, %s10805_s1  ;;  %v633_v3 = vrot.slane %v435_v42, 1  ;;  %v630_v36 = vrot.slane %v12901_v11, 1  ;;  %v2347_v47 = vsel %vm2323_vm4, %v17104_v18, %v9557_v44  ;;  %v9567_v50 = vunpack.i.h.bf16 %v12607_v23 }
 0x14b   :  { %8921 = vmatmul.mubr.msk.bf16.gmra.mrb[20].mxu0 %vm2896_vm12, %v2848_v54  ;;  %v17105_v26 = vrot.slane %v12661_v56, 1  ;;  %v17106_v35 = vrot.slane %v12661_v56, 2  ;;  %v784_v33 = vrot.slane %v12896_v28, 2  ;;  %v9627_v43 = vunpack.i.h.bf16 %v12836_v51 }
 0x14c   :  { %9929 = vrot.lane.b32.xlu0 %v12417_v22, %s10811_s28  ;;  %v12931_v27 = vpop.permute.xlu1 %9654  ;;  %v12969_v54 = vsel %vm16862_vm2, %v631_v45, %v633_v3  ;;  %v12974_v44 = vsel %vm16862_vm2, %v635_v41, %v16821_v16  ;;  %v16822_v24 = vrot.slane %v12908_v8, 2  ;;  %v2409_v3 = vsel %vm2385_vm5, %v2347_v47, %v9567_v50 }
 0x14d   :  { %v12936_v52 = vpop.permute.xlu0 %9649  ;;  %v12956_v9 = vsel %vm16862_vm2, %v17105_v26, %v628_v6  ;;  %v12961_v23 = vsel %vm16867_vm1, %v17106_v35, %v781_v32  ;;  %17107 = vst [vmem:[#allocation21_spill] sm:$0xff] %v12969_v54  ;;  %v12977_v6 = vsel %vm16862_vm2, %v630_v36, %v631_v45  ;;  %v9626_v32 = vunpack.i.l.bf16 %v12836_v51 }
 0x14e   :  { %9944 = vrot.lane.b32.xlu1 %v12401_v31, %s10805_s1  ;;  %v783_v31 = vrot.slane %v12901_v11, 2  ;;  %17108 = vst [vmem:[#allocation60_spill] sm:$0xff] %v12977_v6  ;;  %v786_v26 = vrot.slane %v435_v42, 2  ;;  %v788_v35 = vrot.slane %v12911_v1, 2  ;;  %v9637_v42 = vunpack.i.h.bf16 %v12863_v10 }
 0x14f   :  { %v9636_v36 = vunpack.i.l.bf16 %v12863_v10  ;;  %v13006_v45 = vpack.i.bf16 %v12974_v44, %v12969_v54  ;;  %v13010_v51 = vpack.i.bf16 %v12977_v6, %v12956_v9  ;;  %v17112_v10 = vld [vmem:[#allocation24_spill] sm:$0xff]  ;;  %v9647_v2 = vunpack.i.h.bf16 %v12889_v37 }
 0x150   :  { %9939 = vrot.lane.b32.xlu0 %v12423_v30, %s10811_s28  ;;  %v12966_v46 = vpop.permute.xlu1 %9664  ;;  %v2349_v12 = vsel %vm2323_vm4, %v17112_v10, %v9627_v43  ;;  %v13022_v40 = vsel %vm16867_vm1, %v788_v35, %v16822_v24  ;;  %v9646_v16 = vunpack.i.l.bf16 %v12889_v37  ;;  %v17115_v43 = vpack.i.bf16 %v12246_v49, %v12256_v19  ;;  %v17118_v10 = vld [vmem:[#allocation23_spill] sm:$0xff] }
 0x151   :  { %v12980_v18 = vpop.permute.xlu0 %9659  ;;  %17110 = vst [vmem:[#allocation62_spill] sm:$0xff] %v13006_v45  ;;  %17111 = vst [vmem:[#allocation63_spill] sm:$0xff] %v13010_v51  ;;  %v2350_v35 = vsel %vm2323_vm4, %v17118_v10, %v9636_v36  ;;  %v17119_v37 = vpack.i.bf16 %v12223_v13, %v12249_v57  ;;  %v9641_v24 = vunpack.i.l.bf16 %v12903_v58  ;;  %v9656_v25 = vunpack.i.l.bf16 %v12931_v27  ;;  %v17131_v51 = vld [vmem:[#allocation45_spill] sm:$0xff] }
 0x152   :  { %9954 = vrot.lane.b32.xlu1 %v12423_v30, %s10804_s19  ;;  %v13000_v30 = vsel %vm16867_vm1, %v783_v31, %v784_v33  ;;  %v13017_v31 = vsel %vm16867_vm1, %v784_v33, %v786_v26  ;;  %v17117_v33 = vld [vmem:[#allocation25_spill] sm:$0xff]  ;;  %v17121_v36 = vrot.slane %v12851_v55, 7  ;;  %v9657_v10 = vunpack.i.h.bf16 %v12931_v27 }
 0x153   :  { %17109 = vst [vmem:[#allocation61_spill] sm:$0xff] %v13000_v30  ;;  %17114 = vst [vmem:[#allocation24_spill] sm:$0xff] %v13017_v31  ;;  %v2351_v26 = vsel %vm2323_vm4, %v17117_v33, %v9637_v42  ;;  %v13051_v42 = vpack.i.bf16 %v13022_v40, %v13017_v31  ;;  %v2412_v13 = vsel %vm2385_vm5, %v2350_v35, %v9646_v16  ;;  %v9652_v57 = vunpack.i.h.bf16 %v12936_v52  ;;  %v17124_v16 = vld [vmem:[#allocation10_spill] sm:$0xff]  ;;  %v17125_v35 = vld [vmem:[#allocation44_spill] sm:$0xff] }
 0x154   :  { %9949 = vrot.lane.b32.xlu0 %v12417_v22, %s10804_s19  ;;  %v13002_v50 = vpop.permute.xlu1 %9674  ;;  %v17113_v22 = vld [vmem:[#allocation20_spill] sm:$0xff]  ;;  %v13056_v33 = vsel %vm186_vm0, %v17121_v36, 0.0  ;;  %v13065_v38 = vsel %vm2385_vm5, %v2351_v26, %v9647_v2  ;;  %v9651_v55 = vunpack.i.l.bf16 %v12936_v52  ;;  %v17126_v2 = vpack.i.bf16 %v17124_v16, %v17125_v35 }
 0x155   :  { %v2348_v41 = vsel %vm2323_vm4, %v17113_v22, %v9626_v32  ;;  %v9670_v47 = vpop.permute.xlu0 %9669  ;;  %v13032_v32 = vpack.i.bf16 %v13000_v30, %v12961_v23  ;;  %v9642_v22 = vunpack.i.h.bf16 %v12903_v58  ;;  %17120 = vst [vmem:[#allocation25_spill] sm:$0xff] %v13051_v42  ;;  %v17122_v36 = vld [vmem:[#allocation8_spill] sm:$0xff]  ;;  %v9666_v58 = vunpack.i.l.bf16 %v12966_v46 }
 0x156   :  { %9964 = vrot.lane.b32.xlu1 %v17115_v43, %s16928_s0  ;;  %v17123_v27 = vpack.i.bf16 %v12426_v48, %v17122_v36  ;;  %v9667_v43 = vunpack.i.h.bf16 %v12966_v46  ;;  %v2410_v52 = vsel %vm2385_vm5, %v2348_v41, %v9641_v24  ;;  %v9662_v48 = vunpack.i.h.bf16 %v12980_v18  ;;  %v17128_v41 = vld [vmem:[#allocation47_spill] sm:$0xff] }
 0x157   :  { %17116 = vst [vmem:[#allocation20_spill] sm:$0xff] %v13032_v32  ;;  %v2411_v42 = vsel %vm2385_vm5, %v2349_v12, %v9642_v22  ;;  %v9661_v36 = vunpack.i.l.bf16 %v12980_v18  ;;  %v2475_v22 = vsel %vm2447_vm6, %v2412_v13, %v9657_v10  ;;  %v9676_v46 = vunpack.i.l.bf16 %v13002_v50 }
 0x158   :  { %9959 = vrot.lane.b32.xlu0 %v17119_v37, %s16928_s0  ;;  %v13047_v19 = vpop.permute.xlu1 %9684  ;;  %v2474_v6 = vsel %vm2447_vm6, %v2411_v42, %v9656_v25  ;;  %v9671_v54 = vunpack.i.l.bf16 %v9670_v47  ;;  %v2472_v16 = vsel %vm2447_vm6, %v2409_v3, %v9651_v55  ;;  %v2473_v35 = vsel %vm2447_vm6, %v2410_v52, %v9652_v57  ;;  %v17127_v25 = vld [vmem:[#allocation51_spill] sm:$0xff] }
 0x159   :  { %v9680_v37 = vpop.permute.xlu0 %9679  ;;  %v17129_v42 = vpack.i.bf16 %v17127_v25, %v17128_v41  ;;  %v2539_v18 = vsel %vm16914_vm7, %v2474_v6, %v9666_v58  ;;  %v2540_v13 = vsel %vm16914_vm7, %v2475_v22, %v9667_v43  ;;  %v2537_v57 = vsel %vm16914_vm7, %v2472_v16, %v9661_v36 }
 0x15a   :  { %9974 = vrot.lane.b32.xlu1 %v17123_v27, %s10807_s20  ;;  %v9672_v27 = vunpack.i.h.bf16 %v9670_v47  ;;  %v9681_v24 = vunpack.i.l.bf16 %v9680_v37  ;;  %v17130_v47 = vld [vmem:[#allocation46_spill] sm:$0xff]  ;;  %v2538_v3 = vsel %vm16914_vm7, %v2473_v35, %v9662_v48  ;;  %v9686_v55 = vunpack.i.l.bf16 %v13047_v19  ;;  %v114_v35 = vld [vmem:[%s16921_s26 + $0x1c0] sm:$0xff] }
 0x15b   :  { %v17132_v45 = vpack.i.bf16 %v17130_v47, %v17131_v51  ;;  %v2604_v6 = vsel %vm16915_vm8, %v2539_v18, %v9676_v46  ;;  %v2602_v43 = vsel %vm16915_vm8, %v2537_v57, %v9671_v54  ;;  %v9687_v58 = vunpack.i.h.bf16 %v13047_v19  ;;  %v13137_v18 = vld [vmem:[%s16921_s26 + $0x1d8] sm:$0xff] }
 0x15c   :  { %9969 = vrot.lane.b32.xlu0 %v17126_v2, %s10807_s20  ;;  %v9695_v12 = vpop.permute.xlu1 %9694  ;;  %v9682_v2 = vunpack.i.h.bf16 %v9680_v37  ;;  %v9677_v37 = vunpack.i.h.bf16 %v13002_v50  ;;  %v17133_v50 = vpack.i.bf16 %v12434_v0, %v12404_v29  ;;  %v17134_v19 = vpack.i.bf16 %v12444_v15, %v12246_v49 }
 0x15d   :  { %v9690_v32 = vpop.permute.xlu0 %9689  ;;  %v9697_v16 = vunpack.i.h.bf16 %v9695_v12  ;;  %v9696_v46 = vunpack.i.l.bf16 %v9695_v12  ;;  %v116_v12 = vld [vmem:[%s16921_s26 + $0x1d0] sm:$0xff] }
 0x15e   :  { %9984 = vrot.lane.b32.xlu1 %v17129_v42, %s16834_s23  ;;  %v9692_v10 = vunpack.i.h.bf16 %v9690_v32  ;;  %v9691_v26 = vunpack.i.l.bf16 %v9690_v32  ;;  %v2603_v32 = vsel %vm16915_vm8, %v2538_v3, %v9672_v27  ;;  %v271_v3 = vrot.slane %v114_v35, 7 }
 0x15f   :  { %v2668_v36 = vsel %vm16882_vm9, %v2603_v32, %v9682_v2  ;;  %v115_v2 = vld [vmem:[%s16921_s26 + $0x1c8] sm:$0xff] }
 0x160   :  { %9979 = vrot.lane.b32.xlu0 %v17132_v45, %s16834_s23  ;;  %v13103_v52 = vpop.permute.xlu1 %9704  ;;  %v2667_v45 = vsel %vm16882_vm9, %v2602_v43, %v9681_v24  ;;  %v2733_v27 = vsel %vm2707_vm10, %v2668_v36, %v9692_v10  ;;  %v2669_v24 = vsel %vm16882_vm9, %v2604_v6, %v9686_v55  ;;  %v272_v43 = vrot.slane %v115_v2, 7 }
 0x161   :  { %v9700_v51 = vpop.permute.xlu0 %9699  ;;  %v2732_v54 = vsel %vm2707_vm10, %v2667_v45, %v9691_v26  ;;  %v2605_v26 = vsel %vm16915_vm8, %v2540_v13, %v9677_v37  ;;  %v17135_v37 = vld [vmem:[#allocation15_spill] sm:$0xff]  ;;  %v274_v55 = vrot.slane %v116_v12, 7  ;;  %v16836_v6 = vrot.slane %v13137_v18, 7 }
 0x162   :  { %v9702_v48 = vunpack.i.h.bf16 %v9700_v51  ;;  %v9701_v22 = vunpack.i.l.bf16 %v9700_v51  ;;  %9994 = vrot.lane.b32.xlu1 %v17133_v50, %s17094_s24  ;;  %v2670_v10 = vsel %vm16882_vm9, %v2605_v26, %v9687_v58  ;;  %v2734_v51 = vsel %vm2707_vm10, %v2669_v24, %v9696_v46 }
 0x163   :  { %v2735_v45 = vsel %vm2707_vm10, %v2670_v10, %v9697_v16  ;;  %v791_v58 = vrot.slane %v13056_v33, 2  ;;  %v9707_v35 = vunpack.i.h.bf16 %v13103_v52  ;;  %v13162_v24 = vsel %vm186_vm0, %v271_v3, %v272_v43 }
 0x164   :  { %9989 = vrot.lane.b32.xlu0 %v17134_v19, %s17094_s24  ;;  %v2797_v25 = vsel %vm2772_vm11, %v2732_v54, %v9701_v22  ;;  %v2798_v41 = vsel %vm2772_vm11, %v2733_v27, %v9702_v48  ;;  %v9715_v42 = vpop.permute.xlu1 %9714  ;;  %v17136_v48 = vld [vmem:[#allocation12_spill] sm:$0xff]  ;;  %v17137_v27 = vrot.slane %v13056_v33, 1  ;;  %v17138_v19 = vrot.slane %v12908_v8, 1  ;;  %17139 = vst [vmem:[#allocation23_spill] sm:$0xff] %v13162_v24 }
 0x165   :  { %v9710_v47 = vpop.permute.xlu0 %9709  ;;  %v2849_v57 = vpack.c.bf16 %v2798_v41, %v2797_v25  ;;  %v9717_v36 = vunpack.i.h.bf16 %v9715_v42  ;;  %v9716_v2 = vunpack.i.l.bf16 %v9715_v42  ;;  %v13169_v33 = vsel %vm186_vm0, %v274_v55, %v16836_v6 }
 0x166   :  { %v9712_v32 = vunpack.i.h.bf16 %v9710_v47  ;;  %v9711_v13 = vunpack.i.l.bf16 %v9710_v47  ;;  %10004 = vrot.lane.b32.xlu1 %v17135_v37, %s10810_s27  ;;  %v13156_v46 = vsel %vm16862_vm2, %v17138_v19, %v17137_v27  ;;  %17140 = vst [vmem:[#allocation8_spill] sm:$0xff] %v13169_v33  ;;  %v13172_v25 = vsel %vm186_vm0, 0.0, %v274_v55  ;;  %v17143_v47 = vld [vmem:[#allocation30_spill] sm:$0xff]  ;;  %v17149_v19 = vld [vmem:[#allocation55_spill] sm:$0xff] }
 0x167   :  { %8924 = vmatprep.mubr.msk.bf16.mxu0 %vm2896_vm12, %v2849_v57  ;;  %17141 = vst [vmem:[#allocation10_spill] sm:$0xff] %v13172_v25  ;;  %v13175_v41 = vsel %vm186_vm0, 0.0, %v271_v3  ;;  %v13178_v42 = vsel %vm186_vm0, %v272_v43, 0.0  ;;  %v9706_v10 = vunpack.i.l.bf16 %v13103_v52  ;;  %v2355_v57 = vsel %vm2323_vm4, %v17143_v47, %v9717_v36  ;;  %v17147_v47 = vld [vmem:[#allocation28_spill] sm:$0xff] }
 0x168   :  { %9999 = vrot.lane.b32.xlu0 %v17136_v48, %s10810_s27  ;;  %v2800_v22 = vsel %vm2772_vm11, %v2735_v45, %v9712_v32  ;;  %v2799_v50 = vsel %vm2772_vm11, %v2734_v51, %v9711_v13  ;;  %v9725_v54 = vpop.permute.xlu1 %9724  ;;  %17142 = vst [vmem:[#allocation44_spill] sm:$0xff] %v13175_v41  ;;  %v17144_v32 = vld [vmem:[#allocation38_spill] sm:$0xff]  ;;  %v17145_v55 = vrot.slane %v12908_v8, 2  ;;  %v641_v52 = vrot.slane %v13162_v24, 1 }
 0x169   :  { %v9720_v12 = vpop.permute.xlu0 %9719  ;;  %v2850_v26 = vpack.c.bf16 %v2800_v22, %v2799_v50  ;;  %v9727_v43 = vunpack.i.h.bf16 %v9725_v54  ;;  %v9726_v51 = vunpack.i.l.bf16 %v9725_v54  ;;  %v643_v36 = vrot.slane %v13178_v42, 1  ;;  %v17148_v13 = vld [vmem:[#allocation26_spill] sm:$0xff] }
 0x16a   :  { %10014 = vrot.lane.b32.xlu1 %v17136_v48, %s10805_s1  ;;  %v13191_v3 = vsel %vm16867_vm1, %v17145_v55, %v791_v58  ;;  %v17146_v48 = vld [vmem:[#allocation27_spill] sm:$0xff]  ;;  %v645_v27 = vrot.slane %v13172_v25, 1  ;;  %v2353_v58 = vsel %vm2323_vm4, %v17147_v47, %v9707_v35  ;;  %v9722_v55 = vunpack.i.h.bf16 %v9720_v12 }
 0x16b   :  { %8925 = vmatmul.mubr.msk.bf16.gmra.mrb[24].mxu0 %vm2896_vm12, %v2850_v26  ;;  %v2354_v22 = vsel %vm2323_vm4, %v17146_v48, %v9716_v2  ;;  %v640_v26 = vrot.slane %v13175_v41, 1  ;;  %v9721_v54 = vunpack.i.l.bf16 %v9720_v12  ;;  %v2352_v2 = vsel %vm2323_vm4, %v17148_v13, %v9706_v10 }
 0x16c   :  { %10009 = vrot.lane.b32.xlu0 %v17144_v32, %s10811_s28  ;;  %v9735_v45 = vpop.permute.xlu1 %9734  ;;  %v2416_v35 = vsel %vm2385_vm5, %v2354_v22, %v9726_v51  ;;  %v13214_v12 = vsel %vm2385_vm5, %v2355_v57, %v9727_v43  ;;  %v13219_v16 = vsel %vm16862_vm2, %v641_v52, %v643_v36  ;;  %v17151_v13 = vrot.slane %v13169_v33, 1 }
 0x16d   :  { %v9730_v50 = vpop.permute.xlu0 %9729  ;;  %v9737_v48 = vunpack.i.h.bf16 %v9735_v45  ;;  %v9736_v6 = vunpack.i.l.bf16 %v9735_v45  ;;  %17150 = vst [vmem:[#allocation51_spill] sm:$0xff] %v13219_v16  ;;  %v13227_v49 = vsel %vm16862_vm2, %v640_v26, %v641_v52  ;;  %v793_v51 = vrot.slane %v13175_v41, 2 }
 0x16e   :  { %10024 = vrot.lane.b32.xlu1 %v17135_v37, %s10805_s1  ;;  %v13224_v45 = vsel %vm16862_vm2, %v645_v27, %v17151_v13  ;;  %17153 = vst [vmem:[#allocation46_spill] sm:$0xff] %v13227_v49  ;;  %v794_v57 = vrot.slane %v13162_v24, 2  ;;  %v2415_v43 = vsel %vm2385_vm5, %v2353_v58, %v9722_v55  ;;  %v2414_v22 = vsel %vm2385_vm5, %v2352_v2, %v9721_v54 }
 0x16f   :  { %17152 = vst [vmem:[#allocation47_spill] sm:$0xff] %v13224_v45  ;;  %v9732_v47 = vunpack.i.h.bf16 %v9730_v50  ;;  %v9731_v36 = vunpack.i.l.bf16 %v9730_v50  ;;  %v2478_v30 = vsel %vm2447_vm6, %v2415_v43, %v9736_v6  ;;  %v2479_v27 = vsel %vm2447_vm6, %v2416_v35, %v9737_v48 }
 0x170   :  { %10019 = vrot.lane.b32.xlu0 %v17149_v19, %s10811_s28  ;;  %v9745_v37 = vpop.permute.xlu1 %9744  ;;  %v13241_v58 = vpack.i.bf16 %v13224_v45, %v13219_v16  ;;  %v13245_v50 = vpack.i.bf16 %v13227_v49, %v13156_v46  ;;  %v13249_v54 = vsel %vm16867_vm1, %v793_v51, %v794_v57  ;;  %v798_v2 = vrot.slane %v13172_v25, 2  ;;  %v17186_v25 = vld [vmem:[#allocation29_spill] sm:$0xff] }
 0x171   :  { %v9740_v10 = vpop.permute.xlu0 %9739  ;;  %v9747_v13 = vunpack.i.h.bf16 %v9745_v37  ;;  %v9746_v52 = vunpack.i.l.bf16 %v9745_v37  ;;  %17156 = vst [vmem:[#allocation12_spill] sm:$0xff] %v13249_v54  ;;  %v2476_v48 = vsel %vm2447_vm6, %v13065_v38, %v9731_v36  ;;  %v2477_v35 = vsel %vm2447_vm6, %v2414_v22, %v9732_v47 }
 0x172   :  { %10034 = vrot.lane.b32.xlu1 %v17149_v19, %s10804_s19  ;;  %v9741_v26 = vunpack.i.l.bf16 %v9740_v10  ;;  %17154 = vst [vmem:[#allocation45_spill] sm:$0xff] %v13241_v58  ;;  %17155 = vst [vmem:[#allocation15_spill] sm:$0xff] %v13245_v50  ;;  %v796_v19 = vrot.slane %v13178_v42, 2  ;;  %v9742_v6 = vunpack.i.h.bf16 %v9740_v10  ;;  %v17157_v37 = vpack.i.bf16 %v12431_v61, %v12434_v0 }
 0x173   :  { %v2543_v42 = vsel %vm16914_vm7, %v2478_v30, %v9746_v52  ;;  %v2544_v10 = vsel %vm16914_vm7, %v2479_v27, %v9747_v13  ;;  %v17158_v43 = vpack.i.bf16 %v12404_v29, %v12444_v15  ;;  %v17159_v50 = vrot.slane %v13137_v18, 7  ;;  %v17175_v15 = vld [vmem:[#allocation37_spill] sm:$0xff] }
 0x174   :  { %10029 = vrot.lane.b32.xlu0 %v17144_v32, %s10804_s19  ;;  %v9755_v31 = vpop.permute.xlu1 %9754  ;;  %v799_v32 = vrot.slane %v13169_v33, 2  ;;  %v2541_v47 = vsel %vm16914_vm7, %v2476_v48, %v9741_v26  ;;  %v13274_v30 = vpack.i.bf16 %v13249_v54, %v13191_v3  ;;  %v13277_v27 = vsel %vm16867_vm1, %v794_v57, %v796_v19  ;;  %v17166_v48 = vld [vmem:[#allocation13_spill] sm:$0xff] }
 0x175   :  { %v9750_v55 = vpop.permute.xlu0 %9749  ;;  %v9756_v51 = vunpack.i.l.bf16 %v9755_v31  ;;  %v438_v38 = vsel %vm186_vm0, %v17159_v50, 0.0  ;;  %v9757_v22 = vunpack.i.h.bf16 %v9755_v31  ;;  %17161 = vst [vmem:[#allocation38_spill] sm:$0xff] %v13277_v27  ;;  %v2542_v13 = vsel %vm16914_vm7, %v2477_v35, %v9742_v6 }
 0x176   :  { %10044 = vrot.lane.b32.xlu1 %v17157_v37, %s16928_s0  ;;  %17160 = vst [vmem:[#allocation30_spill] sm:$0xff] %v13274_v30  ;;  %v9752_v52 = vunpack.i.h.bf16 %v9750_v55  ;;  %v9751_v37 = vunpack.i.l.bf16 %v9750_v55  ;;  %v13281_v18 = vsel %vm16867_vm1, %v798_v2, %v799_v32  ;;  %v17164_v31 = vpack.i.bf16 %v12681_v4, %v12501_v20  ;;  %v17165_v55 = vld [vmem:[#allocation53_spill] sm:$0xff] }
 0x177   :  { %17162 = vst [vmem:[#allocation27_spill] sm:$0xff] %v13281_v18  ;;  %v648_v50 = vrot.slane %v438_v38, 1  ;;  %v2608_v19 = vsel %vm16915_vm8, %v2543_v42, %v9756_v51  ;;  %v17167_v2 = vpack.i.bf16 %v17165_v55, %v17166_v48  ;;  %v801_v29 = vrot.slane %v438_v38, 2 }
 0x178   :  { %10039 = vrot.lane.b32.xlu0 %v17158_v43, %s16928_s0  ;;  %v13270_v36 = vpop.permute.xlu1 %9764  ;;  %v2609_v0 = vsel %vm16915_vm8, %v2544_v10, %v9757_v22  ;;  %v13309_v42 = vpack.i.bf16 %v13281_v18, %v13277_v27  ;;  %v2606_v51 = vsel %vm16915_vm8, %v2541_v47, %v9751_v37  ;;  %v2607_v55 = vsel %vm16915_vm8, %v2542_v13, %v9752_v52  ;;  %v17171_v47 = vld [vmem:[#allocation35_spill] sm:$0xff] }
 0x179   :  { %v9760_v43 = vpop.permute.xlu0 %9759  ;;  %v13284_v26 = vunpack.i.l.bf16 %v13270_v36  ;;  %v17172_v13 = vpack.i.bf16 %v12688_v59, %v17171_v47  ;;  %v17173_v52 = vrot.slane %v13169_v33, 1  ;;  %v13338_v16 = vsel %vm16867_vm1, %v799_v32, %v801_v29 }
 0x17a   :  { %10054 = vrot.lane.b32.xlu1 %v17164_v31, %s10807_s20  ;;  %v9761_v6 = vunpack.i.l.bf16 %v9760_v43  ;;  %v9762_v20 = vunpack.i.h.bf16 %v9760_v43  ;;  %v13305_v31 = vld [vmem:[%s16719_s2] ss:$0 sm:$0xff]  ;;  %17168 = vst [vmem:[#allocation26_spill] sm:$0xff] %v13309_v42  ;;  %17178 = vst [vmem:[#allocation13_spill] sm:$0xff] %v13338_v16  ;;  %vm16901_vm1 = vcmask 1046534  }
 0x17b   :  { %17163 = vst [vmem:[#allocation28_spill] sm:$0xff] %v13284_v26  ;;  %v2673_v43 = vsel %vm16882_vm9, %v2608_v19, %v13284_v26  ;;  %v2674_v48 = vsel %vm16882_vm9, %v2609_v0, %v13284_v26  ;;  %v13329_v37 = vsel %vm16862_vm2, %v17173_v52, %v648_v50  ;;  %v17176_v0 = vld [vmem:[#allocation14_spill] sm:$0xff]  ;;  %vm16902_vm2 = vcmask 1045509  }
 0x17c   :  { %10049 = vrot.lane.b32.xlu0 %v17167_v2, %s10807_s20  ;;  %v13300_v4 = vpop.permute.xlu1 %9774  ;;  %17174 = vst [vmem:[#allocation53_spill] sm:$0xff] %v13329_v37  ;;  %v2671_v22 = vsel %vm16882_vm9, %v2606_v51, %v9761_v6  ;;  %v17177_v26 = vpack.i.bf16 %v17175_v15, %v17176_v0  ;;  %v2672_v59 = vsel %vm16882_vm9, %v2607_v55, %v9762_v20 }
 0x17d   :  { %v13314_v38 = vunpack.i.l.bf16 %v13300_v4  ;;  %v9770_v10 = vpop.permute.xlu0 %9769 }
 0x17e   :  { %v9771_v2 = vunpack.i.l.bf16 %v9770_v10  ;;  %v8902_v35 = vpop.f32.mrb[0].mxu0  ;;  %10064 = vrot.lane.b32.xlu1 %v17172_v13, %s17170_s30  ;;  %v9772_v57 = vunpack.i.h.bf16 %v9770_v10 }
 0x17f   :  { %17169 = vst [vmem:[#allocation55_spill] sm:$0xff] %v13314_v38  ;;  %v3040_v19 = vadd.f32 %v8902_v35, %v13305_v31  ;;  %v3031_v49 = vpop.f32.mrb[1].mxu0  ;;  %v2738_v6 = vsel %vm2707_vm10, %v2673_v43, %v13314_v38  ;;  %v2739_v35 = vsel %vm2707_vm10, %v2674_v48, %v13314_v38  ;;  %v17180_v43 = vpack.i.bf16 %v12664_v17, %v12651_v7 }
 0x180   :  { %10059 = vrot.lane.b32.xlu0 %v17177_v26, %s17170_s30  ;;  %v3032_v47 = vadd.f32 %v13305_v31, %v3031_v49  ;;  %v8903_v50 = vpop.f32.mrb[2].mxu0  ;;  %v13342_v13 = vpop.permute.xlu1 %9784  ;;  %v2736_v15 = vsel %vm2707_vm10, %v2671_v22, %v9771_v2  ;;  %v2737_v22 = vsel %vm2707_vm10, %v2672_v59, %v9772_v57  ;;  %v17181_v2 = vpack.i.bf16 %v12673_v21, %v12431_v61  ;;  %v17182_v61 = vld [vmem:[#allocation17_spill] sm:$0xff] }
 0x181   :  { %v3288_v26 = vmax.f32 %v3040_v19, 0.0  ;;  %v3043_v51 = vadd.f32 %v8903_v50, %v13305_v31  ;;  %v13351_v29 = vunpack.i.l.bf16 %v13342_v13  ;;  %v9780_v32 = vpop.permute.xlu0 %9779  ;;  %v3034_v20 = vpop.f32.mrb[3].mxu0 }
 0x182   :  { %v3286_v49 = vmax.f32 %v3032_v47, 0.0  ;;  %v9782_v55 = vunpack.i.h.bf16 %v9780_v32  ;;  %v9781_v10 = vunpack.i.l.bf16 %v9780_v32  ;;  %v3035_v52 = vadd.f32 %v13305_v31, %v3034_v20  ;;  %10074 = vrot.lane.b32.xlu1 %v17180_v43, %s17094_s24 }
 0x183   :  { %17179 = vst [vmem:[#allocation35_spill] sm:$0xff] %v13351_v29  ;;  %v3289_v48 = vmax.f32 %v3043_v51, 0.0  ;;  %v2803_v19 = vsel %vm2772_vm11, %v2738_v6, %v13351_v29  ;;  %v2804_v0 = vsel %vm2772_vm11, %v2739_v35, %v13351_v29 }
 0x184   :  { %10069 = vrot.lane.b32.xlu0 %v17181_v2, %s17094_s24  ;;  %v3350_v47 = vmax.f32 %v3286_v49, %v3288_v26  ;;  %v2801_v50 = vsel %vm2772_vm11, %v2736_v15, %v9781_v10  ;;  %v2802_v32 = vsel %vm2772_vm11, %v2737_v22, %v9782_v55  ;;  %v3287_v20 = vmax.f32 %v3035_v52, 0.0  ;;  %v13369_v43 = vpop.permute.xlu1 %9794  ;;  %v17183_v15 = vld [vmem:[#allocation57_spill] sm:$0xff]  ;;  %v17184_v22 = vld [vmem:[#allocation19_spill] sm:$0xff] }
 0x185   :  { %v13372_v59 = vpop.permute.xlu0 %9789  ;;  %v2851_v51 = vpack.c.bf16 %v2802_v32, %v2801_v50  ;;  %v2852_v2 = vpack.c.bf16 %v2804_v0, %v2803_v19 }
 0x186   :  { %v3414_v38 = vcombine.high %v3350_v47, %v3350_v47  ;;  %v3421_v35 = vrot.slane %v3350_v47, %v17182_v61  ;;  %v3351_v26 = vmax.f32 %v3287_v20, %v3289_v48  ;;  %10084 = vrot.lane.b32.xlu1 %v17183_v15, %s10810_s27 }
 0x187   :  { %8928 = vmatprep.mubr.msk.bf16.mxu0 %vm2896_vm12, %v2851_v51 }
 0x188   :  { %10079 = vrot.lane.b32.xlu0 %v17184_v22, %s10810_s27  ;;  %v3428_v19 = vrot.slane %v3414_v38, %v17182_v61  ;;  %v3429_v0 = vcombine.high %v3421_v35, %v3421_v35  ;;  %v4087_v47 = vsel %vm4086_vm13, %v3421_v35, -inf  ;;  %v3431_v50 = vcombine.high %v3351_v26, %v3351_v26  ;;  %8929 = vmatmul.mubr.msk.bf16.gmra.mrb[28].mxu0 %vm2896_vm12, %v2852_v2  ;;  %v13392_v32 = vpop.permute.xlu1 %9804 }
 0x189   :  { %v4088_v20 = vrot.slane %v4087_v47, 4  ;;  %v3438_v6 = vrot.slane %v3351_v26, %v17182_v61 }
 0x18a   :  { %v13397_v52 = vpop.permute.xlu0 %9799  ;;  %v3430_v48 = vcombine.high %v3428_v19, %v3428_v19  ;;  %v4094_v38 = vsel %vm4086_vm13, %v3429_v0, -inf  ;;  %v4101_v10 = vsel %vm4086_vm13, %v3428_v19, -inf  ;;  %v3445_v35 = vrot.slane %v3431_v50, %v17182_v61  ;;  %10094 = vrot.lane.b32.xlu1 %v17184_v22, %s10805_s1 }
 0x18b   :  { %v4089_v2 = vmax.f32 %v4087_v47, %v4088_v20  ;;  %v4095_v55 = vrot.slane %v4094_v38, 4  ;;  %v4102_v57 = vrot.slane %v4101_v10, 4  ;;  %v3446_v26 = vcombine.high %v3438_v6, %v3438_v6 }
 0x18c   :  { %10089 = vrot.lane.b32.xlu0 %v12921_v14, %s10811_s28  ;;  %v4108_v49 = vsel %vm4086_vm13, %v3430_v48, -inf  ;;  %v3447_v51 = vcombine.high %v3445_v35, %v3445_v35  ;;  %v4115_v0 = vsel %vm4086_vm13, %v3438_v6, -inf  ;;  %v4129_v19 = vsel %vm4086_vm13, %v3445_v35, -inf  ;;  %v13409_v29 = vpop.permute.xlu1 %9814 }
 0x18d   :  { %v4090_v50 = vrot.slane %v4089_v2, 2  ;;  %v4096_v54 = vmax.f32 %v4094_v38, %v4095_v55  ;;  %v4103_v22 = vmax.f32 %v4101_v10, %v4102_v57  ;;  %v4109_v47 = vrot.slane %v4108_v49, 4 }
 0x18e   :  { %v13411_v20 = vpop.permute.xlu0 %9809  ;;  %v4116_v27 = vrot.slane %v4115_v0, 4  ;;  %v4122_v18 = vsel %vm4086_vm13, %v3446_v26, -inf  ;;  %v4130_v16 = vrot.slane %v4129_v19, 4  ;;  %v4136_v48 = vsel %vm4086_vm13, %v3447_v51, -inf  ;;  %10104 = vrot.lane.b32.xlu1 %v17183_v15, %s10805_s1 }
 0x18f   :  { %v4091_v6 = vmax.f32 %v4089_v2, %v4090_v50  ;;  %v4097_v35 = vrot.slane %v4096_v54, 2  ;;  %v4104_v45 = vrot.slane %v4103_v22, 2  ;;  %v4110_v37 = vmax.f32 %v4108_v49, %v4109_v47 }
 0x190   :  { %10099 = vrot.lane.b32.xlu0 %v12928_v53, %s10811_s28  ;;  %v4117_v57 = vmax.f32 %v4115_v0, %v4116_v27  ;;  %v4123_v55 = vrot.slane %v4122_v18, 4  ;;  %v4131_v10 = vmax.f32 %v4129_v19, %v4130_v16  ;;  %v4137_v38 = vrot.slane %v4136_v48, 4  ;;  %v13419_v26 = vpop.permute.xlu1 %9824 }
 0x191   :  { %v4092_v33 = vrot.slane %v4091_v6, 1  ;;  %v4098_v51 = vmax.f32 %v4096_v54, %v4097_v35  ;;  %v4105_v42 = vmax.f32 %v4103_v22, %v4104_v45  ;;  %v4111_v30 = vrot.slane %v4110_v37, 2 }
 0x192   :  { %v13421_v15 = vpop.permute.xlu0 %9819  ;;  %v4118_v2 = vrot.slane %v4117_v57, 2  ;;  %v4124_v50 = vmax.f32 %v4122_v18, %v4123_v55  ;;  %v4132_v49 = vrot.slane %v4131_v10, 2  ;;  %v4138_v47 = vmax.f32 %v4136_v48, %v4137_v38  ;;  %10114 = vrot.lane.b32.xlu1 %v12928_v53, %s10804_s19 }
 0x193   :  { %v4099_v27 = vrot.slane %v4098_v51, 1  ;;  %v4106_v0 = vrot.slane %v4105_v42, 1  ;;  %v4112_v16 = vmax.f32 %v4110_v37, %v4111_v30  ;;  %v9792_v19 = vunpack.i.h.bf16 %v13372_v59 }
 0x194   :  { %10109 = vrot.lane.b32.xlu0 %v12921_v14, %s10804_s19  ;;  %v4119_v45 = vmax.f32 %v4117_v57, %v4118_v2  ;;  %v4125_v54 = vrot.slane %v4124_v50, 2  ;;  %v4133_v22 = vmax.f32 %v4131_v10, %v4132_v49  ;;  %v4139_v35 = vrot.slane %v4138_v47, 2  ;;  %v13428_v58 = vpop.permute.xlu1 %9834 }
 0x195   :  { %v4093_v18 = vmax.f32 %v4091_v6, %v4092_v33  ;;  %v4100_v55 = vmax.f32 %v4098_v51, %v4099_v27  ;;  %v4107_v48 = vmax.f32 %v4105_v42, %v4106_v0  ;;  %v4113_v38 = vrot.slane %v4112_v16, 1  ;;  %v17188_v6 = vld [vmem:[#allocation33_spill] sm:$0xff] }
 0x196   :  { %v13430_v41 = vpop.permute.xlu0 %9829  ;;  %v4120_v53 = vrot.slane %v4119_v45, 1  ;;  %v4126_v24 = vmax.f32 %v4124_v50, %v4125_v54  ;;  %v4134_v30 = vrot.slane %v4133_v22, 1  ;;  %v17185_v37 = vunpack.i.l.bf16 %v13372_v59 }
 0x197   :  { %v17187_v57 = vpack.i.bf16 %v12661_v56, %v12664_v17  ;;  %v4114_v10 = vmax.f32 %v4112_v16, %v4113_v38  ;;  %v5112_v33 = vsel %vm5111_vm14, %v4100_v55, %v4093_v18  ;;  %v13441_v42 = vmax.f32 %v4138_v47, %v4139_v35 }
 0x198   :  { %v2356_v14 = vsel %vm2323_vm4, %v17186_v25, %v17185_v37  ;;  %v13445_v51 = vsel %vm2323_vm4, %v17188_v6, %v9792_v19  ;;  %v17189_v59 = vpack.i.bf16 %v12651_v7, %v12673_v21  ;;  %v5114_v25 = vsel %vm5113_vm15, %v4107_v48, %v5112_v33  ;;  %v13453_v27 = vpop.permute.xlu1 %9844 }
 0x199   :  { %10124 = vrot.lane.b32.xlu1 %v17187_v57, %s16928_s0  ;;  %v4121_v2 = vmax.f32 %v4119_v45, %v4120_v53  ;;  %v4127_v50 = vrot.slane %v4126_v24, 1  ;;  %v9806_v49 = vunpack.i.l.bf16 %v13392_v32  ;;  %v13455_v0 = vmax.f32 %v4133_v22, %v4134_v30 }
 0x19a   :  { %10119 = vrot.lane.b32.xlu0 %v17189_v59, %s16928_s0  ;;  %v5116_v47 = vsel %vm5115_vm3, %v4114_v10, %v5114_v25  ;;  %v9807_v16 = vunpack.i.h.bf16 %v13392_v32  ;;  %v17190_v19 = vunpack.i.l.bf16 %v13369_v43  ;;  %v13462_v35 = vpop.permute.xlu0 %9839  ;;  %v9802_v55 = vunpack.i.h.bf16 %v13397_v52 }
 0x19b   :  { %v4128_v18 = vmax.f32 %v4126_v24, %v4127_v50  ;;  %v5118_v45 = vsel %vm16902_vm2, %v4121_v2, %v5116_v47  ;;  %v9801_v48 = vunpack.i.l.bf16 %v13397_v52  ;;  %v17191_v22 = vpack.i.bf16 %v12956_v9, %v12726_v63 }
 0x19c   :  { %v2418_v54 = vsel %vm2385_vm5, %v2356_v14, %v17190_v19  ;;  %v9817_v32 = vunpack.i.h.bf16 %v13409_v29  ;;  %v9816_v38 = vunpack.i.l.bf16 %v13409_v29  ;;  %v9812_v53 = vunpack.i.h.bf16 %v13411_v20  ;;  %v13486_v29 = vpop.permute.xlu1 %9854 }
 0x19d   :  { %10134 = vrot.lane.b32.xlu1 %v17191_v22, %s10807_s20  ;;  %v9811_v30 = vunpack.i.l.bf16 %v13411_v20  ;;  %v17192_v24 = vpack.i.bf16 %v12718_v5, %v12738_v39  ;;  %v13481_v37 = vsel %vm16901_vm1, %v4128_v18, %v5118_v45  ;;  %v2482_v63 = vsel %vm2447_vm6, %v13214_v12, %v9806_v49  ;;  %v17193_v20 = vld [vmem:[#allocation22_spill] sm:$0xff] }
 0x19e   :  { %v9827_v9 = vunpack.i.h.bf16 %v13419_v26  ;;  %v2483_v14 = vsel %vm2447_vm6, %v2418_v54, %v9807_v16  ;;  %v2480_v57 = vsel %vm2447_vm6, %v17193_v20, %v9801_v48  ;;  %v2481_v39 = vsel %vm2447_vm6, %v17193_v20, %v9802_v55  ;;  %v9850_v10 = vpop.permute.xlu0 %9849  ;;  %v8906_v25 = vpop.f32.mrb[4].mxu0 }
 0x19f   :  { %10129 = vrot.lane.b32.xlu0 %v17192_v24, %s10807_s20  ;;  %v2547_v5 = vsel %vm16914_vm7, %v2482_v63, %v9816_v38  ;;  %v2548_v33 = vsel %vm16914_vm7, %v2483_v14, %v9817_v32  ;;  %v9826_v6 = vunpack.i.l.bf16 %v13419_v26  ;;  %v9822_v12 = vunpack.i.h.bf16 %v13421_v15 }
 0x1a0   :  { %v9821_v59 = vunpack.i.l.bf16 %v13421_v15  ;;  %v17194_v2 = vpack.i.bf16 %v12961_v23, %v12882_v34  ;;  %v2545_v50 = vsel %vm16914_vm7, %v2480_v57, %v9811_v30  ;;  %v2546_v49 = vsel %vm16914_vm7, %v2481_v39, %v9812_v53  ;;  %v3047_v15 = vpop.f32.mrb[5].mxu0  ;;  %v9865_v45 = vpop.permute.xlu1 %9864 }
 0x1a1   :  { %v9836_v47 = vunpack.i.l.bf16 %v13428_v58  ;;  %v9832_v16 = vunpack.i.h.bf16 %v13430_v41  ;;  %v17195_v26 = vpack.i.bf16 %v12780_v62, %v12771_v60  ;;  %v2613_v19 = vsel %vm16915_vm8, %v2548_v33, %v9827_v9  ;;  %v8907_v18 = vpop.f32.mrb[6].mxu0 }
 0x1a2   :  { %10144 = vrot.lane.b32.xlu1 %v17194_v2, %s17170_s30  ;;  %v2610_v54 = vsel %vm16915_vm8, %v2545_v50, %v9821_v59  ;;  %v9831_v23 = vunpack.i.l.bf16 %v13430_v41  ;;  %v2612_v55 = vsel %vm16915_vm8, %v2547_v5, %v9826_v6  ;;  %v2611_v48 = vsel %vm16915_vm8, %v2546_v49, %v9822_v12  ;;  %v13520_v32 = vpop.permute.xlu0 %9859  ;;  %v3050_v38 = vpop.f32.mrb[7].mxu0  ;;  %v17199_v2 = vld [vmem:[#allocation32_spill] sm:$0xff] }
 0x1a3   :  { %10139 = vrot.lane.b32.xlu0 %v17195_v26, %s17170_s30  ;;  %v17196_v22 = vunpack.i.h.bf16 %v13270_v36  ;;  %v9846_v53 = vunpack.i.l.bf16 %v13453_v27  ;;  %v9842_v30 = vunpack.i.h.bf16 %v13462_v35  ;;  %v9841_v41 = vunpack.i.l.bf16 %v13462_v35 }
 0x1a4   :  { %v9857_v24 = vunpack.i.h.bf16 %v13486_v29  ;;  %v17197_v63 = vpack.i.bf16 %v12911_v1, %v12896_v28  ;;  %v2678_v36 = vsel %vm16882_vm9, %v2613_v19, %v9836_v47  ;;  %v2677_v9 = vsel %vm16882_vm9, %v2612_v55, %v9832_v16  ;;  %v9875_v6 = vpop.permute.xlu1 %9874 }
 0x1a5   :  { %v2675_v60 = vsel %vm16882_vm9, %v2610_v54, %v17196_v22  ;;  %v9851_v14 = vunpack.i.l.bf16 %v9850_v10  ;;  %v3056_v20 = vadd.f32 %v8906_v25, %v13305_v31  ;;  %v17198_v57 = vpack.i.bf16 %v12901_v11, %v12661_v56  ;;  %v17202_v22 = vld [vmem:[#allocation63_spill] sm:$0xff] }
 0x1a6   :  { %10154 = vrot.lane.b32.xlu1 %v17197_v63, %s17094_s24  ;;  %v2676_v35 = vsel %vm16882_vm9, %v2611_v48, %v9831_v23  ;;  %v2743_v39 = vsel %vm2707_vm10, %v2678_v36, %v9846_v53  ;;  %v9856_v5 = vunpack.i.l.bf16 %v13486_v29  ;;  %v9852_v33 = vunpack.i.h.bf16 %v9850_v10  ;;  %v13546_v49 = vpop.permute.xlu0 %9869  ;;  %v17200_v29 = vld [vmem:[#allocation62_spill] sm:$0xff]  ;;  %v17203_v53 = vld [vmem:[#allocation31_spill] sm:$0xff] }
 0x1a7   :  { %10149 = vrot.lane.b32.xlu0 %v17198_v57, %s17094_s24  ;;  %v2741_v12 = vsel %vm2707_vm10, %v2676_v35, %v9841_v41  ;;  %v2742_v59 = vsel %vm2707_vm10, %v2677_v9, %v9842_v30  ;;  %v13544_v25 = vsel %vm2323_vm4, %v17199_v2, %v9857_v24  ;;  %v3292_v50 = vmax.f32 %v3056_v20, 0.0  ;;  %v17207_v2 = vld [vmem:[#allocation20_spill] sm:$0xff] }
 0x1a8   :  { %v3048_v47 = vadd.f32 %v13305_v31, %v3047_v15  ;;  %v3059_v16 = vadd.f32 %v8907_v18, %v13305_v31  ;;  %v9867_v26 = vunpack.i.h.bf16 %v9865_v45  ;;  %v9866_v19 = vunpack.i.l.bf16 %v9865_v45  ;;  %v13563_v41 = vpop.permute.xlu1 %9884 }
 0x1a9   :  { %v2806_v10 = vsel %vm2772_vm11, %v2741_v12, %v9851_v14  ;;  %v9861_v54 = vunpack.i.l.bf16 %v13520_v32  ;;  %v3051_v23 = vadd.f32 %v13305_v31, %v3050_v38  ;;  %v17201_v55 = vunpack.i.h.bf16 %v13300_v4  ;;  %v17205_v14 = vld [vmem:[#allocation36_spill] sm:$0xff] }
 0x1aa   :  { %10164 = vrot.lane.b32.xlu1 %v17200_v29, %s10810_s27  ;;  %v2807_v15 = vsel %vm2772_vm11, %v2742_v59, %v9852_v33  ;;  %v3290_v18 = vmax.f32 %v3048_v47, 0.0  ;;  %v3293_v45 = vmax.f32 %v3059_v16, 0.0  ;;  %v2361_v30 = vsel %vm2323_vm4, %v17203_v53, %v9867_v26  ;;  %v13569_v36 = vpop.permute.xlu0 %9879  ;;  %v17206_v33 = vld [vmem:[#allocation34_spill] sm:$0xff] }
 0x1ab   :  { %v2740_v48 = vsel %vm2707_vm10, %v2675_v60, %v17201_v55  ;;  %10159 = vrot.lane.b32.xlu0 %v17202_v22, %s10810_s27  ;;  %v2808_v24 = vsel %vm2772_vm11, %v2743_v39, %v9861_v54  ;;  %v3291_v63 = vmax.f32 %v3051_v23, 0.0  ;;  %v17204_v38 = vunpack.i.h.bf16 %v13342_v13 }
 0x1ac   :  { %v9877_v60 = vunpack.i.h.bf16 %v9875_v6  ;;  %v3352_v9 = vmax.f32 %v3290_v18, %v3292_v50  ;;  %v2360_v20 = vsel %vm2323_vm4, %v17205_v14, %v9866_v19  ;;  %v9876_v35 = vunpack.i.l.bf16 %v9875_v6  ;;  %v13588_v26 = vpop.permute.xlu1 %9894 }
 0x1ad   :  { %v2805_v4 = vsel %vm2772_vm11, %v2740_v48, %v17204_v38  ;;  %v13577_v39 = vsel %vm2323_vm4, %v17206_v33, %v9856_v5  ;;  %v3353_v12 = vmax.f32 %v3291_v63, %v3293_v45  ;;  %v2854_v59 = vpack.c.bf16 %v2808_v24, %v2807_v15  ;;  %v17208_v24 = vld [vmem:[#allocation25_spill] sm:$0xff] }
 0x1ae   :  { %v2853_v57 = vpack.c.bf16 %v2806_v10, %v2805_v4  ;;  %10174 = vrot.lane.b32.xlu1 %v17202_v22, %s10805_s1  ;;  %v3448_v50 = vcombine.high %v3352_v9, %v3352_v9  ;;  %v3455_v47 = vrot.slane %v3352_v9, %v17182_v61  ;;  %v13585_v6 = vsel %vm2385_vm5, %v2361_v30, %v9877_v60  ;;  %v13596_v23 = vpop.permute.xlu0 %9889 }
 0x1af   :  { %10169 = vrot.lane.b32.xlu0 %v17207_v2, %s10811_s28  ;;  %v9872_v16 = vunpack.i.h.bf16 %v13546_v49  ;;  %v3465_v5 = vcombine.high %v3353_v12, %v3353_v12  ;;  %v3472_v19 = vrot.slane %v3353_v12, %v17182_v61  ;;  %v13592_v10 = vsel %vm2385_vm5, %v2360_v20, %v9876_v35 }
 0x1b0   :  { %8932 = vmatprep.mubr.msk.bf16.mxu0 %vm2896_vm12, %v2853_v57  ;;  %v9871_v54 = vunpack.i.l.bf16 %v13546_v49  ;;  %v3462_v55 = vrot.slane %v3448_v50, %v17182_v61  ;;  %v3463_v48 = vcombine.high %v3455_v47, %v3455_v47  ;;  %v4143_v22 = vsel %vm4086_vm13, %v3455_v47, -inf  ;;  %v13609_v9 = vpop.permute.xlu1 %9904 }
 0x1b1   :  { %8933 = vmatmul.mubr.msk.bf16.gmra.mrb[32].mxu0 %vm2896_vm12, %v2854_v59  ;;  %v9886_v15 = vunpack.i.l.bf16 %v13563_v41  ;;  %v4144_v18 = vrot.slane %v4143_v22, 4  ;;  %v3479_v45 = vrot.slane %v3465_v5, %v17182_v61  ;;  %v3480_v53 = vcombine.high %v3472_v19, %v3472_v19 }
 0x1b2   :  { %10184 = vrot.lane.b32.xlu1 %v17200_v29, %s10805_s1  ;;  %v4171_v30 = vsel %vm4086_vm13, %v3472_v19, -inf  ;;  %v3464_v63 = vcombine.high %v3462_v55, %v3462_v55  ;;  %v4150_v38 = vsel %vm4086_vm13, %v3463_v48, -inf  ;;  %v4157_v4 = vsel %vm4086_vm13, %v3462_v55, -inf  ;;  %v13611_v35 = vpop.permute.xlu0 %9899 }
 0x1b3   :  { %10179 = vrot.lane.b32.xlu0 %v17208_v24, %s10811_s28  ;;  %v4172_v60 = vrot.slane %v4171_v30, 4  ;;  %v4145_v14 = vmax.f32 %v4143_v22, %v4144_v18  ;;  %v4151_v20 = vrot.slane %v4150_v38, 4  ;;  %v4158_v29 = vrot.slane %v4157_v4, 4 }
 0x1b4   :  { %v3481_v57 = vcombine.high %v3479_v45, %v3479_v45  ;;  %v4164_v33 = vsel %vm4086_vm13, %v3464_v63, -inf  ;;  %v4178_v59 = vsel %vm4086_vm13, %v3480_v53, -inf  ;;  %v4185_v50 = vsel %vm4086_vm13, %v3479_v45, -inf }
 0x1b5   :  { %v4173_v12 = vmax.f32 %v4171_v30, %v4172_v60  ;;  %v4146_v47 = vrot.slane %v4145_v14, 2  ;;  %v4152_v5 = vmax.f32 %v4150_v38, %v4151_v20  ;;  %v4159_v19 = vmax.f32 %v4157_v4, %v4158_v29  ;;  %v13621_v30 = vpop.permute.xlu1 %9914 }
 0x1b6   :  { %10194 = vrot.lane.b32.xlu1 %v17208_v24, %s10804_s19  ;;  %v4165_v55 = vrot.slane %v4164_v33, 4  ;;  %v4179_v22 = vrot.slane %v4178_v59, 4  ;;  %v4186_v18 = vrot.slane %v4185_v50, 4  ;;  %v4192_v63 = vsel %vm4086_vm13, %v3481_v57, -inf  ;;  %v13623_v13 = vpop.permute.xlu0 %9909 }
 0x1b7   :  { %10189 = vrot.lane.b32.xlu0 %v17207_v2, %s10804_s19  ;;  %v4174_v48 = vrot.slane %v4173_v12, 2  ;;  %v4147_v53 = vmax.f32 %v4145_v14, %v4146_v47  ;;  %v4153_v60 = vrot.slane %v4152_v5, 2  ;;  %v4160_v45 = vrot.slane %v4159_v19, 2 }
 0x1b8   :  { %v4166_v52 = vmax.f32 %v4164_v33, %v4165_v55  ;;  %v4180_v38 = vmax.f32 %v4178_v59, %v4179_v22  ;;  %v4187_v4 = vmax.f32 %v4185_v50, %v4186_v18  ;;  %v4193_v20 = vrot.slane %v4192_v63, 4 }
 0x1b9   :  { %v4175_v24 = vmax.f32 %v4173_v12, %v4174_v48  ;;  %v17209_v2 = vpack.i.bf16 %v12908_v8, %v12911_v1  ;;  %v4148_v29 = vrot.slane %v4147_v53, 1  ;;  %v4154_v62 = vmax.f32 %v4152_v5, %v4153_v60  ;;  %v13635_v50 = vpop.permute.xlu1 %9924  ;;  %v17251_v1 = vld [vmem:[#allocation12_spill] sm:$0xff] }
 0x1ba   :  { %v4161_v57 = vmax.f32 %v4159_v19, %v4160_v45  ;;  %v4167_v34 = vrot.slane %v4166_v52, 2  ;;  %v17210_v14 = vpack.i.bf16 %v12896_v28, %v12901_v11  ;;  %v4181_v47 = vrot.slane %v4180_v38, 2  ;;  %v13641_v19 = vpop.permute.xlu0 %9919 }
 0x1bb   :  { %10204 = vrot.lane.b32.xlu1 %v17209_v2, %s16928_s0  ;;  %v4176_v33 = vrot.slane %v4175_v24, 1  ;;  %v4188_v12 = vrot.slane %v4187_v4, 2  ;;  %v13633_v59 = vmax.f32 %v4192_v63, %v4193_v20  ;;  %v4155_v55 = vrot.slane %v4154_v62, 1 }
 0x1bc   :  { %10199 = vrot.lane.b32.xlu0 %v17210_v14, %s16928_s0  ;;  %v4162_v48 = vrot.slane %v4161_v57, 1  ;;  %v4168_v22 = vmax.f32 %v4166_v52, %v4167_v34  ;;  %v2421_v5 = vsel %vm2385_vm5, %v13544_v25, %v9872_v16  ;;  %v4182_v18 = vmax.f32 %v4180_v38, %v4181_v47  ;;  %v17212_v16 = vld [vmem:[#allocation21_spill] sm:$0xff]  ;;  %v17213_v38 = vld [vmem:[#allocation60_spill] sm:$0xff] }
 0x1bd   :  { %v4189_v60 = vmax.f32 %v4187_v4, %v4188_v12  ;;  %v2420_v63 = vsel %vm2385_vm5, %v13577_v39, %v9871_v54  ;;  %v9887_v45 = vunpack.i.h.bf16 %v13563_v41  ;;  %v17211_v52 = vpack.i.bf16 %v13156_v46, %v12974_v44  ;;  %v13660_v47 = vpop.permute.xlu1 %9934 }
 0x1be   :  { %v4149_v34 = vmax.f32 %v4147_v53, %v4148_v29  ;;  %v4156_v20 = vmax.f32 %v4154_v62, %v4155_v55  ;;  %v4163_v2 = vmax.f32 %v4161_v57, %v4162_v48  ;;  %v4169_v25 = vrot.slane %v4168_v22, 1  ;;  %v13664_v29 = vpop.permute.xlu0 %9929  ;;  %v8910_v12 = vpop.f32.mrb[8].mxu0 }
 0x1bf   :  { %10214 = vrot.lane.b32.xlu1 %v17211_v52, %s10807_s20  ;;  %v17214_v4 = vpack.i.bf16 %v17212_v16, %v17213_v38  ;;  %v4177_v49 = vmax.f32 %v4175_v24, %v4176_v33  ;;  %v4183_v14 = vrot.slane %v4182_v18, 1  ;;  %v2486_v54 = vsel %vm2447_vm6, %v2421_v5, %v9886_v15 }
 0x1c0   :  { %v4170_v44 = vmax.f32 %v4168_v22, %v4169_v25  ;;  %v5123_v46 = vsel %vm5111_vm14, %v4156_v20, %v4149_v34  ;;  %v4190_v62 = vrot.slane %v4189_v60, 1  ;;  %v9882_v53 = vunpack.i.h.bf16 %v13569_v36 }
 0x1c1   :  { %10209 = vrot.lane.b32.xlu0 %v17214_v4, %s10807_s20  ;;  %v5124_v57 = vsel %vm5113_vm15, %v4163_v2, %v5123_v46  ;;  %v2487_v24 = vsel %vm2447_vm6, %v13592_v10, %v9887_v45  ;;  %v9881_v33 = vunpack.i.l.bf16 %v13569_v36  ;;  %v17215_v41 = vunpack.i.h.bf16 %v13369_v43  ;;  %v17217_v36 = vld [vmem:[#allocation24_spill] sm:$0xff]  ;;  %v17218_v43 = vld [vmem:[#allocation61_spill] sm:$0xff]  ;;  %v13693_v20 = vpop.permute.xlu1 %9944  ;;  %v17221_v46 = vld [vmem:[#allocation23_spill] sm:$0xff] }
 0x1c2   :  { %v17216_v55 = vpack.i.bf16 %v13191_v3, %v13022_v40  ;;  %v13678_v48 = vmax.f32 %v4182_v18, %v4183_v14  ;;  %v5125_v22 = vsel %vm5115_vm3, %v4170_v44, %v5124_v57  ;;  %v9897_v5 = vunpack.i.h.bf16 %v13588_v26  ;;  %v13700_v38 = vpop.permute.xlu0 %9939 }
 0x1c3   :  { %v2419_v15 = vsel %vm2385_vm5, %v13445_v51, %v17215_v41  ;;  %v9896_v10 = vunpack.i.l.bf16 %v13588_v26  ;;  %v17219_v45 = vpack.i.bf16 %v17217_v36, %v17218_v43  ;;  %v3063_v51 = vpop.f32.mrb[9].mxu0  ;;  %v13688_v52 = vsel %vm16902_vm2, %v4177_v49, %v5125_v22 }
 0x1c4   :  { %10224 = vrot.lane.b32.xlu1 %v17216_v55, %s17170_s30  ;;  %v9892_v40 = vunpack.i.h.bf16 %v13596_v23  ;;  %v9891_v3 = vunpack.i.l.bf16 %v13596_v23  ;;  %v9907_v18 = vunpack.i.h.bf16 %v13609_v9  ;;  %v8911_v34 = vpop.f32.mrb[10].mxu0  ;;  %v13695_v2 = vmax.f32 %v4189_v60, %v4190_v62  ;;  %v17220_v60 = vld [vmem:[#allocation10_spill] sm:$0xff] }
 0x1c5   :  { %10219 = vrot.lane.b32.xlu0 %v17219_v45, %s17170_s30  ;;  %v2485_v26 = vsel %vm2447_vm6, %v2420_v63, %v9882_v53  ;;  %v9906_v25 = vunpack.i.l.bf16 %v13609_v9  ;;  %v9902_v16 = vunpack.i.h.bf16 %v13611_v35  ;;  %v3066_v4 = vpop.f32.mrb[11].mxu0  ;;  %v2484_v49 = vsel %vm2447_vm6, %v2419_v15, %v9881_v33  ;;  %v17223_v33 = vld [vmem:[#allocation44_spill] sm:$0xff]  ;;  %v13722_v55 = vpop.permute.xlu1 %9954 }
 0x1c6   :  { %v2551_v23 = vsel %vm16914_vm7, %v2486_v54, %v9896_v10  ;;  %v2552_v14 = vsel %vm16914_vm7, %v2487_v24, %v9897_v5  ;;  %v9901_v44 = vunpack.i.l.bf16 %v13611_v35  ;;  %v17222_v62 = vpack.i.bf16 %v17220_v60, %v17221_v46  ;;  %v13728_v43 = vpop.permute.xlu0 %9949 }
 0x1c7   :  { %v2549_v9 = vsel %vm16914_vm7, %v2484_v49, %v9891_v3  ;;  %v2550_v63 = vsel %vm16914_vm7, %v2485_v26, %v9892_v40  ;;  %v2617_v53 = vsel %vm16915_vm8, %v2552_v14, %v9907_v18  ;;  %v9916_v57 = vunpack.i.l.bf16 %v13621_v30  ;;  %v17226_v26 = vld [vmem:[#allocation45_spill] sm:$0xff] }
 0x1c8   :  { %10234 = vrot.lane.b32.xlu1 %v17222_v62, %s17094_s24  ;;  %v17224_v54 = vpack.i.bf16 %v17223_v33, %v12908_v8  ;;  %v2616_v35 = vsel %vm16915_vm8, %v2551_v23, %v9906_v25  ;;  %v2614_v24 = vsel %vm16915_vm8, %v2549_v9, %v9901_v44  ;;  %v9912_v41 = vunpack.i.h.bf16 %v13623_v13  ;;  %v17241_v3 = vld [vmem:[#allocation53_spill] sm:$0xff] }
 0x1c9   :  { %v9911_v15 = vunpack.i.l.bf16 %v13623_v13  ;;  %v2615_v22 = vsel %vm16915_vm8, %v2550_v63, %v9902_v16  ;;  %v9926_v10 = vunpack.i.l.bf16 %v13635_v50  ;;  %v9922_v36 = vunpack.i.h.bf16 %v13641_v19  ;;  %v13748_v9 = vpop.permute.xlu1 %9964 }
 0x1ca   :  { %10229 = vrot.lane.b32.xlu0 %v17224_v54, %s17094_s24  ;;  %v17225_v45 = vunpack.i.h.bf16 %v13428_v58  ;;  %v9921_v13 = vunpack.i.l.bf16 %v13641_v19  ;;  %v9937_v18 = vunpack.i.h.bf16 %v13660_v47  ;;  %v2682_v25 = vsel %vm16882_vm9, %v2617_v53, %v9916_v57  ;;  %v17227_v58 = vld [vmem:[#allocation15_spill] sm:$0xff]  ;;  %v13754_v54 = vpop.permute.xlu0 %9959 }
 0x1cb   :  { %v2680_v16 = vsel %vm16882_vm9, %v2615_v22, %v9911_v15  ;;  %v2681_v49 = vsel %vm16882_vm9, %v2616_v35, %v9912_v41  ;;  %v9936_v23 = vunpack.i.l.bf16 %v13660_v47  ;;  %v2747_v14 = vsel %vm2707_vm10, %v2682_v25, %v9926_v10  ;;  %v17228_v35 = vld [vmem:[#allocation11_spill] sm:$0xff] }
 0x1cc   :  { %v2679_v40 = vsel %vm16882_vm9, %v2614_v24, %v17225_v45  ;;  %10244 = vrot.lane.b32.xlu1 %v17226_v26, %s10810_s27  ;;  %v2746_v19 = vsel %vm2707_vm10, %v2681_v49, %v9922_v36  ;;  %v9931_v44 = vunpack.i.l.bf16 %v13664_v29  ;;  %v3072_v62 = vadd.f32 %v8910_v12, %v13305_v31  ;;  %v17229_v41 = vld [vmem:[#allocation7_spill] sm:$0xff]  ;;  %v17230_v36 = vld [vmem:[#allocation30_spill] sm:$0xff] }
 0x1cd   :  { %v2745_v63 = vsel %vm2707_vm10, %v2680_v16, %v9921_v13  ;;  %v9932_v53 = vunpack.i.h.bf16 %v13664_v29  ;;  %v3064_v57 = vadd.f32 %v13305_v31, %v3063_v51  ;;  %v3075_v47 = vadd.f32 %v8911_v34, %v13305_v31  ;;  %v17231_v13 = vld [vmem:[#allocation43_spill] sm:$0xff] }
 0x1ce   :  { %10239 = vrot.lane.b32.xlu0 %v17227_v58, %s10810_s27  ;;  %v2363_v24 = vsel %vm2323_vm4, %v17228_v35, %v9937_v18  ;;  %v2362_v15 = vsel %vm2323_vm4, %v17229_v41, %v9936_v23  ;;  %v3296_v22 = vmax.f32 %v3072_v62, 0.0  ;;  %v9947_v12 = vunpack.i.h.bf16 %v13693_v20  ;;  %v13774_v23 = vpop.permute.xlu1 %9974  ;;  %v17234_v35 = vld [vmem:[#allocation42_spill] sm:$0xff] }
 0x1cf   :  { %v2810_v29 = vsel %vm2772_vm11, %v2745_v63, %v9931_v44  ;;  %v3294_v10 = vmax.f32 %v3064_v57, 0.0  ;;  %v9946_v51 = vunpack.i.l.bf16 %v13693_v20  ;;  %v9941_v34 = vunpack.i.l.bf16 %v13700_v38  ;;  %v13781_v57 = vpop.permute.xlu0 %9969 }
 0x1d0   :  { %10254 = vrot.lane.b32.xlu1 %v17227_v58, %s10805_s1  ;;  %v3297_v45 = vmax.f32 %v3075_v47, 0.0  ;;  %v2365_v18 = vsel %vm2323_vm4, %v17231_v13, %v9947_v12  ;;  %v3067_v25 = vadd.f32 %v13305_v31, %v3066_v4  ;;  %v17232_v16 = vunpack.i.h.bf16 %v13453_v27 }
 0x1d1   :  { %v3354_v58 = vmax.f32 %v3294_v10, %v3296_v22  ;;  %v2812_v20 = vsel %vm2772_vm11, %v2747_v14, %v9941_v34  ;;  %v17233_v44 = vunpack.i.h.bf16 %v13520_v32  ;;  %v9957_v63 = vunpack.i.h.bf16 %v13722_v55  ;;  %v17235_v22 = vld [vmem:[#allocation26_spill] sm:$0xff] }
 0x1d2   :  { %10249 = vrot.lane.b32.xlu0 %v17230_v36, %s10811_s28  ;;  %v2744_v49 = vsel %vm2707_vm10, %v2679_v40, %v17232_v16  ;;  %v2811_v47 = vsel %vm2772_vm11, %v2746_v19, %v9932_v53  ;;  %v3295_v31 = vmax.f32 %v3067_v25, 0.0  ;;  %v9956_v27 = vunpack.i.l.bf16 %v13722_v55  ;;  %v13798_v12 = vpop.permute.xlu1 %9984 }
 0x1d3   :  { %v2809_v62 = vsel %vm2772_vm11, %v2744_v49, %v17233_v44  ;;  %v3482_v40 = vcombine.high %v3354_v58, %v3354_v58  ;;  %v3489_v14 = vrot.slane %v3354_v58, %v17182_v61  ;;  %v2364_v32 = vsel %vm2323_vm4, %v17234_v35, %v9946_v51  ;;  %v13803_v13 = vpop.permute.xlu0 %9979 }
 0x1d4   :  { %v2855_v4 = vpack.c.bf16 %v2810_v29, %v2809_v62  ;;  %10264 = vrot.lane.b32.xlu1 %v17226_v26, %s10805_s1  ;;  %v9952_v41 = vunpack.i.h.bf16 %v13728_v43  ;;  %v3355_v53 = vmax.f32 %v3295_v31, %v3297_v45  ;;  %v13796_v55 = vsel %vm2385_vm5, %v2365_v18, %v9957_v63 }
 0x1d5   :  { %v2856_v26 = vpack.c.bf16 %v2812_v20, %v2811_v47  ;;  %v3496_v29 = vrot.slane %v3482_v40, %v17182_v61  ;;  %v3497_v10 = vcombine.high %v3489_v14, %v3489_v14  ;;  %v4199_v51 = vsel %vm4086_vm13, %v3489_v14, -inf }
 0x1d6   :  { %10259 = vrot.lane.b32.xlu0 %v17235_v22, %s10811_s28  ;;  %8936 = vmatprep.mubr.msk.bf16.mxu0 %vm2896_vm12, %v2855_v4  ;;  %v9951_v34 = vunpack.i.l.bf16 %v13728_v43  ;;  %v4200_v25 = vrot.slane %v4199_v51, 4  ;;  %v3499_v16 = vcombine.high %v3355_v53, %v3355_v53  ;;  %v3506_v45 = vrot.slane %v3355_v53, %v17182_v61  ;;  %v13820_v31 = vpop.permute.xlu1 %9994 }
 0x1d7   :  { %v13807_v49 = vsel %vm2385_vm5, %v2364_v32, %v9956_v27  ;;  %8937 = vmatmul.mubr.msk.bf16.gmra.mrb[36].mxu0 %vm2896_vm12, %v2856_v26  ;;  %v3498_v18 = vcombine.high %v3496_v29, %v3496_v29  ;;  %v4206_v58 = vsel %vm4086_vm13, %v3497_v10, -inf  ;;  %v4213_v20 = vsel %vm4086_vm13, %v3496_v29, -inf  ;;  %17236 = vst [vmem:[#allocation37_spill] sm:$0xff] %v13820_v31 }
 0x1d8   :  { %10274 = vrot.lane.b32.xlu1 %v17235_v22, %s10804_s19  ;;  %v13815_v43 = vsel %vm2385_vm5, %v2363_v24, %v9952_v41  ;;  %v4201_v44 = vmax.f32 %v4199_v51, %v4200_v25  ;;  %v4207_v62 = vrot.slane %v4206_v58, 4  ;;  %v4214_v63 = vrot.slane %v4213_v20, 4  ;;  %v13827_v24 = vpop.permute.xlu0 %9989  ;;  %v17237_v22 = vld [vmem:[#allocation8_spill] sm:$0xff] }
 0x1d9   :  { %v3513_v47 = vrot.slane %v3499_v16, %v17182_v61  ;;  %v4220_v4 = vsel %vm4086_vm13, %v3498_v18, -inf  ;;  %v3514_v27 = vcombine.high %v3506_v45, %v3506_v45  ;;  %v4227_v40 = vsel %vm4086_vm13, %v3506_v45, -inf }
 0x1da   :  { %10269 = vrot.lane.b32.xlu0 %v17230_v36, %s10804_s19  ;;  %v13825_v14 = vsel %vm2385_vm5, %v2362_v15, %v9951_v34  ;;  %v4202_v35 = vrot.slane %v4201_v44, 2  ;;  %v4208_v32 = vmax.f32 %v4206_v58, %v4207_v62  ;;  %v4215_v36 = vmax.f32 %v4213_v20, %v4214_v63  ;;  %v13839_v18 = vpop.permute.xlu1 %10004 }
 0x1db   :  { %v4221_v41 = vrot.slane %v4220_v4, 4  ;;  %v17238_v53 = vpack.i.bf16 %v17237_v22, %v17220_v60  ;;  %v3515_v26 = vcombine.high %v3513_v47, %v3513_v47  ;;  %v4228_v29 = vrot.slane %v4227_v40, 4  ;;  %17240 = vst [vmem:[#allocation14_spill] sm:$0xff] %v13839_v18 }
 0x1dc   :  { %v4234_v10 = vsel %vm4086_vm13, %v3514_v27, -inf  ;;  %v4241_v51 = vsel %vm4086_vm13, %v3513_v47, -inf  ;;  %v17239_v15 = vpack.i.bf16 %v17221_v46, %v17223_v33  ;;  %v4203_v34 = vmax.f32 %v4201_v44, %v4202_v35 }
 0x1dd   :  { %10284 = vrot.lane.b32.xlu1 %v17238_v53, %s16928_s0  ;;  %v4209_v25 = vrot.slane %v4208_v32, 2  ;;  %v4216_v16 = vrot.slane %v4215_v36, 2  ;;  %v4222_v45 = vmax.f32 %v4220_v4, %v4221_v41  ;;  %v4229_v58 = vmax.f32 %v4227_v40, %v4228_v29  ;;  %v13842_v53 = vpop.permute.xlu0 %9999  ;;  %v17244_v40 = vld [vmem:[#allocation51_spill] sm:$0xff]  ;;  %v17245_v29 = vld [vmem:[#allocation46_spill] sm:$0xff] }
 0x1de   :  { %10279 = vrot.lane.b32.xlu0 %v17239_v15, %s16928_s0  ;;  %v4235_v20 = vrot.slane %v4234_v10, 4  ;;  %v4242_v62 = vrot.slane %v4241_v51, 4  ;;  %v4248_v63 = vsel %vm4086_vm13, %v3515_v26, -inf  ;;  %v4204_v27 = vrot.slane %v4203_v34, 1  ;;  %v17242_v15 = vld [vmem:[#allocation47_spill] sm:$0xff] }
 0x1df   :  { %v4210_v47 = vmax.f32 %v4208_v32, %v4209_v25  ;;  %v4217_v39 = vmax.f32 %v4215_v36, %v4216_v16  ;;  %v4223_v19 = vrot.slane %v4222_v45, 2  ;;  %v17243_v44 = vpack.i.bf16 %v17241_v3, %v17242_v15  ;;  %v13853_v36 = vpop.permute.xlu1 %10014 }
 0x1e0   :  { %v4230_v35 = vrot.slane %v4229_v58, 2  ;;  %v4236_v4 = vmax.f32 %v4234_v10, %v4235_v20  ;;  %v4243_v41 = vmax.f32 %v4241_v51, %v4242_v62  ;;  %v4249_v5 = vrot.slane %v4248_v63, 4 }
 0x1e1   :  { %10294 = vrot.lane.b32.xlu1 %v17243_v44, %s10807_s20  ;;  %v17246_v60 = vpack.i.bf16 %v17244_v40, %v17245_v29  ;;  %v4211_v26 = vrot.slane %v4210_v47, 1  ;;  %v4218_v46 = vrot.slane %v4217_v39, 1  ;;  %v4224_v8 = vmax.f32 %v4222_v45, %v4223_v19  ;;  %v13856_v10 = vpop.permute.xlu0 %10009  ;;  %v13858_v40 = vpop.f32.mrb[12].mxu0  ;;  %v17248_v19 = vld [vmem:[#allocation27_spill] sm:$0xff] }
 0x1e2   :  { %v9967_v32 = vunpack.i.h.bf16 %v13748_v9  ;;  %v4231_v25 = vmax.f32 %v4229_v58, %v4230_v35  ;;  %v4237_v16 = vrot.slane %v4236_v4, 2  ;;  %v4244_v15 = vrot.slane %v4243_v41, 2 }
 0x1e3   :  { %10289 = vrot.lane.b32.xlu0 %v17246_v60, %s10807_s20  ;;  %v9966_v44 = vunpack.i.l.bf16 %v13748_v9  ;;  %v4205_v51 = vmax.f32 %v4203_v34, %v4204_v27  ;;  %v4212_v20 = vmax.f32 %v4210_v47, %v4211_v26  ;;  %v4219_v62 = vmax.f32 %v4217_v39, %v4218_v46  ;;  %v17247_v60 = vld [vmem:[#allocation13_spill] sm:$0xff]  ;;  %v17250_v9 = vld [vmem:[#allocation38_spill] sm:$0xff]  ;;  %v13870_v34 = vpop.f32.mrb[13].mxu0 }
 0x1e4   :  { %v4225_v33 = vrot.slane %v4224_v8, 1  ;;  %v17249_v45 = vpack.i.bf16 %v17247_v60, %v17248_v19  ;;  %v4232_v29 = vrot.slane %v4231_v25, 1  ;;  %v4238_v28 = vmax.f32 %v4236_v4, %v4237_v16  ;;  %v8915_v26 = vpop.f32.mrb[14].mxu0  ;;  %v13875_v19 = vpop.permute.xlu1 %10024 }
 0x1e5   :  { %v4245_v58 = vmax.f32 %v4243_v41, %v4244_v15  ;;  %v13864_v35 = vmax.f32 %v4248_v63, %v4249_v5  ;;  %v17252_v56 = vpack.i.bf16 %v17250_v9, %v17251_v1  ;;  %v5129_v46 = vsel %vm5111_vm14, %v4212_v20, %v4205_v51  ;;  %v13882_v41 = vpop.f32.mrb[15].mxu0 }
 0x1e6   :  { %10304 = vrot.lane.b32.xlu1 %v17249_v45, %s17170_s30  ;;  %v4226_v39 = vmax.f32 %v4224_v8, %v4225_v33  ;;  %v9962_v27 = vunpack.i.h.bf16 %v13754_v54  ;;  %v9961_v47 = vunpack.i.l.bf16 %v13754_v54  ;;  %v5130_v5 = vsel %vm5113_vm15, %v4219_v62, %v5129_v46 }
 0x1e7   :  { %10299 = vrot.lane.b32.xlu0 %v17252_v56, %s17170_s30  ;;  %v4233_v63 = vmax.f32 %v4231_v25, %v4232_v29  ;;  %v4239_v4 = vrot.slane %v4238_v28, 1  ;;  %v2490_v1 = vsel %vm2447_vm6, %v13815_v43, %v9966_v44  ;;  %v13880_v56 = vpop.permute.xlu0 %10019  ;;  %v4246_v8 = vrot.slane %v4245_v58, 1 }
 0x1e8   :  { %v5131_v33 = vsel %vm5115_vm3, %v4226_v39, %v5130_v5  ;;  %v2491_v54 = vsel %vm2447_vm6, %v13807_v49, %v9967_v32  ;;  %v9977_v16 = vunpack.i.h.bf16 %v13774_v23  ;;  %v4251_v15 = vrot.slane %v13864_v35, 2  ;;  %v13900_v32 = vpop.permute.xlu1 %10034 }
 0x1e9   :  { %v13890_v25 = vsel %vm16902_vm2, %v4233_v63, %v5131_v33  ;;  %v2488_v43 = vsel %vm2447_vm6, %v13585_v6, %v9961_v47  ;;  %v9976_v44 = vunpack.i.l.bf16 %v13774_v23  ;;  %v2489_v51 = vsel %vm2447_vm6, %v13825_v14, %v9962_v27 }
 0x1ea   :  { %v9972_v20 = vunpack.i.h.bf16 %v13781_v57  ;;  %v9971_v62 = vunpack.i.l.bf16 %v13781_v57  ;;  %v9987_v49 = vunpack.i.h.bf16 %v13798_v12  ;;  %v13902_v45 = vmax.f32 %v4238_v28, %v4239_v4 }
 0x1eb   :  { %v9986_v29 = vunpack.i.l.bf16 %v13798_v12  ;;  %v9982_v9 = vunpack.i.h.bf16 %v13803_v13  ;;  %v9981_v6 = vunpack.i.l.bf16 %v13803_v13  ;;  %v13907_v23 = vpop.permute.xlu0 %10029  ;;  %v13909_v39 = vmax.f32 %v4245_v58, %v4246_v8 }
 0x1ec   :  { %v2555_v14 = vsel %vm16914_vm7, %v2490_v1, %v9976_v44  ;;  %v2556_v57 = vsel %vm16914_vm7, %v2491_v54, %v9977_v16  ;;  %v2553_v46 = vsel %vm16914_vm7, %v2488_v43, %v9971_v62  ;;  %v2554_v27 = vsel %vm16914_vm7, %v2489_v51, %v9972_v20  ;;  %v13922_v4 = vpop.permute.xlu1 %10044 }
 0x1ed   :  { %v2621_v28 = vsel %vm16915_vm8, %v2556_v57, %v9987_v49  ;;  %v2618_v12 = vsel %vm16915_vm8, %v2553_v46, %v9981_v6  ;;  %v9996_v47 = vunpack.i.l.bf16 %v13820_v31  ;;  %v2620_v13 = vsel %vm16915_vm8, %v2555_v14, %v9986_v29  ;;  %v13948_v14 = vld [vmem:[%s16719_s2] ss:$0 sm:$0xff] }
 0x1ee   :  { %v9992_v58 = vunpack.i.h.bf16 %v13827_v24  ;;  %v9991_v63 = vunpack.i.l.bf16 %v13827_v24  ;;  %v2619_v1 = vsel %vm16915_vm8, %v2554_v27, %v9982_v9  ;;  %v10006_v8 = vunpack.i.l.bf16 %v13839_v18  ;;  %17254 = vst [vmem:[#allocation57_spill] sm:$0xff] %v13948_v14 }
 0x1ef   :  { %v10002_v33 = vunpack.i.h.bf16 %v13842_v53  ;;  %v10001_v54 = vunpack.i.l.bf16 %v13842_v53  ;;  %v13928_v16 = vpop.permute.xlu0 %10039  ;;  %v17253_v43 = vunpack.i.h.bf16 %v13621_v30  ;;  %v10017_v24 = vunpack.i.h.bf16 %v13853_v36 }
 0x1f0   :  { %v10016_v20 = vunpack.i.l.bf16 %v13853_v36  ;;  %v2686_v62 = vsel %vm16882_vm9, %v2621_v28, %v9996_v47  ;;  %v2684_v49 = vsel %vm16882_vm9, %v2619_v1, %v9991_v63  ;;  %v2685_v29 = vsel %vm16882_vm9, %v2620_v13, %v9992_v58  ;;  %v13952_v57 = vpop.permute.xlu1 %10054  ;;  %v13965_v47 = vld [vmem:[%s16921_s26 + $0x1e8] sm:$0xff]  ;;  %v17255_v13 = vld [vmem:[#allocation52_spill] sm:$0xff] }
 0x1f1   :  { %v2683_v44 = vsel %vm16882_vm9, %v2618_v12, %v17253_v43  ;;  %v10012_v53 = vunpack.i.h.bf16 %v13856_v10  ;;  %v13941_v9 = vsel %vm2707_vm10, %v2686_v62, %v10006_v8  ;;  %v2749_v30 = vsel %vm2707_vm10, %v2684_v49, %v10001_v54  ;;  %v13983_v8 = vld [vmem:[%s16921_s26 + $0x1f0] sm:$0xff] }
 0x1f2   :  { %v10011_v6 = vunpack.i.l.bf16 %v13856_v10  ;;  %v3088_v36 = vadd.f32 %v13948_v14, %v13858_v40  ;;  %v2750_v46 = vsel %vm2707_vm10, %v2685_v29, %v10002_v33  ;;  %v3080_v27 = vadd.f32 %v13948_v14, %v13870_v34  ;;  %v118_v10 = vld [vmem:[%s16921_s26 + $0x1e0] sm:$0xff]  ;;  %v17256_v34 = vld [vmem:[#allocation9_spill] sm:$0xff]  ;;  %17257 = vst [vmem:[#allocation19_spill] sm:$0xff] %v13983_v8 }
 0x1f3   :  { %v3091_v28 = vadd.f32 %v13948_v14, %v8915_v26  ;;  %v10027_v12 = vunpack.i.h.bf16 %v13875_v19  ;;  %v13967_v40 = vpop.permute.xlu0 %10049  ;;  %v13971_v58 = vsel %vm2323_vm4, %v17255_v13, %v10017_v24  ;;  %v13975_v26 = vsel %vm2323_vm4, %v17256_v34, %v10016_v20 }
 0x1f4   :  { %v13978_v63 = vsel %vm2772_vm11, %v2750_v46, %v10012_v53  ;;  %v3300_v1 = vmax.f32 %v3088_v36, 0.0  ;;  %vm16900_vm9 = vcmask 1047559   ;;  %v2814_v33 = vsel %vm2772_vm11, %v2749_v30, %v10011_v6  ;;  %v17258_v36 = vld [vmem:[#allocation50_spill] sm:$0xff] }
 0x1f5   :  { %v3298_v54 = vmax.f32 %v3080_v27, 0.0  ;;  %v3301_v62 = vmax.f32 %v3091_v28, 0.0  ;;  %v3083_v20 = vadd.f32 %v13948_v14, %v13882_v41  ;;  %v277_v49 = vrot.slane %v118_v10, 7  ;;  %v13999_v27 = vpop.permute.xlu1 %10064 }
 0x1f6   :  { %v16884_v29 = vrot.slane %v13965_v47, 7  ;;  %v13993_v46 = vsel %vm2323_vm4, %v17258_v36, %v10027_v12  ;;  %v16883_v13 = vrot.slane %v13983_v8, 7  ;;  %v17259_v30 = vunpack.i.h.bf16 %v13635_v50 }
 0x1f7   :  { %v3356_v53 = vmax.f32 %v3298_v54, %v3300_v1  ;;  %v14001_v28 = vpop.permute.xlu0 %10059  ;;  %v3299_v34 = vmax.f32 %v3083_v20, 0.0  ;;  %v14009_v10 = vsel %vm186_vm0, 0.0, %v277_v49  ;;  %v17262_v12 = vunpack.i.h.bf16 %v13700_v38 }
 0x1f8   :  { %v2748_v6 = vsel %vm2707_vm10, %v2683_v44, %v17259_v30  ;;  %v14006_v41 = vsel %vm186_vm0, %v277_v49, %v16884_v29  ;;  %17261 = vst [vmem:[#allocation33_spill] sm:$0xff] %v14009_v10  ;;  %v14018_v54 = vsel %vm186_vm0, 0.0, %v16883_v13  ;;  %v10308_v20 = vpack.i.bf16 %v14009_v10, %v17237_v22 }
 0x1f9   :  { %17260 = vst [vmem:[#allocation29_spill] sm:$0xff] %v14006_v41  ;;  %v2813_v1 = vsel %vm2772_vm11, %v2748_v6, %v17262_v12  ;;  %v3516_v50 = vcombine.high %v3356_v53, %v3356_v53  ;;  %v3523_v44 = vrot.slane %v3356_v53, %v17182_v61  ;;  %17263 = vst [vmem:[#allocation22_spill] sm:$0xff] %v14018_v54 }
 0x1fa   :  { %v3357_v36 = vmax.f32 %v3299_v34, %v3301_v62  ;;  %v10313_v49 = vpack.i.bf16 %v14018_v54, %v14006_v41  ;;  %v2857_v30 = vpack.c.bf16 %v2814_v33, %v2813_v1  ;;  %v4252_v38 = vmax.f32 %v13864_v35, %v4251_v15  ;;  %10309 = vrot.lane.b32.xlu0 %v10308_v20, %s17094_s24 }
 0x1fb   :  { %v3530_v6 = vrot.slane %v3516_v50, %v17182_v61  ;;  %v3531_v53 = vcombine.high %v3523_v44, %v3523_v44  ;;  %v4255_v12 = vsel %vm4086_vm13, %v3523_v44, -inf  ;;  %v5133_v24 = vsel %vm16901_vm1, %v13902_v45, %v13890_v25  ;;  %v14033_v62 = vpop.permute.xlu0 %10069  ;;  %v14043_v45 = vpop.permute.xlu1 %10074 }
 0x1fc   :  { %v4256_v34 = vrot.slane %v4255_v12, 4  ;;  %v3533_v1 = vcombine.high %v3357_v36, %v3357_v36  ;;  %v3540_v51 = vrot.slane %v3357_v36, %v17182_v61  ;;  %10314 = vrot.lane.b32.xlu1 %v10313_v49, %s17094_s24  ;;  %8940 = vmatprep.mubr.msk.bf16.mxu0 %vm2896_vm12, %v2857_v30  ;;  %v5134_v25 = vsel %vm16900_vm9, %v13909_v39, %v5133_v24 }
 0x1fd   :  { %v3532_v35 = vcombine.high %v3530_v6, %v3530_v6  ;;  %v4262_v15 = vsel %vm4086_vm13, %v3531_v53, -inf  ;;  %v4269_v50 = vsel %vm4086_vm13, %v3530_v6, -inf  ;;  %v4253_v29 = vrot.slane %v4252_v38, 1 }
 0x1fe   :  { %v4257_v44 = vmax.f32 %v4255_v12, %v4256_v34  ;;  %v4263_v20 = vrot.slane %v4262_v15, 4  ;;  %v4270_v13 = vrot.slane %v4269_v50, 4  ;;  %v3547_v5 = vrot.slane %v3533_v1, %v17182_v61 }
 0x1ff   :  { %v4276_v36 = vsel %vm4086_vm13, %v3532_v35, -inf  ;;  %v3548_v49 = vcombine.high %v3540_v51, %v3540_v51  ;;  %v4283_v30 = vsel %vm4086_vm13, %v3540_v51, -inf  ;;  %v14050_v12 = vpop.permute.xlu0 %10079 }
 0x200   :  { %v4258_v33 = vrot.slane %v4257_v44, 2  ;;  %v4264_v53 = vmax.f32 %v4262_v15, %v4263_v20  ;;  %v4271_v43 = vmax.f32 %v4269_v50, %v4270_v13  ;;  %v4277_v6 = vrot.slane %v4276_v36, 4  ;;  %17264 = vst [vmem:[#allocation32_spill] sm:$0xff] %v14050_v12  ;;  %v14053_v15 = vpop.permute.xlu1 %10084 }
 0x201   :  { %v3549_v22 = vcombine.high %v3547_v5, %v3547_v5  ;;  %v4284_v11 = vrot.slane %v4283_v30, 4  ;;  %v4290_v39 = vsel %vm4086_vm13, %v3548_v49, -inf  ;;  %v4297_v24 = vsel %vm4086_vm13, %v3547_v5, -inf  ;;  %17265 = vst [vmem:[#allocation62_spill] sm:$0xff] %v14053_v15  ;;  %v14055_v49 = vpop.f32.mrb[16].mxu0 }
 0x202   :  { %v4259_v34 = vmax.f32 %v4257_v44, %v4258_v33  ;;  %v4265_v1 = vrot.slane %v4264_v53, 2  ;;  %v4272_v61 = vrot.slane %v4271_v43, 2  ;;  %v4278_v35 = vmax.f32 %v4276_v36, %v4277_v6  ;;  %17266 = vst [vmem:[#allocation63_spill] sm:$0xff] %v14055_v49  ;;  %v14057_v44 = vpop.f32.mrb[17].mxu0 }
 0x203   :  { %v4285_v7 = vmax.f32 %v4283_v30, %v4284_v11  ;;  %v4291_v18 = vrot.slane %v4290_v39, 4  ;;  %v4298_v51 = vrot.slane %v4297_v24, 4  ;;  %v4304_v17 = vsel %vm4086_vm13, %v3549_v22, -inf  ;;  %17267 = vst [vmem:[#allocation31_spill] sm:$0xff] %v14057_v44  ;;  %v14059_v12 = vpop.f32.mrb[18].mxu0 }
 0x204   :  { %v4260_v13 = vrot.slane %v4259_v34, 1  ;;  %v4266_v50 = vmax.f32 %v4264_v53, %v4265_v1  ;;  %v4273_v20 = vmax.f32 %v4271_v43, %v4272_v61  ;;  %v4279_v21 = vrot.slane %v4278_v35, 2  ;;  %v14061_v61 = vpop.permute.xlu0 %10089  ;;  %v14063_v43 = vpop.f32.mrb[19].mxu0 }
 0x205   :  { %v4286_v5 = vrot.slane %v4285_v7, 2  ;;  %v4292_v14 = vmax.f32 %v4290_v39, %v4291_v18  ;;  %v4299_v54 = vmax.f32 %v4297_v24, %v4298_v51  ;;  %v4305_v33 = vrot.slane %v4304_v17, 4 }
 0x206   :  { %v4267_v36 = vrot.slane %v4266_v50, 1  ;;  %v4274_v11 = vrot.slane %v4273_v20, 1  ;;  %v4280_v30 = vmax.f32 %v4278_v35, %v4279_v21  ;;  %v4254_v6 = vmax.f32 %v4252_v38, %v4253_v29  ;;  %v14065_v21 = vpop.permute.xlu1 %10094 }
 0x207   :  { %v4287_v22 = vmax.f32 %v4285_v7, %v4286_v5  ;;  %v4293_v15 = vrot.slane %v4292_v14, 2  ;;  %v4300_v8 = vrot.slane %v4299_v54, 2  ;;  %v4306_v53 = vmax.f32 %v4304_v17, %v4305_v33  ;;  %v17269_v17 = vld [vmem:[#allocation48_spill] sm:$0xff] }
 0x208   :  { %v4261_v1 = vmax.f32 %v4259_v34, %v4260_v13  ;;  %v4268_v18 = vmax.f32 %v4266_v50, %v4267_v36  ;;  %v4275_v39 = vmax.f32 %v4273_v20, %v4274_v11  ;;  %v4281_v24 = vrot.slane %v4280_v30, 1 }
 0x209   :  { %v4288_v51 = vrot.slane %v4287_v22, 1  ;;  %v4294_v44 = vmax.f32 %v4292_v14, %v4293_v15  ;;  %v4301_v49 = vmax.f32 %v4299_v54, %v4300_v8  ;;  %v4307_v31 = vrot.slane %v4306_v53, 2 }
 0x20a   :  { %v4282_v29 = vmax.f32 %v4280_v30, %v4281_v24  ;;  %v5135_v7 = vsel %vm5111_vm14, %v4268_v18, %v4261_v1  ;;  %v17268_v38 = vunpack.i.l.bf16 %v13875_v19  ;;  %v14073_v5 = vsel %vm186_vm0, 0.0, %v5134_v25 }
 0x20b   :  { %17270 = vst [vmem:[#allocation36_spill] sm:$0xff] %v14073_v5  ;;  %v5136_v34 = vsel %vm5113_vm15, %v4275_v39, %v5135_v7  ;;  %v4289_v13 = vmax.f32 %v4287_v22, %v4288_v51  ;;  %v4295_v50 = vrot.slane %v4294_v44, 1  ;;  %v4302_v14 = vrot.slane %v4301_v49, 1  ;;  %v14091_v22 = vpop.permute.xlu0 %10099  ;;  %v14109_v39 = vpop.permute.xlu1 %10104 }
 0x20c   :  { %v2368_v35 = vsel %vm2323_vm4, %v17269_v17, %v17268_v38  ;;  %v17271_v8 = vunpack.i.l.bf16 %v13880_v56  ;;  %v4308_v15 = vmax.f32 %v4306_v53, %v4307_v31  ;;  %v5137_v19 = vsel %vm5115_vm3, %v4282_v29, %v5136_v34  ;;  %17273 = vst [vmem:[#allocation34_spill] sm:$0xff] %v14091_v22 }
 0x20d   :  { %v14084_v20 = vsel %vm186_vm0, %v4254_v6, 0.0  ;;  %v4296_v33 = vmax.f32 %v4294_v44, %v4295_v50  ;;  %v5138_v25 = vsel %vm16902_vm2, %v4289_v13, %v5137_v19  ;;  %v5353_v36 = vrot.slane %v14073_v5, 2 }
 0x20e   :  { %v14080_v54 = vsel %vm2772_vm11, %v13941_v9, %v17271_v8  ;;  %v17272_v11 = vrot.slane %v13441_v42, 1  ;;  %v4303_v1 = vmax.f32 %v4301_v49, %v4302_v14  ;;  %v4309_v9 = vrot.slane %v4308_v15, 1 }
 0x20f   :  { %v17274_v31 = vrot.slane %v13633_v59, 2  ;;  %v5122_v44 = vsel %vm16900_vm9, %v13455_v0, %v13481_v37  ;;  %v5139_v6 = vsel %vm16901_vm1, %v4296_v33, %v5138_v25  ;;  %v5127_v18 = vsel %vm16901_vm1, %v13678_v48, %v13688_v52  ;;  %v14131_v8 = vpop.permute.xlu0 %10109 }
 0x210   :  { %v4142_v30 = vmax.f32 %v13441_v42, %v17272_v11  ;;  %v14104_v42 = vsel %vm186_vm0, 0.0, %v5122_v44  ;;  %v4310_v24 = vmax.f32 %v4308_v15, %v4309_v9  ;;  %v5128_v0 = vsel %vm16900_vm9, %v13695_v2, %v5127_v18 }
 0x211   :  { %v4196_v53 = vmax.f32 %v13633_v59, %v17274_v31  ;;  %17275 = vst [vmem:[#allocation20_spill] sm:$0xff] %v14104_v42  ;;  %v5140_v59 = vsel %vm16900_vm9, %v4303_v1, %v5139_v6  ;;  %v5354_v48 = vrot.slane %v14084_v20, 2  ;;  %v14119_v52 = vsel %vm186_vm0, 0.0, %v5128_v0 }
 0x212   :  { %v14107_v49 = vsel %vm186_vm0, %v4142_v30, 0.0  ;;  %v14115_v37 = vsel %vm186_vm0, 0.0, %v5140_v59  ;;  %17277 = vst [vmem:[#allocation21_spill] sm:$0xff] %v14119_v52  ;;  %v5347_v29 = vrot.slane %v14104_v42, 2  ;;  %v14123_v7 = vsel %vm186_vm0, %v4310_v24, 0.0 }
 0x213   :  { %v4197_v51 = vrot.slane %v4196_v53, 1  ;;  %17276 = vst [vmem:[#allocation25_spill] sm:$0xff] %v14115_v37  ;;  %v5356_v38 = vrot.slane %v14115_v37, 2  ;;  %v5348_v34 = vrot.slane %v14107_v49, 2  ;;  %v5357_v13 = vrot.slane %v14123_v7, 2 }
 0x214   :  { %v5350_v50 = vrot.slane %v14119_v52, 2  ;;  %v10036_v14 = vunpack.i.l.bf16 %v13900_v32  ;;  %vm17278_vm9 = vcmask 1045504   ;;  %v10037_v25 = vunpack.i.h.bf16 %v13900_v32 }
 0x215   :  { %v4198_v17 = vmax.f32 %v4196_v53, %v4197_v51  ;;  %v5355_v15 = vsel %vm17278_vm9, %v5353_v36, %v5354_v48  ;;  %vm17279_vm1 = vmmov %vm17278_vm9  ;;  %v10032_v1 = vunpack.i.h.bf16 %v13907_v23  ;;  %v17282_v9 = vrot.slane %v13965_v47, 7  ;;  %v14147_v53 = vpop.permute.xlu1 %10114 }
 0x216   :  { %v5349_v33 = vsel %vm17279_vm1, %v5347_v29, %v5348_v34  ;;  %vm17280_vm2 = vmmov %vm17279_vm1  ;;  %v2430_v32 = vsel %vm2385_vm5, %v2368_v35, %v10036_v14  ;;  %v10031_v6 = vunpack.i.l.bf16 %v13907_v23  ;;  %v650_v59 = vrot.slane %v14009_v10, 1  ;;  %v17301_v14 = vld [vmem:[#allocation57_spill] sm:$0xff] }
 0x217   :  { %v14135_v19 = vsel %vm186_vm0, %v4198_v17, 0.0  ;;  %v14140_v11 = vsel %vm17280_vm2, %v5356_v38, %v5357_v13  ;;  %v439_v31 = vsel %vm186_vm0, %v17282_v9, 0.0  ;;  %v651_v24 = vrot.slane %v14006_v41, 1  ;;  %v14170_v38 = vpop.permute.xlu0 %10119 }
 0x218   :  { %17281 = vst [vmem:[#allocation60_spill] sm:$0xff] %v14140_v11  ;;  %v5351_v30 = vrot.slane %v14135_v19, 2  ;;  %v14150_v36 = vpack.i.bf16 %v14140_v11, %v5355_v15  ;;  %v653_v0 = vrot.slane %v439_v31, 1  ;;  %v14162_v48 = vsel %vm2385_vm5, %v13993_v46, %v10037_v25 }
 0x219   :  { %vm17283_vm2 = vcmask 1046528   ;;  %v2858_v23 = vpack.c.bf16 %v14080_v54, %v13978_v63  ;;  %v10046_v35 = vunpack.i.l.bf16 %v13922_v4  ;;  %v2429_v17 = vsel %vm2385_vm5, %v13971_v58, %v10032_v1 }
 0x21a   :  { %v5352_v18 = vsel %vm17279_vm1, %v5350_v50, %v5351_v30  ;;  %v14165_v29 = vsel %vm17283_vm2, %v650_v59, %v651_v24  ;;  %v2428_v34 = vsel %vm2385_vm5, %v13975_v26, %v10031_v6  ;;  %vm17284_vm9 = vmmov %vm17283_vm2  ;;  %v10047_v63 = vunpack.i.h.bf16 %v13922_v4  ;;  %v14189_v26 = vpop.permute.xlu1 %10124 }
 0x21b   :  { %v5857_v47 = vpack.c.bf16 %v5355_v15, %v5352_v18  ;;  %v14158_v51 = vpack.i.bf16 %v5352_v18, %v5349_v33  ;;  %v14178_v46 = vsel %vm17284_vm9, %v651_v24, %v653_v0  ;;  %v10318_v13 = vpack.i.bf16 %v14165_v29, %v17241_v3  ;;  %8941 = vmatmul.mubr.msk.bf16.gmra.mrb[40].mxu0 %vm2896_vm12, %v2858_v23  ;;  %vm17285_vm2 = vmmov %vm17279_vm1 }
 0x21c   :  { %2073 = vrot.lane.b32.xlu1 %v14178_v46, %s10810_s27  ;;  %v10042_v54 = vunpack.i.h.bf16 %v13928_v16  ;;  %v10041_v58 = vunpack.i.l.bf16 %v13928_v16  ;;  %v803_v50 = vrot.slane %v14009_v10, 2  ;;  %v2494_v3 = vsel %vm2447_vm6, %v2429_v17, %v10046_v35 }
 0x21d   :  { %8627 = vmatprep.mubr.msk.bf16.mxu1 %vm16914_vm7, %v5857_v47  ;;  %10319 = vrot.lane.b32.xlu0 %v10318_v13, %s10810_s27  ;;  %v804_v15 = vrot.slane %v14006_v41, 2  ;;  %v10057_v33 = vunpack.i.h.bf16 %v13952_v57  ;;  %v10056_v4 = vunpack.i.l.bf16 %v13952_v57  ;;  %v10052_v25 = vunpack.i.h.bf16 %v13967_v40 }
 0x21e   :  { %v10051_v16 = vunpack.i.l.bf16 %v13967_v40  ;;  %v806_v1 = vrot.slane %v439_v31, 2  ;;  %v10067_v9 = vunpack.i.h.bf16 %v13999_v27  ;;  %v10066_v6 = vunpack.i.l.bf16 %v13999_v27  ;;  %v14212_v40 = vpop.permute.xlu0 %10129  ;;  %v14228_v17 = vpop.permute.xlu1 %10134 }
 0x21f   :  { %v14201_v30 = vsel %vm17279_vm1, %v803_v50, %v804_v15  ;;  %v2495_v18 = vsel %vm2447_vm6, %v2430_v32, %v10047_v63  ;;  %v2492_v59 = vsel %vm2447_vm6, %v13796_v55, %v10041_v58  ;;  %v2493_v24 = vsel %vm2447_vm6, %v2428_v34, %v10042_v54  ;;  %v121_v55 = vld [vmem:[%s16921_s26 + $0x1f8] sm:$0xff]  ;;  %s10813_s26 = smov 48  }
 0x220   :  { %10329 = vrot.lane.b32.xlu1 %v10318_v13, %s10805_s1  ;;  %v10323_v57 = vpack.i.bf16 %v14201_v30, %v17247_v60  ;;  %v2559_v31 = vsel %vm16914_vm7, %v2494_v3, %v10056_v4  ;;  %v2560_v47 = vsel %vm16914_vm7, %v2495_v18, %v10057_v33  ;;  %v2557_v27 = vsel %vm16914_vm7, %v2492_v59, %v10051_v16  ;;  %v17292_v59 = vld [vmem:[#allocation62_spill] sm:$0xff]  ;;  %v17300_v34 = vld [vmem:[#allocation63_spill] sm:$0xff] }
 0x221   :  { %v2558_v32 = vsel %vm16914_vm7, %v2493_v24, %v10052_v25  ;;  %v14223_v0 = vsel %vm17285_vm2, %v804_v15, %v806_v1  ;;  %v2624_v60 = vsel %vm16915_vm8, %v2559_v31, %v10066_v6  ;;  %v10062_v23 = vunpack.i.h.bf16 %v14001_v28  ;;  %v17286_v15 = vld [vmem:[#allocation37_spill] sm:$0xff]  ;;  %v14248_v1 = vpop.f32.mrb[20].mxu0  ;;  %v17293_v31 = vld [vmem:[#allocation32_spill] sm:$0xff] }
 0x222   :  { %10324 = vrot.lane.b32.xlu0 %v10323_v57, %s10811_s28  ;;  %v10061_v35 = vunpack.i.l.bf16 %v14001_v28  ;;  %v2625_v13 = vsel %vm16915_vm8, %v2560_v47, %v10067_v9  ;;  %v10076_v63 = vunpack.i.l.bf16 %v14043_v45  ;;  %v10071_v54 = vunpack.i.l.bf16 %v14033_v62  ;;  %v17290_v9 = vld [vmem:[#allocation19_spill] sm:$0xff] }
 0x223   :  { %v10072_v50 = vunpack.i.h.bf16 %v14033_v62  ;;  %v281_v3 = vrot.slane %v121_v55, 7  ;;  %v2623_v28 = vsel %vm16915_vm8, %v2558_v32, %v10062_v23  ;;  %v17287_v33 = vunpack.i.h.bf16 %v17286_v15  ;;  %v14262_v32 = vpop.f32.mrb[21].mxu0 }
 0x224   :  { %952 = vrot.lane.b32.xlu1 %v14178_v46, %s10805_s1  ;;  %v2622_v58 = vsel %vm16915_vm8, %v2557_v27, %v10061_v35  ;;  %vm17288_vm9 = vcmask 195584   ;;  %v10338_v16 = vpack.i.bf16 %v14006_v41, %v14009_v10  ;;  %v17291_v6 = vrot.slane %v17290_v9, 7  ;;  %v14260_v27 = vpop.permute.xlu0 %10139  ;;  %v17307_v41 = vld [vmem:[#allocation54_spill] sm:$0xff] }
 0x225   :  { %v14243_v4 = vsel %vm17288_vm9, %v2622_v58, %v17287_v33  ;;  %vm17289_vm1 = vmmov %vm17288_vm9  ;;  %v10086_v24 = vunpack.i.l.bf16 %v17292_v59  ;;  %v10082_v47 = vunpack.i.h.bf16 %v17293_v31  ;;  %v10081_v23 = vunpack.i.l.bf16 %v17293_v31  ;;  %v14268_v58 = vpop.f32.mrb[22].mxu0 }
 0x226   :  { %2256 = vrot.lane.b32.xlu0 %v14223_v0, %s10811_s28  ;;  %v2690_v62 = vsel %vm17289_vm1, %v2625_v13, %v10076_v63  ;;  %v14256_v18 = vsel %vm186_vm0, %v17291_v6, %v281_v3  ;;  %vm17294_vm2 = vmmov %vm17289_vm1  ;;  %v440_v35 = vsel %vm186_vm0, %v281_v3, 0.0  ;;  %v17295_v13 = vld [vmem:[#allocation22_spill] sm:$0xff]  ;;  %v10097_v2 = vunpack.i.h.bf16 %v14065_v21 }
 0x227   :  { %v2688_v55 = vsel %vm17294_vm2, %v2623_v28, %v10071_v54  ;;  %v817_v63 = vrot.slane %v17295_v13, 1  ;;  %vm17296_vm9 = vmmov %vm17289_vm1  ;;  %v10343_v33 = vpack.i.bf16 %v14256_v18, %v17295_v13  ;;  %v818_v9 = vrot.slane %v14256_v18, 1  ;;  %v14276_v54 = vpop.permute.xlu1 %10144  ;;  %v14278_v28 = vpop.f32.mrb[23].mxu0 }
 0x228   :  { %1135 = vrot.lane.b32.xlu1 %v14223_v0, %s10804_s19  ;;  %v2689_v15 = vsel %vm17296_vm9, %v2624_v60, %v10072_v50  ;;  %v820_v6 = vrot.slane %v440_v35, 1  ;;  %17297 = vst [vmem:[#allocation24_spill] sm:$0xff] %v14278_v28  ;;  %v2755_v31 = vsel %vm2707_vm10, %v2690_v62, %v10086_v24  ;;  %vm17298_vm1 = vcmask 1046528  }
 0x229   :  { %v2754_v25 = vsel %vm2707_vm10, %v2689_v15, %v10082_v47  ;;  %v819_v60 = vsel %vm17298_vm1, %v817_v63, %v818_v9  ;;  %vm17299_vm2 = vmmov %vm17298_vm1  ;;  %v10096_v44 = vunpack.i.l.bf16 %v14065_v21  ;;  %v3104_v11 = vadd.f32 %v17301_v14, %v17300_v34  ;;  %v14302_v34 = vpop.permute.xlu0 %10149 }
 0x22a   :  { %10334 = vrot.lane.b32.xlu0 %v10323_v57, %s10804_s19  ;;  %v821_v50 = vsel %vm17299_vm2, %v818_v9, %v820_v6  ;;  %v2753_v10 = vsel %vm2707_vm10, %v2688_v55, %v10081_v23  ;;  %v10092_v62 = vunpack.i.h.bf16 %v14061_v61  ;;  %v10091_v24 = vunpack.i.l.bf16 %v14061_v61  ;;  %v17302_v57 = vld [vmem:[#allocation56_spill] sm:$0xff]  ;;  %v17303_v23 = vld [vmem:[#allocation31_spill] sm:$0xff]  ;;  %s10814_s19 = smov 64  }
 0x22b   :  { %v14291_v3 = vpack.i.bf16 %v821_v50, %v819_v60  ;;  %v14298_v47 = vsel %vm2323_vm4, %v17302_v57, %v10097_v2  ;;  %v3304_v63 = vmax.f32 %v3104_v11, 0.0  ;;  %v827_v21 = vrot.slane %v17295_v13, 2  ;;  %v17304_v2 = vld [vmem:[#allocation49_spill] sm:$0xff]  ;;  %v14317_v60 = vpop.permute.xlu1 %10154 }
 0x22c   :  { %10344 = vrot.lane.b32.xlu1 %v10343_v33, %s16928_s0  ;;  %v828_v15 = vrot.slane %v14256_v18, 2  ;;  %v830_v55 = vrot.slane %v440_v35, 2  ;;  %v3096_v9 = vadd.f32 %v17301_v14, %v17303_v23  ;;  %v3107_v61 = vadd.f32 %v17301_v14, %v14059_v12 }
 0x22d   :  { %v10107_v33 = vunpack.i.h.bf16 %v14109_v39  ;;  %v14312_v11 = vsel %vm2323_vm4, %v17304_v2, %v10096_v44  ;;  %vm17305_vm9 = vcmask 1045504   ;;  %v10106_v6 = vunpack.i.l.bf16 %v14109_v39 }
 0x22e   :  { %10339 = vrot.lane.b32.xlu0 %v10338_v16, %s16928_s0  ;;  %v829_v13 = vsel %vm17305_vm9, %v827_v21, %v828_v15  ;;  %v10101_v35 = vunpack.i.l.bf16 %v14091_v22  ;;  %v2818_v50 = vsel %vm2772_vm11, %v2753_v10, %v10091_v24  ;;  %v2819_v12 = vsel %vm2772_vm11, %v2754_v25, %v10092_v62  ;;  %vm17306_vm1 = vmmov %vm17305_vm9  ;;  %v17308_v24 = vld [vmem:[#allocation14_spill] sm:$0xff]  ;;  %s10816_s0 = smov 96  }
 0x22f   :  { %v831_v57 = vsel %vm17306_vm1, %v828_v15, %v830_v55  ;;  %v3302_v23 = vmax.f32 %v3096_v9, 0.0  ;;  %v3305_v16 = vmax.f32 %v3107_v61, 0.0  ;;  %v3099_v39 = vadd.f32 %v17301_v14, %v14063_v43  ;;  %v17311_v9 = vld [vmem:[#allocation39_spill] sm:$0xff]  ;;  %vm17322_vm1 = vmmov %vm17299_vm2 }
 0x230   :  { %10354 = vrot.lane.b32.xlu1 %v14291_v3, %s10807_s20  ;;  %v14324_v44 = vpack.i.bf16 %v831_v57, %v829_v13  ;;  %v2373_v10 = vsel %vm2323_vm4, %v17307_v41, %v10107_v33  ;;  %v17309_v25 = vunpack.i.h.bf16 %v17308_v24  ;;  %v10117_v15 = vunpack.i.h.bf16 %v14147_v53  ;;  %v14348_v13 = vpop.permute.xlu0 %10159  ;;  %v17313_v57 = vld [vmem:[#allocation17_spill] sm:$0xff] }
 0x231   :  { %v3358_v2 = vmax.f32 %v3302_v23, %v3304_v63  ;;  %v17310_v55 = vpack.i.bf16 %v14178_v46, %v14165_v29  ;;  %v14342_v61 = vsel %vm2323_vm4, %v17311_v9, %v10106_v6  ;;  %v2820_v43 = vsel %vm2772_vm11, %v2755_v31, %v10101_v35 }
 0x232   :  { %v2752_v62 = vsel %vm2707_vm10, %v14243_v4, %v17309_v25  ;;  %v3303_v63 = vmax.f32 %v3099_v39, 0.0  ;;  %v17312_v41 = vunpack.i.h.bf16 %v13880_v56  ;;  %v14355_v6 = vsel %vm2385_vm5, %v2373_v10, %v10117_v15  ;;  %v14358_v56 = vpop.permute.xlu1 %10164 }
 0x233   :  { %10349 = vrot.lane.b32.xlu0 %v17310_v55, %s10807_s20  ;;  %v3550_v4 = vcombine.high %v3358_v2, %v3358_v2  ;;  %v3557_v23 = vrot.slane %v3358_v2, %v17313_v57  ;;  %17314 = vst [vmem:[#allocation61_spill] sm:$0xff] %v14355_v6  ;;  %vm17317_vm9 = vcmask 1045509  }
 0x234   :  { %v2817_v33 = vsel %vm2772_vm11, %v2752_v62, %v17312_v41  ;;  %10364 = vrot.lane.b32.xlu1 %v14324_v44, %s17170_s30  ;;  %v3359_v29 = vmax.f32 %v3303_v63, %v3305_v16  ;;  %v17315_v16 = vpack.i.bf16 %v14223_v0, %v14201_v30  ;;  %v2860_v63 = vpack.c.bf16 %v2820_v43, %v2819_v12  ;;  %v14374_v30 = vpop.permute.xlu0 %10169 }
 0x235   :  { %v2859_v24 = vpack.c.bf16 %v2818_v50, %v2817_v33  ;;  %v3564_v35 = vrot.slane %v3550_v4, %v17313_v57  ;;  %v3565_v39 = vcombine.high %v3557_v23, %v3557_v23  ;;  %v4311_v25 = vsel %vm4086_vm13, %v3557_v23, -inf }
 0x236   :  { %v4312_v2 = vrot.slane %v4311_v25, 4  ;;  %v3567_v10 = vcombine.high %v3359_v29, %v3359_v29  ;;  %v3574_v62 = vrot.slane %v3359_v29, %v17313_v57 }
 0x237   :  { %8944 = vmatprep.mubr.msk.bf16.mxu0 %vm2896_vm12, %v2859_v24  ;;  %10359 = vrot.lane.b32.xlu0 %v17315_v16, %s17170_s30  ;;  %v3566_v15 = vcombine.high %v3564_v35, %v3564_v35  ;;  %v4318_v55 = vsel %vm4086_vm13, %v3565_v39, -inf  ;;  %v4325_v9 = vsel %vm4086_vm13, %v3564_v35, -inf  ;;  %v5305_v35 = vrot.slane %v14104_v42, 1  ;;  %v14382_v16 = vpop.permute.xlu1 %10174 }
 0x238   :  { %v4313_v41 = vmax.f32 %v4311_v25, %v4312_v2  ;;  %v4319_v33 = vrot.slane %v4318_v55, 4  ;;  %v4326_v4 = vrot.slane %v4325_v9, 4  ;;  %v3581_v23 = vrot.slane %v3567_v10, %v17313_v57  ;;  %10369 = vrot.lane.b32.xlu1 %v14291_v3, %s10810_s27  ;;  %8945 = vmatmul.mubr.msk.bf16.gmra.mrb[44].mxu0 %vm2896_vm12, %v2860_v63  ;;  %v14389_v22 = vpop.permute.xlu0 %10179  ;;  %s10815_s27 = smov 80  }
 0x239   :  { %v4332_v0 = vsel %vm4086_vm13, %v3566_v15, -inf  ;;  %v3582_v24 = vcombine.high %v3574_v62, %v3574_v62  ;;  %v4339_v29 = vsel %vm4086_vm13, %v3574_v62, -inf }
 0x23a   :  { %v4314_v12 = vrot.slane %v4313_v41, 2  ;;  %v4320_v43 = vmax.f32 %v4318_v55, %v4319_v33  ;;  %v4327_v39 = vmax.f32 %v4325_v9, %v4326_v4  ;;  %v4333_v25 = vrot.slane %v4332_v0, 4 }
 0x23b   :  { %1894 = vrot.lane.b32.xlu0 %v14256_v18, %s17094_s24  ;;  %v3583_v3 = vcombine.high %v3581_v23, %v3581_v23  ;;  %v4340_v2 = vrot.slane %v4339_v29, 4  ;;  %v4346_v10 = vsel %vm4086_vm13, %v3582_v24, -inf  ;;  %v4353_v15 = vsel %vm4086_vm13, %v3581_v23, -inf  ;;  %s10817_s24 = smov 112  }
 0x23c   :  { %v4315_v62 = vmax.f32 %v4313_v41, %v4314_v12  ;;  %v4321_v21 = vrot.slane %v4320_v43, 2  ;;  %v4328_v63 = vrot.slane %v4327_v39, 2  ;;  %v4334_v50 = vmax.f32 %v4332_v0, %v4333_v25 }
 0x23d   :  { %v4341_v31 = vmax.f32 %v4339_v29, %v4340_v2  ;;  %v4347_v46 = vrot.slane %v4346_v10, 4  ;;  %v4354_v55 = vrot.slane %v4353_v15, 4  ;;  %v4360_v9 = vsel %vm4086_vm13, %v3583_v3, -inf  ;;  %v14391_v2 = vpop.permute.xlu1 %10184 }
 0x23e   :  { %v4316_v33 = vrot.slane %v4315_v62, 1  ;;  %v4322_v4 = vmax.f32 %v4320_v43, %v4321_v21  ;;  %v4329_v18 = vmax.f32 %v4327_v39, %v4328_v63  ;;  %v4335_v6 = vrot.slane %v4334_v50, 2 }
 0x23f   :  { %10374 = vrot.lane.b32.xlu0 %v14324_v44, %s10811_s28  ;;  %v4342_v24 = vrot.slane %v4341_v31, 2  ;;  %v4348_v23 = vmax.f32 %v4346_v10, %v4347_v46  ;;  %v4355_v41 = vmax.f32 %v4353_v15, %v4354_v55  ;;  %v4361_v12 = vrot.slane %v4360_v9, 4 }
 0x240   :  { %v4317_v57 = vmax.f32 %v4315_v62, %v4316_v33  ;;  %v4323_v0 = vrot.slane %v4322_v4, 1  ;;  %v4330_v29 = vrot.slane %v4329_v18, 1  ;;  %v4336_v25 = vmax.f32 %v4334_v50, %v4335_v6 }
 0x241   :  { %v4343_v3 = vmax.f32 %v4341_v31, %v4342_v24  ;;  %v4349_v59 = vrot.slane %v4348_v23, 2  ;;  %v4356_v21 = vrot.slane %v4355_v41, 2  ;;  %v4362_v43 = vmax.f32 %v4360_v9, %v4361_v12  ;;  %v14399_v9 = vpop.permute.xlu0 %10189  ;;  %v14402_v24 = vpop.f32.mrb[24].mxu0 }
 0x242   :  { %v4324_v39 = vmax.f32 %v4322_v4, %v4323_v0  ;;  %v4331_v63 = vmax.f32 %v4329_v18, %v4330_v29  ;;  %v4337_v28 = vrot.slane %v4336_v25, 1  ;;  %v5306_v44 = vrot.slane %v14107_v49, 1 }
 0x243   :  { %10384 = vrot.lane.b32.xlu0 %v14158_v51, %s10811_s28  ;;  %v4344_v46 = vrot.slane %v4343_v3, 1  ;;  %v4350_v10 = vmax.f32 %v4348_v23, %v4349_v59  ;;  %v4357_v15 = vmax.f32 %v4355_v41, %v4356_v21  ;;  %v4363_v62 = vrot.slane %v4362_v43, 2  ;;  %v17316_v23 = vld [vmem:[#allocation6_spill] sm:$0xff]  ;;  %v14407_v41 = vpop.permute.xlu1 %10194 }
 0x244   :  { %v4338_v55 = vmax.f32 %v4336_v25, %v4337_v28  ;;  %v5141_v6 = vsel %vm5111_vm14, %v4324_v39, %v4317_v57  ;;  %v5307_v31 = vsel %vm17299_vm2, %v5305_v35, %v5306_v44  ;;  %v10127_v50 = vunpack.i.h.bf16 %v14189_v26  ;;  %v14409_v35 = vpop.f32.mrb[25].mxu0  ;;  %vm17324_vm2 = vmmov %vm17322_vm1 }
 0x245   :  { %v5142_v33 = vsel %vm5113_vm15, %v4331_v63, %v5141_v6  ;;  %v4345_v4 = vmax.f32 %v4343_v3, %v4344_v46  ;;  %v4351_v49 = vrot.slane %v4350_v10, 1  ;;  %v4358_v18 = vrot.slane %v4357_v15, 1  ;;  %v14426_v39 = vpop.f32.mrb[26].mxu0 }
 0x246   :  { %v4364_v12 = vmax.f32 %v4362_v43, %v4363_v62  ;;  %v5143_v59 = vsel %vm5115_vm3, %v4338_v55, %v5142_v33  ;;  %v10378_v28 = vpack.i.bf16 %v5307_v31, %v17316_v23  ;;  %v10126_v57 = vunpack.i.l.bf16 %v14189_v26  ;;  %v14433_v46 = vpop.f32.mrb[27].mxu0 }
 0x247   :  { %v14412_v0 = vsel %vm17317_vm9, %v4345_v4, %v5143_v59  ;;  %v17318_v29 = vunpack.i.l.bf16 %v14147_v53  ;;  %v17319_v3 = vunpack.i.h.bf16 %v14131_v8  ;;  %v17320_v43 = vunpack.i.l.bf16 %v14131_v8 }
 0x248   :  { %v14428_v63 = vmax.f32 %v4350_v10, %v4351_v49  ;;  %v4365_v44 = vrot.slane %v4364_v12, 1  ;;  %10379 = vrot.lane.b32.xlu1 %v10378_v28, %s10807_s20  ;;  %v10122_v53 = vunpack.i.h.bf16 %v14170_v38  ;;  %v14435_v62 = vmax.f32 %v4357_v15, %v4358_v18 }
 0x249   :  { %v2434_v25 = vsel %vm2385_vm5, %v14342_v61, %v17318_v29  ;;  %v2433_v21 = vsel %vm2385_vm5, %v14298_v47, %v17319_v3  ;;  %v2432_v26 = vsel %vm2385_vm5, %v14312_v11, %v17320_v43  ;;  %v10121_v61 = vunpack.i.l.bf16 %v14170_v38  ;;  %v14445_v38 = vpop.permute.xlu0 %10199 }
 0x24a   :  { %v2499_v8 = vsel %vm2447_vm6, %v2434_v25, %v10127_v50  ;;  %v10137_v47 = vunpack.i.h.bf16 %v14228_v17  ;;  %v10136_v11 = vunpack.i.l.bf16 %v14228_v17  ;;  %v2498_v10 = vsel %vm2447_vm6, %v2433_v21, %v10126_v57 }
 0x24b   :  { %v10388_v55 = vpack.i.bf16 %v14119_v52, %v14104_v42  ;;  %v10132_v6 = vunpack.i.h.bf16 %v14212_v40  ;;  %v10131_v33 = vunpack.i.l.bf16 %v14212_v40  ;;  %v14447_v4 = vmax.f32 %v4364_v12, %v4365_v44  ;;  %v14458_v12 = vpop.permute.xlu1 %10204 }
 0x24c   :  { %v2496_v15 = vsel %vm2447_vm6, %v14162_v48, %v10121_v61  ;;  %v2497_v50 = vsel %vm2447_vm6, %v2432_v26, %v10122_v53  ;;  %v5308_v17 = vrot.slane %v14119_v52, 1  ;;  %v2563_v49 = vsel %vm16914_vm7, %v2498_v10, %v10136_v11 }
 0x24d   :  { %10389 = vrot.lane.b32.xlu1 %v10388_v55, %s10813_s26  ;;  %v2564_v18 = vsel %vm16914_vm7, %v2499_v8, %v10137_v47  ;;  %v10147_v40 = vunpack.i.h.bf16 %v14276_v54  ;;  %v10146_v59 = vunpack.i.l.bf16 %v14276_v54  ;;  %v17321_v28 = vrot.slane %v14135_v19, 1  ;;  %v14485_v47 = vpop.permute.xlu0 %10209 }
 0x24e   :  { %v10142_v57 = vunpack.i.h.bf16 %v14260_v27  ;;  %v10141_v29 = vunpack.i.l.bf16 %v14260_v27  ;;  %v5311_v25 = vrot.slane %v14073_v5, 1  ;;  %v2561_v3 = vsel %vm16914_vm7, %v2496_v15, %v10131_v33 }
 0x24f   :  { %v5310_v48 = vsel %vm17322_vm1, %v5308_v17, %v17321_v28  ;;  %v2562_v21 = vsel %vm16914_vm7, %v2497_v50, %v10132_v6  ;;  %v10403_v54 = vpack.i.bf16 %v14073_v5, %v14119_v52  ;;  %v2628_v26 = vsel %vm16915_vm8, %v2563_v49, %v10146_v59  ;;  %v14496_v17 = vpop.permute.xlu1 %10214 }
 0x250   :  { %v10393_v43 = vpack.i.bf16 %v5310_v48, %v5307_v31  ;;  %v2626_v19 = vsel %vm16915_vm8, %v2561_v3, %v10141_v29  ;;  %v17323_v44 = vrot.slane %v14084_v20, 1  ;;  %v10156_v27 = vunpack.i.l.bf16 %v14317_v60 }
 0x251   :  { %10399 = vrot.lane.b32.xlu1 %v14158_v51, %s10815_s27  ;;  %v2629_v31 = vsel %vm16915_vm8, %v2564_v18, %v10147_v40  ;;  %v10152_v8 = vunpack.i.h.bf16 %v14302_v34  ;;  %v10151_v20 = vunpack.i.l.bf16 %v14302_v34  ;;  %v2627_v11 = vsel %vm16915_vm8, %v2562_v21, %v10142_v57 }
 0x252   :  { %v14475_v53 = vsel %vm17324_vm2, %v5311_v25, %v17323_v44  ;;  %10394 = vrot.lane.b32.xlu0 %v10393_v43, %s10814_s19  ;;  %v10166_v55 = vunpack.i.l.bf16 %v14358_v56  ;;  %v17325_v6 = vunpack.i.h.bf16 %v14043_v45  ;;  %vm17326_vm9 = vcmask 195584   ;;  %v17332_v44 = vld [vmem:[#allocation40_spill] sm:$0xff] }
 0x253   :  { %v10408_v61 = vpack.i.bf16 %v14475_v53, %v5310_v48  ;;  %vm17327_vm1 = vmmov %vm17326_vm9  ;;  %v10161_v50 = vunpack.i.l.bf16 %v14348_v13  ;;  %v10162_v49 = vunpack.i.h.bf16 %v14348_v13  ;;  %v5314_v18 = vrot.slane %v14115_v37, 1 }
 0x254   :  { %v2691_v51 = vsel %vm17326_vm9, %v2626_v19, %v17325_v6  ;;  %v2694_v33 = vsel %vm17327_vm1, %v2629_v31, %v10156_v27  ;;  %vm17328_vm2 = vmmov %vm17327_vm1  ;;  %v5315_v40 = vrot.slane %v14123_v7, 1  ;;  %v10177_v28 = vunpack.i.h.bf16 %v14382_v16 }
 0x255   :  { %v2692_v34 = vsel %vm17328_vm2, %v2627_v11, %v10151_v20  ;;  %10409 = vrot.lane.b32.xlu1 %v10408_v61, %s10817_s24  ;;  %vm17329_vm9 = vmmov %vm17327_vm1  ;;  %v14506_v59 = vsel %vm2707_vm10, %v2694_v33, %v10166_v55  ;;  %v10176_v48 = vunpack.i.l.bf16 %v14382_v16  ;;  %vm17330_vm1 = vcmask 1046528   ;;  %v14521_v16 = vpop.permute.xlu0 %10219 }
 0x256   :  { %10404 = vrot.lane.b32.xlu0 %v10403_v54, %s10816_s0  ;;  %v2693_v45 = vsel %vm17329_vm9, %v2628_v26, %v10152_v8  ;;  %v5316_v13 = vsel %vm17330_vm1, %v5314_v18, %v5315_v40  ;;  %v10172_v57 = vunpack.i.h.bf16 %v14374_v30  ;;  %v10171_v7 = vunpack.i.l.bf16 %v14374_v30  ;;  %v17331_v26 = vld [vmem:[#allocation16_spill] sm:$0xff]  ;;  %v14541_v8 = vpop.permute.xlu1 %10224 }
 0x257   :  { %v3120_v29 = vadd.f32 %v17301_v14, %v14248_v1  ;;  %v2757_v25 = vsel %vm2707_vm10, %v2692_v34, %v10161_v50  ;;  %v10423_v3 = vpack.i.bf16 %v14115_v37, %v14073_v5  ;;  %v10428_v21 = vpack.i.bf16 %v5316_v13, %v14475_v53  ;;  %v17336_v34 = vld [vmem:[#allocation24_spill] sm:$0xff] }
 0x258   :  { %v3112_v43 = vadd.f32 %v17301_v14, %v14262_v32  ;;  %v2758_v54 = vsel %vm2707_vm10, %v2693_v45, %v10162_v49  ;;  %v14526_v30 = vsel %vm2323_vm4, %v17331_v26, %v10177_v28  ;;  %v3123_v1 = vadd.f32 %v17301_v14, %v14268_v58  ;;  %v17339_v45 = vld [vmem:[#allocation17_spill] sm:$0xff] }
 0x259   :  { %v3308_v19 = vmax.f32 %v3120_v29, 0.0  ;;  %10419 = vrot.lane.b32.xlu1 %v14150_v36, %s10811_s28  ;;  %v14535_v32 = vsel %vm2323_vm4, %v17332_v44, %v10176_v48  ;;  %v2822_v53 = vsel %vm2772_vm11, %v2757_v25, %v10171_v7  ;;  %vm17333_vm2 = vcmask 1046534   ;;  %v17340_v48 = vld [vmem:[#allocation34_spill] sm:$0xff] }
 0x25a   :  { %10414 = vrot.lane.b32.xlu0 %v10408_v61, %s10807_s20  ;;  %v3306_v27 = vmax.f32 %v3112_v43, 0.0  ;;  %v5145_v31 = vsel %vm17333_vm2, %v14428_v63, %v14412_v0  ;;  %v14544_v58 = vsel %vm2772_vm11, %v2758_v54, %v10172_v57  ;;  %vm17334_vm9 = vcmask 1047559   ;;  %v14582_v44 = vpop.permute.xlu1 %10234 }
 0x25b   :  { %v5146_v61 = vsel %vm17334_vm9, %v14435_v62, %v5145_v31  ;;  %v10187_v20 = vunpack.i.h.bf16 %v14391_v2  ;;  %v10186_v11 = vunpack.i.l.bf16 %v14391_v2  ;;  %v3309_v6 = vmax.f32 %v3123_v1, 0.0  ;;  %v17337_v62 = vld [vmem:[#allocation62_spill] sm:$0xff] }
 0x25c   :  { %v3360_v55 = vmax.f32 %v3306_v27, %v3308_v19  ;;  %v14551_v33 = vsel %vm186_vm0, 0.0, %v5146_v61  ;;  %v10181_v63 = vunpack.i.l.bf16 %v14389_v22  ;;  %v3115_v49 = vadd.f32 %v17301_v14, %v17336_v34  ;;  %v14572_v14 = vpop.permute.xlu0 %10229  ;;  %v17342_v19 = vld [vmem:[#allocation59_spill] sm:$0xff]  ;;  %v17343_v27 = vld [vmem:[#allocation18_spill] sm:$0xff] }
 0x25d   :  { %17335 = vst [vmem:[#allocation45_spill] sm:$0xff] %v14551_v33  ;;  %v10438_v0 = vpack.i.bf16 %v14551_v33, %v14115_v37  ;;  %v17338_v18 = vunpack.i.h.bf16 %v17337_v62  ;;  %10429 = vrot.lane.b32.xlu1 %v10428_v21, %s10814_s19  ;;  %v17341_v57 = vunpack.i.h.bf16 %v17340_v48  ;;  %v14570_v29 = vsel %vm186_vm0, %v14447_v4, 0.0 }
 0x25e   :  { %10424 = vrot.lane.b32.xlu0 %v10423_v3, %s10813_s26  ;;  %v3584_v2 = vcombine.high %v3360_v55, %v3360_v55  ;;  %v3591_v28 = vrot.slane %v3360_v55, %v17339_v45  ;;  %v3307_v25 = vmax.f32 %v3115_v49, 0.0  ;;  %v5318_v3 = vrot.slane %v14570_v29, 1 }
 0x25f   :  { %v2756_v40 = vsel %vm2707_vm10, %v2691_v51, %v17338_v18  ;;  %v5317_v51 = vrot.slane %v14551_v33, 1  ;;  %v14580_v1 = vsel %vm2323_vm4, %v17342_v19, %v10187_v20  ;;  %v14586_v31 = vsel %vm2323_vm4, %v17343_v27, %v10186_v11 }
 0x260   :  { %v2821_v7 = vsel %vm2772_vm11, %v2756_v40, %v17341_v57  ;;  %v3598_v21 = vrot.slane %v3584_v2, %v17339_v45  ;;  %v3599_v54 = vcombine.high %v3591_v28, %v3591_v28  ;;  %v4367_v26 = vsel %vm4086_vm13, %v3591_v28, -inf  ;;  %v14604_v48 = vpop.permute.xlu0 %10239  ;;  %v14606_v57 = vpop.f32.mrb[28].mxu0 }
 0x261   :  { %v2861_v43 = vpack.c.bf16 %v2822_v53, %v2821_v7  ;;  %v4368_v4 = vrot.slane %v4367_v26, 4  ;;  %v3361_v53 = vmax.f32 %v3307_v25, %v3309_v6  ;;  %v14590_v61 = vsel %vm17330_vm1, %v5317_v51, %v5318_v3  ;;  %10439 = vrot.lane.b32.xlu1 %v10438_v0, %s10816_s0  ;;  %v14608_v25 = vpop.f32.mrb[29].mxu0 }
 0x262   :  { %v3600_v55 = vcombine.high %v3598_v21, %v3598_v21  ;;  %v4374_v34 = vsel %vm4086_vm13, %v3599_v54, -inf  ;;  %v4381_v49 = vsel %vm4086_vm13, %v3598_v21, -inf  ;;  %10434 = vrot.lane.b32.xlu0 %v14150_v36, %s10815_s27  ;;  %v10443_v20 = vpack.i.bf16 %v14590_v61, %v5316_v13  ;;  %v14617_v21 = vpop.f32.mrb[30].mxu0 }
 0x263   :  { %8948 = vmatprep.mubr.msk.bf16.mxu0 %vm2896_vm12, %v2861_v43  ;;  %v4369_v11 = vmax.f32 %v4367_v26, %v4368_v4  ;;  %v4375_v62 = vrot.slane %v4374_v34, 4  ;;  %v4382_v6 = vrot.slane %v4381_v49, 4  ;;  %v3601_v18 = vcombine.high %v3361_v53, %v3361_v53  ;;  %17344 = vst [vmem:[#allocation15_spill] sm:$0xff] %v14617_v21  ;;  %v14619_v27 = vpop.f32.mrb[31].mxu0 }
 0x264   :  { %v4388_v40 = vsel %vm4086_vm13, %v3600_v55, -inf  ;;  %v14601_v2 = vsel %vm2772_vm11, %v14506_v59, %v10181_v63  ;;  %v3608_v28 = vrot.slane %v3361_v53, %v17339_v45  ;;  %v10197_v59 = vunpack.i.h.bf16 %v14407_v41  ;;  %v14615_v63 = vpop.permute.xlu1 %10244  ;;  %17345 = vst [vmem:[#allocation11_spill] sm:$0xff] %v14619_v27 }
 0x265   :  { %v4370_v36 = vrot.slane %v4369_v11, 2  ;;  %v4376_v0 = vmax.f32 %v4374_v34, %v4375_v62  ;;  %v4383_v7 = vmax.f32 %v4381_v49, %v4382_v6  ;;  %v4389_v13 = vrot.slane %v4388_v40, 4  ;;  %10449 = vrot.lane.b32.xlu1 %v10443_v20, %s10807_s20 }
 0x266   :  { %v3615_v43 = vrot.slane %v3601_v18, %v17339_v45  ;;  %v3616_v51 = vcombine.high %v3608_v28, %v3608_v28  ;;  %v4395_v3 = vsel %vm4086_vm13, %v3608_v28, -inf  ;;  %10444 = vrot.lane.b32.xlu0 %v10443_v20, %s10817_s24  ;;  %v10196_v37 = vunpack.i.l.bf16 %v14407_v41 }
 0x267   :  { %v4371_v54 = vmax.f32 %v4369_v11, %v4370_v36  ;;  %v4377_v26 = vrot.slane %v4376_v0, 2  ;;  %v4384_v19 = vrot.slane %v4383_v7, 2  ;;  %v4390_v4 = vmax.f32 %v4388_v40, %v4389_v13  ;;  %v14624_v36 = vpop.permute.xlu0 %10249 }
 0x268   :  { %v3617_v53 = vcombine.high %v3615_v43, %v3615_v43  ;;  %v4396_v55 = vrot.slane %v4395_v3, 4  ;;  %v4402_v34 = vsel %vm4086_vm13, %v3616_v51, -inf  ;;  %v4409_v49 = vsel %vm4086_vm13, %v3615_v43, -inf  ;;  %v14627_v23 = vpop.permute.xlu1 %10254 }
 0x269   :  { %v4372_v62 = vrot.slane %v4371_v54, 1  ;;  %v4378_v20 = vmax.f32 %v4376_v0, %v4377_v26  ;;  %v4385_v6 = vmax.f32 %v4383_v7, %v4384_v19  ;;  %v4391_v18 = vrot.slane %v4390_v4, 2 }
 0x26a   :  { %v4397_v28 = vmax.f32 %v4395_v3, %v4396_v55  ;;  %v4403_v50 = vrot.slane %v4402_v34, 4  ;;  %v4410_v15 = vrot.slane %v4409_v49, 4  ;;  %v4416_v11 = vsel %vm4086_vm13, %v3617_v53, -inf }
 0x26b   :  { %v4379_v40 = vrot.slane %v4378_v20, 1  ;;  %v4386_v13 = vrot.slane %v4385_v6, 1  ;;  %v4392_v10 = vmax.f32 %v4390_v4, %v4391_v18  ;;  %v4417_v43 = vrot.slane %v4416_v11, 4 }
 0x26c   :  { %v4398_v52 = vrot.slane %v4397_v28, 2  ;;  %v4404_v51 = vmax.f32 %v4402_v34, %v4403_v50  ;;  %v4411_v5 = vmax.f32 %v4409_v49, %v4410_v15  ;;  %v4373_v0 = vmax.f32 %v4371_v54, %v4372_v62  ;;  %v14633_v54 = vpop.permute.xlu0 %10259 }
 0x26d   :  { %v4380_v7 = vmax.f32 %v4378_v20, %v4379_v40  ;;  %v4387_v3 = vmax.f32 %v4385_v6, %v4386_v13  ;;  %v4393_v26 = vrot.slane %v4392_v10, 1  ;;  %v4418_v42 = vmax.f32 %v4416_v11, %v4417_v43 }
 0x26e   :  { %v4399_v19 = vmax.f32 %v4397_v28, %v4398_v52  ;;  %v4405_v55 = vrot.slane %v4404_v51, 2  ;;  %v4412_v53 = vrot.slane %v4411_v5, 2  ;;  %v10192_v4 = vunpack.i.h.bf16 %v14399_v9 }
 0x26f   :  { %v4394_v27 = vmax.f32 %v4392_v10, %v4393_v26  ;;  %v5147_v21 = vsel %vm5111_vm14, %v4380_v7, %v4373_v0  ;;  %v10191_v41 = vunpack.i.l.bf16 %v14399_v9  ;;  %v4419_v62 = vrot.slane %v4418_v42, 2 }
 0x270   :  { %v5148_v15 = vsel %vm5113_vm15, %v4387_v3, %v5147_v21  ;;  %v4400_v50 = vrot.slane %v4399_v19, 1  ;;  %v4406_v34 = vmax.f32 %v4404_v51, %v4405_v55  ;;  %v4413_v49 = vmax.f32 %v4411_v5, %v4412_v53  ;;  %v14641_v21 = vpop.permute.xlu1 %10264  ;;  %v14661_v0 = vpop.permute.xlu0 %10269 }
 0x271   :  { %v5149_v52 = vsel %vm5115_vm3, %v4394_v27, %v5148_v15  ;;  %v2438_v20 = vsel %vm2385_vm5, %v14586_v31, %v10196_v37  ;;  %v2862_v10 = vpack.c.bf16 %v14601_v2, %v14544_v58  ;;  %v10207_v9 = vunpack.i.h.bf16 %v14458_v12 }
 0x272   :  { %v4401_v6 = vmax.f32 %v4399_v19, %v4400_v50  ;;  %v4407_v18 = vrot.slane %v4406_v34, 1  ;;  %v4414_v28 = vrot.slane %v4413_v49, 1  ;;  %v4420_v11 = vmax.f32 %v4418_v42, %v4419_v62  ;;  %v17347_v19 = vld [vmem:[#allocation61_spill] sm:$0xff] }
 0x273   :  { %v14645_v5 = vsel %vm2385_vm5, %v14580_v1, %v10197_v59  ;;  %v2437_v27 = vsel %vm2385_vm5, %v14526_v30, %v10192_v4  ;;  %8949 = vmatmul.mubr.msk.bf16.gmra.mrb[48].mxu0 %vm2896_vm12, %v2862_v10  ;;  %v10206_v37 = vunpack.i.l.bf16 %v14458_v12  ;;  %vm17346_vm2 = vcmask 1045509  }
 0x274   :  { %v5150_v58 = vsel %vm17346_vm2, %v4401_v6, %v5149_v52  ;;  %v2436_v31 = vsel %vm2385_vm5, %v14535_v32, %v10191_v41  ;;  %v10202_v2 = vunpack.i.h.bf16 %v14445_v38  ;;  %v10201_v42 = vunpack.i.l.bf16 %v14445_v38 }
 0x275   :  { %v4408_v40 = vmax.f32 %v4406_v34, %v4407_v18  ;;  %v4415_v13 = vmax.f32 %v4413_v49, %v4414_v28  ;;  %v4421_v1 = vrot.slane %v4420_v11, 1  ;;  %v2503_v59 = vsel %vm2447_vm6, %v2438_v20, %v10207_v9 }
 0x276   :  { %v10217_v30 = vunpack.i.h.bf16 %v14496_v17  ;;  %v10216_v51 = vunpack.i.l.bf16 %v14496_v17  ;;  %v10212_v12 = vunpack.i.h.bf16 %v14485_v47  ;;  %v10211_v43 = vunpack.i.l.bf16 %v14485_v47  ;;  %v14673_v47 = vpop.permute.xlu1 %10274 }
 0x277   :  { %v2502_v32 = vsel %vm2447_vm6, %v2437_v27, %v10206_v37  ;;  %v10227_v7 = vunpack.i.h.bf16 %v14541_v8  ;;  %v10226_v38 = vunpack.i.l.bf16 %v14541_v8  ;;  %v10222_v3 = vunpack.i.h.bf16 %v14521_v16  ;;  %v14693_v27 = vpop.permute.xlu0 %10279 }
 0x278   :  { %v14667_v26 = vmax.f32 %v4420_v11, %v4421_v1  ;;  %v2500_v55 = vsel %vm2447_vm6, %v17347_v19, %v10201_v42  ;;  %v2501_v17 = vsel %vm2447_vm6, %v2436_v31, %v10202_v2  ;;  %v2567_v53 = vsel %vm16914_vm7, %v2502_v32, %v10216_v51 }
 0x279   :  { %v2568_v4 = vsel %vm16914_vm7, %v2503_v59, %v10217_v30  ;;  %v2565_v41 = vsel %vm16914_vm7, %v2500_v55, %v10211_v43  ;;  %v2566_v15 = vsel %vm16914_vm7, %v2501_v17, %v10212_v12  ;;  %v10221_v8 = vunpack.i.l.bf16 %v14521_v16  ;;  %v14705_v59 = vld [vmem:[%s16719_s2] ss:$0 sm:$0xff] }
 0x27a   :  { %v2632_v50 = vsel %vm16915_vm8, %v2567_v53, %v10226_v38  ;;  %v2633_v34 = vsel %vm16915_vm8, %v2568_v4, %v10227_v7  ;;  %v10236_v49 = vunpack.i.l.bf16 %v14582_v44  ;;  %v10231_v62 = vunpack.i.l.bf16 %v14572_v14  ;;  %v14709_v51 = vpop.permute.xlu1 %10284  ;;  %v17353_v7 = vld [vmem:[#allocation44_spill] sm:$0xff] }
 0x27b   :  { %v2630_v52 = vsel %vm16915_vm8, %v2565_v41, %v10221_v8  ;;  %v2631_v20 = vsel %vm16915_vm8, %v2566_v15, %v10222_v3  ;;  %v10232_v10 = vunpack.i.h.bf16 %v14572_v14  ;;  %v10246_v6 = vunpack.i.l.bf16 %v14615_v63  ;;  %v17354_v3 = vld [vmem:[#allocation58_spill] sm:$0xff]  ;;  %v14735_v15 = vpop.permute.xlu0 %10289 }
 0x27c   :  { %v17348_v18 = vunpack.i.h.bf16 %v14317_v60  ;;  %vm17349_vm9 = vcmask 195584   ;;  %v10242_v11 = vunpack.i.h.bf16 %v14604_v48  ;;  %v10241_v14 = vunpack.i.l.bf16 %v14604_v48 }
 0x27d   :  { %vm17350_vm1 = vmmov %vm17349_vm9  ;;  %v10257_v2 = vunpack.i.h.bf16 %v14627_v23  ;;  %v10256_v60 = vunpack.i.l.bf16 %v14627_v23  ;;  %v10252_v42 = vunpack.i.h.bf16 %v14624_v36  ;;  %v10251_v1 = vunpack.i.l.bf16 %v14624_v36 }
 0x27e   :  { %v2695_v16 = vsel %vm17349_vm9, %v2630_v52, %v17348_v18  ;;  %v2698_v37 = vsel %vm17350_vm1, %v2633_v34, %v10236_v49  ;;  %vm17351_vm2 = vmmov %vm17350_vm1  ;;  %v3136_v30 = vadd.f32 %v14705_v59, %v14402_v24  ;;  %v3128_v23 = vadd.f32 %v14705_v59, %v14409_v35 }
 0x27f   :  { %v2696_v31 = vsel %vm17351_vm2, %v2631_v20, %v10231_v62  ;;  %vm17352_vm9 = vmmov %vm17350_vm1  ;;  %v2763_v12 = vsel %vm2707_vm10, %v2698_v37, %v10246_v6  ;;  %v3139_v36 = vadd.f32 %v14705_v59, %v14426_v39  ;;  %v14721_v38 = vsel %vm2323_vm4, %v17353_v7, %v10257_v2 }
 0x280   :  { %v2697_v48 = vsel %vm17352_vm9, %v2632_v50, %v10232_v10  ;;  %v2761_v43 = vsel %vm2707_vm10, %v2696_v31, %v10241_v14  ;;  %v3312_v24 = vmax.f32 %v3136_v30, 0.0  ;;  %v14725_v19 = vsel %vm2323_vm4, %v17354_v3, %v10256_v60  ;;  %v14752_v10 = vpop.permute.xlu1 %10294 }
 0x281   :  { %v2762_v32 = vsel %vm2707_vm10, %v2697_v48, %v10242_v11  ;;  %v2826_v55 = vsel %vm2772_vm11, %v2761_v43, %v10251_v1  ;;  %v3310_v17 = vmax.f32 %v3128_v23, 0.0  ;;  %vm17355_vm1 = vcmask 1046534   ;;  %v14773_v23 = vpop.permute.xlu0 %10299 }
 0x282   :  { %v5151_v35 = vsel %vm17355_vm1, %v4408_v40, %v5150_v58  ;;  %v14730_v39 = vsel %vm2772_vm11, %v2762_v32, %v10252_v42  ;;  %vm17356_vm2 = vcmask 1047559   ;;  %v10266_v4 = vunpack.i.l.bf16 %v14641_v21 }
 0x283   :  { %v5152_v53 = vsel %vm17356_vm2, %v4415_v13, %v5151_v35  ;;  %v10261_v41 = vunpack.i.l.bf16 %v14633_v54  ;;  %v3362_v8 = vmax.f32 %v3310_v17, %v3312_v24  ;;  %v3313_v50 = vmax.f32 %v3139_v36, 0.0  ;;  %v17357_v13 = vld [vmem:[#allocation23_spill] sm:$0xff] }
 0x284   :  { %v14738_v34 = vsel %vm186_vm0, 0.0, %v5152_v53  ;;  %v3131_v49 = vadd.f32 %v14705_v59, %v14433_v46  ;;  %v14747_v62 = vsel %vm2323_vm4, %v17357_v13, %v10266_v4  ;;  %v17358_v52 = vunpack.i.h.bf16 %v14358_v56  ;;  %v14777_v7 = vpop.f32.mrb[32].mxu0 }
 0x285   :  { %v10458_v58 = vpack.i.bf16 %v14738_v34, %v14551_v33  ;;  %v3618_v6 = vcombine.high %v3362_v8, %v3362_v8  ;;  %v3625_v18 = vrot.slane %v3362_v8, %v17339_v45  ;;  %v17359_v46 = vunpack.i.h.bf16 %v14389_v22  ;;  %v14782_v35 = vpop.f32.mrb[33].mxu0 }
 0x286   :  { %v2760_v20 = vsel %vm2707_vm10, %v2695_v16, %v17358_v52  ;;  %v3311_v11 = vmax.f32 %v3131_v49, 0.0  ;;  %v14760_v31 = vsel %vm2772_vm11, %v2763_v12, %v10261_v41  ;;  %v14764_v56 = vsel %vm186_vm0, %v14667_v26, 0.0 }
 0x287   :  { %v2825_v37 = vsel %vm2772_vm11, %v2760_v20, %v17359_v46  ;;  %10459 = vrot.lane.b32.xlu1 %v10458_v58, %s10813_s26  ;;  %v5359_v16 = vrot.slane %v14551_v33, 2  ;;  %v3632_v2 = vrot.slane %v3618_v6, %v17339_v45  ;;  %v3633_v60 = vcombine.high %v3625_v18, %v3625_v18 }
 0x288   :  { %v2863_v14 = vpack.c.bf16 %v2826_v55, %v2825_v37  ;;  %v4423_v42 = vsel %vm4086_vm13, %v3625_v18, -inf  ;;  %v3363_v22 = vmax.f32 %v3311_v11, %v3313_v50  ;;  %v5360_v30 = vrot.slane %v14570_v29, 2  ;;  %v14780_v29 = vpop.permute.xlu1 %10304  ;;  %v14792_v50 = vpop.f32.mrb[34].mxu0 }
 0x289   :  { %v4424_v1 = vrot.slane %v4423_v42, 4  ;;  %v5362_v48 = vrot.slane %v14738_v34, 2  ;;  %v5363_v12 = vrot.slane %v14764_v56, 2  ;;  %v3634_v26 = vcombine.high %v3632_v2, %v3632_v2  ;;  %v14794_v20 = vpop.f32.mrb[35].mxu0 }
 0x28a   :  { %8952 = vmatprep.mubr.msk.bf16.mxu0 %vm2896_vm12, %v2863_v14  ;;  %v4430_v36 = vsel %vm4086_vm13, %v3633_v60, -inf  ;;  %v4437_v43 = vsel %vm4086_vm13, %v3632_v2, -inf  ;;  %v3635_v32 = vcombine.high %v3363_v22, %v3363_v22  ;;  %v3642_v17 = vrot.slane %v3363_v22, %v17339_v45  ;;  %v14798_v60 = vpop.permute.xlu0 %10309 }
 0x28b   :  { %v4425_v24 = vmax.f32 %v4423_v42, %v4424_v1  ;;  %v4431_v3 = vrot.slane %v4430_v36, 4  ;;  %v4438_v55 = vrot.slane %v4437_v43, 4  ;;  %v4444_v53 = vsel %vm4086_vm13, %v3634_v26, -inf }
 0x28c   :  { %v3649_v4 = vrot.slane %v3635_v32, %v17339_v45  ;;  %vm17360_vm9 = vcmask 1045504   ;;  %v4445_v52 = vrot.slane %v4444_v53, 4  ;;  %v3650_v6 = vcombine.high %v3642_v17, %v3642_v17 }
 0x28d   :  { %v14787_v41 = vsel %vm17360_vm9, %v5359_v16, %v5360_v30  ;;  %vm17361_vm1 = vmmov %vm17360_vm9  ;;  %v4426_v49 = vrot.slane %v4425_v24, 2  ;;  %v4432_v58 = vmax.f32 %v4430_v36, %v4431_v3  ;;  %v4439_v13 = vmax.f32 %v4437_v43, %v4438_v55  ;;  %v14802_v43 = vpop.permute.xlu1 %10314 }
 0x28e   :  { %v14790_v8 = vsel %vm17361_vm1, %v5362_v48, %v5363_v12  ;;  %v3651_v18 = vcombine.high %v3649_v4, %v3649_v4  ;;  %v4451_v11 = vsel %vm4086_vm13, %v3642_v17, -inf  ;;  %v4465_v46 = vsel %vm4086_vm13, %v3649_v4, -inf }
 0x28f   :  { %v4427_v37 = vmax.f32 %v4425_v24, %v4426_v49  ;;  %v4433_v14 = vrot.slane %v4432_v58, 2  ;;  %v4440_v16 = vrot.slane %v4439_v13, 2  ;;  %v4446_v2 = vmax.f32 %v4444_v53, %v4445_v52 }
 0x290   :  { %v4452_v42 = vrot.slane %v4451_v11, 4  ;;  %v4458_v22 = vsel %vm4086_vm13, %v3650_v6, -inf  ;;  %v4466_v1 = vrot.slane %v4465_v46, 4  ;;  %v4472_v30 = vsel %vm4086_vm13, %v3651_v18, -inf }
 0x291   :  { %v4428_v48 = vrot.slane %v4427_v37, 1  ;;  %v4434_v12 = vmax.f32 %v4432_v58, %v4433_v14  ;;  %v4441_v26 = vmax.f32 %v4439_v13, %v4440_v16  ;;  %v4447_v36 = vrot.slane %v4446_v2, 2  ;;  %v14806_v13 = vpop.permute.xlu0 %10319 }
 0x292   :  { %v4453_v32 = vmax.f32 %v4451_v11, %v4452_v42  ;;  %v4459_v3 = vrot.slane %v4458_v22, 4  ;;  %v4467_v24 = vmax.f32 %v4465_v46, %v4466_v1  ;;  %v4473_v55 = vrot.slane %v4472_v30, 4 }
 0x293   :  { %v4429_v17 = vmax.f32 %v4427_v37, %v4428_v48  ;;  %v4435_v53 = vrot.slane %v4434_v12, 1  ;;  %v4442_v4 = vrot.slane %v4441_v26, 1  ;;  %v4448_v49 = vmax.f32 %v4446_v2, %v4447_v36  ;;  %v17363_v36 = vld [vmem:[#allocation10_spill] sm:$0xff] }
 0x294   :  { %v4454_v52 = vrot.slane %v4453_v32, 2  ;;  %v4460_v9 = vmax.f32 %v4458_v22, %v4459_v3  ;;  %v4468_v6 = vrot.slane %v4467_v24, 2  ;;  %v4474_v28 = vmax.f32 %v4472_v30, %v4473_v55  ;;  %v14811_v22 = vpop.permute.xlu1 %2073 }
 0x295   :  { %v4436_v40 = vmax.f32 %v4434_v12, %v4435_v53  ;;  %v4443_v18 = vmax.f32 %v4441_v26, %v4442_v4  ;;  %v4449_v33 = vrot.slane %v4448_v49, 1  ;;  %v10453_v58 = vpack.i.bf16 %v14790_v8, %v14787_v41 }
 0x296   :  { %v4455_v11 = vmax.f32 %v4453_v32, %v4454_v52  ;;  %v4461_v14 = vrot.slane %v4460_v9, 2  ;;  %v4469_v46 = vmax.f32 %v4467_v24, %v4468_v6  ;;  %v4475_v16 = vrot.slane %v4474_v28, 2 }
 0x297   :  { %v4450_v37 = vmax.f32 %v4448_v49, %v4449_v33  ;;  %v5153_v42 = vsel %vm5111_vm14, %v4436_v40, %v4429_v17  ;;  %10454 = vrot.lane.b32.xlu0 %v10453_v58, %s10811_s28  ;;  %v10276_v2 = vunpack.i.l.bf16 %v14673_v47  ;;  %v10277_v12 = vunpack.i.h.bf16 %v14673_v47  ;;  %10469 = vrot.lane.b32.xlu1 %v10453_v58, %s10815_s27 }
 0x298   :  { %v5154_v1 = vsel %vm5113_vm15, %v4443_v18, %v5153_v42  ;;  %v4456_v30 = vrot.slane %v4455_v11, 1  ;;  %v4462_v48 = vmax.f32 %v4460_v9, %v4461_v14  ;;  %v17362_v26 = vunpack.i.h.bf16 %v14641_v21 }
 0x299   :  { %v4470_v33 = vrot.slane %v4469_v46, 1  ;;  %v4476_v3 = vmax.f32 %v4474_v28, %v4475_v16  ;;  %v5155_v40 = vsel %vm5115_vm3, %v4450_v37, %v5154_v1  ;;  %v10262_v24 = vunpack.i.h.bf16 %v14633_v54  ;;  %v14828_v28 = vpop.permute.xlu0 %10324 }
 0x29a   :  { %v2381_v32 = vsel %vm2323_vm4, %v17363_v36, %v17362_v26  ;;  %v4457_v55 = vmax.f32 %v4455_v11, %v4456_v30  ;;  %v4463_v17 = vrot.slane %v4462_v48, 1  ;;  %v2442_v9 = vsel %vm2385_vm5, %v14747_v62, %v10276_v2  ;;  %v14845_v11 = vpop.permute.xlu1 %10329 }
 0x29b   :  { %v4477_v53 = vrot.slane %v4476_v3, 1  ;;  %v10272_v47 = vunpack.i.h.bf16 %v14661_v0  ;;  %v2864_v21 = vpack.c.bf16 %v14760_v31, %v14730_v39  ;;  %v5320_v4 = vrot.slane %v14738_v34, 1 }
 0x29c   :  { %vm17364_vm2 = vcmask 1045509   ;;  %v14834_v52 = vsel %vm2385_vm5, %v2381_v32, %v10277_v12  ;;  %v10271_v6 = vunpack.i.l.bf16 %v14661_v0  ;;  %v5321_v62 = vrot.slane %v14764_v56, 1 }
 0x29d   :  { %v14831_v49 = vsel %vm17364_vm2, %v4457_v55, %v5155_v40  ;;  %v14838_v18 = vmax.f32 %v4462_v48, %v4463_v17  ;;  %v14840_v58 = vmax.f32 %v4469_v46, %v4470_v33  ;;  %8953 = vmatmul.mubr.msk.bf16.gmra.mrb[52].mxu0 %vm2896_vm12, %v2864_v21  ;;  %v10287_v39 = vunpack.i.h.bf16 %v14709_v51  ;;  %v2257_v12 = vpop.permute.xlu0 %2256 }
 0x29e   :  { %v10286_v31 = vunpack.i.l.bf16 %v14709_v51  ;;  %vm17365_vm9 = vcmask 1046528   ;;  %v10282_v16 = vunpack.i.h.bf16 %v14693_v27  ;;  %v10281_v0 = vunpack.i.l.bf16 %v14693_v27  ;;  %v953_v40 = vpop.permute.xlu1 %952 }
 0x29f   :  { %v14848_v14 = vsel %vm17365_vm9, %v5320_v4, %v5321_v62  ;;  %v10297_v56 = vunpack.i.h.bf16 %v14752_v10  ;;  %v14853_v37 = vmax.f32 %v4476_v3, %v4477_v53  ;;  %v2441_v46 = vsel %vm2385_vm5, %v14721_v38, %v10272_v47 }
 0x2a0   :  { %v10463_v42 = vpack.i.bf16 %v14848_v14, %v14590_v61  ;;  %v10296_v51 = vunpack.i.l.bf16 %v14752_v10  ;;  %v2440_v2 = vsel %vm2385_vm5, %v14725_v19, %v10271_v6  ;;  %v2506_v1 = vsel %vm2447_vm6, %v2441_v46, %v10286_v31 }
 0x2a1   :  { %v2507_v30 = vsel %vm2447_vm6, %v2442_v9, %v10287_v39  ;;  %v10292_v27 = vunpack.i.h.bf16 %v14735_v15  ;;  %v2504_v48 = vsel %vm2447_vm6, %v14645_v5, %v10281_v0  ;;  %v10291_v38 = vunpack.i.l.bf16 %v14735_v15 }
 0x2a2   :  { %10464 = vrot.lane.b32.xlu0 %v10463_v42, %s10814_s19  ;;  %v10307_v61 = vunpack.i.h.bf16 %v14780_v29  ;;  %v10306_v10 = vunpack.i.l.bf16 %v14780_v29  ;;  %v2505_v19 = vsel %vm2447_vm6, %v2440_v2, %v10282_v16  ;;  %v2572_v26 = vsel %vm16914_vm7, %v2507_v30, %v10297_v56  ;;  %v14900_v56 = vpop.permute.xlu0 %10334 }
 0x2a3   :  { %v10302_v36 = vunpack.i.h.bf16 %v14773_v23  ;;  %v10301_v32 = vunpack.i.l.bf16 %v14773_v23  ;;  %v2571_v33 = vsel %vm16914_vm7, %v2506_v1, %v10296_v51  ;;  %v2569_v3 = vsel %vm16914_vm7, %v2504_v48, %v10291_v38  ;;  %v17372_v48 = vld [vmem:[#allocation15_spill] sm:$0xff] }
 0x2a4   :  { %v10316_v5 = vunpack.i.l.bf16 %v14802_v43  ;;  %v10312_v15 = vunpack.i.h.bf16 %v14798_v60  ;;  %v2570_v29 = vsel %vm16914_vm7, %v2505_v19, %v10292_v27  ;;  %v10311_v17 = vunpack.i.l.bf16 %v14798_v60 }
 0x2a5   :  { %v2634_v55 = vsel %vm16915_vm8, %v2569_v3, %v10301_v32  ;;  %v2637_v9 = vsel %vm16915_vm8, %v2572_v26, %v10307_v61  ;;  %v2636_v53 = vsel %vm16915_vm8, %v2571_v33, %v10306_v10  ;;  %v17366_v23 = vunpack.i.h.bf16 %v14582_v44  ;;  %v17373_v61 = vld [vmem:[#allocation11_spill] sm:$0xff] }
 0x2a6   :  { %vm17367_vm1 = vcmask 195584   ;;  %v10317_v21 = vunpack.i.h.bf16 %v14802_v43  ;;  %v2635_v6 = vsel %vm16915_vm8, %v2570_v29, %v10302_v36  ;;  %v10321_v39 = vunpack.i.l.bf16 %v14806_v13 }
 0x2a7   :  { %v2699_v47 = vsel %vm17367_vm1, %v2634_v55, %v17366_v23  ;;  %vm17368_vm2 = vmmov %vm17367_vm1  ;;  %v3152_v60 = vadd.f32 %v14705_v59, %v14606_v57  ;;  %v10322_v16 = vunpack.i.h.bf16 %v14806_v13  ;;  %v3144_v0 = vadd.f32 %v14705_v59, %v14608_v25  ;;  %v14912_v13 = vpop.permute.xlu1 %1135 }
 0x2a8   :  { %v2702_v4 = vsel %vm17368_vm2, %v2637_v9, %v10316_v5  ;;  %vm17369_vm9 = vmmov %vm17367_vm1  ;;  %v10332_v42 = vunpack.i.h.bf16 %v14845_v11  ;;  %v10326_v51 = vunpack.i.l.bf16 %v14828_v28  ;;  %v17371_v2 = vunpack.i.h.bf16 %v14615_v63 }
 0x2a9   :  { %v2701_v62 = vsel %vm17369_vm9, %v2636_v53, %v10312_v15  ;;  %vm17370_vm7 = vmmov %vm17367_vm1  ;;  %v2767_v44 = vsel %vm2707_vm10, %v2702_v4, %v14811_v22  ;;  %v3316_v46 = vmax.f32 %v3152_v60, 0.0  ;;  %v3314_v30 = vmax.f32 %v3144_v0, 0.0  ;;  %v14934_v15 = vpop.permute.xlu0 %10339 }
 0x2aa   :  { %v2700_v31 = vsel %vm17370_vm7, %v2635_v6, %v10311_v17  ;;  %v2764_v57 = vsel %vm2707_vm10, %v2699_v47, %v17371_v2  ;;  %v10327_v22 = vunpack.i.h.bf16 %v14828_v28  ;;  %v3155_v38 = vadd.f32 %v14705_v59, %v17372_v48  ;;  %v14947_v6 = vpop.f32.mrb[36].mxu0 }
 0x2ab   :  { %v2765_v1 = vsel %vm2707_vm10, %v2700_v31, %v10321_v39  ;;  %v2829_v25 = vsel %vm2772_vm11, %v2764_v57, %v10262_v24  ;;  %v3147_v63 = vadd.f32 %v14705_v59, %v17373_v61  ;;  %vm17374_vm7 = vcmask 1046534   ;;  %v14945_v4 = vpop.permute.xlu1 %10344  ;;  %v14954_v31 = vpop.f32.mrb[37].mxu0 }
 0x2ac   :  { %v2830_v27 = vsel %vm2772_vm11, %v2765_v1, %v10326_v51  ;;  %v5157_v10 = vsel %vm17374_vm7, %v14838_v18, %v14831_v49  ;;  %v3364_v19 = vmax.f32 %v3314_v30, %v3316_v46  ;;  %v10331_v28 = vunpack.i.l.bf16 %v14845_v11  ;;  %v14960_v51 = vpop.f32.mrb[38].mxu0 }
 0x2ad   :  { %v2865_v54 = vpack.c.bf16 %v2830_v27, %v2829_v25  ;;  %vm17375_vm1 = vcmask 1047559   ;;  %v3317_v26 = vmax.f32 %v3155_v38, 0.0  ;;  %v3315_v36 = vmax.f32 %v3147_v63, 0.0  ;;  %v14970_v38 = vpop.permute.xlu0 %10349 }
 0x2ae   :  { %v5158_v24 = vsel %vm17375_vm1, %v14840_v58, %v5157_v10  ;;  %v2766_v33 = vsel %vm2707_vm10, %v2701_v62, %v10322_v16  ;;  %v3652_v3 = vcombine.high %v3364_v19, %v3364_v19  ;;  %v3659_v5 = vrot.slane %v3364_v19, %v17339_v45 }
 0x2af   :  { %v14926_v32 = vsel %vm186_vm0, 0.0, %v5158_v24  ;;  %v2831_v18 = vsel %vm2772_vm11, %v2766_v33, %v10327_v22  ;;  %8956 = vmatprep.mubr.msk.bf16.mxu0 %vm2896_vm12, %v2865_v54  ;;  %v3365_v58 = vmax.f32 %v3315_v36, %v3317_v26  ;;  %v2832_v29 = vsel %vm2772_vm11, %v2767_v44, %v2257_v12  ;;  %v14974_v33 = vpop.permute.xlu1 %10354 }
 0x2b0   :  { %v10473_v49 = vpack.i.bf16 %v14926_v32, %v14738_v34  ;;  %v14939_v55 = vsel %vm186_vm0, %v14853_v37, 0.0  ;;  %v5323_v17 = vrot.slane %v14926_v32, 1  ;;  %v3666_v9 = vrot.slane %v3652_v3, %v17339_v45  ;;  %v17376_v37 = vld [vmem:[#allocation29_spill] sm:$0xff] }
 0x2b1   :  { %v3667_v53 = vcombine.high %v3659_v5, %v3659_v5  ;;  %v4479_v23 = vsel %vm4086_vm13, %v3659_v5, -inf  ;;  %v2866_v47 = vpack.c.bf16 %v2832_v29, %v2831_v18  ;;  %v3669_v12 = vcombine.high %v3365_v58, %v3365_v58 }
 0x2b2   :  { %10474 = vrot.lane.b32.xlu0 %v10473_v49, %s10816_s0  ;;  %v4480_v62 = vrot.slane %v4479_v23, 4  ;;  %v3676_v39 = vrot.slane %v3365_v58, %v17339_v45  ;;  %v14952_v60 = vsel %vm2323_vm4, %v17376_v37, %v953_v40  ;;  %v3668_v44 = vcombine.high %v3666_v9, %v3666_v9  ;;  %v14963_v40 = vpop.f32.mrb[39].mxu0 }
 0x2b3   :  { %v4486_v16 = vsel %vm4086_vm13, %v3667_v53, -inf  ;;  %v4493_v0 = vsel %vm4086_vm13, %v3666_v9, -inf  ;;  %v5324_v46 = vrot.slane %v14939_v55, 1  ;;  %8957 = vmatmul.mubr.msk.bf16.gmra.mrb[56].mxu0 %vm2896_vm12, %v2866_v47  ;;  %v3683_v30 = vrot.slane %v3669_v12, %v17339_v45 }
 0x2b4   :  { %v4481_v2 = vmax.f32 %v4479_v23, %v4480_v62  ;;  %v4487_v57 = vrot.slane %v4486_v16, 4  ;;  %v4494_v1 = vrot.slane %v4493_v0, 4  ;;  %v4500_v22 = vsel %vm4086_vm13, %v3668_v44, -inf }
 0x2b5   :  { %v3684_v25 = vcombine.high %v3676_v39, %v3676_v39  ;;  %v4507_v27 = vsel %vm4086_vm13, %v3676_v39, -inf  ;;  %vm17377_vm2 = vcmask 1046528   ;;  %v4501_v19 = vrot.slane %v4500_v22, 4 }
 0x2b6   :  { %v14968_v48 = vsel %vm17377_vm2, %v5323_v17, %v5324_v46  ;;  %v4482_v61 = vrot.slane %v4481_v2, 2  ;;  %v4488_v63 = vmax.f32 %v4486_v16, %v4487_v57  ;;  %v4495_v10 = vmax.f32 %v4493_v0, %v4494_v1  ;;  %v14977_v16 = vpop.permute.xlu0 %10359 }
 0x2b7   :  { %v3685_v54 = vcombine.high %v3683_v30, %v3683_v30  ;;  %v4508_v24 = vrot.slane %v4507_v27, 4  ;;  %v4514_v26 = vsel %vm4086_vm13, %v3684_v25, -inf  ;;  %v4521_v36 = vsel %vm4086_vm13, %v3683_v30, -inf }
 0x2b8   :  { %v4483_v3 = vmax.f32 %v4481_v2, %v4482_v61  ;;  %v4489_v5 = vrot.slane %v4488_v63, 2  ;;  %v4496_v49 = vrot.slane %v4495_v10, 2  ;;  %v4502_v18 = vmax.f32 %v4500_v22, %v4501_v19 }
 0x2b9   :  { %v4509_v58 = vmax.f32 %v4507_v27, %v4508_v24  ;;  %v4515_v29 = vrot.slane %v4514_v26, 4  ;;  %v4522_v17 = vrot.slane %v4521_v36, 4  ;;  %v4528_v9 = vsel %vm4086_vm13, %v3685_v54, -inf  ;;  %v14979_v27 = vpop.permute.xlu1 %10364 }
 0x2ba   :  { %v4484_v53 = vrot.slane %v4483_v3, 1  ;;  %v4490_v23 = vmax.f32 %v4488_v63, %v4489_v5  ;;  %v4497_v47 = vmax.f32 %v4495_v10, %v4496_v49  ;;  %v4503_v62 = vrot.slane %v4502_v18, 2 }
 0x2bb   :  { %v4510_v12 = vrot.slane %v4509_v58, 2  ;;  %v4516_v39 = vmax.f32 %v4514_v26, %v4515_v29  ;;  %v4523_v37 = vmax.f32 %v4521_v36, %v4522_v17  ;;  %v4529_v44 = vrot.slane %v4528_v9, 4 }
 0x2bc   :  { %v4485_v0 = vmax.f32 %v4483_v3, %v4484_v53  ;;  %v4491_v46 = vrot.slane %v4490_v23, 1  ;;  %v4498_v2 = vrot.slane %v4497_v47, 1  ;;  %v4504_v57 = vmax.f32 %v4502_v18, %v4503_v62  ;;  %v17378_v53 = vld [vmem:[#allocation33_spill] sm:$0xff] }
 0x2bd   :  { %v4511_v1 = vmax.f32 %v4509_v58, %v4510_v12  ;;  %v4517_v30 = vrot.slane %v4516_v39, 2  ;;  %v4524_v22 = vrot.slane %v4523_v37, 2  ;;  %v4530_v25 = vmax.f32 %v4528_v9, %v4529_v44  ;;  %v1895_v9 = vpop.permute.xlu0 %1894 }
 0x2be   :  { %v4492_v61 = vmax.f32 %v4490_v23, %v4491_v46  ;;  %v4499_v63 = vmax.f32 %v4497_v47, %v4498_v2  ;;  %v4505_v10 = vrot.slane %v4504_v57, 1  ;;  %v10478_v19 = vpack.i.bf16 %v14968_v48, %v14848_v14  ;;  %v10711_v14 = vld [vmem:[%s16720_s3] sm:$0xff]  }
 0x2bf   :  { %v4512_v54 = vrot.slane %v4511_v1, 1  ;;  %v4518_v24 = vmax.f32 %v4516_v39, %v4517_v30  ;;  %v4525_v26 = vmax.f32 %v4523_v37, %v4524_v22  ;;  %v4531_v36 = vrot.slane %v4530_v25, 2  ;;  %v17379_v47 = vld [vmem:[#allocation8_spill] sm:$0xff] }
 0x2c0   :  { %v4506_v3 = vmax.f32 %v4504_v57, %v4505_v10  ;;  %v5159_v5 = vsel %vm5111_vm14, %v4492_v61, %v4485_v0  ;;  %10479 = vrot.lane.b32.xlu1 %v10478_v19, %s10817_s24  ;;  %v10337_v49 = vunpack.i.h.bf16 %v14900_v56  ;;  %v2383_v23 = vsel %vm2323_vm4, %v17378_v53, %v10332_v42  ;;  %10484 = vrot.lane.b32.xlu0 %v10478_v19, %s10807_s20  ;;  %v10370_v0 = vpop.permute.xlu1 %10369 }
 0x2c1   :  { %v5160_v18 = vsel %vm5113_vm15, %v4499_v63, %v5159_v5  ;;  %v4513_v58 = vmax.f32 %v4511_v1, %v4512_v54  ;;  %v4519_v29 = vrot.slane %v4518_v24, 1  ;;  %v4526_v17 = vrot.slane %v4525_v26, 1  ;;  %v10375_v54 = vpop.permute.xlu0 %10374 }
 0x2c2   :  { %v2382_v62 = vsel %vm2323_vm4, %v17379_v47, %v10331_v28  ;;  %v5161_v12 = vsel %vm5115_vm3, %v4506_v3, %v5160_v18  ;;  %v10336_v39 = vunpack.i.l.bf16 %v14900_v56  ;;  %v15001_v37 = vmax.f32 %v4530_v25, %v4531_v36 }
 0x2c3   :  { %vm17380_vm9 = vcmask 1045509   ;;  %v2446_v42 = vsel %vm2385_vm5, %v14952_v60, %v14912_v13  ;;  %v15009_v11 = vmax.f32 %v4518_v24, %v4519_v29  ;;  %v2445_v28 = vsel %vm2385_vm5, %v2383_v23, %v10337_v49  ;;  %v10712_v13 = vld [vmem:[%s16720_s3 + $0x8] sm:$0xff]  }
 0x2c4   :  { %v15004_v44 = vsel %vm17380_vm9, %v4513_v58, %v5161_v12  ;;  %v10818_v46 = vmov 0   ;;  %v10347_v2 = vunpack.i.h.bf16 %v14945_v4  ;;  %v10346_v56 = vunpack.i.l.bf16 %v14945_v4  ;;  %v10380_v18 = vpop.permute.xlu1 %10379 }
 0x2c5   :  { %5975 = vmatprep.subr.bf16.mxu1 %v10818_v46  ;;  %v15015_v57 = vmax.f32 %v4525_v26, %v4526_v17  ;;  %v10342_v1 = vunpack.i.h.bf16 %v14934_v15  ;;  %v10341_v30 = vunpack.i.l.bf16 %v14934_v15  ;;  %v10356_v60 = vunpack.i.l.bf16 %v14974_v33 }
 0x2c6   :  { %5976 = vmatpush1.bf16.msra.mxu1 %v10711_v14  ;;  %v2444_v22 = vsel %vm2385_vm5, %v2382_v62, %v10336_v39  ;;  %v10357_v25 = vunpack.i.h.bf16 %v14974_v33  ;;  %v10352_v4 = vunpack.i.h.bf16 %v14970_v38  ;;  %v10351_v61 = vunpack.i.l.bf16 %v14970_v38  ;;  %v10713_v38 = vld [vmem:[%s16720_s3 + $0x10] sm:$0xff]  }
 0x2c7   :  { %5977 = vmatprep.subr.bf16.mxu1 %v10818_v46  ;;  %v2511_v63 = vsel %vm2447_vm6, %v2446_v42, %v10347_v2  ;;  %v2510_v15 = vsel %vm2447_vm6, %v2445_v28, %v10346_v56  ;;  %v2508_v10 = vsel %vm2447_vm6, %v14834_v52, %v10341_v30  ;;  %v2509_v19 = vsel %vm2447_vm6, %v2444_v22, %v10342_v1  ;;  %v10714_v42 = vld [vmem:[%s16720_s3 + $0x18] sm:$0xff]   ;;  %v15068_v30 = vpop.permute.xlu0 %10384 }
 0x2c8   :  { %vm17381_vm4 = vcmask 130048   ;;  %v10367_v26 = vunpack.i.h.bf16 %v14979_v27  ;;  %v10366_v33 = vunpack.i.l.bf16 %v14979_v27  ;;  %v10362_v36 = vunpack.i.h.bf16 %v14977_v16 }
 0x2c9   :  { %v2575_v24 = vsel %vm17381_vm4, %v2510_v15, %v10356_v60  ;;  %v10361_v3 = vunpack.i.l.bf16 %v14977_v16  ;;  %v10372_v5 = vunpack.i.h.bf16 %v10370_v0  ;;  %v10371_v52 = vunpack.i.l.bf16 %v10370_v0  ;;  %vm17382_vm5 = vmmov %vm17381_vm4  ;;  %v10715_v15 = vld [vmem:[%s16720_s3 + $0x20] sm:$0xff]  }
 0x2ca   :  { %5978 = vmatpush1.bf16.msra.mxu1 %v10712_v13  ;;  %v2574_v49 = vsel %vm17382_vm5, %v2509_v19, %v10352_v4  ;;  %vm17383_vm6 = vmmov %vm17381_vm4  ;;  %v10377_v17 = vunpack.i.h.bf16 %v10375_v54  ;;  %v2640_v14 = vsel %vm16915_vm8, %v2575_v24, %v10366_v33  ;;  %vm17385_vm1 = vcmask 195584   ;;  %v17388_v4 = vld [vmem:[#allocation28_spill] sm:$0xff]  ;;  %v17393_v24 = vld [vmem:[#allocation35_spill] sm:$0xff] }
 0x2cb   :  { %v2576_v58 = vsel %vm17383_vm6, %v2511_v63, %v10357_v25  ;;  %vm17384_vm7 = vmmov %vm17381_vm4  ;;  %5979 = vmatprep.subr.bf16.mxu1 %v10818_v46  ;;  %v2639_v27 = vsel %vm16915_vm8, %v2574_v49, %v10362_v36  ;;  %v10376_v12 = vunpack.i.l.bf16 %v10375_v54  ;;  %v10382_v39 = vunpack.i.h.bf16 %v10380_v18  ;;  %v15073_v25 = vpop.permute.xlu1 %10389 }
 0x2cc   :  { %v2573_v29 = vsel %vm17384_vm7, %v2508_v10, %v10351_v61  ;;  %v2641_v53 = vsel %vm16915_vm8, %v2576_v58, %v10367_v26  ;;  %v2704_v23 = vsel %vm17385_vm1, %v2639_v27, %v1895_v9  ;;  %vm17386_vm2 = vmmov %vm17385_vm1  ;;  %v10381_v2 = vunpack.i.l.bf16 %v10380_v18  ;;  %v17391_v10 = vld [vmem:[#allocation20_spill] sm:$0xff]  ;;  %v15107_v58 = vpop.permute.xlu0 %10394  ;;  %v10716_v27 = vld [vmem:[%s16720_s3 + $0x28] sm:$0xff]  }
 0x2cd   :  { %v2638_v16 = vsel %vm16915_vm8, %v2573_v29, %v10361_v3  ;;  %v2769_v62 = vsel %vm2707_vm10, %v2704_v23, %v10372_v5  ;;  %v3168_v9 = vadd.f32 %v14705_v59, %v14777_v7  ;;  %v4533_v43 = vrot.slane %v15001_v37, 1  ;;  %vm17387_vm9 = vmmov %vm17381_vm4 }
 0x2ce   :  { %v2703_v47 = vsel %vm17386_vm2, %v2638_v16, %v10317_v21  ;;  %5980 = vmatpush1.bf16.msra.mxu1 %v10713_v38  ;;  %v2834_v28 = vsel %vm2772_vm11, %v2769_v62, %v10377_v17  ;;  %v3160_v56 = vadd.f32 %v14705_v59, %v14782_v35  ;;  %v3171_v1 = vadd.f32 %v14705_v59, %v14792_v50  ;;  %vm17389_vm4 = vmmov %vm17385_vm1 }
 0x2cf   :  { %v2768_v0 = vsel %vm2707_vm10, %v2703_v47, %v10371_v52  ;;  %5981 = vmatprep.subr.bf16.mxu1 %v10818_v46  ;;  %v5741_v60 = vsel %vm17387_vm9, 0.0, %v10381_v2  ;;  %v3320_v22 = vmax.f32 %v3168_v9, 0.0  ;;  %v3163_v7 = vadd.f32 %v14705_v59, %v14794_v20  ;;  %vm17390_vm5 = vmmov %vm17385_vm1 }
 0x2d0   :  { %v2833_v21 = vsel %vm2772_vm11, %v2768_v0, %v10376_v12  ;;  %v2705_v61 = vsel %vm17389_vm4, %v2640_v14, %v17388_v4  ;;  %v15079_v35 = vsel %vm17390_vm5, %v2641_v53, %v17388_v4  ;;  %v3318_v63 = vmax.f32 %v3160_v56, 0.0  ;;  %v17395_v14 = vld [vmem:[#allocation55_spill] sm:$0xff] }
 0x2d1   :  { %v2867_v13 = vpack.c.bf16 %v2834_v28, %v2833_v21  ;;  %v3321_v50 = vmax.f32 %v3171_v1, 0.0  ;;  %v5742_v19 = vsel %vm17383_vm6, %v17391_v10, %v10382_v39  ;;  %v3319_v59 = vmax.f32 %v3163_v7, 0.0  ;;  %v15128_v28 = vpop.permute.xlu1 %10399  ;;  %v10717_v7 = vld [vmem:[%s16720_s3 + $0x30] sm:$0xff]  }
 0x2d2   :  { %5982 = vmatpush1.bf16.msra.mxu1 %v10714_v42  ;;  %v10386_v20 = vunpack.i.l.bf16 %v15068_v30  ;;  %vm17392_vm7 = vcmask 1046534   ;;  %v15094_v26 = vsel %vm2772_vm11, %v5741_v60, %v17393_v24  ;;  %v3366_v33 = vmax.f32 %v3318_v63, %v3320_v22 }
 0x2d3   :  { %v5163_v54 = vsel %vm17392_vm7, %v15009_v11, %v15004_v44  ;;  %8960 = vmatprep.mubr.msk.bf16.mxu0 %vm2896_vm12, %v2867_v13  ;;  %5983 = vmatprep.subr.bf16.mxu1 %v10818_v46  ;;  %vm17394_vm1 = vcmask 1047559   ;;  %v10391_v38 = vunpack.i.l.bf16 %v15073_v25  ;;  %v3367_v3 = vmax.f32 %v3319_v59, %v3321_v50  ;;  %vm17397_vm4 = vmmov %vm17392_vm7 }
 0x2d4   :  { %v5164_v36 = vsel %vm17394_vm1, %v15015_v57, %v5163_v54  ;;  %v10387_v5 = vunpack.i.h.bf16 %v15068_v30  ;;  %vm5771_vm2 = vcmask 392192   ;;  %v3686_v44 = vcombine.high %v3366_v33, %v3366_v33 }
 0x2d5   :  { %v15101_v52 = vsel %vm186_vm0, 0.0, %v5164_v36  ;;  %v3693_v11 = vrot.slane %v3366_v33, %v17339_v45  ;;  %v10392_v18 = vunpack.i.h.bf16 %v15073_v25  ;;  %v3703_v57 = vcombine.high %v3367_v3, %v3367_v3 }
 0x2d6   :  { %v10493_v49 = vpack.i.bf16 %v15101_v52, %v14926_v32  ;;  %5984 = vmatpush1.bf16.msra.mxu1 %v10715_v15  ;;  %v3710_v29 = vrot.slane %v3367_v3, %v17339_v45  ;;  %v15114_v17 = vsel %vm2772_vm11, %v5742_v19, %v10386_v20  ;;  %v2770_v53 = vsel %vm2707_vm10, %v2705_v61, %v17395_v14  ;;  %v15139_v15 = vpop.permute.xlu0 %10404 }
 0x2d7   :  { %v3700_v16 = vrot.slane %v3686_v44, %v17339_v45  ;;  %v3701_v23 = vcombine.high %v3693_v11, %v3693_v11  ;;  %v4535_v47 = vsel %vm4086_vm13, %v3693_v11, -inf  ;;  %5985 = vmatprep.subr.bf16.mxu1 %v10818_v46  ;;  %v15124_v62 = vsel %vm5771_vm2, %v15094_v26, %v10391_v38 }
 0x2d8   :  { %10494 = vrot.lane.b32.xlu0 %v10493_v49, %s10813_s26  ;;  %v4536_v12 = vrot.slane %v4535_v47, 4  ;;  %v3717_v39 = vrot.slane %v3703_v57, %v17339_v45  ;;  %v3718_v42 = vcombine.high %v3710_v29, %v3710_v29  ;;  %v4563_v0 = vsel %vm4086_vm13, %v3710_v29, -inf  ;;  %v10718_v57 = vld [vmem:[%s16720_s3 + $0x38] sm:$0xff]   ;;  %v15145_v29 = vpop.permute.xlu1 %10409 }
 0x2d9   :  { %v3702_v2 = vcombine.high %v3700_v16, %v3700_v16  ;;  %v4542_v9 = vsel %vm4086_vm13, %v3701_v23, -inf  ;;  %v4549_v21 = vsel %vm4086_vm13, %v3700_v16, -inf  ;;  %v4564_v56 = vrot.slane %v4563_v0, 4 }
 0x2da   :  { %v4537_v1 = vmax.f32 %v4535_v47, %v4536_v12  ;;  %v4543_v13 = vrot.slane %v4542_v9, 4  ;;  %v4550_v60 = vrot.slane %v4549_v21, 4  ;;  %v3719_v22 = vcombine.high %v3717_v39, %v3717_v39  ;;  %5986 = vmatpush1.bf16.msra.mxu1 %v10716_v27 }
 0x2db   :  { %v4556_v4 = vsel %vm4086_vm13, %v3702_v2, -inf  ;;  %v4565_v61 = vmax.f32 %v4563_v0, %v4564_v56  ;;  %v4570_v63 = vsel %vm4086_vm13, %v3718_v42, -inf  ;;  %v4577_v50 = vsel %vm4086_vm13, %v3717_v39, -inf  ;;  %5987 = vmatprep.subr.bf16.mxu1 %v10818_v46 }
 0x2dc   :  { %v4538_v10 = vrot.slane %v4537_v1, 2  ;;  %v4544_v19 = vmax.f32 %v4542_v9, %v4543_v13  ;;  %v4551_v59 = vmax.f32 %v4549_v21, %v4550_v60  ;;  %v4557_v20 = vrot.slane %v4556_v4, 4 }
 0x2dd   :  { %v4566_v54 = vrot.slane %v4565_v61, 2  ;;  %v4571_v33 = vrot.slane %v4570_v63, 4  ;;  %v4578_v36 = vrot.slane %v4577_v50, 4  ;;  %v4584_v38 = vsel %vm4086_vm13, %v3719_v22, -inf }
 0x2de   :  { %v4539_v3 = vmax.f32 %v4537_v1, %v4538_v10  ;;  %v4545_v44 = vrot.slane %v4544_v19, 2  ;;  %v4552_v11 = vrot.slane %v4551_v59, 2  ;;  %v4558_v49 = vmax.f32 %v4556_v4, %v4557_v20  ;;  %5988 = vmatpush1.bf16.msra.mxu1 %v10717_v7  ;;  %v15151_v1 = vpop.permute.xlu0 %10414  ;;  %v10719_v4 = vld [vmem:[%s16720_s3 + $0x40] sm:$0xff]   ;;  %v15163_v20 = vpop.permute.xlu1 %10419 }
 0x2df   :  { %v4567_v27 = vmax.f32 %v4565_v61, %v4566_v54  ;;  %v4572_v16 = vmax.f32 %v4570_v63, %v4571_v33  ;;  %v4579_v23 = vmax.f32 %v4577_v50, %v4578_v36  ;;  %v4585_v47 = vrot.slane %v4584_v38, 4  ;;  %5989 = vmatprep.subr.bf16.mxu1 %v10818_v46 }
 0x2e0   :  { %v4540_v12 = vrot.slane %v4539_v3, 1  ;;  %v4546_v39 = vmax.f32 %v4544_v19, %v4545_v44  ;;  %v4553_v42 = vmax.f32 %v4551_v59, %v4552_v11  ;;  %v4559_v0 = vrot.slane %v4558_v49, 2 }
 0x2e1   :  { %v4568_v2 = vrot.slane %v4567_v27, 1  ;;  %v4573_v9 = vrot.slane %v4572_v16, 2  ;;  %v4580_v21 = vrot.slane %v4579_v23, 2  ;;  %v2771_v56 = vsel %vm2707_vm10, %v15079_v35, %v17395_v14 }
 0x2e2   :  { %v4547_v13 = vrot.slane %v4546_v39, 1  ;;  %v4554_v60 = vrot.slane %v4553_v42, 1  ;;  %v4560_v22 = vmax.f32 %v4558_v49, %v4559_v0  ;;  %v2835_v7 = vsel %vm2772_vm11, %v2770_v53, %v17393_v24  ;;  %5990 = vmatpush1.bf16.msra.mxu1 %v10718_v57 }
 0x2e3   :  { %v4541_v61 = vmax.f32 %v4539_v3, %v4540_v12  ;;  %v4574_v63 = vmax.f32 %v4572_v16, %v4573_v9  ;;  %v15158_v50 = vmax.f32 %v4579_v23, %v4580_v21  ;;  %v4586_v10 = vmax.f32 %v4584_v38, %v4585_v47  ;;  %5991 = vmatprep.subr.bf16.mxu1 %v10818_v46 }
 0x2e4   :  { %v4548_v35 = vmax.f32 %v4546_v39, %v4547_v13  ;;  %v4555_v14 = vmax.f32 %v4553_v42, %v4554_v60  ;;  %v4561_v19 = vrot.slane %v4560_v22, 1  ;;  %v2836_v59 = vsel %vm2772_vm11, %v2771_v56, %v17393_v24  ;;  %v10430_v42 = vpop.permute.xlu1 %10429 }
 0x2e5   :  { %v4569_v53 = vmax.f32 %v4567_v27, %v4568_v2  ;;  %v4575_v54 = vrot.slane %v4574_v63, 1  ;;  %v5773_v33 = vsel %vm5771_vm2, %v15114_v17, %v10392_v18  ;;  %v2868_v36 = vpack.c.bf16 %v2836_v59, %v2835_v7  ;;  %v10425_v18 = vpop.permute.xlu0 %10424  ;;  %v17401_v59 = vld [vmem:[#allocation6_spill] sm:$0xff] }
 0x2e6   :  { %v4562_v3 = vmax.f32 %v4560_v22, %v4561_v19  ;;  %v5165_v38 = vsel %vm5111_vm14, %v4548_v35, %v4541_v61  ;;  %v4534_v46 = vmax.f32 %v15001_v37, %v4533_v43  ;;  %v5365_v44 = vrot.slane %v14926_v32, 2  ;;  %5992 = vmatpush1.bf16.msra.mxu1 %v10719_v4 }
 0x2e7   :  { %v5166_v24 = vsel %vm5113_vm15, %v4555_v14, %v5165_v38  ;;  %v4576_v11 = vmax.f32 %v4574_v63, %v4575_v54  ;;  %v4582_v49 = vrot.slane %v15158_v50, 1  ;;  %v4587_v25 = vrot.slane %v4586_v10, 2  ;;  %8961 = vmatmul.mubr.msk.bf16.gmra.mrb[60].mxu0 %vm2896_vm12, %v2868_v36  ;;  %v17402_v36 = vld [vmem:[#allocation36_spill] sm:$0xff] }
 0x2e8   :  { %v5167_v17 = vsel %vm5115_vm3, %v4562_v3, %v5166_v24  ;;  %v5268_v57 = vsel %vm186_vm0, %v4534_v46, 0.0  ;;  %v5366_v27 = vrot.slane %v14939_v55, 2  ;;  %v5399_v37 = vrot.slane %v15101_v52, 2  ;;  %v17404_v3 = vld [vmem:[#allocation21_spill] sm:$0xff] }
 0x2e9   :  { %vm17396_vm10 = vcmask 1045509   ;;  %v5400_v16 = vrot.slane %v5268_v57, 2  ;;  %vm5788_vm9 = vcmask 523264   ;;  %v10397_v23 = vunpack.i.h.bf16 %v15107_v58  ;;  %v10435_v4 = vpop.permute.xlu0 %10434 }
 0x2ea   :  { %v5168_v43 = vsel %vm17396_vm10, %v4569_v53, %v5167_v17  ;;  %vm17398_vm5 = vcmask 1045504   ;;  %v10396_v39 = vunpack.i.l.bf16 %v15107_v58  ;;  %vm5805_vm12 = vcmask 654336  }
 0x2eb   :  { %v15184_v47 = vsel %vm17397_vm4, %v4576_v11, %v5168_v43  ;;  %v15187_v12 = vsel %vm17398_vm5, %v5365_v44, %v5366_v27  ;;  %vm17399_vm6 = vmmov %vm17398_vm5  ;;  %v5790_v0 = vsel %vm5788_vm9, %v5773_v33, %v10397_v23  ;;  %v10402_v2 = vunpack.i.h.bf16 %v15128_v28 }
 0x2ec   :  { %v15191_v55 = vsel %vm17399_vm6, %v5399_v37, %v5400_v16  ;;  %v10401_v9 = vunpack.i.l.bf16 %v15128_v28  ;;  %v5789_v56 = vsel %vm5788_vm9, %v15124_v62, %v10396_v39  ;;  %v5393_v13 = vrot.slane %v15101_v52, 1  ;;  %v17406_v37 = vld [vmem:[#allocation60_spill] sm:$0xff] }
 0x2ed   :  { %v10503_v21 = vpack.i.bf16 %v15191_v55, %v15187_v12  ;;  %v5394_v58 = vrot.slane %v5268_v57, 1  ;;  %v15201_v60 = vmax.f32 %v4586_v10, %v4587_v25  ;;  %v5807_v22 = vsel %vm5805_vm12, %v5790_v0, %v10402_v2  ;;  %v10445_v16 = vpop.permute.xlu0 %10444 }
 0x2ee   :  { %vm16916_vm7 = vcmask 785408   ;;  %v10407_v7 = vunpack.i.h.bf16 %v15139_v15  ;;  %vm17400_vm1 = vcmask 1046528   ;;  %v10406_v61 = vunpack.i.l.bf16 %v15139_v15  ;;  %v10440_v15 = vpop.permute.xlu1 %10439 }
 0x2ef   :  { %10504 = vrot.lane.b32.xlu0 %v10503_v21, %s10815_s27  ;;  %v15207_v28 = vsel %vm17400_vm1, %v5393_v13, %v5394_v58  ;;  %v10412_v62 = vunpack.i.h.bf16 %v15145_v29  ;;  %v10411_v63 = vunpack.i.l.bf16 %v15145_v29  ;;  %v5806_v10 = vsel %vm5805_vm12, %v5789_v56, %v10401_v9 }
 0x2f0   :  { %v5824_v35 = vsel %vm16916_vm7, %v5807_v22, %v10407_v7  ;;  %v10417_v14 = vunpack.i.h.bf16 %v15151_v1  ;;  %v10416_v19 = vunpack.i.l.bf16 %v15151_v1  ;;  %v10513_v53 = vpack.i.bf16 %v17401_v59, %v15207_v28 }
 0x2f1   :  { %v5823_v54 = vsel %vm16916_vm7, %v5806_v10, %v10406_v61  ;;  %v10421_v33 = vunpack.i.l.bf16 %v15163_v20  ;;  %vm16917_vm10 = vcmask 916480   ;;  %vm17403_vm4 = vcmask 130048   ;;  %v15255_v10 = vld [vmem:[%s16719_s2] ss:$0 sm:$0xff] }
 0x2f2   :  { %v5744_v29 = vsel %vm17403_vm4, %v17402_v36, %v10417_v14  ;;  %vm17405_vm5 = vmmov %vm17403_vm4  ;;  %v5840_v46 = vsel %vm16917_vm10, %v5823_v54, %v10411_v63  ;;  %v5841_v44 = vsel %vm16917_vm10, %v5824_v35, %v10412_v62  ;;  %v10427_v11 = vunpack.i.h.bf16 %v10425_v18  ;;  %v10450_v58 = vpop.permute.xlu1 %10449 }
 0x2f3   :  { %v5743_v38 = vsel %vm17405_vm5, %v17404_v3, %v10416_v19  ;;  %10514 = vrot.lane.b32.xlu0 %v10513_v53, %s10817_s24  ;;  %v5759_v1 = vsel %vm2772_vm11, %v5744_v29, %v10421_v33  ;;  %v5856_v24 = vpack.c.bf16 %v5841_v44, %v5840_v46  ;;  %v10426_v25 = vunpack.i.l.bf16 %v10425_v18  ;;  %vm17407_vm6 = vmmov %vm17403_vm4 }
 0x2f4   :  { %v5758_v17 = vsel %vm2772_vm11, %v5743_v38, %v10387_v5  ;;  %v10432_v57 = vunpack.i.h.bf16 %v10430_v42  ;;  %v10431_v27 = vunpack.i.l.bf16 %v10430_v42  ;;  %v5859_v43 = vpack.c.bf16 %v14787_v41, %v17406_v37  ;;  %v15238_v42 = vpop.f32.mrb[40].mxu0  ;;  %vm17410_vm5 = vmmov %vm17403_vm4 }
 0x2f5   :  { %6008 = vmatmul.mubr.bf16.vlgmr.msra.gmra.mrb[0].mxu1 %v5856_v24  ;;  %v5774_v23 = vsel %vm5771_vm2, %v5758_v17, %v10426_v25  ;;  %v5775_v39 = vsel %vm5771_vm2, %v5759_v1, %v10427_v11  ;;  %v10437_v0 = vunpack.i.h.bf16 %v10435_v4  ;;  %v10436_v2 = vunpack.i.l.bf16 %v10435_v4  ;;  %v15242_v22 = vpop.f32.mrb[41].mxu0  ;;  %v17409_v25 = vld [vmem:[#allocation45_spill] sm:$0xff] }
 0x2f6   :  { %v5791_v9 = vsel %vm5788_vm9, %v5774_v23, %v10431_v27  ;;  %v5792_v18 = vsel %vm5788_vm9, %v5775_v39, %v10432_v57  ;;  %8628 = vmatprep.mubr.msk.bf16.mxu1 %vm17407_vm6, %v5859_v43  ;;  %v10442_v30 = vunpack.i.h.bf16 %v10440_v15  ;;  %v10441_v5 = vunpack.i.l.bf16 %v10440_v15  ;;  %v15250_v63 = vpop.f32.mrb[42].mxu0  ;;  %v17411_v57 = vld [vmem:[#allocation25_spill] sm:$0xff]  ;;  %vm17412_vm6 = vmmov %vm17403_vm4 }
 0x2f7   :  { %v5808_v41 = vsel %vm5805_vm12, %v5791_v9, %v10436_v2  ;;  %v5809_v21 = vsel %vm5805_vm12, %v5792_v18, %v10437_v0  ;;  %v10447_v56 = vunpack.i.h.bf16 %v10445_v16  ;;  %v10446_v13 = vunpack.i.l.bf16 %v10445_v16  ;;  %v15263_v19 = vpop.f32.mrb[43].mxu0 }
 0x2f8   :  { %v4583_v7 = vmax.f32 %v15158_v50, %v4582_v49  ;;  %v4589_v4 = vrot.slane %v15201_v60, 1  ;;  %v5825_v61 = vsel %vm16916_vm7, %v5808_v41, %v10441_v5  ;;  %v5826_v62 = vsel %vm16916_vm7, %v5809_v21, %v10442_v30 }
 0x2f9   :  { %v3184_v35 = vadd.f32 %v15255_v10, %v14947_v6  ;;  %v3176_v14 = vadd.f32 %v15255_v10, %v14954_v31  ;;  %v5842_v50 = vsel %vm16917_vm10, %v5825_v61, %v10446_v13  ;;  %v5843_v49 = vsel %vm16917_vm10, %v5826_v62, %v10447_v56 }
 0x2fa   :  { %v10452_v59 = vunpack.i.h.bf16 %v10450_v58  ;;  %v10451_v53 = vunpack.i.l.bf16 %v10450_v58  ;;  %v5858_v54 = vpack.c.bf16 %v5843_v49, %v5842_v50  ;;  %v3187_v33 = vadd.f32 %v15255_v10, %v14960_v51 }
 0x2fb   :  { %v3324_v15 = vmax.f32 %v3184_v35, 0.0  ;;  %v3322_v36 = vmax.f32 %v3176_v14, 0.0  ;;  %v5861_v6 = vpack.c.bf16 %v15187_v12, %v14790_v8  ;;  %v3179_v31 = vadd.f32 %v15255_v10, %v14963_v40 }
 0x2fc   :  { %v3325_v29 = vmax.f32 %v3187_v33, 0.0  ;;  %v4590_v3 = vmax.f32 %v15201_v60, %v4589_v4  ;;  %vm17408_vm1 = vcmask 1047559   ;;  %v10498_v46 = vpack.i.bf16 %v15207_v28, %v14968_v48 }
 0x2fd   :  { %v5170_v38 = vsel %vm17408_vm1, %v4583_v7, %v15184_v47  ;;  %v3368_v44 = vmax.f32 %v3322_v36, %v3324_v15  ;;  %6016 = vmatmul.mubr.bf16.gmra.mrb[4].mxu1 %v5858_v54  ;;  %v3323_v51 = vmax.f32 %v3179_v31, 0.0  ;;  %v10422_v11 = vunpack.i.h.bf16 %v15163_v20 }
 0x2fe   :  { %v15277_v1 = vsel %vm186_vm0, 0.0, %v5170_v38  ;;  %8629 = vmatprep.mubr.msk.bf16.mxu1 %vm17403_vm4, %v5861_v6  ;;  %v15281_v8 = vsel %vm186_vm0, %v4590_v3, 0.0  ;;  %v15288_v17 = vsel %vm17410_vm5, %v17409_v25, %v10452_v59  ;;  %v15292_v27 = vsel %vm17412_vm6, %v17411_v57, %v10451_v53 }
 0x2ff   :  { %v5368_v40 = vrot.slane %v15277_v1, 2  ;;  %v3720_v60 = vcombine.high %v3368_v44, %v3368_v44  ;;  %v3727_v24 = vrot.slane %v3368_v44, %v17339_v45  ;;  %v3369_v47 = vmax.f32 %v3323_v51, %v3325_v29 }
 0x300   :  { %v5369_v37 = vrot.slane %v15281_v8, 2  ;;  %vm17413_vm1 = vcmask 1045504   ;;  %v17414_v18 = vmov 0.0   ;;  %vm17415_vm4 = vcmask 1045509  }
 0x301   :  { %v3734_v43 = vrot.slane %v3720_v60, %v17339_v45  ;;  %v3735_v16 = vcombine.high %v3727_v24, %v3727_v24  ;;  %v4591_v23 = vsel %vm4086_vm13, %v3727_v24, -inf  ;;  %v3737_v39 = vcombine.high %v3369_v47, %v3369_v47 }
 0x302   :  { %v4592_v0 = vrot.slane %v4591_v23, 4  ;;  %v3744_v2 = vrot.slane %v3369_v47, %v17339_v45  ;;  %v15299_v9 = vsel %vm17413_vm1, %v5368_v40, %v5369_v37  ;;  %v15303_v30 = vpack.i.bf16 %v17414_v18, %v15101_v52 }
 0x303   :  { %v3736_v5 = vcombine.high %v3734_v43, %v3734_v43  ;;  %v4598_v41 = vsel %vm4086_vm13, %v3735_v16, -inf  ;;  %v4605_v21 = vsel %vm4086_vm13, %v3734_v43, -inf  ;;  %v3751_v56 = vrot.slane %v3737_v39, %v17339_v45 }
 0x304   :  { %v4593_v13 = vmax.f32 %v4591_v23, %v4592_v0  ;;  %v4599_v58 = vrot.slane %v4598_v41, 4  ;;  %v4606_v7 = vrot.slane %v4605_v21, 4  ;;  %v3752_v4 = vcombine.high %v3744_v2, %v3744_v2 }
 0x305   :  { %v4612_v61 = vsel %vm4086_vm13, %v3736_v5, -inf  ;;  %v3753_v62 = vcombine.high %v3751_v56, %v3751_v56  ;;  %v4619_v35 = vsel %vm4086_vm13, %v3744_v2, -inf  ;;  %v4633_v14 = vsel %vm4086_vm13, %v3751_v56, -inf }
 0x306   :  { %v4594_v52 = vrot.slane %v4593_v13, 2  ;;  %v4600_v50 = vmax.f32 %v4598_v41, %v4599_v58  ;;  %v4607_v49 = vmax.f32 %v4605_v21, %v4606_v7  ;;  %v4613_v59 = vrot.slane %v4612_v61, 4 }
 0x307   :  { %v4620_v53 = vrot.slane %v4619_v35, 4  ;;  %v4626_v54 = vsel %vm4086_vm13, %v3752_v4, -inf  ;;  %v4634_v33 = vrot.slane %v4633_v14, 4  ;;  %v4640_v15 = vsel %vm4086_vm13, %v3753_v62, -inf }
 0x308   :  { %v4595_v36 = vmax.f32 %v4593_v13, %v4594_v52  ;;  %v4601_v6 = vrot.slane %v4600_v50, 2  ;;  %v4608_v31 = vrot.slane %v4607_v49, 2  ;;  %v4614_v29 = vmax.f32 %v4612_v61, %v4613_v59 }
 0x309   :  { %v4621_v3 = vmax.f32 %v4619_v35, %v4620_v53  ;;  %v4627_v38 = vrot.slane %v4626_v54, 4  ;;  %v4635_v44 = vmax.f32 %v4633_v14, %v4634_v33  ;;  %v4641_v51 = vrot.slane %v4640_v15, 4  ;;  %v15315_v35 = vpop.permute.xlu1 %10459  ;;  %v15321_v59 = vpop.permute.xlu0 %10454 }
 0x30a   :  { %v4596_v40 = vrot.slane %v4595_v36, 1  ;;  %v4602_v60 = vmax.f32 %v4600_v50, %v4601_v6  ;;  %v4609_v24 = vmax.f32 %v4607_v49, %v4608_v31  ;;  %v4615_v47 = vrot.slane %v4614_v29, 2 }
 0x30b   :  { %v4622_v25 = vrot.slane %v4621_v3, 2  ;;  %v4628_v57 = vmax.f32 %v4626_v54, %v4627_v38  ;;  %v4636_v37 = vrot.slane %v4635_v44, 2  ;;  %v4642_v43 = vmax.f32 %v4640_v15, %v4641_v51 }
 0x30c   :  { %v4597_v16 = vmax.f32 %v4595_v36, %v4596_v40  ;;  %v4603_v23 = vrot.slane %v4602_v60, 1  ;;  %v4610_v39 = vrot.slane %v4609_v24, 1  ;;  %v4616_v0 = vmax.f32 %v4614_v29, %v4615_v47 }
 0x30d   :  { %v4623_v2 = vmax.f32 %v4621_v3, %v4622_v25  ;;  %v4629_v5 = vrot.slane %v4628_v57, 2  ;;  %v4637_v41 = vmax.f32 %v4635_v44, %v4636_v37  ;;  %v4643_v21 = vrot.slane %v4642_v43, 2  ;;  %v8946_v44 = vpop.f32.mrb[44].mxu0 }
 0x30e   :  { %v4604_v56 = vmax.f32 %v4602_v60, %v4603_v23  ;;  %v4611_v13 = vmax.f32 %v4609_v24, %v4610_v39  ;;  %v4617_v58 = vrot.slane %v4616_v0, 1  ;;  %v10488_v7 = vpack.i.bf16 %v15299_v9, %v15187_v12  ;;  %v15343_v24 = vpop.f32.mrb[45].mxu0 }
 0x30f   :  { %v4624_v4 = vrot.slane %v4623_v2, 1  ;;  %v4630_v61 = vmax.f32 %v4628_v57, %v4629_v5  ;;  %v4644_v62 = vmax.f32 %v4642_v43, %v4643_v21  ;;  %v3200_v14 = vadd.f32 %v15255_v10, %v15238_v42  ;;  %v15349_v25 = vpop.f32.mrb[46].mxu0 }
 0x310   :  { %v4618_v52 = vmax.f32 %v4616_v0, %v4617_v58  ;;  %v5171_v50 = vsel %vm5111_vm14, %v4604_v56, %v4597_v16  ;;  %v4638_v49 = vrot.slane %v4637_v41, 1  ;;  %10489 = vrot.lane.b32.xlu1 %v10488_v7, %s10811_s28  ;;  %v3192_v53 = vadd.f32 %v15255_v10, %v15242_v22 }
 0x311   :  { %v5172_v12 = vsel %vm5113_vm15, %v4611_v13, %v5171_v50  ;;  %v4625_v54 = vmax.f32 %v4623_v2, %v4624_v4  ;;  %v4631_v33 = vrot.slane %v4630_v61, 1  ;;  %v3203_v15 = vadd.f32 %v15255_v10, %v15250_v63 }
 0x312   :  { %v4645_v36 = vrot.slane %v4644_v62, 1  ;;  %v5173_v42 = vsel %vm5115_vm3, %v4618_v52, %v5172_v12  ;;  %v10462_v6 = vunpack.i.h.bf16 %v15315_v35  ;;  %v10461_v31 = vunpack.i.l.bf16 %v15315_v35 }
 0x313   :  { %v4632_v29 = vmax.f32 %v4630_v61, %v4631_v33  ;;  %v5174_v3 = vsel %vm17415_vm4, %v4625_v54, %v5173_v42  ;;  %v15336_v22 = vsel %vm2772_vm11, %v15292_v27, %v10422_v11  ;;  %v10456_v38 = vunpack.i.l.bf16 %v15321_v59 }
 0x314   :  { %v4639_v63 = vmax.f32 %v4637_v41, %v4638_v49  ;;  %v4646_v51 = vmax.f32 %v4644_v62, %v4645_v36  ;;  %10499 = vrot.lane.b32.xlu1 %v10498_v46, %s10814_s19  ;;  %v3328_v40 = vmax.f32 %v3200_v14, 0.0  ;;  %v3326_v60 = vmax.f32 %v3192_v53, 0.0  ;;  %v15356_v46 = vpop.f32.mrb[47].mxu0  ;;  %v15362_v16 = vpop.permute.xlu0 %10464 }
 0x315   :  { %v3329_v47 = vmax.f32 %v3203_v15, 0.0  ;;  %vm17416_vm5 = vcmask 1046534   ;;  %v3195_v11 = vadd.f32 %v15255_v10, %v15263_v19  ;;  %v5326_v27 = vrot.slane %v15277_v1, 1 }
 0x316   :  { %v5175_v20 = vsel %vm17416_vm5, %v4632_v29, %v5174_v3  ;;  %v3370_v57 = vmax.f32 %v3326_v60, %v3328_v40  ;;  %vm17417_vm6 = vcmask 1047559   ;;  %v15353_v48 = vsel %vm186_vm0, %v4646_v51, 0.0 }
 0x317   :  { %v5176_v37 = vsel %vm17417_vm6, %v4639_v63, %v5175_v20  ;;  %v5327_v28 = vrot.slane %v15281_v8, 1  ;;  %v15360_v43 = vsel %vm2772_vm11, %v15288_v17, %v10456_v38  ;;  %v3327_v23 = vmax.f32 %v3195_v11, 0.0 }
 0x318   :  { %v15365_v19 = vsel %vm186_vm0, 0.0, %v5176_v37  ;;  %v15368_v39 = vadd.f32 %v15255_v10, %v8946_v44  ;;  %10509 = vrot.lane.b32.xlu1 %v15303_v30, %s10816_s0  ;;  %v3754_v0 = vcombine.high %v3370_v57, %v3370_v57  ;;  %v3761_v8 = vrot.slane %v3370_v57, %v17339_v45 }
 0x319   :  { %vm17418_vm1 = vcmask 1046528   ;;  %v5330_v17 = vrot.slane %v15353_v48, 1  ;;  %v10467_v5 = vunpack.i.h.bf16 %v15362_v16  ;;  %v10523_v41 = vpack.i.bf16 %v15365_v19, %v15277_v1 }
 0x31a   :  { %v5328_v2 = vsel %vm17418_vm1, %v5326_v27, %v5327_v28  ;;  %v3371_v21 = vmax.f32 %v3327_v23, %v3329_v47  ;;  %v5329_v56 = vrot.slane %v15365_v19, 1  ;;  %v10466_v13 = vunpack.i.l.bf16 %v15362_v16  ;;  %vm17419_vm4 = vmmov %vm17418_vm1 }
 0x31b   :  { %v3768_v58 = vrot.slane %v3754_v0, %v17339_v45  ;;  %v3769_v30 = vcombine.high %v3761_v8, %v3761_v8  ;;  %v5371_v7 = vrot.slane %v15365_v19, 2  ;;  %v4647_v4 = vsel %vm4086_vm13, %v3761_v8, -inf  ;;  %10524 = vrot.lane.b32.xlu0 %v10523_v41, %s10813_s26 }
 0x31c   :  { %v3771_v61 = vcombine.high %v3371_v21, %v3371_v21  ;;  %v3778_v62 = vrot.slane %v3371_v21, %v17339_v45  ;;  %v15386_v14 = vsel %vm17419_vm4, %v5329_v56, %v5330_v17  ;;  %v4648_v50 = vrot.slane %v4647_v4, 4 }
 0x31d   :  { %v3770_v52 = vcombine.high %v3768_v58, %v3768_v58  ;;  %v4654_v49 = vsel %vm4086_vm13, %v3769_v30, -inf  ;;  %v4661_v53 = vsel %vm4086_vm13, %v3768_v58, -inf  ;;  %v10518_v3 = vpack.i.bf16 %v15386_v14, %v5328_v2 }
 0x31e   :  { %v4655_v12 = vrot.slane %v4654_v49, 4  ;;  %v4662_v54 = vrot.slane %v4661_v53, 4  ;;  %v3785_v33 = vrot.slane %v3771_v61, %v17339_v45  ;;  %v3786_v15 = vcombine.high %v3778_v62, %v3778_v62 }
 0x31f   :  { %v4649_v36 = vmax.f32 %v4647_v4, %v4648_v50  ;;  %v4668_v42 = vsel %vm4086_vm13, %v3770_v52, -inf  ;;  %v4675_v29 = vsel %vm4086_vm13, %v3778_v62, -inf  ;;  %10519 = vrot.lane.b32.xlu1 %v10518_v3, %s10807_s20  ;;  %vm17420_vm5 = vcmask 1045504  }
 0x320   :  { %v4656_v38 = vmax.f32 %v4654_v49, %v4655_v12  ;;  %v4663_v44 = vmax.f32 %v4661_v53, %v4662_v54  ;;  %v4669_v63 = vrot.slane %v4668_v42, 4  ;;  %v3787_v51 = vcombine.high %v3785_v33, %v3785_v33 }
 0x321   :  { %v4650_v40 = vrot.slane %v4649_v36, 2  ;;  %v4676_v60 = vrot.slane %v4675_v29, 4  ;;  %v4682_v47 = vsel %vm4086_vm13, %v3786_v15, -inf  ;;  %v4689_v20 = vsel %vm4086_vm13, %v3785_v33, -inf }
 0x322   :  { %v4657_v11 = vrot.slane %v4656_v38, 2  ;;  %v4664_v27 = vrot.slane %v4663_v44, 2  ;;  %v4670_v57 = vmax.f32 %v4668_v42, %v4669_v63  ;;  %v4683_v37 = vrot.slane %v4682_v47, 4 }
 0x323   :  { %v4651_v28 = vmax.f32 %v4649_v36, %v4650_v40  ;;  %v4677_v23 = vmax.f32 %v4675_v29, %v4676_v60  ;;  %v4690_v0 = vrot.slane %v4689_v20, 4  ;;  %v4696_v8 = vsel %vm4086_vm13, %v3787_v51, -inf  ;;  %v10470_v29 = vpop.permute.xlu1 %10469  ;;  %10529 = vrot.lane.b32.xlu1 %v10518_v3, %s10814_s19 }
 0x324   :  { %v4658_v2 = vmax.f32 %v4656_v38, %v4657_v11  ;;  %v4665_v17 = vmax.f32 %v4663_v44, %v4664_v27  ;;  %v4671_v41 = vrot.slane %v4670_v57, 2  ;;  %v4684_v21 = vmax.f32 %v4682_v47, %v4683_v37 }
 0x325   :  { %v4652_v56 = vrot.slane %v4651_v28, 1  ;;  %v4678_v58 = vrot.slane %v4677_v23, 2  ;;  %v4691_v30 = vmax.f32 %v4689_v20, %v4690_v0  ;;  %v4697_v4 = vrot.slane %v4696_v8, 4 }
 0x326   :  { %v4659_v61 = vrot.slane %v4658_v2, 1  ;;  %v4666_v62 = vrot.slane %v4665_v17, 1  ;;  %v4672_v52 = vmax.f32 %v4670_v57, %v4671_v41  ;;  %v4685_v50 = vrot.slane %v4684_v21, 2 }
 0x327   :  { %v4653_v49 = vmax.f32 %v4651_v28, %v4652_v56  ;;  %v4679_v53 = vmax.f32 %v4677_v23, %v4678_v58  ;;  %v4692_v12 = vrot.slane %v4691_v30, 2  ;;  %v4698_v54 = vmax.f32 %v4696_v8, %v4697_v4 }
 0x328   :  { %v4660_v33 = vmax.f32 %v4658_v2, %v4659_v61  ;;  %v4667_v15 = vmax.f32 %v4665_v17, %v4666_v62  ;;  %v4673_v36 = vrot.slane %v4672_v52, 1  ;;  %v4686_v42 = vmax.f32 %v4684_v21, %v4685_v50 }
 0x329   :  { %v4680_v38 = vrot.slane %v4679_v53, 1  ;;  %v4693_v44 = vmax.f32 %v4691_v30, %v4692_v12  ;;  %v4699_v63 = vrot.slane %v4698_v54, 2  ;;  %v5372_v51 = vrot.slane %v15353_v48, 2 }
 0x32a   :  { %v4674_v40 = vmax.f32 %v4672_v52, %v4673_v36  ;;  %v5177_v60 = vsel %vm5111_vm14, %v4660_v33, %v4653_v49  ;;  %v4687_v47 = vrot.slane %v4686_v42, 1  ;;  %v5776_v37 = vsel %vm5771_vm2, %v15336_v22, %v10461_v31  ;;  %v10475_v22 = vpop.permute.xlu0 %10474 }
 0x32b   :  { %v5178_v20 = vsel %vm5113_vm15, %v4667_v15, %v5177_v60  ;;  %v4681_v11 = vmax.f32 %v4679_v53, %v4680_v38  ;;  %v4694_v27 = vrot.slane %v4693_v44, 1  ;;  %v4700_v57 = vmax.f32 %v4698_v54, %v4699_v63 }
 0x32c   :  { %v10472_v28 = vunpack.i.h.bf16 %v10470_v29  ;;  %v5179_v23 = vsel %vm5115_vm3, %v4674_v40, %v5178_v20  ;;  %v15409_v48 = vsel %vm17420_vm5, %v5371_v7, %v5372_v51  ;;  %v5777_v0 = vsel %vm5771_vm2, %v15360_v43, %v10462_v6 }
 0x32d   :  { %v4701_v8 = vrot.slane %v4700_v57, 1  ;;  %vm17421_vm6 = vcmask 1045509   ;;  %v10533_v31 = vpack.i.bf16 %v15409_v48, %v15299_v9  ;;  %v5793_v17 = vsel %vm5788_vm9, %v5776_v37, %v10466_v13 }
 0x32e   :  { %v5180_v2 = vsel %vm17421_vm6, %v4681_v11, %v5179_v23  ;;  %v5794_v7 = vsel %vm5788_vm9, %v5777_v0, %v10467_v5  ;;  %v4688_v3 = vmax.f32 %v4686_v42, %v4687_v47  ;;  %v4695_v35 = vmax.f32 %v4693_v44, %v4694_v27 }
 0x32f   :  { %v4702_v41 = vmax.f32 %v4700_v57, %v4701_v8  ;;  %10534 = vrot.lane.b32.xlu0 %v10533_v31, %s10815_s27  ;;  %v3332_v6 = vmax.f32 %v15368_v39, 0.0  ;;  %v3208_v43 = vadd.f32 %v15255_v10, %v15343_v24  ;;  %v3219_v9 = vadd.f32 %v15255_v10, %v15349_v25  ;;  %v17425_v31 = vld [vmem:[#allocation5_spill] sm:$0xff] }
 0x330   :  { %v10477_v21 = vunpack.i.h.bf16 %v10475_v22  ;;  %v10476_v56 = vunpack.i.l.bf16 %v10475_v22  ;;  %vm17422_vm1 = vcmask 1046534   ;;  %v3211_v16 = vadd.f32 %v15255_v10, %v15356_v46 }
 0x331   :  { %v5181_v13 = vsel %vm17422_vm1, %v4688_v3, %v5180_v2  ;;  %v3330_v5 = vmax.f32 %v3208_v43, 0.0  ;;  %v3333_v58 = vmax.f32 %v3219_v9, 0.0  ;;  %vm17423_vm4 = vcmask 1047559  }
 0x332   :  { %v5182_v30 = vsel %vm17423_vm4, %v4695_v35, %v5181_v13  ;;  %v5271_v4 = vsel %vm186_vm0, %v4702_v41, 0.0  ;;  %v10471_v39 = vunpack.i.l.bf16 %v10470_v29  ;;  %v5811_v61 = vsel %vm5805_vm12, %v5794_v7, %v10472_v28  ;;  %v10480_v33 = vpop.permute.xlu1 %10479 }
 0x333   :  { %v15438_v24 = vsel %vm186_vm0, 0.0, %v5182_v30  ;;  %v3331_v25 = vmax.f32 %v3211_v16, 0.0  ;;  %v3372_v62 = vmax.f32 %v3330_v5, %v3332_v6  ;;  %v5333_v46 = vrot.slane %v5271_v4, 1 }
 0x334   :  { %v10538_v52 = vpack.i.bf16 %v15438_v24, %v15365_v19  ;;  %v5332_v50 = vrot.slane %v15438_v24, 1  ;;  %v5810_v49 = vsel %vm5805_vm12, %v5793_v17, %v10471_v39  ;;  %v5828_v53 = vsel %vm16916_vm7, %v5811_v61, %v10477_v21 }
 0x335   :  { %v3373_v12 = vmax.f32 %v3331_v25, %v3333_v58  ;;  %v5827_v54 = vsel %vm16916_vm7, %v5810_v49, %v10476_v56  ;;  %v3788_v15 = vcombine.high %v3372_v62, %v3372_v62  ;;  %v3795_v36 = vrot.slane %v3372_v62, %v17339_v45 }
 0x336   :  { %10539 = vrot.lane.b32.xlu1 %v10538_v52, %s10816_s0  ;;  %vm17424_vm5 = vcmask 1046528   ;;  %v10482_v29 = vunpack.i.h.bf16 %v10480_v33  ;;  %v10481_v38 = vunpack.i.l.bf16 %v10480_v33  ;;  %v5374_v63 = vrot.slane %v15438_v24, 2 }
 0x337   :  { %v15449_v42 = vsel %vm17424_vm5, %v5332_v50, %v5333_v46  ;;  %v3805_v44 = vcombine.high %v3373_v12, %v3373_v12  ;;  %v3802_v51 = vrot.slane %v3788_v15, %v17339_v45  ;;  %v3803_v40 = vcombine.high %v3795_v36, %v3795_v36 }
 0x338   :  { %v4703_v60 = vsel %vm4086_vm13, %v3795_v36, -inf  ;;  %v10543_v47 = vpack.i.bf16 %v15449_v42, %v15386_v14  ;;  %v5844_v11 = vsel %vm16917_vm10, %v5827_v54, %v10481_v38  ;;  %v3812_v27 = vrot.slane %v3373_v12, %v17339_v45 }
 0x339   :  { %v4704_v20 = vrot.slane %v4703_v60, 4  ;;  %v5375_v57 = vrot.slane %v5271_v4, 2  ;;  %v3804_v37 = vcombine.high %v3802_v51, %v3802_v51  ;;  %v4710_v28 = vsel %vm4086_vm13, %v3803_v40, -inf }
 0x33a   :  { %v4717_v23 = vsel %vm4086_vm13, %v3802_v51, -inf  ;;  %v5845_v0 = vsel %vm16917_vm10, %v5828_v53, %v10482_v29  ;;  %10544 = vrot.lane.b32.xlu0 %v10543_v47, %s10817_s24  ;;  %v4711_v2 = vrot.slane %v4710_v28, 4  ;;  %v5863_v14 = vpack.c.bf16 %v17425_v31, %v15191_v55 }
 0x33b   :  { %v4705_v8 = vmax.f32 %v4703_v60, %v4704_v20  ;;  %vm17426_vm6 = vcmask 1045504   ;;  %v4718_v17 = vrot.slane %v4717_v23, 4  ;;  %v4724_v7 = vsel %vm4086_vm13, %v3804_v37, -inf }
 0x33c   :  { %v15465_v22 = vsel %vm17426_vm6, %v5374_v63, %v5375_v57  ;;  %v5860_v3 = vpack.c.bf16 %v5845_v0, %v5844_v11  ;;  %v3819_v35 = vrot.slane %v3805_v44, %v17339_v45  ;;  %v4712_v6 = vmax.f32 %v4710_v28, %v4711_v2 }
 0x33d   :  { %v4706_v41 = vrot.slane %v4705_v8, 2  ;;  %v4725_v43 = vrot.slane %v4724_v7, 4  ;;  %v3820_v9 = vcombine.high %v3812_v27, %v3812_v27  ;;  %v4719_v21 = vmax.f32 %v4717_v23, %v4718_v17 }
 0x33e   :  { %6024 = vmatmul.mubr.bf16.gmra.mrb[8].mxu1 %v5860_v3  ;;  %v3821_v56 = vcombine.high %v3819_v35, %v3819_v35  ;;  %v4731_v13 = vsel %vm4086_vm13, %v3812_v27, -inf  ;;  %v4745_v55 = vsel %vm4086_vm13, %v3819_v35, -inf  ;;  %v4713_v5 = vrot.slane %v4712_v6, 2 }
 0x33f   :  { %v4707_v16 = vmax.f32 %v4705_v8, %v4706_v41  ;;  %v4726_v58 = vmax.f32 %v4724_v7, %v4725_v43  ;;  %vm17427_vm1 = vcmask 130048   ;;  %v4732_v30 = vrot.slane %v4731_v13, 4 }
 0x340   :  { %8630 = vmatprep.mubr.msk.bf16.mxu1 %vm17427_vm1, %v5863_v14  ;;  %v4720_v4 = vrot.slane %v4719_v21, 2  ;;  %v4738_v39 = vsel %vm4086_vm13, %v3820_v9, -inf  ;;  %v4746_v61 = vrot.slane %v4745_v55, 4  ;;  %v4752_v25 = vsel %vm4086_vm13, %v3821_v56, -inf }
 0x341   :  { %v4708_v62 = vrot.slane %v4707_v16, 1  ;;  %v4714_v52 = vmax.f32 %v4712_v6, %v4713_v5  ;;  %v4727_v50 = vrot.slane %v4726_v58, 2  ;;  %v4733_v46 = vmax.f32 %v4731_v13, %v4732_v30 }
 0x342   :  { %v4721_v49 = vmax.f32 %v4719_v21, %v4720_v4  ;;  %v4739_v53 = vrot.slane %v4738_v39, 4  ;;  %v4747_v12 = vmax.f32 %v4745_v55, %v4746_v61  ;;  %v4753_v54 = vrot.slane %v4752_v25, 4 }
 0x343   :  { %v4709_v33 = vmax.f32 %v4707_v16, %v4708_v62  ;;  %v4715_v15 = vrot.slane %v4714_v52, 1  ;;  %v4728_v36 = vmax.f32 %v4726_v58, %v4727_v50  ;;  %v4734_v29 = vrot.slane %v4733_v46, 2 }
 0x344   :  { %v4722_v38 = vrot.slane %v4721_v49, 1  ;;  %v4740_v44 = vmax.f32 %v4738_v39, %v4739_v53  ;;  %v4748_v63 = vrot.slane %v4747_v12, 2  ;;  %v4754_v51 = vmax.f32 %v4752_v25, %v4753_v54 }
 0x345   :  { %v4716_v40 = vmax.f32 %v4714_v52, %v4715_v15  ;;  %v4729_v60 = vrot.slane %v4728_v36, 1  ;;  %v4735_v47 = vmax.f32 %v4733_v46, %v4734_v29  ;;  %v10553_v20 = vpack.i.bf16 %v15465_v22, %v15409_v48 }
 0x346   :  { %v4723_v11 = vmax.f32 %v4721_v49, %v4722_v38  ;;  %v4741_v27 = vrot.slane %v4740_v44, 2  ;;  %v4749_v57 = vmax.f32 %v4747_v12, %v4748_v63  ;;  %v4755_v37 = vrot.slane %v4754_v51, 2  ;;  %v8950_v13 = vpop.f32.mrb[48].mxu0 }
 0x347   :  { %v4730_v28 = vmax.f32 %v4728_v36, %v4729_v60  ;;  %v5183_v23 = vsel %vm5111_vm14, %v4716_v40, %v4709_v33  ;;  %v4736_v0 = vrot.slane %v4735_v47, 1  ;;  %10554 = vrot.lane.b32.xlu0 %v10553_v20, %s10811_s28  ;;  %v5865_v35 = vpack.c.bf16 %v15465_v22, %v15409_v48  ;;  %v3223_v5 = vpop.f32.mrb[49].mxu0 }
 0x348   :  { %v5184_v8 = vsel %vm5113_vm15, %v4723_v11, %v5183_v23  ;;  %v4742_v2 = vmax.f32 %v4740_v44, %v4741_v27  ;;  %v4756_v14 = vmax.f32 %v4754_v51, %v4755_v37  ;;  %v4750_v7 = vrot.slane %v4749_v57, 1  ;;  %v8951_v39 = vpop.f32.mrb[50].mxu0 }
 0x349   :  { %v4737_v17 = vmax.f32 %v4735_v47, %v4736_v0  ;;  %v5185_v3 = vsel %vm5115_vm3, %v4730_v28, %v5184_v8  ;;  %vm17428_vm4 = vcmask 1045509   ;;  %vm17429_vm5 = vcmask 1046534   ;;  %v3226_v52 = vpop.f32.mrb[51].mxu0 }
 0x34a   :  { %v4743_v41 = vrot.slane %v4742_v2, 1  ;;  %v4757_v6 = vrot.slane %v4756_v14, 1  ;;  %v4751_v56 = vmax.f32 %v4749_v57, %v4750_v7  ;;  %v3232_v16 = vadd.f32 %v15255_v10, %v8950_v13 }
 0x34b   :  { %v5186_v43 = vsel %vm17428_vm4, %v4737_v17, %v5185_v3  ;;  %vm17430_vm6 = vcmask 1047559   ;;  %v3224_v4 = vadd.f32 %v15255_v10, %v3223_v5  ;;  %v3235_v62 = vadd.f32 %v15255_v10, %v8951_v39 }
 0x34c   :  { %v4744_v9 = vmax.f32 %v4742_v2, %v4743_v41  ;;  %v4758_v21 = vmax.f32 %v4756_v14, %v4757_v6  ;;  %v3336_v25 = vmax.f32 %v3232_v16, 0.0  ;;  %v3227_v46 = vadd.f32 %v15255_v10, %v3226_v52 }
 0x34d   :  { %v3334_v50 = vmax.f32 %v3224_v4, 0.0  ;;  %v3337_v12 = vmax.f32 %v3235_v62, 0.0  ;;  %vm17431_vm1 = vcmask 1046528   ;;  %vm17432_vm4 = vcmask 1045504  }
 0x34e   :  { %v5187_v55 = vsel %vm17429_vm5, %v4744_v9, %v5186_v43  ;;  %v5272_v58 = vsel %vm186_vm0, %v4758_v21, 0.0  ;;  %v3335_v36 = vmax.f32 %v3227_v46, 0.0  ;;  %vm17433_vm5 = vcmask 1045509  }
 0x34f   :  { %v5188_v30 = vsel %vm17430_vm6, %v4751_v56, %v5187_v55  ;;  %v5336_v53 = vrot.slane %v5272_v58, 1  ;;  %v5378_v33 = vrot.slane %v5272_v58, 2  ;;  %v3374_v15 = vmax.f32 %v3334_v50, %v3336_v25 }
 0x350   :  { %v15489_v61 = vsel %vm186_vm0, 0.0, %v5188_v30  ;;  %v3375_v40 = vmax.f32 %v3335_v36, %v3337_v12  ;;  %vm17434_vm6 = vcmask 1046534   ;;  %vm17458_vm8 = vcmask 1041408  }
 0x351   :  { %v5335_v49 = vrot.slane %v15489_v61, 1  ;;  %v5377_v54 = vrot.slane %v15489_v61, 2  ;;  %v3822_v63 = vcombine.high %v3374_v15, %v3374_v15  ;;  %v3829_v51 = vrot.slane %v3374_v15, %v17339_v45 }
 0x352   :  { %v3846_v57 = vrot.slane %v3375_v40, %v17339_v45  ;;  %v10558_v37 = vpack.i.bf16 %v15489_v61, %v15438_v24 }
 0x353   :  { %v15496_v29 = vsel %vm17431_vm1, %v5335_v49, %v5336_v53  ;;  %v15501_v44 = vsel %vm17432_vm4, %v5377_v54, %v5378_v33  ;;  %v3836_v47 = vrot.slane %v3822_v63, %v17339_v45  ;;  %v3837_v20 = vcombine.high %v3829_v51, %v3829_v51 }
 0x354   :  { %v10563_v38 = vpack.i.bf16 %v15496_v29, %v15449_v42  ;;  %v10568_v60 = vpack.i.bf16 %v15501_v44, %v15465_v22  ;;  %v4759_v11 = vsel %vm4086_vm13, %v3829_v51, -inf  ;;  %v3839_v42 = vcombine.high %v3375_v40, %v3375_v40 }
 0x355   :  { %v4760_v27 = vrot.slane %v4759_v11, 4  ;;  %v3838_v28 = vcombine.high %v3836_v47, %v3836_v47  ;;  %v4766_v23 = vsel %vm4086_vm13, %v3837_v20, -inf  ;;  %v4773_v0 = vsel %vm4086_vm13, %v3836_v47, -inf }
 0x356   :  { %10564 = vrot.lane.b32.xlu0 %v10563_v38, %s10814_s19  ;;  %10549 = vrot.lane.b32.xlu1 %v10563_v38, %s10807_s20  ;;  %v3853_v8 = vrot.slane %v3839_v42, %v17339_v45  ;;  %v4767_v14 = vrot.slane %v4766_v23, 4  ;;  %v4774_v17 = vrot.slane %v4773_v0, 4  ;;  %v3854_v7 = vcombine.high %v3846_v57, %v3846_v57 }
 0x357   :  { %v4761_v2 = vmax.f32 %v4759_v11, %v4760_v27  ;;  %v4780_v3 = vsel %vm4086_vm13, %v3838_v28, -inf  ;;  %v4787_v6 = vsel %vm4086_vm13, %v3846_v57, -inf  ;;  %vm17435_vm1 = vcmask 1047559  }
 0x358   :  { %v3855_v41 = vcombine.high %v3853_v8, %v3853_v8  ;;  %v4801_v43 = vsel %vm4086_vm13, %v3853_v8, -inf  ;;  %v4768_v21 = vmax.f32 %v4766_v23, %v4767_v14  ;;  %v4775_v56 = vmax.f32 %v4773_v0, %v4774_v17 }
 0x359   :  { %v4762_v9 = vrot.slane %v4761_v2, 2  ;;  %v4781_v13 = vrot.slane %v4780_v3, 4  ;;  %v4788_v55 = vrot.slane %v4787_v6, 4  ;;  %v4794_v16 = vsel %vm4086_vm13, %v3854_v7, -inf }
 0x35a   :  { %10559 = vrot.lane.b32.xlu1 %v10558_v37, %s10813_s26  ;;  %v4802_v5 = vrot.slane %v4801_v43, 4  ;;  %v4808_v58 = vsel %vm4086_vm13, %v3855_v41, -inf  ;;  %v4769_v4 = vrot.slane %v4768_v21, 2  ;;  %v4776_v39 = vrot.slane %v4775_v56, 2 }
 0x35b   :  { %v4763_v30 = vmax.f32 %v4761_v2, %v4762_v9  ;;  %v4782_v25 = vmax.f32 %v4780_v3, %v4781_v13  ;;  %v4789_v62 = vmax.f32 %v4787_v6, %v4788_v55  ;;  %v4795_v52 = vrot.slane %v4794_v16, 4 }
 0x35c   :  { %v4803_v50 = vmax.f32 %v4801_v43, %v4802_v5  ;;  %v4809_v46 = vrot.slane %v4808_v58, 4  ;;  %v4770_v53 = vmax.f32 %v4768_v21, %v4769_v4  ;;  %v4777_v12 = vmax.f32 %v4775_v56, %v4776_v39 }
 0x35d   :  { %v4764_v49 = vrot.slane %v4763_v30, 1  ;;  %v4783_v54 = vrot.slane %v4782_v25, 2  ;;  %v4790_v33 = vrot.slane %v4789_v62, 2  ;;  %v4796_v15 = vmax.f32 %v4794_v16, %v4795_v52 }
 0x35e   :  { %10569 = vrot.lane.b32.xlu1 %v10568_v60, %s10815_s27  ;;  %v4804_v36 = vrot.slane %v4803_v50, 2  ;;  %v4810_v38 = vmax.f32 %v4808_v58, %v4809_v46  ;;  %v4771_v63 = vrot.slane %v4770_v53, 1  ;;  %v4778_v51 = vrot.slane %v4777_v12, 1 }
 0x35f   :  { %v4784_v40 = vmax.f32 %v4782_v25, %v4783_v54  ;;  %v4791_v47 = vmax.f32 %v4789_v62, %v4790_v33  ;;  %v4797_v20 = vrot.slane %v4796_v15, 2  ;;  %v4765_v60 = vmax.f32 %v4763_v30, %v4764_v49  ;;  %v10485_v30 = vpop.permute.xlu0 %10484 }
 0x360   :  { %v4805_v11 = vmax.f32 %v4803_v50, %v4804_v36  ;;  %v4811_v42 = vrot.slane %v4810_v38, 2  ;;  %v4772_v27 = vmax.f32 %v4770_v53, %v4771_v63  ;;  %v4779_v57 = vmax.f32 %v4777_v12, %v4778_v51 }
 0x361   :  { %v4785_v37 = vrot.slane %v4784_v40, 1  ;;  %v4792_v28 = vrot.slane %v4791_v47, 1  ;;  %v4798_v23 = vmax.f32 %v4796_v15, %v4797_v20  ;;  %vm17436_vm4 = vcmask 1046528  }
 0x362   :  { %v5189_v0 = vsel %vm5111_vm14, %v4772_v27, %v4765_v60  ;;  %v4806_v8 = vrot.slane %v4805_v11, 1  ;;  %v4812_v2 = vmax.f32 %v4810_v38, %v4811_v42  ;;  %v10486_v33 = vunpack.i.l.bf16 %v10485_v30 }
 0x363   :  { %v4786_v14 = vmax.f32 %v4784_v40, %v4785_v37  ;;  %v5190_v17 = vsel %vm5113_vm15, %v4779_v57, %v5189_v0  ;;  %v4799_v7 = vrot.slane %v4798_v23, 1  ;;  %v4793_v3 = vmax.f32 %v4791_v47, %v4792_v28  ;;  %v15550_v12 = vpop.permute.xlu0 %10494 }
 0x364   :  { %v4813_v41 = vrot.slane %v4812_v2, 1  ;;  %v4807_v9 = vmax.f32 %v4805_v11, %v4806_v8  ;;  %v10487_v42 = vunpack.i.h.bf16 %v10485_v30  ;;  %v10496_v27 = vunpack.i.l.bf16 %v15550_v12 }
 0x365   :  { %v4800_v6 = vmax.f32 %v4798_v23, %v4799_v7  ;;  %v5191_v43 = vsel %vm5115_vm3, %v4786_v14, %v5190_v17  ;;  %v10457_v37 = vunpack.i.h.bf16 %v15321_v59 }
 0x366   :  { %v4814_v21 = vmax.f32 %v4812_v2, %v4813_v41  ;;  %v5192_v56 = vsel %vm17433_vm5, %v4793_v3, %v5191_v43  ;;  %vm17437_vm5 = vcmask 1045504  }
 0x367   :  { %v5193_v13 = vsel %vm17434_vm6, %v4800_v6, %v5192_v56  ;;  %v15555_v38 = vpop.permute.xlu0 %10504  ;;  %vm17438_vm6 = vcmask 130048  }
 0x368   :  { %v5194_v55 = vsel %vm17435_vm1, %v4807_v9, %v5193_v13  ;;  %v5273_v16 = vsel %vm186_vm0, %v4814_v21, 0.0  ;;  %v5747_v60 = vsel %vm17438_vm6, %v14738_v34, %v10486_v33  ;;  %vm17439_vm1 = vmmov %vm17438_vm6  ;;  %v10497_v34 = vunpack.i.h.bf16 %v15550_v12 }
 0x369   :  { %v15531_v5 = vsel %vm186_vm0, 0.0, %v5194_v55  ;;  %v5339_v58 = vrot.slane %v5273_v16, 1  ;;  %v5381_v62 = vrot.slane %v5273_v16, 2  ;;  %v5762_v0 = vsel %vm2772_vm11, %v5747_v60, %v10457_v37  ;;  %vm17442_vm6 = vmmov %vm17439_vm1 }
 0x36a   :  { %v10573_v4 = vpack.i.bf16 %v15531_v5, %v15489_v61  ;;  %v5338_v39 = vrot.slane %v15531_v5, 1  ;;  %v5380_v25 = vrot.slane %v15531_v5, 2  ;;  %v5778_v7 = vsel %vm5771_vm2, %v5762_v0, %v10496_v27 }
 0x36b   :  { %v15565_v8 = vpop.permute.xlu0 %10514  ;;  %v10507_v3 = vunpack.i.h.bf16 %v15555_v38  ;;  %v10506_v9 = vunpack.i.l.bf16 %v15555_v38 }
 0x36c   :  { %10574 = vrot.lane.b32.xlu0 %v10573_v4, %s10816_s0  ;;  %v15539_v52 = vsel %vm17436_vm4, %v5338_v39, %v5339_v58  ;;  %v15542_v50 = vsel %vm17437_vm5, %v5380_v25, %v5381_v62  ;;  %v10517_v21 = vunpack.i.h.bf16 %v15565_v8  ;;  %v10516_v62 = vunpack.i.l.bf16 %v15565_v8 }
 0x36d   :  { %v10578_v46 = vpack.i.bf16 %v15539_v52, %v15496_v29  ;;  %v10588_v49 = vpack.i.bf16 %v15542_v50, %v15501_v44  ;;  %v5867_v53 = vpack.c.bf16 %v15542_v50, %v15501_v44  ;;  %vm17440_vm4 = vcmask 1045509  }
 0x36e   :  { %vm17441_vm5 = vcmask 1046534  }
 0x36f   :  { %10579 = vrot.lane.b32.xlu1 %v10578_v46, %s10817_s24 }
 0x370   :  { %v8954_v54 = vpop.f32.mrb[52].mxu0 }
 0x371   :  { %v3248_v15 = vadd.f32 %v15255_v10, %v8954_v54  ;;  %v3239_v36 = vpop.f32.mrb[53].mxu0 }
 0x372   :  { %v3240_v29 = vadd.f32 %v15255_v10, %v3239_v36  ;;  %v8955_v63 = vpop.f32.mrb[54].mxu0 }
 0x373   :  { %10589 = vrot.lane.b32.xlu1 %v10588_v49, %s10811_s28  ;;  %v3340_v51 = vmax.f32 %v3248_v15, 0.0  ;;  %v3251_v40 = vadd.f32 %v15255_v10, %v8955_v63  ;;  %v3242_v47 = vpop.f32.mrb[55].mxu0 }
 0x374   :  { %v3338_v20 = vmax.f32 %v3240_v29, 0.0  ;;  %v3243_v11 = vadd.f32 %v15255_v10, %v3242_v47  ;;  %v5748_v10 = vsel %vm17439_vm1, %v14926_v32, %v10487_v42 }
 0x375   :  { %v3341_v57 = vmax.f32 %v3251_v40, 0.0 }
 0x376   :  { %v3376_v28 = vmax.f32 %v3338_v20, %v3340_v51  ;;  %v3339_v23 = vmax.f32 %v3243_v11, 0.0 }
 0x378   :  { %v3856_v2 = vcombine.high %v3376_v28, %v3376_v28  ;;  %v3863_v14 = vrot.slane %v3376_v28, %v17339_v45  ;;  %v3377_v17 = vmax.f32 %v3339_v23, %v3341_v57 }
 0x37a   :  { %v3870_v59 = vrot.slane %v3856_v2, %v17339_v45  ;;  %v3871_v41 = vcombine.high %v3863_v14, %v3863_v14  ;;  %v4815_v6 = vsel %vm4086_vm13, %v3863_v14, -inf  ;;  %v3873_v43 = vcombine.high %v3377_v17, %v3377_v17 }
 0x37b   :  { %v4816_v56 = vrot.slane %v4815_v6, 4  ;;  %v3880_v13 = vrot.slane %v3377_v17, %v17339_v45 }
 0x37c   :  { %v3872_v32 = vcombine.high %v3870_v59, %v3870_v59  ;;  %v4822_v55 = vsel %vm4086_vm13, %v3871_v41, -inf  ;;  %v4829_v16 = vsel %vm4086_vm13, %v3870_v59, -inf  ;;  %v15581_v58 = vrot.slane %v3873_v43, %v17339_v45 }
 0x37d   :  { %v4817_v30 = vmax.f32 %v4815_v6, %v4816_v56  ;;  %v4823_v4 = vrot.slane %v4822_v55, 4  ;;  %v4830_v39 = vrot.slane %v4829_v16, 4  ;;  %v3888_v25 = vcombine.high %v3880_v13, %v3880_v13 }
 0x37e   :  { %v4836_v49 = vsel %vm4086_vm13, %v3872_v32, -inf  ;;  %v3889_v12 = vcombine.high %v15581_v58, %v15581_v58  ;;  %v4843_v54 = vsel %vm4086_vm13, %v3880_v13, -inf  ;;  %v4857_v38 = vsel %vm4086_vm13, %v15581_v58, -inf }
 0x37f   :  { %v4818_v15 = vrot.slane %v4817_v30, 2  ;;  %v4824_v36 = vmax.f32 %v4822_v55, %v4823_v4  ;;  %v4831_v29 = vmax.f32 %v4829_v16, %v4830_v39  ;;  %v4837_v63 = vrot.slane %v4836_v49, 4 }
 0x380   :  { %v4844_v51 = vrot.slane %v4843_v54, 4  ;;  %v4850_v40 = vsel %vm4086_vm13, %v3888_v25, -inf }
 0x381   :  { %v4819_v20 = vmax.f32 %v4817_v30, %v4818_v15  ;;  %v4825_v11 = vrot.slane %v4824_v36, 2  ;;  %v4851_v42 = vrot.slane %v4850_v40, 4  ;;  %v4832_v57 = vrot.slane %v4831_v29, 2 }
 0x382   :  { %v15584_v46 = vpop.permute.xlu1 %10489  ;;  %v4838_v37 = vmax.f32 %v4836_v49, %v4837_v63  ;;  %v4845_v28 = vmax.f32 %v4843_v54, %v4844_v51  ;;  %v4858_v63 = vrot.slane %v4857_v38, 4 }
 0x383   :  { %v10491_v33 = vunpack.i.l.bf16 %v15584_v46  ;;  %v4820_v2 = vrot.slane %v4819_v20, 1  ;;  %v4826_v14 = vmax.f32 %v4824_v36, %v4825_v11  ;;  %v4833_v17 = vmax.f32 %v4831_v29, %v4832_v57 }
 0x384   :  { %v4839_v59 = vrot.slane %v4838_v37, 2  ;;  %v4846_v41 = vrot.slane %v4845_v28, 2  ;;  %v4852_v6 = vmax.f32 %v4850_v40, %v4851_v42  ;;  %v4859_v42 = vmax.f32 %v4857_v38, %v4858_v63 }
 0x385   :  { %v5763_v47 = vsel %vm2772_vm11, %v5748_v10, %v10491_v33  ;;  %v4821_v13 = vmax.f32 %v4819_v20, %v4820_v2  ;;  %v4827_v32 = vrot.slane %v4826_v14, 1  ;;  %v4834_v30 = vrot.slane %v4833_v17, 1 }
 0x386   :  { %v10500_v60 = vpop.permute.xlu1 %10499  ;;  %v5779_v27 = vsel %vm5771_vm2, %v5763_v47, %v10497_v34  ;;  %v8958_v43 = vpop.f32.mrb[56].mxu0  ;;  %v4840_v4 = vmax.f32 %v4838_v37, %v4839_v59  ;;  %v4853_v29 = vrot.slane %v4852_v6, 2 }
 0x387   :  { %v10502_v23 = vunpack.i.h.bf16 %v10500_v60  ;;  %v10501_v0 = vunpack.i.l.bf16 %v10500_v60  ;;  %v3255_v55 = vpop.f32.mrb[57].mxu0  ;;  %v4828_v54 = vmax.f32 %v4826_v14, %v4827_v32  ;;  %v4835_v15 = vmax.f32 %v4833_v17, %v4834_v30 }
 0x388   :  { %v8959_v39 = vpop.f32.mrb[58].mxu0  ;;  %v4841_v36 = vrot.slane %v4840_v4, 1  ;;  %v4854_v11 = vmax.f32 %v4852_v6, %v4853_v29 }
 0x389   :  { %v5795_v10 = vsel %vm5788_vm9, %v5778_v7, %v10501_v0  ;;  %v5796_v56 = vsel %vm5788_vm9, %v5779_v27, %v10502_v23  ;;  %v4847_v7 = vmax.f32 %v4845_v28, %v4846_v41  ;;  %v3258_v33 = vpop.f32.mrb[59].mxu0  ;;  %v4864_v27 = vsel %vm4086_vm13, %v3889_v12, -inf }
 0x38a   :  { %v15598_v34 = vpop.permute.xlu1 %10509  ;;  %v5812_v16 = vsel %vm5805_vm12, %v5795_v10, %v10506_v9  ;;  %v5813_v58 = vsel %vm5805_vm12, %v5796_v56, %v10507_v3  ;;  %v5195_v9 = vsel %vm5111_vm14, %v4828_v54, %v4821_v13  ;;  %v4842_v47 = vmax.f32 %v4840_v4, %v4841_v36 }
 0x38b   :  { %v10512_v25 = vunpack.i.h.bf16 %v15598_v34  ;;  %v10511_v49 = vunpack.i.l.bf16 %v15598_v34  ;;  %v4848_v40 = vrot.slane %v4847_v7, 1  ;;  %v5196_v20 = vsel %vm5113_vm15, %v4835_v15, %v5195_v9  ;;  %v10723_v34 = vld [vmem:[%s16722_s5 + $0x8] sm:$0xff]  }
 0x38c   :  { %v4855_v28 = vrot.slane %v4854_v11, 1  ;;  %v4860_v23 = vrot.slane %v4859_v42, 2  ;;  %v4865_v0 = vrot.slane %v4864_v27, 4  ;;  %v5197_v2 = vsel %vm5115_vm3, %v4842_v47, %v5196_v20 }
 0x38d   :  { %v5829_v51 = vsel %vm16916_vm7, %v5812_v16, %v10511_v49  ;;  %v5830_v3 = vsel %vm16916_vm7, %v5813_v58, %v10512_v25  ;;  %v4849_v60 = vmax.f32 %v4847_v7, %v4848_v40  ;;  %v10525_v10 = vpop.permute.xlu0 %10524  ;;  %v10492_v4 = vunpack.i.h.bf16 %v15584_v46 }
 0x38e   :  { %v5846_v57 = vsel %vm16917_vm10, %v5829_v51, %v10516_v62  ;;  %v5847_v37 = vsel %vm16917_vm10, %v5830_v3, %v10517_v21  ;;  %v4856_v59 = vmax.f32 %v4854_v11, %v4855_v28  ;;  %v4861_v41 = vmax.f32 %v4859_v42, %v4860_v23  ;;  %v15622_v62 = vld [vmem:[%s16719_s2] ss:$0 sm:$0xff] }
 0x38f   :  { %v5198_v14 = vsel %vm17440_vm4, %v4849_v60, %v5197_v2  ;;  %v5862_v17 = vpack.c.bf16 %v5847_v37, %v5846_v57  ;;  %v4866_v38 = vmax.f32 %v4864_v27, %v4865_v0  ;;  %v3264_v12 = vadd.f32 %v15622_v62, %v8958_v43 }
 0x390   :  { %v3256_v13 = vadd.f32 %v15622_v62, %v3255_v55  ;;  %v4862_v32 = vrot.slane %v4861_v41, 1  ;;  %v5199_v58 = vsel %vm17441_vm5, %v4856_v59, %v5198_v14  ;;  %v3267_v54 = vadd.f32 %v15622_v62, %v8959_v39 }
 0x391   :  { %v15617_v6 = vpop.permute.xlu1 %10519  ;;  %6032 = vmatmul.mubr.bf16.gmra.mrb[12].mxu1 %v5862_v17  ;;  %v4867_v16 = vrot.slane %v4866_v38, 2  ;;  %v3344_v30 = vmax.f32 %v3264_v12, 0.0  ;;  %v10526_v15 = vunpack.i.l.bf16 %v10525_v10  ;;  %v3259_v36 = vadd.f32 %v15622_v62, %v3258_v33 }
 0x392   :  { %v10521_v56 = vunpack.i.l.bf16 %v15617_v6  ;;  %8631 = vmatprep.mubr.msk.bf16.mxu1 %vm17442_vm6, %v5865_v35  ;;  %v3342_v49 = vmax.f32 %v3256_v13, 0.0  ;;  %v4863_v7 = vmax.f32 %v4861_v41, %v4862_v32  ;;  %v3345_v48 = vmax.f32 %v3267_v54, 0.0 }
 0x393   :  { %v4868_v55 = vmax.f32 %v4866_v38, %v4867_v16  ;;  %vm17443_vm4 = vcmask 1047559   ;;  %v10527_v51 = vunpack.i.h.bf16 %v10525_v10  ;;  %v3343_v46 = vmax.f32 %v3259_v36, 0.0 }
 0x394   :  { %v5749_v43 = vsel %vm17439_vm1, %v15277_v1, %v10521_v56  ;;  %v3378_v63 = vmax.f32 %v3342_v49, %v3344_v30  ;;  %v5200_v35 = vsel %vm17443_vm4, %v4863_v7, %v5199_v58  ;;  %v5780_v40 = vsel %vm5771_vm2, %v15094_v26, %v10526_v15 }
 0x395   :  { %v5764_v29 = vsel %vm2772_vm11, %v5749_v43, %v10492_v4  ;;  %v4869_v22 = vrot.slane %v4868_v55, 1  ;;  %v15640_v3 = vsel %vm186_vm0, 0.0, %v5200_v35  ;;  %v3379_v47 = vmax.f32 %v3343_v46, %v3345_v48  ;;  %v10530_v23 = vpop.permute.xlu1 %10529 }
 0x396   :  { %v3890_v1 = vcombine.high %v3378_v63, %v3378_v63  ;;  %v3897_v39 = vrot.slane %v3378_v63, %v17339_v45  ;;  %v5781_v33 = vsel %vm5771_vm2, %v5764_v29, %v10527_v51  ;;  %v5341_v60 = vrot.slane %v15640_v3, 1 }
 0x397   :  { %v4870_v9 = vmax.f32 %v4868_v55, %v4869_v22  ;;  %v3907_v57 = vcombine.high %v3379_v47, %v3379_v47  ;;  %v3914_v37 = vrot.slane %v3379_v47, %v17339_v45  ;;  %v10593_v28 = vpack.i.bf16 %v15640_v3, %v15531_v5 }
 0x398   :  { %v3904_v20 = vrot.slane %v3890_v1, %v17339_v45  ;;  %v3905_v11 = vcombine.high %v3897_v39, %v3897_v39  ;;  %v4871_v42 = vsel %vm4086_vm13, %v3897_v39, -inf  ;;  %v10532_v17 = vunpack.i.h.bf16 %v10530_v23 }
 0x399   :  { %v4872_v27 = vrot.slane %v4871_v42, 4  ;;  %v15655_v14 = vsel %vm186_vm0, %v4870_v9, 0.0  ;;  %v10531_v59 = vunpack.i.l.bf16 %v10530_v23  ;;  %v3921_v56 = vrot.slane %v3907_v57, %v17339_v45 }
 0x39a   :  { %v3906_v0 = vcombine.high %v3904_v20, %v3904_v20  ;;  %v4878_v26 = vsel %vm4086_vm13, %v3905_v11, -inf  ;;  %v4885_v2 = vsel %vm4086_vm13, %v3904_v20, -inf  ;;  %v3922_v13 = vcombine.high %v3914_v37, %v3914_v37 }
 0x39b   :  { %v4873_v41 = vmax.f32 %v4871_v42, %v4872_v27  ;;  %v4879_v38 = vrot.slane %v4878_v26, 4  ;;  %v4886_v12 = vrot.slane %v4885_v2, 4  ;;  %v5342_v58 = vrot.slane %v15655_v14, 1 }
 0x39c   :  { %v4892_v10 = vsel %vm4086_vm13, %v3906_v0, -inf  ;;  %v5383_v30 = vrot.slane %v15640_v3, 2  ;;  %v15662_v4 = vsel %vm5788_vm9, %v5780_v40, %v10531_v59  ;;  %v15665_v43 = vsel %vm5788_vm9, %v5781_v33, %v10532_v17 }
 0x39d   :  { %v4874_v32 = vrot.slane %v4873_v41, 2  ;;  %v4880_v16 = vmax.f32 %v4878_v26, %v4879_v38  ;;  %v4887_v49 = vmax.f32 %v4885_v2, %v4886_v12  ;;  %v4893_v54 = vrot.slane %v4892_v10, 4 }
 0x39e   :  { %v3923_v15 = vcombine.high %v3921_v56, %v3921_v56  ;;  %v4899_v36 = vsel %vm4086_vm13, %v3914_v37, -inf  ;;  %v4906_v22 = vsel %vm4086_vm13, %v3922_v13, -inf  ;;  %v4913_v1 = vsel %vm4086_vm13, %v3921_v56, -inf }
 0x39f   :  { %v4875_v7 = vmax.f32 %v4873_v41, %v4874_v32  ;;  %v4881_v55 = vrot.slane %v4880_v16, 2  ;;  %v4888_v29 = vrot.slane %v4887_v49, 2  ;;  %v4894_v63 = vmax.f32 %v4892_v10, %v4893_v54 }
 0x3a0   :  { %v4900_v48 = vrot.slane %v4899_v36, 4  ;;  %v4907_v46 = vrot.slane %v4906_v22, 4  ;;  %v4914_v33 = vrot.slane %v4913_v1, 4  ;;  %v4920_v42 = vsel %vm4086_vm13, %v3923_v15, -inf }
 0x3a1   :  { %v4876_v35 = vrot.slane %v4875_v7, 1  ;;  %v4882_v51 = vmax.f32 %v4880_v16, %v4881_v55  ;;  %v4889_v39 = vmax.f32 %v4887_v49, %v4888_v29  ;;  %v4895_v9 = vrot.slane %v4894_v63, 2  ;;  %v10535_v59 = vpop.permute.xlu0 %10534 }
 0x3a2   :  { %v4901_v40 = vmax.f32 %v4899_v36, %v4900_v48  ;;  %v4908_v11 = vmax.f32 %v4906_v22, %v4907_v46  ;;  %v4915_v23 = vmax.f32 %v4913_v1, %v4914_v33  ;;  %v4921_v2 = vrot.slane %v4920_v42, 4 }
 0x3a3   :  { %v4877_v47 = vmax.f32 %v4875_v7, %v4876_v35  ;;  %v4883_v20 = vrot.slane %v4882_v51, 1  ;;  %v4890_v27 = vrot.slane %v4889_v39, 1  ;;  %v4896_v57 = vmax.f32 %v4894_v63, %v4895_v9 }
 0x3a4   :  { %v4902_v37 = vrot.slane %v4901_v40, 2  ;;  %v4909_v26 = vrot.slane %v4908_v11, 2  ;;  %vm17444_vm5 = vcmask 1046528   ;;  %v4916_v10 = vrot.slane %v4915_v23, 2 }
 0x3a5   :  { %v4884_v0 = vmax.f32 %v4882_v51, %v4883_v20  ;;  %v15672_v17 = vsel %vm17444_vm5, %v5341_v60, %v5342_v58  ;;  %v4891_v41 = vmax.f32 %v4889_v39, %v4890_v27  ;;  %v4897_v38 = vrot.slane %v4896_v57, 1 }
 0x3a6   :  { %v4903_v12 = vmax.f32 %v4901_v40, %v4902_v37  ;;  %v4910_v13 = vmax.f32 %v4908_v11, %v4909_v26  ;;  %v4922_v32 = vmax.f32 %v4920_v42, %v4921_v2  ;;  %v10583_v16 = vpack.i.bf16 %v15672_v17, %v15539_v52 }
 0x3a7   :  { %v5201_v56 = vsel %vm5111_vm14, %v4884_v0, %v4877_v47  ;;  %v4898_v54 = vmax.f32 %v4896_v57, %v4897_v38  ;;  %v4917_v15 = vmax.f32 %v4915_v23, %v4916_v10  ;;  %v5384_v36 = vrot.slane %v15655_v14, 2 }
 0x3a8   :  { %v10540_v49 = vpop.permute.xlu1 %10539  ;;  %v5202_v7 = vsel %vm5113_vm15, %v4891_v41, %v5201_v56  ;;  %v4904_v55 = vrot.slane %v4903_v12, 1  ;;  %v4911_v60 = vrot.slane %v4910_v13, 1  ;;  %v4923_v58 = vrot.slane %v4922_v32, 2  ;;  %10584 = vrot.lane.b32.xlu0 %v10583_v16, %s10807_s20  ;;  %10599 = vrot.lane.b32.xlu1 %v10583_v16, %s10814_s19 }
 0x3a9   :  { %v4918_v63 = vrot.slane %v4917_v15, 1  ;;  %v5203_v48 = vsel %vm5115_vm3, %v4898_v54, %v5202_v7  ;;  %v10542_v22 = vunpack.i.h.bf16 %v10540_v49  ;;  %v10537_v51 = vunpack.i.h.bf16 %v10535_v59 }
 0x3aa   :  { %v4905_v29 = vmax.f32 %v4903_v12, %v4904_v55  ;;  %v4924_v52 = vmax.f32 %v4922_v32, %v4923_v58  ;;  %vm17445_vm6 = vcmask 1045504   ;;  %v10541_v1 = vunpack.i.l.bf16 %v10540_v49 }
 0x3ab   :  { %v15683_v46 = vsel %vm17445_vm6, %v5383_v30, %v5384_v36  ;;  %v10536_v39 = vunpack.i.l.bf16 %v10535_v59  ;;  %v4912_v9 = vmax.f32 %v4910_v13, %v4911_v60  ;;  %vm17446_vm1 = vcmask 1045509  }
 0x3ac   :  { %v10545_v35 = vpop.permute.xlu0 %10544  ;;  %v5204_v40 = vsel %vm17446_vm1, %v4905_v29, %v5203_v48  ;;  %v10603_v14 = vpack.i.bf16 %v15683_v46, %v15542_v50  ;;  %v4919_v33 = vmax.f32 %v4917_v15, %v4918_v63  ;;  %v4925_v47 = vrot.slane %v4924_v52, 1  ;;  %10594 = vrot.lane.b32.xlu0 %v10593_v28, %s10813_s26 }
 0x3ad   :  { %v5815_v20 = vsel %vm5805_vm12, %v15665_v43, %v10537_v51  ;;  %v10547_v30 = vunpack.i.h.bf16 %v10545_v35  ;;  %v5814_v11 = vsel %vm5805_vm12, %v15662_v4, %v10536_v39  ;;  %v10546_v27 = vunpack.i.l.bf16 %v10545_v35 }
 0x3ae   :  { %v5832_v42 = vsel %vm16916_vm7, %v5815_v20, %v10542_v22  ;;  %vm17447_vm4 = vcmask 1046534   ;;  %v4926_v37 = vmax.f32 %v4924_v52, %v4925_v47  ;;  %v5831_v23 = vsel %vm16916_vm7, %v5814_v11, %v10541_v1 }
 0x3af   :  { %v5205_v57 = vsel %vm17447_vm4, %v4912_v9, %v5204_v40  ;;  %v5849_v0 = vsel %vm16917_vm10, %v5832_v42, %v10547_v30  ;;  %vm17448_vm5 = vcmask 1047559   ;;  %v5848_v28 = vsel %vm16917_vm10, %v5831_v23, %v10546_v27 }
 0x3b0   :  { %v5206_v26 = vsel %vm17448_vm5, %v4919_v33, %v5205_v57  ;;  %10604 = vrot.lane.b32.xlu0 %v10603_v14, %s10815_s27  ;;  %v5864_v4 = vpack.c.bf16 %v5849_v0, %v5848_v28  ;;  %v5275_v59 = vsel %vm186_vm0, %v4926_v37, 0.0  ;;  %vm17449_vm6 = vcmask 130048  }
 0x3b1   :  { %v15703_v43 = vsel %vm186_vm0, 0.0, %v5206_v26  ;;  %v5345_v38 = vrot.slane %v5275_v59, 1  ;;  %v5387_v10 = vrot.slane %v5275_v59, 2  ;;  %vm17450_vm1 = vcmask 1046528   ;;  %vm17452_vm5 = vmmov %vm17449_vm6 }
 0x3b2   :  { %v10608_v2 = vpack.i.bf16 %v15703_v43, %v15640_v3  ;;  %v5344_v41 = vrot.slane %v15703_v43, 1  ;;  %v5386_v12 = vrot.slane %v15703_v43, 2  ;;  %6040 = vmatmul.mubr.bf16.gmra.mrb[16].mxu1 %v5864_v4  ;;  %vm17451_vm4 = vcmask 1045504  }
 0x3b3   :  { %8632 = vmatprep.mubr.msk.bf16.mxu1 %vm17449_vm6, %v5867_v53  ;;  %v10522_v48 = vunpack.i.h.bf16 %v15617_v6  ;;  %vm17453_vm6 = vcmask 1045509  }
 0x3b4   :  { %10609 = vrot.lane.b32.xlu1 %v10608_v2, %s10816_s0  ;;  %v15717_v56 = vsel %vm17450_vm1, %v5344_v41, %v5345_v38  ;;  %v15720_v13 = vsel %vm17451_vm4, %v5386_v12, %v5387_v10  ;;  %vm17454_vm1 = vcmask 1046534   ;;  %vm17455_vm4 = vcmask 1047559  }
 0x3b5   :  { %v10613_v32 = vpack.i.bf16 %v15717_v56, %v15672_v17  ;;  %v10618_v16 = vpack.i.bf16 %v15720_v13, %v15683_v46  ;;  %v5869_v49 = vpack.c.bf16 %v15720_v13, %v15683_v46  ;;  %v15742_v40 = vsel %vm17452_vm5, %v15365_v19, %v10522_v48 }
 0x3b7   :  { %10614 = vrot.lane.b32.xlu0 %v10613_v32, %s10817_s24 }
 0x3b8   :  { %5448 = vrot.lane.b32.xlu1 %v15717_v56, %s10807_s20 }
 0x3ba   :  { %v8962_v44 = vpop.f32.mrb[60].mxu0 }
 0x3bb   :  { %v3280_v50 = vadd.f32 %v15622_v62, %v8962_v44  ;;  %v3271_v53 = vpop.f32.mrb[61].mxu0  ;;  %10619 = vrot.lane.b32.xlu0 %v10618_v16, %s10811_s28 }
 0x3bc   :  { %v3272_v54 = vadd.f32 %v15622_v62, %v3271_v53  ;;  %v8963_v7 = vpop.f32.mrb[62].mxu0 }
 0x3bd   :  { %v3348_v55 = vmax.f32 %v3280_v50, 0.0  ;;  %v3283_v17 = vadd.f32 %v15622_v62, %v8963_v7  ;;  %v3274_v15 = vpop.f32.mrb[63].mxu0 }
 0x3be   :  { %v3346_v60 = vmax.f32 %v3272_v54, 0.0  ;;  %v3275_v58 = vadd.f32 %v15622_v62, %v3274_v15 }
 0x3bf   :  { %v3349_v36 = vmax.f32 %v3283_v17, 0.0 }
 0x3c0   :  { %v3380_v29 = vmax.f32 %v3346_v60, %v3348_v55  ;;  %v3347_v63 = vmax.f32 %v3275_v58, 0.0 }
 0x3c2   :  { %v3924_v22 = vcombine.high %v3380_v29, %v3380_v29  ;;  %v3931_v35 = vrot.slane %v3380_v29, %v17339_v45  ;;  %v3381_v51 = vmax.f32 %v3347_v63, %v3349_v36 }
 0x3c4   :  { %v3938_v52 = vrot.slane %v3924_v22, %v17339_v45  ;;  %v3939_v1 = vcombine.high %v3931_v35, %v3931_v35  ;;  %v4927_v39 = vsel %vm4086_vm13, %v3931_v35, -inf  ;;  %v3941_v9 = vcombine.high %v3381_v51, %v3381_v51 }
 0x3c5   :  { %v4928_v62 = vrot.slane %v4927_v39, 4  ;;  %v3948_v14 = vrot.slane %v3381_v51, %v17339_v45  ;;  %v15756_v51 = vld [vmem:[%s16721_s4] ss:$0 sm:$0xff] }
 0x3c6   :  { %v3940_v33 = vcombine.high %v3938_v52, %v3938_v52  ;;  %v4934_v6 = vsel %vm4086_vm13, %v3939_v1, -inf  ;;  %v4941_v47 = vsel %vm4086_vm13, %v3938_v52, -inf  ;;  %v3955_v20 = vrot.slane %v3941_v9, %v17339_v45 }
 0x3c7   :  { %v4929_v30 = vmax.f32 %v4927_v39, %v4928_v62  ;;  %v4935_v11 = vrot.slane %v4934_v6, 4  ;;  %v4942_v42 = vrot.slane %v4941_v47, 4  ;;  %v3956_v27 = vcombine.high %v3948_v14, %v3948_v14  ;;  %v15758_v62 = vpop.permute.xlu0 %10554 }
 0x3c8   :  { %v6009_v57 = vpop.f32.mrb[0].mxu1  ;;  %v4948_v37 = vsel %vm4086_vm13, %v3940_v33, -inf  ;;  %v3957_v23 = vcombine.high %v3955_v20, %v3955_v20  ;;  %v4955_v19 = vsel %vm4086_vm13, %v3948_v14, -inf  ;;  %v4969_v0 = vsel %vm4086_vm13, %v3955_v20, -inf }
 0x3c9   :  { %v6011_v26 = vpop.f32.mrb[1].mxu1  ;;  %v4930_v28 = vrot.slane %v4929_v30, 2  ;;  %v4936_v4 = vmax.f32 %v4934_v6, %v4935_v11  ;;  %v4943_v2 = vmax.f32 %v4941_v47, %v4942_v42  ;;  %v4949_v59 = vrot.slane %v4948_v37, 4 }
 0x3ca   :  { %v6012_v41 = vpop.f32.mrb[2].mxu1  ;;  %v4956_v38 = vrot.slane %v4955_v19, 4  ;;  %v4962_v12 = vsel %vm4086_vm13, %v3956_v27, -inf  ;;  %v4970_v10 = vrot.slane %v4969_v0, 4  ;;  %v4976_v32 = vsel %vm4086_vm13, %v3957_v23, -inf }
 0x3cb   :  { %v6014_v16 = vpop.f32.mrb[3].mxu1  ;;  %v4931_v44 = vmax.f32 %v4929_v30, %v4930_v28  ;;  %v4937_v50 = vrot.slane %v4936_v4, 2  ;;  %v4944_v53 = vrot.slane %v4943_v2, 2  ;;  %v4950_v54 = vmax.f32 %v4948_v37, %v4949_v59 }
 0x3cc   :  { %v4957_v7 = vmax.f32 %v4955_v19, %v4956_v38  ;;  %v4963_v55 = vrot.slane %v4962_v12, 4  ;;  %v4971_v17 = vmax.f32 %v4969_v0, %v4970_v10  ;;  %v4977_v15 = vrot.slane %v4976_v32, 4  ;;  %v15761_v19 = vpop.permute.xlu1 %10549 }
 0x3cd   :  { %v4932_v60 = vrot.slane %v4931_v44, 1  ;;  %v4938_v58 = vmax.f32 %v4936_v4, %v4937_v50  ;;  %v4945_v36 = vmax.f32 %v4943_v2, %v4944_v53  ;;  %v4951_v29 = vrot.slane %v4950_v54, 2  ;;  %v15770_v50 = vpop.permute.xlu0 %10564 }
 0x3ce   :  { %v4958_v63 = vrot.slane %v4957_v7, 2  ;;  %v4964_v48 = vmax.f32 %v4962_v12, %v4963_v55  ;;  %v4972_v22 = vrot.slane %v4971_v17, 2  ;;  %v4978_v35 = vmax.f32 %v4976_v32, %v4977_v15 }
 0x3cf   :  { %v4933_v52 = vmax.f32 %v4931_v44, %v4932_v60  ;;  %v4939_v1 = vrot.slane %v4938_v58, 1  ;;  %v4946_v39 = vrot.slane %v4945_v36, 1  ;;  %v4952_v9 = vmax.f32 %v4950_v54, %v4951_v29 }
 0x3d0   :  { %v6017_v14 = vpop.f32.mrb[4].mxu1  ;;  %v4959_v33 = vmax.f32 %v4957_v7, %v4958_v63  ;;  %v4965_v6 = vrot.slane %v4964_v48, 2  ;;  %v4973_v47 = vmax.f32 %v4971_v17, %v4972_v22  ;;  %v4979_v20 = vrot.slane %v4978_v35, 2 }
 0x3d1   :  { %vm6272_vm13 = vcmask 254976   ;;  %v6019_v30 = vpop.f32.mrb[5].mxu1  ;;  %v4940_v11 = vmax.f32 %v4938_v58, %v4939_v1  ;;  %v4947_v42 = vmax.f32 %v4945_v36, %v4946_v39  ;;  %v4953_v27 = vrot.slane %v4952_v9, 1 }
 0x3d2   :  { %v6010_v37 = vadd.f32 %v15756_v51, %v6009_v57  ;;  %v6020_v23 = vpop.f32.mrb[6].mxu1  ;;  %v10556_v0 = vunpack.i.l.bf16 %v15758_v62  ;;  %v4960_v26 = vrot.slane %v4959_v33, 1  ;;  %v4966_v28 = vmax.f32 %v4964_v48, %v4965_v6  ;;  %v15780_v48 = vpop.permute.xlu1 %10559 }
 0x3d3   :  { %v4974_v4 = vrot.slane %v4973_v47, 1  ;;  %v6022_v2 = vpop.f32.mrb[7].mxu1  ;;  %v4954_v59 = vmax.f32 %v4952_v9, %v4953_v27  ;;  %v5207_v38 = vsel %vm5111_vm14, %v4940_v11, %v4933_v52  ;;  %v15765_v12 = vmax.f32 %v4978_v35, %v4979_v20 }
 0x3d4   :  { %v6013_v10 = vadd.f32 %v15756_v51, %v6012_v41  ;;  %v5208_v32 = vsel %vm5113_vm15, %v4947_v42, %v5207_v38  ;;  %v10557_v57 = vunpack.i.h.bf16 %v15758_v62  ;;  %v4961_v16 = vmax.f32 %v4959_v33, %v4960_v26 }
 0x3d5   :  { %v4967_v44 = vrot.slane %v4966_v28, 1  ;;  %v5209_v53 = vsel %vm5115_vm3, %v4954_v59, %v5208_v32  ;;  %v6072_v54 = vmax.f32 %v6010_v37, 0.0  ;;  %v6018_v55 = vadd.f32 %v15756_v51, %v6017_v14 }
 0x3d6   :  { %v6073_v7 = vmax.f32 %v6013_v10, 0.0  ;;  %v5765_v17 = vsel %vm2772_vm11, %v15742_v40, %v10556_v0  ;;  %v5210_v41 = vsel %vm17453_vm6, %v4961_v16, %v5209_v53  ;;  %v6021_v60 = vadd.f32 %v15756_v51, %v6020_v23 }
 0x3d7   :  { %v4968_v15 = vmax.f32 %v4966_v28, %v4967_v44  ;;  %v4975_v58 = vmax.f32 %v4973_v47, %v4974_v4  ;;  %v4981_v36 = vrot.slane %v15765_v12, 1  ;;  %v10567_v63 = vunpack.i.h.bf16 %v15770_v50 }
 0x3d8   :  { %v6088_v29 = vmax.f32 %v6072_v54, %v6073_v7  ;;  %v6074_v22 = vmax.f32 %v6018_v55, 0.0  ;;  %v6075_v35 = vmax.f32 %v6021_v60, 0.0  ;;  %v10551_v52 = vunpack.i.l.bf16 %v15761_v19 }
 0x3d9   :  { %v5211_v1 = vsel %vm17454_vm1, %v4968_v15, %v5210_v41  ;;  %v10566_v9 = vunpack.i.l.bf16 %v15770_v50  ;;  %v10561_v47 = vunpack.i.l.bf16 %v15780_v48  ;;  %v10562_v0 = vunpack.i.h.bf16 %v15780_v48 }
 0x3da   :  { %v6104_v40 = vcombine.high %v6088_v29, %v6088_v29  ;;  %v6111_v39 = vrot.slane %v6088_v29, %v17339_v45  ;;  %v5212_v62 = vsel %vm17455_vm4, %v4975_v58, %v5211_v1  ;;  %v6089_v14 = vmax.f32 %v6074_v22, %v6075_v35 }
 0x3db   :  { %v5751_v33 = vsel %vm17452_vm5, %v15438_v24, %v10551_v52  ;;  %v15790_v6 = vsel %vm186_vm0, 0.0, %v5212_v62  ;;  %v15807_v53 = vsel %vm5771_vm2, %v5765_v17, %v10561_v47  ;;  %vm6569_vm6 = vcmask 1044480  }
 0x3dc   :  { %v6118_v20 = vrot.slane %v6104_v40, %v17339_v45  ;;  %v6119_v30 = vcombine.high %v6111_v39, %v6111_v39  ;;  %v6273_v11 = vsel %vm6272_vm13, %v6111_v39, -inf  ;;  %v10623_v42 = vpack.i.bf16 %v15790_v6, %v15703_v43 }
 0x3dd   :  { %v6274_v27 = vrot.slane %v6273_v11, 4  ;;  %v6121_v37 = vcombine.high %v6089_v14, %v6089_v14  ;;  %v6128_v23 = vrot.slane %v6089_v14, %v17339_v45  ;;  %v5766_v4 = vsel %vm2772_vm11, %v5751_v33, %v10557_v57 }
 0x3de   :  { %v6120_v24 = vcombine.high %v6118_v20, %v6118_v20  ;;  %v6280_v26 = vsel %vm6272_vm13, %v6119_v30, -inf  ;;  %v6287_v28 = vsel %vm6272_vm13, %v6118_v20, -inf  ;;  %10624 = vrot.lane.b32.xlu1 %v10623_v42, %s10813_s26  ;;  %vm6622_vm1 = vcmask 1045508  }
 0x3df   :  { %v6275_v2 = vmax.f32 %v6273_v11, %v6274_v27  ;;  %v6281_v59 = vrot.slane %v6280_v26, 4  ;;  %v6288_v38 = vrot.slane %v6287_v28, 4  ;;  %v6135_v10 = vrot.slane %v6121_v37, %v17339_v45 }
 0x3e0   :  { %v6294_v32 = vsel %vm6272_vm13, %v6120_v24, -inf  ;;  %v6136_v16 = vcombine.high %v6128_v23, %v6128_v23  ;;  %v6301_v44 = vsel %vm6272_vm13, %v6128_v23, -inf  ;;  %vm17456_vm4 = vcmask 1046528  }
 0x3e1   :  { %v6276_v54 = vrot.slane %v6275_v2, 2  ;;  %v6282_v7 = vmax.f32 %v6280_v26, %v6281_v59  ;;  %v6289_v55 = vmax.f32 %v6287_v28, %v6288_v38  ;;  %v6295_v15 = vrot.slane %v6294_v32, 4 }
 0x3e2   :  { %v6137_v41 = vcombine.high %v6135_v10, %v6135_v10  ;;  %v6302_v60 = vrot.slane %v6301_v44, 4  ;;  %v6308_v57 = vsel %vm6272_vm13, %v6136_v16, -inf  ;;  %v6315_v58 = vsel %vm6272_vm13, %v6135_v10, -inf }
 0x3e3   :  { %v6277_v29 = vmax.f32 %v6275_v2, %v6276_v54  ;;  %v6283_v22 = vrot.slane %v6282_v7, 2  ;;  %v6290_v35 = vrot.slane %v6289_v55, 2  ;;  %v6296_v52 = vmax.f32 %v6294_v32, %v6295_v15 }
 0x3e4   :  { %v6303_v1 = vmax.f32 %v6301_v44, %v6302_v60  ;;  %v6309_v40 = vrot.slane %v6308_v57, 4  ;;  %v6316_v39 = vrot.slane %v6315_v58, 4  ;;  %v6322_v17 = vsel %vm6272_vm13, %v6137_v41, -inf }
 0x3e5   :  { %v6278_v62 = vrot.slane %v6277_v29, 1  ;;  %v6284_v14 = vmax.f32 %v6282_v7, %v6283_v22  ;;  %v6291_v33 = vmax.f32 %v6289_v55, %v6290_v35  ;;  %v6297_v47 = vrot.slane %v6296_v52, 2 }
 0x3e6   :  { %v6304_v20 = vrot.slane %v6303_v1, 2  ;;  %v6310_v30 = vmax.f32 %v6308_v57, %v6309_v40  ;;  %v6317_v11 = vmax.f32 %v6315_v58, %v6316_v39  ;;  %v6323_v42 = vrot.slane %v6322_v17, 4 }
 0x3e7   :  { %v6279_v27 = vmax.f32 %v6277_v29, %v6278_v62  ;;  %v6285_v37 = vrot.slane %v6284_v14, 1  ;;  %v6292_v23 = vrot.slane %v6291_v33, 1  ;;  %v6298_v24 = vmax.f32 %v6296_v52, %v6297_v47 }
 0x3e8   :  { %v6305_v26 = vmax.f32 %v6303_v1, %v6304_v20  ;;  %v6311_v28 = vrot.slane %v6310_v30, 2  ;;  %v6318_v2 = vrot.slane %v6317_v11, 2  ;;  %v6324_v59 = vmax.f32 %v6322_v17, %v6323_v42 }
 0x3e9   :  { %v6286_v38 = vmax.f32 %v6284_v14, %v6285_v37  ;;  %v6293_v10 = vmax.f32 %v6291_v33, %v6292_v23  ;;  %v6299_v32 = vrot.slane %v6298_v24, 1  ;;  %v4982_v16 = vmax.f32 %v15765_v12, %v4981_v36  ;;  %v10570_v36 = vpop.permute.xlu1 %10569 }
 0x3ea   :  { %v6306_v44 = vrot.slane %v6305_v26, 1  ;;  %v6312_v54 = vmax.f32 %v6310_v30, %v6311_v28  ;;  %v6319_v7 = vmax.f32 %v6317_v11, %v6318_v2  ;;  %v6325_v55 = vrot.slane %v6324_v59, 2  ;;  %v10575_v11 = vpop.permute.xlu0 %10574 }
 0x3eb   :  { %v6300_v15 = vmax.f32 %v6298_v24, %v6299_v32  ;;  %v6529_v41 = vsel %vm5111_vm14, %v6286_v38, %v6279_v27  ;;  %v5276_v60 = vsel %vm186_vm0, %v4982_v16, 0.0  ;;  %v5396_v57 = vrot.slane %v15790_v6, 1 }
 0x3ec   :  { %v6530_v58 = vsel %vm5113_vm15, %v6293_v10, %v6529_v41  ;;  %v6313_v29 = vrot.slane %v6312_v54, 1  ;;  %v6320_v22 = vrot.slane %v6319_v7, 1  ;;  %v5783_v12 = vsel %vm5771_vm2, %v5766_v4, %v10562_v0 }
 0x3ed   :  { %v6531_v35 = vsel %vm5115_vm3, %v6300_v15, %v6530_v58  ;;  %v6326_v52 = vmax.f32 %v6324_v59, %v6325_v55  ;;  %v5397_v1 = vrot.slane %v5276_v60, 1  ;;  %v5402_v40 = vrot.slane %v15790_v6, 2  ;;  %v10580_v27 = vpop.permute.xlu1 %10579 }
 0x3ee   :  { %v6307_v39 = vmax.f32 %v6305_v26, %v6306_v44  ;;  %v6314_v17 = vmax.f32 %v6312_v54, %v6313_v29  ;;  %v6321_v62 = vmax.f32 %v6319_v7, %v6320_v22  ;;  %v5403_v14 = vrot.slane %v5276_v60, 2 }
 0x3ef   :  { %v6327_v33 = vrot.slane %v6326_v52, 1  ;;  %v5398_v47 = vsel %vm17456_vm4, %v5396_v57, %v5397_v1  ;;  %v10572_v20 = vunpack.i.h.bf16 %v10570_v36  ;;  %v10571_v30 = vunpack.i.l.bf16 %v10570_v36 }
 0x3f0   :  { %v6561_v48 = vsel %vm186_vm0, 0.0, %v6531_v35  ;;  %v6532_v0 = vsel %vm5111_vm14, %v6314_v17, %v6307_v39  ;;  %v10628_v4 = vpack.i.bf16 %v5398_v47, %v15717_v56  ;;  %vm17457_vm5 = vcmask 1045504  }
 0x3f1   :  { %v15829_v42 = vsel %vm17457_vm5, %v5402_v40, %v5403_v14  ;;  %v6328_v37 = vmax.f32 %v6326_v52, %v6327_v33  ;;  %v6533_v23 = vsel %vm5113_vm15, %v6321_v62, %v6532_v0  ;;  %v5799_v26 = vsel %vm5788_vm9, %v15807_v53, %v10566_v9 }
 0x3f2   :  { %v10633_v24 = vpack.i.bf16 %v15829_v42, %v15720_v13  ;;  %10629 = vrot.lane.b32.xlu0 %v10628_v4, %s10814_s19  ;;  %v5800_v56 = vsel %vm5788_vm9, %v5783_v12, %v10567_v63  ;;  %v5816_v28 = vsel %vm5805_vm12, %v5799_v26, %v10571_v30  ;;  %v10577_v2 = vunpack.i.h.bf16 %v10575_v11 }
 0x3f3   :  { %v10576_v59 = vunpack.i.l.bf16 %v10575_v11  ;;  %v6534_v38 = vsel %vm5115_vm3, %v6328_v37, %v6533_v23  ;;  %v5817_v10 = vsel %vm5805_vm12, %v5800_v56, %v10572_v20  ;;  %v10582_v32 = vunpack.i.h.bf16 %v10580_v27 }
 0x3f4   :  { %10634 = vrot.lane.b32.xlu1 %v10633_v24, %s10815_s27  ;;  %v10581_v16 = vunpack.i.l.bf16 %v10580_v27  ;;  %v6562_v9 = vsel %vm186_vm0, 0.0, %v6534_v38  ;;  %v5834_v50 = vsel %vm16916_vm7, %v5817_v10, %v10577_v2  ;;  %vm16918_vm4 = vcmask 1042432  }
 0x3f5   :  { %v5833_v53 = vsel %vm16916_vm7, %v5816_v28, %v10576_v59  ;;  %v5851_v44 = vsel %vm16917_vm10, %v5834_v50, %v10582_v32  ;;  %v15852_v54 = vsel %vm6569_vm6, %v6561_v48, 0.0  ;;  %vm6592_vm5 = vcmask 1046532   ;;  %vm15863_vm7 = vmor %vm17458_vm8, %vm6622_vm1 }
 0x3f6   :  { %v5850_v63 = vsel %vm16917_vm10, %v5833_v53, %v10581_v16  ;;  %5679 = vrot.lane.b32.xlu0 %v15790_v6, %s10816_s0  ;;  %v15857_v55 = vsel %vm6569_vm6, %v6562_v9, 0.0  ;;  %v6585_v15 = vcombine.high %v15852_v54, %v15852_v54  ;;  %v8636_v6 = vrot.slane %v15852_v54, 9  ;;  %vm15872_vm10 = vmor %vm16918_vm4, %vm6592_vm5 }
 0x3f7   :  { %v5866_v7 = vpack.c.bf16 %v5851_v44, %v5850_v63  ;;  %v6586_v60 = vcombine.high %v15857_v55, %v15857_v55  ;;  %v8637_v29 = vrot.slane %v15857_v55, 9  ;;  %v6712_v12 = vcombine.low %v15852_v54, %v15857_v55  ;;  %v10590_v44 = vpop.permute.xlu1 %10589 }
 0x3f8   :  { %5724 = vrot.lane.b32.xlu1 %v5398_v47, %s10817_s24  ;;  %v6600_v58 = vrot.slane %v6585_v15, 5  ;;  %v6630_v22 = vrot.slane %v6585_v15, 6  ;;  %vm17463_vm8 = vcmask 130048   ;;  %v8643_v35 = vrot.slane %v15852_v54, 10 }
 0x3f9   :  { %6048 = vmatmul.mubr.bf16.gmra.mrb[20].mxu1 %v5866_v7  ;;  %v6604_v36 = vrot.slane %v6586_v60, 5  ;;  %v8644_v52 = vrot.slane %v15857_v55, 10  ;;  %v6634_v1 = vrot.slane %v6586_v60, 6  ;;  %vm17464_vm1 = vmmov %vm17463_vm8 }
 0x3fa   :  { %8633 = vmatprep.mubr.msk.bf16.mxu1 %vm17463_vm8, %v5869_v49  ;;  %v15887_v40 = vsel %vm15872_vm10, %v8636_v6, %v6600_v58  ;;  %v15895_v17 = vsel %vm15863_vm7, %v8643_v35, %v6630_v22  ;;  %vm17465_vm5 = vmmov %vm17464_vm1  ;;  %vm17466_vm8 = vcmask 785408  }
 0x3fb   :  { %v15891_v39 = vsel %vm15872_vm10, %v8637_v29, %v6604_v36  ;;  %v15899_v46 = vsel %vm15863_vm7, %v8644_v52, %v6634_v1  ;;  %v10552_v29 = vunpack.i.h.bf16 %v15761_v19 }
 0x3fc   :  { %v6736_v13 = vcombine.low %v15895_v17, %v15899_v46  ;;  %v6728_v49 = vcombine.low %v15887_v40, %v15891_v39 }
 0x411   :  { %v6025_v62 = vpop.f32.mrb[8].mxu1 }
 0x412   :  { %v6026_v14 = vadd.f32 %v15756_v51, %v6025_v62  ;;  %v6027_v33 = vpop.f32.mrb[9].mxu1 }
 0x413   :  { %v6028_v47 = vpop.f32.mrb[10].mxu1  ;;  %v10591_v33 = vunpack.i.l.bf16 %v10590_v44 }
 0x414   :  { %v6029_v20 = vadd.f32 %v15756_v51, %v6028_v47  ;;  %v6030_v30 = vpop.f32.mrb[11].mxu1  ;;  %v6076_v11 = vmax.f32 %v6026_v14, 0.0  ;;  %v10592_v14 = vunpack.i.h.bf16 %v10590_v44 }
 0x416   :  { %v6077_v48 = vmax.f32 %v6029_v20, 0.0 }
 0x418   :  { %v6090_v0 = vmax.f32 %v6076_v11, %v6077_v48 }
 0x41a   :  { %v6138_v4 = vcombine.high %v6090_v0, %v6090_v0  ;;  %v6145_v27 = vrot.slane %v6090_v0, %v17339_v45  ;;  %v15913_v16 = vpop.permute.xlu0 %10584  ;;  %v10600_v47 = vpop.permute.xlu1 %10599 }
 0x41b   :  { %v10586_v7 = vunpack.i.l.bf16 %v15913_v16 }
 0x41c   :  { %v6152_v37 = vrot.slane %v6138_v4, %v17339_v45  ;;  %v6153_v23 = vcombine.high %v6145_v27, %v6145_v27  ;;  %v6329_v24 = vsel %vm6272_vm13, %v6145_v27, -inf  ;;  %v5752_v4 = vsel %vm17465_vm5, %v15489_v61, %v10552_v29 }
 0x41d   :  { %v6330_v26 = vrot.slane %v6329_v24, 4  ;;  %v5753_v22 = vsel %vm17464_vm1, %v15531_v5, %v10586_v7  ;;  %v6584_v5 = vcombine.high %v17414_v18, %v17414_v18  ;;  %vm17467_vm1 = vmmov %vm17466_vm8  ;;  %vm17468_vm5 = vcmask 916480  }
 0x41e   :  { %v6154_v56 = vcombine.high %v6152_v37, %v6152_v37  ;;  %v6336_v28 = vsel %vm6272_vm13, %v6153_v23, -inf  ;;  %v6343_v2 = vsel %vm6272_vm13, %v6152_v37, -inf  ;;  %v10595_v36 = vpop.permute.xlu0 %10594  ;;  %v5768_v19 = vsel %vm2772_vm11, %v5753_v22, %v10592_v14  ;;  %vm17469_vm4 = vmmov %vm17468_vm5 }
 0x41f   :  { %v6331_v59 = vmax.f32 %v6329_v24, %v6330_v26  ;;  %v6337_v38 = vrot.slane %v6336_v28, 4  ;;  %v6344_v10 = vrot.slane %v6343_v2, 4  ;;  %v10597_v20 = vunpack.i.h.bf16 %v10595_v36 }
 0x420   :  { %v6350_v32 = vsel %vm6272_vm13, %v6154_v56, -inf  ;;  %v10596_v0 = vunpack.i.l.bf16 %v10595_v36  ;;  %v5767_v56 = vsel %vm2772_vm11, %v5752_v4, %v10591_v33 }
 0x421   :  { %v6332_v9 = vrot.slane %v6331_v59, 2  ;;  %v6338_v53 = vmax.f32 %v6336_v28, %v6337_v38  ;;  %v6345_v50 = vmax.f32 %v6343_v2, %v6344_v10  ;;  %v6351_v63 = vrot.slane %v6350_v32, 4 }
 0x422   :  { %v10605_v27 = vpop.permute.xlu0 %10604  ;;  %v10602_v28 = vunpack.i.h.bf16 %v10600_v47  ;;  %v5785_v2 = vsel %vm5771_vm2, %v5768_v19, %v10597_v20 }
 0x423   :  { %v6333_v15 = vmax.f32 %v6331_v59, %v6332_v9  ;;  %v6339_v60 = vrot.slane %v6338_v53, 2  ;;  %v6346_v6 = vrot.slane %v6345_v50, 2  ;;  %v6352_v58 = vmax.f32 %v6350_v32, %v6351_v63 }
 0x424   :  { %v10607_v59 = vunpack.i.h.bf16 %v10605_v27  ;;  %v5784_v32 = vsel %vm5771_vm2, %v5767_v56, %v10596_v0  ;;  %v10606_v9 = vunpack.i.l.bf16 %v10605_v27 }
 0x425   :  { %v6334_v35 = vrot.slane %v6333_v15, 1  ;;  %v6340_v52 = vmax.f32 %v6338_v53, %v6339_v60  ;;  %v6347_v1 = vmax.f32 %v6345_v50, %v6346_v6  ;;  %v6353_v62 = vrot.slane %v6352_v58, 2 }
 0x426   :  { %v10610_v38 = vpop.permute.xlu1 %10609  ;;  %v10601_v50 = vunpack.i.l.bf16 %v10600_v47  ;;  %v8635_v60 = vrot.slane %v17414_v18, 9  ;;  %v6596_v6 = vrot.slane %v6584_v5, 5 }
 0x427   :  { %v6341_v30 = vrot.slane %v6340_v52, 1  ;;  %v6348_v11 = vrot.slane %v6347_v1, 1  ;;  %v6354_v48 = vmax.f32 %v6352_v58, %v6353_v62  ;;  %v6335_v37 = vmax.f32 %v6333_v15, %v6334_v35 }
 0x428   :  { %v10612_v63 = vunpack.i.h.bf16 %v10610_v38  ;;  %v10611_v44 = vunpack.i.l.bf16 %v10610_v38  ;;  %v5802_v15 = vsel %vm5788_vm9, %v5785_v2, %v10602_v28  ;;  %v5801_v29 = vsel %vm5788_vm9, %v5784_v32, %v10601_v50 }
 0x429   :  { %v6342_v23 = vmax.f32 %v6340_v52, %v6341_v30  ;;  %v6349_v24 = vmax.f32 %v6347_v1, %v6348_v11  ;;  %v6355_v26 = vrot.slane %v6354_v48, 1  ;;  %v5819_v22 = vsel %vm5805_vm12, %v5802_v15, %v10607_v59  ;;  %v10615_v36 = vpop.permute.xlu0 %10614 }
 0x42a   :  { %v8642_v35 = vrot.slane %v17414_v18, 10  ;;  %v5818_v52 = vsel %vm5805_vm12, %v5801_v29, %v10606_v9  ;;  %v10617_v1 = vunpack.i.h.bf16 %v10615_v36  ;;  %v10616_v62 = vunpack.i.l.bf16 %v10615_v36 }
 0x42b   :  { %v6356_v10 = vmax.f32 %v6354_v48, %v6355_v26  ;;  %v6535_v61 = vsel %vm5111_vm14, %v6342_v23, %v6335_v37  ;;  %v5835_v33 = vsel %vm17466_vm8, %v5818_v52, %v10611_v44  ;;  %v5836_v47 = vsel %vm17467_vm1, %v5819_v22, %v10612_v63 }
 0x42c   :  { %v6536_v53 = vsel %vm5113_vm15, %v6349_v24, %v6535_v61  ;;  %v6626_v30 = vrot.slane %v6584_v5, 6  ;;  %v5852_v11 = vsel %vm17468_vm5, %v5835_v33, %v10616_v62  ;;  %v5853_v48 = vsel %vm17469_vm4, %v5836_v47, %v10617_v1 }
 0x42d   :  { %v6537_v7 = vsel %vm5115_vm3, %v6356_v10, %v6536_v53  ;;  %v15948_v0 = vsel %vm15872_vm10, %v8635_v60, %v6596_v6  ;;  %v5868_v19 = vpack.c.bf16 %v5853_v48, %v5852_v11  ;;  %v5871_v24 = vpack.c.bf16 %v17425_v31, %v15829_v42  ;;  %v5449_v10 = vpop.permute.xlu1 %5448  ;;  %v10620_v61 = vpop.permute.xlu0 %10619 }
 0x42e   :  { %v6563_v58 = vsel %vm186_vm0, 0.0, %v6537_v7  ;;  %vm17470_vm4 = vcmask 130048   ;;  %v6680_v56 = vcombine.low %v15948_v0, %v15887_v40  ;;  %v15971_v31 = vsel %vm15863_vm7, %v8642_v35, %v6626_v30  ;;  %v16132_v40 = vld [vmem:[%s16721_s4] ss:$0 sm:$0xff] }
 0x42f   :  { %v15938_v14 = vsel %vm6569_vm6, %v6563_v58, 0.0  ;;  %6056 = vmatmul.mubr.bf16.gmra.mrb[24].mxu1 %v5868_v19  ;;  %v6696_v59 = vcombine.low %v15971_v31, %v15895_v17  ;;  %v10587_v9 = vunpack.i.h.bf16 %v15913_v16  ;;  %v10622_v53 = vunpack.i.h.bf16 %v10620_v61  ;;  %vm17471_vm8 = vmmov %vm17470_vm4  ;;  %v10721_v19 = vld [vmem:[%s16722_s5] sm:$0xff]  }
 0x430   :  { %v6587_v20 = vcombine.high %v15938_v14, %v15938_v14  ;;  %v8638_v4 = vrot.slane %v15938_v14, 9  ;;  %v8645_v37 = vrot.slane %v15938_v14, 10  ;;  %8634 = vmatprep.mubr.msk.bf16.mxu1 %vm17470_vm4, %v5871_v24  ;;  %v10621_v50 = vunpack.i.l.bf16 %v10620_v61  ;;  %vm17472_vm1 = vmmov %vm17470_vm4 }
 0x431   :  { %v5754_v7 = vsel %vm17471_vm8, %v15640_v3, %v10587_v9  ;;  %v5755_v15 = vsel %vm17472_vm1, %v15703_v43, %v5449_v10 }
 0x432   :  { %v6608_v27 = vrot.slane %v6587_v20, 5  ;;  %v6638_v23 = vrot.slane %v6587_v20, 6  ;;  %v5769_v6 = vsel %vm2772_vm11, %v5754_v7, %v10621_v50  ;;  %v5770_v58 = vsel %vm2772_vm11, %v5755_v15, %v10622_v53  ;;  %v10726_v50 = vld [vmem:[%s16722_s5 + $0x58] sm:$0xff]  }
 0x434   :  { %v15956_v5 = vsel %vm15872_vm10, %v8638_v4, %v6608_v27  ;;  %v15960_v26 = vsel %vm15863_vm7, %v8645_v37, %v6638_v23  ;;  %v10720_v4 = vld [vmem:[%s16722_s5 + $0x40] sm:$0xff]   ;;  %v10722_v27 = vld [vmem:[%s16722_s5 + $0x48] sm:$0xff]  }
 0x435   :  { %v15967_v28 = vcombine.low %v15891_v39, %v15956_v5  ;;  %v15976_v2 = vcombine.low %v15899_v46, %v15960_v26  ;;  %8773 = vmatprep.subr.bf16.mxu1 %v10720_v4 }
 0x436   :  { %8774 = vmatpush3.bf16.msra.mxu1 %v10721_v19 }
 0x437   :  { %v10638_v42 = vpack.i.bf16 %v15967_v28, %v6680_v56  ;;  %v10643_v38 = vpack.i.bf16 %v15976_v2, %v6696_v59  ;;  %8775 = vmatprep.subr.bf16.mxu1 %v10722_v27 }
 0x439   :  { %10639 = vrot.lane.b32.xlu1 %v10638_v42, %s10811_s28 }
 0x43a   :  { %8776 = vmatpush3.bf16.msra.mxu1 %v10723_v34 }
 0x43d   :  { %10644 = vrot.lane.b32.xlu1 %v10643_v38, %s10814_s19 }
 0x450   :  { %v10625_v32 = vpop.permute.xlu1 %10624 }
 0x451   :  { %v10627_v63 = vunpack.i.h.bf16 %v10625_v32  ;;  %v10626_v44 = vunpack.i.l.bf16 %v10625_v32 }
 0x453   :  { %v5787_v16 = vsel %vm5771_vm2, %v5770_v58, %v10627_v63  ;;  %v5786_v35 = vsel %vm5771_vm2, %v5769_v6, %v10626_v44  ;;  %vm17473_vm2 = vcmask 785408  }
 0x454   :  { %vm17474_vm5 = vmmov %vm17473_vm2 }
 0x455   :  { %vm17477_vm8 = vmmov %vm17473_vm2 }
 0x456   :  { %vm17478_vm1 = vmmov %vm17473_vm2 }
 0x464   :  { %v10630_v60 = vpop.permute.xlu0 %10629  ;;  %v6033_v62 = vpop.f32.mrb[12].mxu1 }
 0x465   :  { %v10632_v29 = vunpack.i.h.bf16 %v10630_v60  ;;  %v10631_v22 = vunpack.i.l.bf16 %v10630_v60  ;;  %v6034_v43 = vadd.f32 %v15756_v51, %v6033_v62  ;;  %v6035_v47 = vpop.f32.mrb[13].mxu1 }
 0x466   :  { %v10635_v36 = vpop.permute.xlu1 %10634  ;;  %v6036_v48 = vpop.f32.mrb[14].mxu1 }
 0x467   :  { %v10637_v52 = vunpack.i.h.bf16 %v10635_v36  ;;  %v10636_v1 = vunpack.i.l.bf16 %v10635_v36  ;;  %v5804_v3 = vsel %vm5788_vm9, %v5787_v16, %v10632_v29  ;;  %v5803_v33 = vsel %vm5788_vm9, %v5786_v35, %v10631_v22  ;;  %v6038_v42 = vpop.f32.mrb[15].mxu1  ;;  %v10727_v29 = vld [vmem:[%s16722_s5 + $0x18] sm:$0xff]   ;;  %v10728_v35 = vld [vmem:[%s16722_s5 + $0x60] sm:$0xff]  }
 0x468   :  { %v5680_v30 = vpop.permute.xlu0 %5679  ;;  %v6037_v56 = vadd.f32 %v15756_v51, %v6036_v48  ;;  %v6078_v61 = vmax.f32 %v6034_v43, 0.0 }
 0x469   :  { %v5821_v20 = vsel %vm5805_vm12, %v5804_v3, %v10637_v52  ;;  %v5820_v11 = vsel %vm5805_vm12, %v5803_v33, %v10636_v1  ;;  %vm17475_vm12 = vcmask 916480  }
 0x46a   :  { %v5837_v37 = vsel %vm17473_vm2, %v5820_v11, %v5680_v30  ;;  %v5725_v23 = vpop.permute.xlu1 %5724  ;;  %v5838_v24 = vsel %vm17474_vm5, %v5821_v20, %v10512_v25  ;;  %vm17476_vm4 = vmmov %vm17475_vm12  ;;  %v6079_v32 = vmax.f32 %v6037_v56, 0.0  ;;  %v10724_v25 = vld [vmem:[%s16722_s5 + $0x50] sm:$0xff]  }
 0x46b   :  { %v5854_v59 = vsel %vm17475_vm12, %v5837_v37, %v5725_v23  ;;  %v5855_v38 = vsel %vm17476_vm4, %v5838_v24, %v10517_v21  ;;  %v10725_v21 = vld [vmem:[%s16722_s5 + $0x10] sm:$0xff]   ;;  %8777 = vmatprep.subr.bf16.mxu1 %v10724_v25  ;;  %v10731_v25 = vld [vmem:[%s16722_s5 + $0x28] sm:$0xff]   ;;  %vm17479_vm2 = vmmov %vm17478_vm1  ;;  %vm17485_vm4 = vcmask 1046534  }
 0x46c   :  { %v5870_v10 = vpack.c.bf16 %v5855_v38, %v5854_v59  ;;  %v6091_v9 = vmax.f32 %v6078_v61, %v6079_v32  ;;  %8778 = vmatpush3.bf16.msra.mxu1 %v10725_v21  ;;  %v10729_v38 = vld [vmem:[%s16722_s5 + $0x20] sm:$0xff]   ;;  %vm17480_vm5 = vmmov %vm17478_vm1 }
 0x46d   :  { %8779 = vmatprep.subr.bf16.mxu1 %v10726_v50  ;;  %v16058_v50 = vcombine.low %v15857_v55, %v15938_v14 }
 0x46e   :  { %6064 = vmatmul.mubr.bf16.gmra.mrb[28].mxu1 %v5870_v10  ;;  %v6155_v53 = vcombine.high %v6091_v9, %v6091_v9  ;;  %v6162_v8 = vrot.slane %v6091_v9, %v17339_v45  ;;  %v10730_v10 = vld [vmem:[%s16722_s5 + $0x68] sm:$0xff]  }
 0x470   :  { %v6169_v63 = vrot.slane %v6155_v53, %v17339_v45  ;;  %v6170_v44 = vcombine.high %v6162_v8, %v6162_v8  ;;  %v6357_v7 = vsel %vm6272_vm13, %v6162_v8, -inf  ;;  %8780 = vmatpush3.bf16.msra.mxu1 %v10727_v29  ;;  %v10732_v8 = vld [vmem:[%s16722_s5 + $0x70] sm:$0xff]  }
 0x471   :  { %v6358_v15 = vrot.slane %v6357_v7, 4  ;;  %8781 = vmatprep.subr.bf16.mxu1 %v10728_v35 }
 0x472   :  { %v6171_v60 = vcombine.high %v6169_v63, %v6169_v63  ;;  %v6364_v6 = vsel %vm6272_vm13, %v6170_v44, -inf  ;;  %v6371_v58 = vsel %vm6272_vm13, %v6169_v63, -inf }
 0x473   :  { %v6359_v22 = vmax.f32 %v6357_v7, %v6358_v15  ;;  %v6365_v36 = vrot.slane %v6364_v6, 4  ;;  %v6372_v16 = vrot.slane %v6371_v58, 4 }
 0x474   :  { %v6378_v52 = vsel %vm6272_vm13, %v6171_v60, -inf  ;;  %8782 = vmatpush3.bf16.msra.mxu1 %v10729_v38 }
 0x475   :  { %v6360_v1 = vrot.slane %v6359_v22, 2  ;;  %v6366_v62 = vmax.f32 %v6364_v6, %v6365_v36  ;;  %v6373_v3 = vmax.f32 %v6371_v58, %v6372_v16  ;;  %v6379_v33 = vrot.slane %v6378_v52, 4  ;;  %8783 = vmatprep.subr.bf16.mxu1 %v10730_v10  ;;  %v10733_v6 = vld [vmem:[%s16722_s5 + $0x30] sm:$0xff]  }
 0x477   :  { %v6361_v43 = vmax.f32 %v6359_v22, %v6360_v1  ;;  %v6367_v47 = vrot.slane %v6366_v62, 2  ;;  %v6374_v20 = vrot.slane %v6373_v3, 2  ;;  %v6380_v30 = vmax.f32 %v6378_v52, %v6379_v33 }
 0x478   :  { %8784 = vmatpush3.bf16.msra.mxu1 %v10731_v25 }
 0x479   :  { %v6362_v11 = vrot.slane %v6361_v43, 1  ;;  %v6368_v48 = vmax.f32 %v6366_v62, %v6367_v47  ;;  %v6375_v4 = vmax.f32 %v6373_v3, %v6374_v20  ;;  %v6381_v19 = vrot.slane %v6380_v30, 2  ;;  %8785 = vmatprep.subr.bf16.mxu1 %v10732_v8  ;;  %v10735_v62 = vld [vmem:[%s16722_s5 + $0x38] sm:$0xff]  }
 0x47b   :  { %v6369_v27 = vrot.slane %v6368_v48, 1  ;;  %v6376_v37 = vrot.slane %v6375_v4, 1  ;;  %v6382_v23 = vmax.f32 %v6380_v30, %v6381_v19  ;;  %v6363_v24 = vmax.f32 %v6361_v43, %v6362_v11 }
 0x47c   :  { %8786 = vmatpush3.bf16.msra.mxu1 %v10733_v6 }
 0x47d   :  { %v6370_v56 = vmax.f32 %v6368_v48, %v6369_v27  ;;  %v6377_v42 = vmax.f32 %v6375_v4, %v6376_v37  ;;  %v6383_v59 = vrot.slane %v6382_v23, 1 }
 0x47f   :  { %v6384_v61 = vmax.f32 %v6382_v23, %v6383_v59  ;;  %v6538_v32 = vsel %vm5111_vm14, %v6370_v56, %v6363_v24 }
 0x480   :  { %v6539_v34 = vsel %vm5113_vm15, %v6377_v42, %v6538_v32 }
 0x481   :  { %v6540_v9 = vsel %vm5115_vm3, %v6384_v61, %v6539_v34 }
 0x482   :  { %v6564_v53 = vsel %vm186_vm0, 0.0, %v6540_v9 }
 0x483   :  { %v6573_v21 = vsel %vm6569_vm6, %v6564_v53, 0.0 }
 0x484   :  { %v6752_v63 = vcombine.low %v6573_v21, %v17414_v18  ;;  %v6713_v44 = vcombine.low %v15938_v14, %v6573_v21  ;;  %v6654_v7 = vcombine.high %v6573_v21, %v6573_v21  ;;  %v8651_v15 = vrot.slane %v6573_v21, 10  ;;  %v10734_v14 = vld [vmem:[%s16722_s5 + $0x78] sm:$0xff]  }
 0x485   :  { %v8649_v60 = vrot.slane %v6573_v21, 9  ;;  %v6041_v55 = vpop.f32.mrb[16].mxu1  ;;  %8787 = vmatprep.subr.bf16.mxu1 %v10734_v14 }
 0x486   :  { %v10648_v58 = vpack.i.bf16 %v6752_v63, %v16058_v50  ;;  %v10653_v29 = vpack.i.bf16 %v6713_v44, %v6712_v12  ;;  %v6666_v22 = vrot.slane %v6654_v7, 6  ;;  %v6658_v36 = vrot.slane %v6654_v7, 5  ;;  %v6043_v1 = vpop.f32.mrb[17].mxu1  ;;  %8788 = vmatpush3.bf16.msra.mxu1 %v10735_v62 }
 0x487   :  { %v6042_v52 = vadd.f32 %v15756_v51, %v6041_v55  ;;  %v6044_v3 = vpop.f32.mrb[18].mxu1  ;;  %v6672_v1 = vcombine.low %v17414_v18, %v15852_v54 }
 0x488   :  { %10649 = vrot.lane.b32.xlu0 %v10648_v58, %s10814_s19  ;;  %10654 = vrot.lane.b32.xlu1 %v10653_v29, %s10816_s0  ;;  %v16076_v16 = vsel %vm15863_vm7, %v8651_v15, %v6666_v22  ;;  %v16080_v35 = vsel %vm15872_vm10, %v8649_v60, %v6658_v36  ;;  %v6045_v47 = vadd.f32 %v15756_v51, %v6044_v3 }
 0x489   :  { %v6737_v12 = vcombine.low %v15960_v26, %v16076_v16  ;;  %v6766_v43 = vcombine.low %v16080_v35, %v15948_v0  ;;  %v6046_v26 = vpop.f32.mrb[19].mxu1  ;;  %v6080_v20 = vmax.f32 %v6042_v52, 0.0 }
 0x48a   :  { %v6081_v30 = vmax.f32 %v6045_v47, 0.0 }
 0x48b   :  { %v10658_v33 = vpack.i.bf16 %v6737_v12, %v6736_v13  ;;  %v10663_v11 = vpack.i.bf16 %v6766_v43, %v15967_v28 }
 0x48c   :  { %v6092_v48 = vmax.f32 %v6080_v20, %v6081_v30 }
 0x48d   :  { %10659 = vrot.lane.b32.xlu0 %v10658_v33, %s10811_s28 }
 0x48e   :  { %v6172_v56 = vcombine.high %v6092_v48, %v6092_v48  ;;  %v6179_v42 = vrot.slane %v6092_v48, %v17339_v45 }
 0x490   :  { %v6186_v28 = vrot.slane %v6172_v56, %v17339_v45  ;;  %v6187_v38 = vcombine.high %v6179_v42, %v6179_v42  ;;  %v6385_v61 = vsel %vm6272_vm13, %v6179_v42, -inf }
 0x491   :  { %10664 = vrot.lane.b32.xlu0 %v10663_v11, %s10816_s0  ;;  %v6386_v8 = vrot.slane %v6385_v61, 4 }
 0x492   :  { %v6392_v34 = vsel %vm6272_vm13, %v6187_v38, -inf  ;;  %v6188_v9 = vcombine.high %v6186_v28, %v6186_v28 }
 0x493   :  { %v6393_v21 = vrot.slane %v6392_v34, 4  ;;  %v6387_v6 = vmax.f32 %v6385_v61, %v6386_v8 }
 0x494   :  { %v6406_v7 = vsel %vm6272_vm13, %v6188_v9, -inf }
 0x495   :  { %v6394_v36 = vmax.f32 %v6392_v34, %v6393_v21  ;;  %v6407_v52 = vrot.slane %v6406_v7, 4  ;;  %v6388_v26 = vrot.slane %v6387_v6, 2 }
 0x497   :  { %v6395_v30 = vrot.slane %v6394_v36, 2  ;;  %v6389_v42 = vmax.f32 %v6387_v6, %v6388_v26 }
 0x499   :  { %v6396_v38 = vmax.f32 %v6394_v36, %v6395_v30 }
 0x4ab   :  { %v10640_v25 = vpop.permute.xlu1 %10639 }
 0x4ac   :  { %v10642_v55 = vunpack.i.h.bf16 %v10640_v25  ;;  %v10641_v12 = vunpack.i.l.bf16 %v10640_v25 }
 0x4ae   :  { %v6787_v48 = vsel %vm2772_vm11, %v16058_v50, %v10642_v55 }
 0x4af   :  { %v10645_v58 = vpop.permute.xlu1 %10644 }
 0x4b0   :  { %v10647_v3 = vunpack.i.h.bf16 %v10645_v58  ;;  %v10646_v33 = vunpack.i.l.bf16 %v10645_v58 }
 0x4cc   :  { %v6049_v4 = vpop.f32.mrb[20].mxu1 }
 0x4cd   :  { %v6050_v17 = vadd.f32 %v15756_v51, %v6049_v4  ;;  %v6051_v46 = vpop.f32.mrb[21].mxu1  ;;  %v6786_v4 = vsel %vm2772_vm11, %v6672_v1, %v10641_v12 }
 0x4ce   :  { %v6052_v13 = vpop.f32.mrb[22].mxu1 }
 0x4cf   :  { %v6053_v19 = vadd.f32 %v15756_v51, %v6052_v13  ;;  %v6054_v27 = vpop.f32.mrb[23].mxu1  ;;  %v6082_v37 = vmax.f32 %v6050_v17, 0.0  ;;  %v6399_v51 = vsel %vm6272_vm13, %v6186_v28, -inf }
 0x4d0   :  { %v6400_v63 = vrot.slane %v6399_v51, 4 }
 0x4d1   :  { %v6083_v23 = vmax.f32 %v6053_v19, 0.0 }
 0x4d2   :  { %v6401_v14 = vmax.f32 %v6399_v51, %v6400_v63  ;;  %v6729_v51 = vcombine.low %v15956_v5, %v16080_v35  ;;  %v6390_v63 = vrot.slane %v6389_v42, 1 }
 0x4d3   :  { %v6093_v24 = vmax.f32 %v6082_v37, %v6083_v23  ;;  %v6408_v37 = vmax.f32 %v6406_v7, %v6407_v52  ;;  %v6790_v23 = vsel %vm5788_vm9, %v6786_v4, %v10646_v33  ;;  %v6397_v7 = vrot.slane %v6396_v38, 1 }
 0x4d4   :  { %v6402_v11 = vrot.slane %v6401_v14, 2 }
 0x4d5   :  { %v6196_v59 = vrot.slane %v6093_v24, %v17339_v45  ;;  %v6189_v10 = vcombine.high %v6093_v24, %v6093_v24  ;;  %v6791_v24 = vsel %vm5788_vm9, %v6787_v48, %v10647_v3  ;;  %v6409_v9 = vrot.slane %v6408_v37, 2 }
 0x4d6   :  { %v6398_v33 = vmax.f32 %v6396_v38, %v6397_v7 }
 0x4d7   :  { %v6204_v32 = vcombine.high %v6196_v59, %v6196_v59  ;;  %v6203_v53 = vrot.slane %v6189_v10, %v17339_v45  ;;  %v6413_v60 = vsel %vm6272_vm13, %v6196_v59, -inf  ;;  %v6403_v10 = vmax.f32 %v6401_v14, %v6402_v11 }
 0x4d8   :  { %v6414_v62 = vrot.slane %v6413_v60, 4  ;;  %v6410_v36 = vmax.f32 %v6408_v37, %v6409_v9 }
 0x4d9   :  { %v6420_v44 = vsel %vm6272_vm13, %v6204_v32, -inf  ;;  %v6205_v15 = vcombine.high %v6203_v53, %v6203_v53  ;;  %v6427_v22 = vsel %vm6272_vm13, %v6203_v53, -inf }
 0x4da   :  { %v6421_v29 = vrot.slane %v6420_v44, 4  ;;  %v6428_v43 = vrot.slane %v6427_v22, 4  ;;  %v6415_v13 = vmax.f32 %v6413_v60, %v6414_v62 }
 0x4db   :  { %v6434_v47 = vsel %vm6272_vm13, %v6205_v15, -inf  ;;  %v6404_v15 = vrot.slane %v6403_v10, 1 }
 0x4dc   :  { %v6422_v20 = vmax.f32 %v6420_v44, %v6421_v29  ;;  %v6435_v19 = vrot.slane %v6434_v47, 4  ;;  %v6429_v56 = vmax.f32 %v6427_v22, %v6428_v43  ;;  %v6416_v32 = vrot.slane %v6415_v13, 2 }
 0x4de   :  { %v6423_v59 = vrot.slane %v6422_v20, 2  ;;  %v6436_v34 = vmax.f32 %v6434_v47, %v6435_v19  ;;  %v6430_v53 = vrot.slane %v6429_v56, 2  ;;  %v6417_v58 = vmax.f32 %v6415_v13, %v6416_v32 }
 0x4df   :  { %v6405_v19 = vmax.f32 %v6403_v10, %v6404_v15 }
 0x4e0   :  { %v6424_v44 = vmax.f32 %v6422_v20, %v6423_v59  ;;  %v6437_v29 = vrot.slane %v6436_v34, 2  ;;  %v6431_v14 = vmax.f32 %v6429_v56, %v6430_v53  ;;  %v6418_v20 = vrot.slane %v6417_v58, 1 }
 0x4e2   :  { %v6425_v1 = vrot.slane %v6424_v44, 1  ;;  %v6438_v30 = vmax.f32 %v6436_v34, %v6437_v29  ;;  %v6432_v13 = vrot.slane %v6431_v14, 1 }
 0x4e4   :  { %v6439_v56 = vrot.slane %v6438_v30, 1 }
 0x4e6   :  { %v6440_v10 = vmax.f32 %v6438_v30, %v6439_v56 }
 0x4fa   :  { %v10650_v17 = vpop.permute.xlu0 %10649  ;;  %v10655_v46 = vpop.permute.xlu1 %10654 }
 0x4fb   :  { %v10657_v54 = vunpack.i.h.bf16 %v10655_v46  ;;  %v10656_v27 = vunpack.i.l.bf16 %v10655_v46  ;;  %v10652_v22 = vunpack.i.h.bf16 %v10650_v17  ;;  %v10651_v5 = vunpack.i.l.bf16 %v10650_v17 }
 0x4fc   :  { %v6391_v17 = vmax.f32 %v6389_v42, %v6390_v63  ;;  %v6411_v46 = vrot.slane %v6410_v36, 1 }
 0x4fd   :  { %v6794_v28 = vsel %vm17477_vm8, %v6790_v23, %v10656_v27  ;;  %v6795_v50 = vsel %vm17478_vm1, %v6791_v24, %v10657_v54  ;;  %v6426_v54 = vmax.f32 %v6424_v44, %v6425_v1  ;;  %v6419_v24 = vmax.f32 %v6417_v58, %v6418_v20 }
 0x4fe   :  { %v6810_v61 = vpack.c.bf16 %v6795_v50, %v6794_v28  ;;  %v6541_v23 = vsel %vm5111_vm14, %v6398_v33, %v6391_v17  ;;  %v6412_v28 = vmax.f32 %v6410_v36, %v6411_v46  ;;  %v6433_v50 = vmax.f32 %v6431_v14, %v6432_v13 }
 0x4ff   :  { %v10660_v25 = vpop.permute.xlu0 %10659  ;;  %v6542_v38 = vsel %vm5113_vm15, %v6405_v19, %v6541_v23  ;;  %v6544_v32 = vsel %vm5111_vm14, %v6426_v54, %v6419_v24 }
 0x500   :  { %v10662_v8 = vunpack.i.h.bf16 %v10660_v25  ;;  %v10661_v21 = vunpack.i.l.bf16 %v10660_v25  ;;  %v6545_v53 = vsel %vm5113_vm15, %v6433_v50, %v6544_v32 }
 0x501   :  { %v6546_v58 = vsel %vm5115_vm3, %v6440_v10, %v6545_v53 }
 0x502   :  { %v6799_v60 = vsel %vm2772_vm11, %v6729_v51, %v10662_v8  ;;  %v6798_v6 = vsel %vm2772_vm11, %v6728_v49, %v10661_v21  ;;  %v6057_v52 = vpop.f32.mrb[24].mxu1  ;;  %v6566_v1 = vsel %vm186_vm0, 0.0, %v6546_v58 }
 0x503   :  { %v10665_v35 = vpop.permute.xlu0 %10664  ;;  %v6802_v62 = vsel %vm5788_vm9, %v6798_v6, %v10651_v5  ;;  %v6803_v3 = vsel %vm5788_vm9, %v6799_v60, %v10652_v22  ;;  %v6058_v39 = vadd.f32 %v16132_v40, %v6057_v52  ;;  %v6059_v49 = vpop.f32.mrb[25].mxu1  ;;  %v16156_v20 = vsel %vm6569_vm6, %v6566_v1, 0.0 }
 0x504   :  { %v10667_v55 = vunpack.i.h.bf16 %v10665_v35  ;;  %v10666_v12 = vunpack.i.l.bf16 %v10665_v35  ;;  %v6060_v26 = vpop.f32.mrb[26].mxu1  ;;  %v6589_v54 = vcombine.high %v16156_v20, %v16156_v20  ;;  %v8647_v10 = vrot.slane %v16156_v20, 10 }
 0x505   :  { %v6061_v48 = vadd.f32 %v16132_v40, %v6060_v26  ;;  %v6062_v4 = vpop.f32.mrb[27].mxu1  ;;  %v6084_v27 = vmax.f32 %v6058_v39, 0.0 }
 0x506   :  { %v6806_v43 = vsel %vm17479_vm2, %v6802_v62, %v10666_v12  ;;  %v6807_v47 = vsel %vm17480_vm5, %v6803_v3, %v10667_v55  ;;  %v6646_v50 = vrot.slane %v6589_v54, 6 }
 0x507   :  { %v6811_v11 = vpack.c.bf16 %v6807_v47, %v6806_v43  ;;  %v6085_v37 = vmax.f32 %v6061_v48, 0.0 }
 0x509   :  { %7005 = vmatprep.mubr.bf16.mxu1 %v6811_v11  ;;  %v6094_v59 = vmax.f32 %v6084_v27, %v6085_v37 }
 0x50a   :  { %7006 = vmatmul.mubr.bf16.vlgmr.msra.gmra.mrb[32].mxu1 %v6810_v61  ;;  %v6543_v61 = vsel %vm5115_vm3, %v6412_v28, %v6542_v38  ;;  %v6616_v28 = vrot.slane %v6589_v54, 5 }
 0x50b   :  { %v6206_v42 = vcombine.high %v6094_v59, %v6094_v59  ;;  %v6213_v34 = vrot.slane %v6094_v59, %v17339_v45  ;;  %v6565_v6 = vsel %vm186_vm0, 0.0, %v6543_v61 }
 0x50c   :  { %v16153_v62 = vsel %vm6569_vm6, %v6565_v6, 0.0 }
 0x50d   :  { %v6220_v51 = vrot.slane %v6206_v42, %v17339_v45  ;;  %v6221_v25 = vcombine.high %v6213_v34, %v6213_v34  ;;  %v6441_v9 = vsel %vm6272_vm13, %v6213_v34, -inf  ;;  %v6588_v30 = vcombine.high %v16153_v62, %v16153_v62 }
 0x50e   :  { %v6442_v8 = vrot.slane %v6441_v9, 4  ;;  %v8639_v56 = vrot.slane %v16153_v62, 9  ;;  %v8640_v42 = vrot.slane %v16156_v20, 9  ;;  %v8646_v53 = vrot.slane %v16153_v62, 10 }
 0x50f   :  { %v6222_v21 = vcombine.high %v6220_v51, %v6220_v51  ;;  %v6448_v63 = vsel %vm6272_vm13, %v6221_v25, -inf  ;;  %v6455_v44 = vsel %vm6272_vm13, %v6220_v51, -inf  ;;  %v6612_v37 = vrot.slane %v6588_v30, 5 }
 0x510   :  { %v6443_v7 = vmax.f32 %v6441_v9, %v6442_v8  ;;  %v6449_v15 = vrot.slane %v6448_v63, 4  ;;  %v6456_v60 = vrot.slane %v6455_v44, 4  ;;  %v6642_v34 = vrot.slane %v6588_v30, 6 }
 0x511   :  { %v6462_v29 = vsel %vm6272_vm13, %v6222_v21, -inf  ;;  %v16178_v32 = vsel %vm15872_vm10, %v8639_v56, %v6612_v37  ;;  %v16187_v8 = vsel %vm15872_vm10, %v8640_v42, %v6616_v28 }
 0x512   :  { %v6444_v22 = vrot.slane %v6443_v7, 2  ;;  %v6450_v5 = vmax.f32 %v6448_v63, %v6449_v15  ;;  %v6457_v35 = vmax.f32 %v6455_v44, %v6456_v60  ;;  %v6463_v36 = vrot.slane %v6462_v29, 4 }
 0x513   :  { %v16195_v63 = vsel %vm15863_vm7, %v8647_v10, %v6646_v50  ;;  %v16213_v6 = vsel %vm15863_vm7, %v8646_v53, %v6642_v34 }
 0x514   :  { %v6445_v14 = vmax.f32 %v6443_v7, %v6444_v22  ;;  %v6451_v55 = vrot.slane %v6450_v5, 2  ;;  %v6458_v12 = vrot.slane %v6457_v35, 2  ;;  %v6464_v52 = vmax.f32 %v6462_v29, %v6463_v36 }
 0x515   :  { %v6682_v7 = vcombine.low %v15948_v0, %v16178_v32  ;;  %v6698_v29 = vcombine.low %v15971_v31, %v16213_v6 }
 0x516   :  { %v6446_v3 = vrot.slane %v6445_v14, 1  ;;  %v6452_v39 = vmax.f32 %v6450_v5, %v6451_v55  ;;  %v6459_v49 = vmax.f32 %v6457_v35, %v6458_v12  ;;  %v6465_v33 = vrot.slane %v6464_v52, 2 }
 0x518   :  { %v6453_v43 = vrot.slane %v6452_v39, 1  ;;  %v6460_v47 = vrot.slane %v6459_v49, 1  ;;  %v6466_v26 = vmax.f32 %v6464_v52, %v6465_v33  ;;  %v6447_v11 = vmax.f32 %v6445_v14, %v6446_v3 }
 0x51a   :  { %v6454_v48 = vmax.f32 %v6452_v39, %v6453_v43  ;;  %v6461_v4 = vmax.f32 %v6459_v49, %v6460_v47  ;;  %v6467_v17 = vrot.slane %v6466_v26, 1 }
 0x51c   :  { %v6468_v46 = vmax.f32 %v6466_v26, %v6467_v17  ;;  %v6547_v13 = vsel %vm5111_vm14, %v6454_v48, %v6447_v11 }
 0x51d   :  { %v6548_v19 = vsel %vm5113_vm15, %v6461_v4, %v6547_v13 }
 0x51e   :  { %v6549_v27 = vsel %vm5115_vm3, %v6468_v46, %v6548_v19 }
 0x51f   :  { %v6567_v23 = vsel %vm186_vm0, 0.0, %v6549_v27 }
 0x520   :  { %v16167_v24 = vsel %vm6569_vm6, %v6567_v23, 0.0 }
 0x521   :  { %v6590_v59 = vcombine.high %v16167_v24, %v16167_v24  ;;  %v16174_v38 = vcombine.low %v16156_v20, %v16167_v24  ;;  %v8641_v51 = vrot.slane %v16167_v24, 9  ;;  %v8648_v9 = vrot.slane %v16167_v24, 10 }
 0x523   :  { %v6620_v25 = vrot.slane %v6590_v59, 5  ;;  %v6650_v61 = vrot.slane %v6590_v59, 6 }
 0x525   :  { %v16191_v21 = vsel %vm15872_vm10, %v8641_v51, %v6620_v25  ;;  %v16199_v44 = vsel %vm15863_vm7, %v8648_v9, %v6650_v61 }
 0x526   :  { %v16205_v15 = vcombine.low %v16187_v8, %v16191_v21  ;;  %v16209_v60 = vcombine.low %v16195_v63, %v16199_v44 }
 0x528   :  { %v10668_v58 = vpack.i.bf16 %v16205_v15, %v6682_v7  ;;  %v10673_v22 = vpack.i.bf16 %v16209_v60, %v6698_v29 }
 0x52a   :  { %10669 = vrot.lane.b32.xlu1 %v10668_v58, %s10811_s28 }
 0x52e   :  { %10674 = vrot.lane.b32.xlu1 %v10673_v22, %s10814_s19 }
 0x541   :  { %v6065_v5 = vpop.f32.mrb[28].mxu1 }
 0x542   :  { %v6066_v35 = vadd.f32 %v16132_v40, %v6065_v5  ;;  %v6067_v36 = vpop.f32.mrb[29].mxu1 }
 0x543   :  { %v6068_v14 = vpop.f32.mrb[30].mxu1  ;;  %v10736_v36 = vld [vmem:[%s16722_s5 + $0x80] sm:$0xff]  }
 0x544   :  { %v6069_v55 = vadd.f32 %v16132_v40, %v6068_v14  ;;  %v6070_v12 = vpop.f32.mrb[31].mxu1  ;;  %v6086_v52 = vmax.f32 %v6066_v35, 0.0  ;;  %8964 = vmatprep.subr.bf16.mxu1 %v10736_v36 }
 0x545   :  { %v6714_v12 = vcombine.low %v16153_v62, %v16156_v20  ;;  %8965 = vmatpush3.bf16.msra.mxu1 %v10736_v36  ;;  %v6738_v20 = vcombine.low %v16213_v6, %v16195_v63 }
 0x546   :  { %v6087_v1 = vmax.f32 %v6069_v55, 0.0 }
 0x548   :  { %v6095_v3 = vmax.f32 %v6086_v52, %v6087_v1 }
 0x54a   :  { %v6223_v39 = vcombine.high %v6095_v3, %v6095_v3  ;;  %v6230_v49 = vrot.slane %v6095_v3, %v17339_v45 }
 0x54c   :  { %v6237_v33 = vrot.slane %v6223_v39, %v17339_v45  ;;  %v6238_v43 = vcombine.high %v6230_v49, %v6230_v49  ;;  %v6469_v47 = vsel %vm6272_vm13, %v6230_v49, -inf }
 0x54d   :  { %v6470_v26 = vrot.slane %v6469_v47, 4 }
 0x54e   :  { %v6239_v30 = vcombine.high %v6237_v33, %v6237_v33  ;;  %v6476_v11 = vsel %vm6272_vm13, %v6238_v43, -inf  ;;  %v6483_v48 = vsel %vm6272_vm13, %v6237_v33, -inf }
 0x54f   :  { %v6471_v4 = vmax.f32 %v6469_v47, %v6470_v26  ;;  %v6477_v40 = vrot.slane %v6476_v11, 4  ;;  %v6484_v17 = vrot.slane %v6483_v48, 4 }
 0x550   :  { %v6490_v46 = vsel %vm6272_vm13, %v6239_v30, -inf  ;;  %vm17484_vm13 = vmmov %vm17478_vm1 }
 0x551   :  { %v6472_v13 = vrot.slane %v6471_v4, 2  ;;  %v6478_v19 = vmax.f32 %v6476_v11, %v6477_v40  ;;  %v6485_v54 = vmax.f32 %v6483_v48, %v6484_v17  ;;  %v6491_v27 = vrot.slane %v6490_v46, 4  ;;  %v10737_v40 = vld [vmem:[%s16722_s5 + $0x88] sm:$0xff]  }
 0x552   :  { %8966 = vmatprep.subr.bf16.mxu1 %v10737_v40 }
 0x553   :  { %v6473_v37 = vmax.f32 %v6471_v4, %v6472_v13  ;;  %v6479_v23 = vrot.slane %v6478_v19, 2  ;;  %v6486_v56 = vrot.slane %v6485_v54, 2  ;;  %v6492_v59 = vmax.f32 %v6490_v46, %v6491_v27  ;;  %8967 = vmatpush3.bf16.msra.mxu1 %v10737_v40  ;;  %v10748_v40 = vld [vmem:[%s16724_s7 + $0x68] sm:$0xff]  }
 0x554   :  { %v6674_v46 = vcombine.low %v17414_v18, %v16153_v62  ;;  %v6780_v62 = vcombine.low %v16076_v16, %v15971_v31 }
 0x555   :  { %v6474_v28 = vrot.slane %v6473_v37, 1  ;;  %v6480_v50 = vmax.f32 %v6478_v19, %v6479_v23  ;;  %v6487_v42 = vmax.f32 %v6485_v54, %v6486_v56  ;;  %v6493_v34 = vrot.slane %v6492_v59, 2 }
 0x557   :  { %v6481_v10 = vrot.slane %v6480_v50, 1  ;;  %v6488_v51 = vrot.slane %v6487_v42, 1  ;;  %v6494_v25 = vmax.f32 %v6492_v59, %v6493_v34  ;;  %v6475_v9 = vmax.f32 %v6473_v37, %v6474_v28 }
 0x559   :  { %v6482_v61 = vmax.f32 %v6480_v50, %v6481_v10  ;;  %v6489_v53 = vmax.f32 %v6487_v42, %v6488_v51  ;;  %v6495_v7 = vrot.slane %v6494_v25, 1 }
 0x55b   :  { %v6496_v58 = vmax.f32 %v6494_v25, %v6495_v7  ;;  %v6550_v29 = vsel %vm5111_vm14, %v6482_v61, %v6475_v9 }
 0x55c   :  { %v6551_v22 = vsel %vm5113_vm15, %v6489_v53, %v6550_v29  ;;  %vm17481_vm15 = vmmov %vm17478_vm1 }
 0x55d   :  { %v6552_v5 = vsel %vm5115_vm3, %v6496_v58, %v6551_v22 }
 0x55e   :  { %v6568_v35 = vsel %vm186_vm0, 0.0, %v6552_v5 }
 0x55f   :  { %v6577_v14 = vsel %vm6569_vm6, %v6568_v35, 0.0  ;;  %vm7242_vm6 = vmor %vm186_vm0, %vm5111_vm14 }
 0x560   :  { %v6753_v55 = vcombine.low %v6577_v14, %v17414_v18  ;;  %v6715_v52 = vcombine.low %v16167_v24, %v6577_v14  ;;  %v6655_v1 = vcombine.high %v6577_v14, %v6577_v14  ;;  %v8652_v3 = vrot.slane %v6577_v14, 10  ;;  %vm7243_vm12 = vmor %vm7242_vm6, %vm5115_vm3 }
 0x561   :  { %v8650_v39 = vrot.slane %v6577_v14, 9  ;;  %vm16400_vm8 = vmor %vm7243_vm12, %vm17485_vm4  ;;  %vm17488_vm3 = vcmask 1042432   ;;  %vm17495_vm6 = vcmask 162816  }
 0x562   :  { %v10678_v49 = vpack.i.bf16 %v6753_v55, %v16174_v38  ;;  %v10693_v33 = vpack.i.bf16 %v6715_v52, %v6714_v12  ;;  %v6670_v43 = vrot.slane %v6655_v1, 6  ;;  %v6662_v47 = vrot.slane %v6655_v1, 5  ;;  %v10738_v52 = vld [vmem:[%s16724_s7 + $0x40] sm:$0xff]   ;;  %vm17496_vm12 = vmmov %vm17495_vm6 }
 0x563   :  { %v6812_v12 = vpack.c.bf16 %v6780_v62, %v15976_v2  ;;  %v10739_v1 = vld [vmem:[%s16724_s7] sm:$0xff]   ;;  %8805 = vmatprep.subr.bf16.mxu0 %v10738_v52  ;;  %v10741_v2 = vld [vmem:[%s16724_s7 + $0x8] sm:$0xff]  }
 0x564   :  { %10679 = vrot.lane.b32.xlu0 %v10678_v49, %s10814_s19  ;;  %10694 = vrot.lane.b32.xlu1 %v10693_v33, %s10816_s0  ;;  %v6671_v26 = vsel %vm15863_vm7, %v8652_v3, %v6670_v43  ;;  %v6663_v24 = vsel %vm15872_vm10, %v8650_v39, %v6662_v47  ;;  %vm17482_vm7 = vmmov %vm17478_vm1  ;;  %v10740_v3 = vld [vmem:[%s16724_s7 + $0x48] sm:$0xff]   ;;  %v10742_v39 = vld [vmem:[%s16724_s7 + $0x50] sm:$0xff]  }
 0x565   :  { %v6739_v30 = vcombine.low %v16199_v44, %v6671_v26  ;;  %v6781_v11 = vcombine.low %v6671_v26, %v15971_v31  ;;  %v6767_v48 = vcombine.low %v6663_v24, %v15948_v0  ;;  %v6731_v4 = vcombine.low %v16191_v21, %v6663_v24  ;;  %vm17483_vm10 = vmmov %vm17478_vm1  ;;  %8806 = vmatpush3.bf16.msra.mxu0 %v10739_v1  ;;  %v10743_v49 = vld [vmem:[%s16724_s7 + $0x10] sm:$0xff]   ;;  %v10744_v33 = vld [vmem:[%s16724_s7 + $0x58] sm:$0xff]  }
 0x566   :  { %8807 = vmatprep.subr.bf16.mxu0 %v10740_v3  ;;  %v10752_v43 = vld [vmem:[%s16724_s7 + $0xc0] sm:$0xff]   ;;  %v10754_v26 = vld [vmem:[%s16724_s7 + $0xc8] sm:$0xff]   ;;  %vm17489_vm1 = vmmov %vm17488_vm3 }
 0x567   :  { %v6815_v41 = vpack.c.bf16 %v6781_v11, %v16209_v60  ;;  %v10683_v17 = vpack.i.bf16 %v6739_v30, %v6738_v20  ;;  %v10688_v63 = vpack.i.bf16 %v6767_v48, %v16205_v15  ;;  %v6730_v60 = vcombine.low %v16178_v32, %v16187_v8  ;;  %v10753_v47 = vld [vmem:[%s16724_s7 + $0x80] sm:$0xff]   ;;  %8827 = vmatprep.subr.bf16.mxu1 %v10752_v43  ;;  %v10745_v20 = vld [vmem:[%s16724_s7 + $0x18] sm:$0xff]   ;;  %v10755_v24 = vld [vmem:[%s16724_s7 + $0x88] sm:$0xff]  }
 0x568   :  { %v10746_v30 = vld [vmem:[%s16724_s7 + $0x60] sm:$0xff]   ;;  %v10756_v11 = vld [vmem:[%s16724_s7 + $0xd0] sm:$0xff]   ;;  %vm17490_vm2 = vmmov %vm17489_vm1 }
 0x569   :  { %10684 = vrot.lane.b32.xlu0 %v10683_v17, %s10811_s28  ;;  %8808 = vmatpush3.bf16.msra.mxu0 %v10741_v2  ;;  %v10747_v48 = vld [vmem:[%s16724_s7 + $0x20] sm:$0xff]   ;;  %v10749_v17 = vld [vmem:[%s16724_s7 + $0x28] sm:$0xff]   ;;  %vm17491_vm5 = vmmov %vm17489_vm1 }
 0x56a   :  { %8809 = vmatprep.subr.bf16.mxu0 %v10742_v39 }
 0x56d   :  { %10689 = vrot.lane.b32.xlu0 %v10688_v63, %s10816_s0  ;;  %8810 = vmatpush3.bf16.msra.mxu0 %v10743_v49  ;;  %v10759_v63 = vld [vmem:[%s16724_s7 + $0x98] sm:$0xff]  }
 0x56e   :  { %8811 = vmatprep.subr.bf16.mxu0 %v10744_v33 }
 0x571   :  { %8812 = vmatpush3.bf16.msra.mxu0 %v10745_v20 }
 0x572   :  { %8813 = vmatprep.subr.bf16.mxu0 %v10746_v30 }
 0x575   :  { %8814 = vmatpush3.bf16.msra.mxu0 %v10747_v48 }
 0x576   :  { %8815 = vmatprep.subr.bf16.mxu0 %v10748_v40 }
 0x579   :  { %8816 = vmatpush3.bf16.msra.mxu0 %v10749_v17 }
 0x59c   :  { %v10670_v57 = vpop.permute.xlu1 %10669 }
 0x59d   :  { %v10671_v21 = vunpack.i.l.bf16 %v10670_v57  ;;  %v10672_v13 = vunpack.i.h.bf16 %v10670_v57  ;;  %v10750_v57 = vld [vmem:[%s16724_s7 + $0x70] sm:$0xff]  }
 0x59e   :  { %8817 = vmatprep.subr.bf16.mxu0 %v10750_v57 }
 0x59f   :  { %v6788_v59 = vsel %vm2772_vm11, %v6674_v46, %v10671_v21  ;;  %v6789_v42 = vsel %vm2772_vm11, %v16174_v38, %v10672_v13  ;;  %v10760_v21 = vld [vmem:[%s16724_s7 + $0x78] sm:$0xff]   ;;  %v10764_v46 = vld [vmem:[%s16724_s7 + $0xe8] sm:$0xff]  }
 0x5a0   :  { %v10675_v44 = vpop.permute.xlu1 %10674  ;;  %v10761_v13 = vld [vmem:[%s16724_s7 + $0x38] sm:$0xff]  }
 0x5a1   :  { %v10676_v19 = vunpack.i.l.bf16 %v10675_v44  ;;  %v10677_v54 = vunpack.i.h.bf16 %v10675_v44  ;;  %v10762_v44 = vld [vmem:[%s16724_s7 + $0xe0] sm:$0xff]  }
 0x5a3   :  { %v6792_v32 = vsel %vm5788_vm9, %v6788_v59, %v10676_v19  ;;  %v6793_v25 = vsel %vm5788_vm9, %v6789_v42, %v10677_v54  ;;  %v10765_v19 = vld [vmem:[%s16724_s7 + $0xa8] sm:$0xff]  }
 0x5d6   :  { %v10680_v0 = vpop.permute.xlu0 %10679  ;;  %v10695_v6 = vpop.permute.xlu1 %10694 }
 0x5d7   :  { %v10696_v27 = vunpack.i.l.bf16 %v10695_v6  ;;  %v10697_v56 = vunpack.i.h.bf16 %v10695_v6  ;;  %v10682_v8 = vunpack.i.h.bf16 %v10680_v0  ;;  %v10681_v34 = vunpack.i.l.bf16 %v10680_v0  ;;  %v10751_v0 = vld [vmem:[%s16724_s7 + $0x30] sm:$0xff]   ;;  %v10763_v6 = vld [vmem:[%s16724_s7 + $0xa0] sm:$0xff]  }
 0x5d8   :  { %8818 = vmatpush3.bf16.msra.mxu0 %v10751_v0 }
 0x5d9   :  { %v6796_v53 = vsel %vm17481_vm15, %v6792_v32, %v10696_v27  ;;  %v6797_v16 = vsel %vm17482_vm7, %v6793_v25, %v10697_v56  ;;  %8819 = vmatprep.subr.bf16.mxu0 %v10760_v21  ;;  %v8653_v56 = vld [vmem:[%s16723_s6] ss:$0 sm:$0xff]  ;;  %vm7927_vm15 = vcmask 1041409   ;;  %vm17492_vm7 = vcmask 1046528  }
 0x5da   :  { %v6813_v55 = vpack.c.bf16 %v6797_v16, %v6796_v53  ;;  %vm17497_vm4 = vmmov %vm17492_vm7 }
 0x5db   :  { %v10685_v15 = vpop.permute.xlu0 %10684 }
 0x5dc   :  { %v10687_v37 = vunpack.i.h.bf16 %v10685_v15  ;;  %v10686_v23 = vunpack.i.l.bf16 %v10685_v15  ;;  %8820 = vmatpush3.bf16.msra.mxu0 %v10761_v13 }
 0x5dd   :  { %v8789_v51 = vpop.f32.mrb[32].mxu1  ;;  %8972 = vmatprep.subr.bf16.mxu0 %v17414_v18 }
 0x5de   :  { %v6801_v28 = vsel %vm2772_vm11, %v6731_v4, %v10687_v37  ;;  %v6800_v50 = vsel %vm2772_vm11, %v6730_v60, %v10686_v23  ;;  %v8790_v7 = vpop.f32.mrb[33].mxu1  ;;  %v10757_v4 = vld [vmem:[%s16724_s7 + $0x90] sm:$0xff]  }
 0x5df   :  { %v10690_v10 = vpop.permute.xlu0 %10689  ;;  %v6804_v58 = vsel %vm5788_vm9, %v6800_v50, %v10681_v34  ;;  %v6805_v31 = vsel %vm5788_vm9, %v6801_v28, %v10682_v8  ;;  %v16278_v38 = vadd.f32 %v8790_v7, %v8789_v51  ;;  %v8792_v29 = vpop.f32.mrb[34].mxu1 }
 0x5e0   :  { %v10692_v9 = vunpack.i.h.bf16 %v10690_v10  ;;  %v10691_v61 = vunpack.i.l.bf16 %v10690_v10  ;;  %v8793_v35 = vpop.f32.mrb[35].mxu1 }
 0x5e1   :  { %v16282_v14 = vadd.f32 %v8793_v35, %v8792_v29  ;;  %v7008_v50 = vadd.f32 %v16278_v38, %v8653_v56  ;;  %v16379_v38 = vrot.slane %v17414_v18, %v17339_v45 }
 0x5e2   :  { %v6808_v22 = vsel %vm17483_vm10, %v6804_v58, %v10691_v61  ;;  %v6809_v5 = vsel %vm17484_vm13, %v6805_v31, %v10692_v9  ;;  %vm17493_vm10 = vmmov %vm17492_vm7 }
 0x5e3   :  { %v6814_v36 = vpack.c.bf16 %v6809_v5, %v6808_v22  ;;  %v7011_v10 = vadd.f32 %v16282_v14, %v8653_v56  ;;  %v7225_v2 = vcombine.high %v16379_v38, %v16379_v38  ;;  %vm17494_vm13 = vmmov %vm17492_vm7 }
 0x5e5   :  { %7013 = vmatprep.mubr.bf16.mxu1 %v6814_v36 }
 0x5e6   :  { %7014 = vmatmul.mubr.bf16.gmra.mrb[36].mxu1 %v6813_v55 }
 0x5e7   :  { %8968 = vmatprep.mubr.msk.bf16.mxu1 %vm2772_vm11, %v6812_v12 }
 0x5ee   :  { %8969 = vmatmul.mubr.msk.bf16.vlgmr.msra.gmra.mrb[40].mxu1 %vm2772_vm11, %v6815_v41  ;;  %v10758_v41 = vld [vmem:[%s16724_s7 + $0xd8] sm:$0xff]   ;;  %vm7135_vm11 = vcmask 517120  }
 0x5ef   :  { %8828 = vmatpush3.bf16.msra.mxu1 %v10753_v47 }
 0x5f0   :  { %8829 = vmatprep.subr.bf16.mxu1 %v10754_v26 }
 0x5f3   :  { %8830 = vmatpush3.bf16.msra.mxu1 %v10755_v24 }
 0x5f4   :  { %8831 = vmatprep.subr.bf16.mxu1 %v10756_v11 }
 0x5f7   :  { %8832 = vmatpush3.bf16.msra.mxu1 %v10757_v4 }
 0x5f8   :  { %8833 = vmatprep.subr.bf16.mxu1 %v10758_v41 }
 0x5fb   :  { %8834 = vmatpush3.bf16.msra.mxu1 %v10759_v63 }
 0x5fc   :  { %8835 = vmatprep.subr.bf16.mxu1 %v10762_v44 }
 0x5ff   :  { %8836 = vmatpush3.bf16.msra.mxu1 %v10763_v6 }
 0x600   :  { %8837 = vmatprep.subr.bf16.mxu1 %v10764_v46 }
 0x603   :  { %8838 = vmatpush3.bf16.msra.mxu1 %v10765_v19 }
 0x6b9   :  { %v8795_v60 = vpop.f32.mrb[36].mxu1 }
 0x6ba   :  { %v8796_v15 = vpop.f32.mrb[37].mxu1 }
 0x6bb   :  { %v8797_v54 = vadd.f32 %v8796_v15, %v8795_v60  ;;  %v8798_v27 = vpop.f32.mrb[38].mxu1 }
 0x6bc   :  { %v8799_v37 = vpop.f32.mrb[39].mxu1 }
 0x6bd   :  { %v8800_v23 = vadd.f32 %v8799_v37, %v8798_v27  ;;  %v7016_v59 = vadd.f32 %v8797_v54, %v8653_v56 }
 0x6bf   :  { %v7019_v32 = vadd.f32 %v8800_v23, %v8653_v56 }
 0x6c1   :  { %v8970_v28 = vpop.f32.mrb[40].mxu1 }
 0x6c2   :  { %v7065_v62 = vadd.f32 %v8970_v28, %v7016_v59  ;;  %v7056_v42 = vpop.f32.mrb[41].mxu1 }
 0x6c3   :  { %v7057_v8 = vadd.f32 %v7056_v42, %v7008_v50  ;;  %v8971_v34 = vpop.f32.mrb[42].mxu1 }
 0x6c4   :  { %v7073_v51 = vmax.f32 %v7065_v62, 0.0  ;;  %v7068_v25 = vadd.f32 %v8971_v34, %v7019_v32  ;;  %v7059_v9 = vpop.f32.mrb[43].mxu1 }
 0x6c5   :  { %v7071_v61 = vmax.f32 %v7057_v8, 0.0  ;;  %v7060_v53 = vadd.f32 %v7059_v9, %v7011_v10 }
 0x6c6   :  { %v7081_v7 = vrot.slane %v7073_v51, 4  ;;  %v7074_v58 = vmax.f32 %v7068_v25, 0.0 }
 0x6c7   :  { %v7079_v31 = vrot.slane %v7071_v61, 4  ;;  %v7072_v16 = vmax.f32 %v7060_v53, 0.0 }
 0x6c8   :  { %v7089_v29 = vmax.f32 %v7073_v51, %v7081_v7  ;;  %v7082_v22 = vrot.slane %v7074_v58, 4 }
 0x6c9   :  { %v7087_v5 = vmax.f32 %v7071_v61, %v7079_v31  ;;  %v7080_v35 = vrot.slane %v7072_v16, 4 }
 0x6ca   :  { %v7117_v36 = vrot.slane %v7089_v29, %v17339_v45  ;;  %v7090_v14 = vmax.f32 %v7074_v58, %v7082_v22  ;;  %v8674_v58 = vrot.slane %v16379_v38, 9  ;;  %v7247_v22 = vrot.slane %v7225_v2, 7 }
 0x6cb   :  { %v7101_v55 = vrot.slane %v7087_v5, %v17339_v45  ;;  %v7088_v12 = vmax.f32 %v7072_v16, %v7080_v35 }
 0x6cc   :  { %v7118_v52 = vcombine.high %v7117_v36, %v7117_v36  ;;  %v7164_v1 = vsel %vm7135_vm11, %v7117_v36, -inf  ;;  %v7125_v3 = vrot.slane %v7090_v14, %v17339_v45 }
 0x6cd   :  { %v7165_v39 = vrot.slane %v7164_v1, 4  ;;  %v7102_v49 = vcombine.high %v7101_v55, %v7101_v55  ;;  %v7136_v33 = vsel %vm7135_vm11, %v7101_v55, -inf  ;;  %v7109_v43 = vrot.slane %v7088_v12, %v17339_v45 }
 0x6ce   :  { %v7171_v47 = vsel %vm7135_vm11, %v7118_v52, -inf  ;;  %v7137_v26 = vrot.slane %v7136_v33, 4  ;;  %v7126_v20 = vcombine.high %v7125_v3, %v7125_v3  ;;  %v7178_v24 = vsel %vm7135_vm11, %v7125_v3, -inf }
 0x6cf   :  { %v7166_v30 = vmax.f32 %v7164_v1, %v7165_v39  ;;  %v7172_v11 = vrot.slane %v7171_v47, 4  ;;  %v7143_v48 = vsel %vm7135_vm11, %v7102_v49, -inf  ;;  %v7179_v4 = vrot.slane %v7178_v24, 4 }
 0x6d0   :  { %v7138_v40 = vmax.f32 %v7136_v33, %v7137_v26  ;;  %v7144_v41 = vrot.slane %v7143_v48, 4  ;;  %v7185_v17 = vsel %vm7135_vm11, %v7126_v20, -inf  ;;  %v7110_v63 = vcombine.high %v7109_v43, %v7109_v43 }
 0x6d1   :  { %v7167_v57 = vrot.slane %v7166_v30, 2  ;;  %v7173_v44 = vmax.f32 %v7171_v47, %v7172_v11  ;;  %v7180_v0 = vmax.f32 %v7178_v24, %v7179_v4  ;;  %v7186_v6 = vrot.slane %v7185_v17, 4 }
 0x6d2   :  { %v7139_v21 = vrot.slane %v7138_v40, 2  ;;  %v7145_v46 = vmax.f32 %v7143_v48, %v7144_v41  ;;  %v7150_v13 = vsel %vm7135_vm11, %v7109_v43, -inf  ;;  %v7157_v19 = vsel %vm7135_vm11, %v7110_v63, -inf }
 0x6d3   :  { %v7168_v60 = vmax.f32 %v7166_v30, %v7167_v57  ;;  %v7174_v15 = vrot.slane %v7173_v44, 2  ;;  %v7181_v54 = vrot.slane %v7180_v0, 2  ;;  %v7187_v27 = vmax.f32 %v7185_v17, %v7186_v6 }
 0x6d4   :  { %v7140_v37 = vmax.f32 %v7138_v40, %v7139_v21  ;;  %v7146_v23 = vrot.slane %v7145_v46, 2  ;;  %v7151_v56 = vrot.slane %v7150_v13, 4  ;;  %v7158_v59 = vrot.slane %v7157_v19, 4 }
 0x6d5   :  { %v7169_v28 = vrot.slane %v7168_v60, 1  ;;  %v7175_v50 = vmax.f32 %v7173_v44, %v7174_v15  ;;  %v7182_v62 = vmax.f32 %v7180_v0, %v7181_v54  ;;  %v7188_v42 = vrot.slane %v7187_v27, 2 }
 0x6d6   :  { %v7141_v32 = vrot.slane %v7140_v37, 1  ;;  %v7147_v8 = vmax.f32 %v7145_v46, %v7146_v23  ;;  %v7152_v34 = vmax.f32 %v7150_v13, %v7151_v56  ;;  %v7159_v10 = vmax.f32 %v7157_v19, %v7158_v59 }
 0x6d7   :  { %v7176_v51 = vrot.slane %v7175_v50, 1  ;;  %v7183_v25 = vrot.slane %v7182_v62, 1  ;;  %v7189_v9 = vmax.f32 %v7187_v27, %v7188_v42  ;;  %v7170_v31 = vmax.f32 %v7168_v60, %v7169_v28  ;;  %v10767_v42 = vld [vmem:[%s16724_s7 + $0xb0] sm:$0xff]  }
 0x6d8   :  { %v7148_v61 = vrot.slane %v7147_v8, 1  ;;  %v7153_v53 = vrot.slane %v7152_v34, 2  ;;  %v7160_v7 = vrot.slane %v7159_v10, 2  ;;  %v7142_v5 = vmax.f32 %v7140_v37, %v7141_v32 }
 0x6d9   :  { %v7177_v16 = vmax.f32 %v7175_v50, %v7176_v51  ;;  %v7190_v29 = vrot.slane %v7189_v9, 1  ;;  %v7184_v52 = vmax.f32 %v7182_v62, %v7183_v25  ;;  %v16412_v26 = vsel %vm16400_vm8, %v8674_v58, %v7247_v22  ;;  %v10766_v62 = vld [vmem:[%s16724_s7 + $0xf0] sm:$0xff]  }
 0x6da   :  { %v7149_v35 = vmax.f32 %v7147_v8, %v7148_v61  ;;  %v7154_v36 = vmax.f32 %v7152_v34, %v7153_v53  ;;  %v7161_v14 = vmax.f32 %v7159_v10, %v7160_v7  ;;  %8839 = vmatprep.subr.bf16.mxu1 %v10766_v62  ;;  %vm8190_vm11 = vcmask 187392  }
 0x6db   :  { %v7202_v12 = vsel %vm5111_vm14, %v7177_v16, %v7170_v31  ;;  %v7191_v1 = vmax.f32 %v7189_v9, %v7190_v29  ;;  %8840 = vmatpush3.bf16.msra.mxu1 %v10767_v42 }
 0x6dc   :  { %v7200_v3 = vsel %vm5111_vm14, %v7149_v35, %v7142_v5  ;;  %v7155_v39 = vrot.slane %v7154_v36, 1  ;;  %v7162_v49 = vrot.slane %v7161_v14, 1  ;;  %v7210_v33 = vsel %vm186_vm0, 0.0, %v7202_v12  ;;  %v10768_v35 = vld [vmem:[%s16724_s7 + $0xf8] sm:$0xff]  }
 0x6dd   :  { %v7203_v2 = vsel %vm5111_vm14, %v7191_v1, %v7184_v52  ;;  %v7208_v43 = vsel %vm186_vm0, 0.0, %v7200_v3  ;;  %v7214_v47 = vsel %vm17488_vm3, %v7210_v33, 0.0  ;;  %8841 = vmatprep.subr.bf16.mxu1 %v10768_v35  ;;  %v7909_v35 = vld [vmem:[%s16726_s9 + $0x38] sm:$0xff]  ;;  %vm17499_vm3 = vmmov %vm17497_vm4 }
 0x6de   :  { %v7156_v20 = vmax.f32 %v7154_v36, %v7155_v39  ;;  %v7163_v24 = vmax.f32 %v7161_v14, %v7162_v49  ;;  %v7211_v30 = vsel %vm186_vm0, 0.0, %v7203_v2  ;;  %v7212_v11 = vsel %vm17489_vm1, %v7208_v43, 0.0  ;;  %v10769_v36 = vld [vmem:[%s16724_s7 + $0xb8] sm:$0xff]  }
 0x6df   :  { %v16417_v48 = vsel %vm17490_vm2, %v7211_v30, 0.0  ;;  %v7232_v4 = vrot.slane %v7212_v11, %v17339_v45  ;;  %v16421_v40 = vrot.slane %v7214_v47, %v17339_v45  ;;  %v7283_v41 = vcombine.low %v17414_v18, %v7212_v11  ;;  %8842 = vmatpush3.bf16.msra.mxu1 %v10769_v36 }
 0x6e0   :  { %v7201_v17 = vsel %vm5111_vm14, %v7163_v24, %v7156_v20  ;;  %v16427_v63 = vrot.slane %v16417_v48, %v17339_v45  ;;  %v7340_v57 = vcombine.low %v7214_v47, %v16417_v48  ;;  %v7284_v44 = vcombine.low %v17414_v18, %v7214_v47 }
 0x6e1   :  { %v7209_v0 = vsel %vm186_vm0, 0.0, %v7201_v17  ;;  %v7233_v6 = vcombine.high %v7232_v4, %v7232_v4  ;;  %v7241_v21 = vcombine.high %v16421_v40, %v16421_v40  ;;  %v8675_v46 = vrot.slane %v7232_v4, 9 }
 0x6e2   :  { %v7213_v13 = vsel %vm17491_vm5, %v7209_v0, 0.0  ;;  %v8676_v19 = vrot.slane %v16421_v40, 9  ;;  %v7354_v60 = vrot.slane %v7340_v57, %v17339_v45  ;;  %v7274_v15 = vcombine.high %v16427_v63, %v16427_v63 }
 0x6e3   :  { %v7251_v54 = vrot.slane %v7233_v6, 7  ;;  %v7255_v27 = vrot.slane %v7241_v21, 7  ;;  %v7265_v37 = vrot.slane %v7213_v13, %v17339_v45  ;;  %v7339_v23 = vcombine.low %v7212_v11, %v7213_v13 }
 0x6e4   :  { %v8678_v56 = vrot.slane %v16427_v63, 9  ;;  %v7281_v59 = vrot.slane %v7274_v15, 7  ;;  %v8682_v28 = vcombine.high %v16421_v40, %v16427_v63  ;;  %v7291_v50 = vrot.slane %v7283_v41, %v17339_v45 }
 0x6e5   :  { %v7252_v32 = vsel %vm16400_vm8, %v8675_v46, %v7251_v54  ;;  %v7256_v8 = vsel %vm16400_vm8, %v8676_v19, %v7255_v27  ;;  %v7347_v34 = vrot.slane %v7339_v23, %v17339_v45  ;;  %v7266_v10 = vcombine.high %v7265_v37, %v7265_v37 }
 0x6e6   :  { %v7301_v51 = vcombine.low %v16412_v26, %v7252_v32  ;;  %v7302_v25 = vcombine.low %v16412_v26, %v7256_v8  ;;  %v8677_v9 = vrot.slane %v7265_v37, 9  ;;  %v7282_v61 = vsel %vm16400_vm8, %v8678_v56, %v7281_v59  ;;  %v10770_v59 = vld [vmem:[%s16724_s7 + $0x100] sm:$0xff]  }
 0x6e7   :  { %v7355_v53 = vcombine.low %v7347_v34, %v7354_v60  ;;  %v7277_v7 = vrot.slane %v7266_v10, 7  ;;  %v8681_v58 = vcombine.high %v7232_v4, %v7265_v37  ;;  %v7392_v31 = vrot.slane %v8682_v28, %v17339_v45  ;;  %v10772_v34 = vld [vmem:[%s16724_s7 + $0x110] sm:$0xff]   ;;  %v10773_v10 = vld [vmem:[%s16724_s7 + $0x118] sm:$0xff]  }
 0x6e8   :  { %v7309_v16 = vrot.slane %v7301_v51, %v17339_v45  ;;  %v7316_v29 = vrot.slane %v7302_v25, %v17339_v45  ;;  %v7416_v22 = vcombine.low %v7282_v61, %v16412_v26  ;;  %v7298_v5 = vrot.slane %v7284_v44, %v17339_v45  ;;  %v7902_v25 = vld [vmem:[%s16726_s9] sm:$0xff] }
 0x6e9   :  { %v7278_v14 = vsel %vm16400_vm8, %v8677_v9, %v7277_v7  ;;  %v7385_v12 = vrot.slane %v8681_v58, %v17339_v45  ;;  %v7360_v52 = vcombine.low %v7256_v8, %v7282_v61  ;;  %v8679_v1 = vcombine.high %v16379_v38, %v7232_v4  ;;  %v10771_v8 = vld [vmem:[%s16724_s7 + $0x108] sm:$0xff]   ;;  %v7904_v61 = vld [vmem:[%s16726_s9 + $0x10] sm:$0xff]  ;;  %v7905_v58 = vld [vmem:[%s16726_s9 + $0x18] sm:$0xff]  ;;  %s10821_s7 = smov 108  }
 0x6ea   :  { %v7317_v3 = vcombine.low %v7309_v16, %v7316_v29  ;;  %v7415_v39 = vcombine.low %v7278_v14, %v16412_v26  ;;  %v7430_v49 = vrot.slane %v7416_v22, %v17339_v45  ;;  %v7299_v33 = vcombine.low %v7291_v50, %v7298_v5  ;;  %v7903_v9 = vld [vmem:[%s16726_s9 + $0x8] sm:$0xff]  ;;  %v7906_v16 = vld [vmem:[%s16726_s9 + $0x20] sm:$0xff]  ;;  %v7908_v22 = vld [vmem:[%s16726_s9 + $0x30] sm:$0xff] }
 0x6eb   :  { %v7393_v2 = vcombine.low %v7385_v12, %v7392_v31  ;;  %v7374_v43 = vrot.slane %v7360_v52, %v17339_v45  ;;  %v7359_v47 = vcombine.low %v7252_v32, %v7278_v14  ;;  %v8680_v55 = vcombine.high %v16379_v38, %v16421_v40  ;;  %v7907_v29 = vld [vmem:[%s16726_s9 + $0x28] sm:$0xff]  ;;  %v7910_v14 = vld [vmem:[%s16726_s9 + $0x40] sm:$0xff]  ;;  %vm17498_vm8 = vmmov %vm17497_vm4 }
 0x6ec   :  { %v10698_v20 = vpack.i.bf16 %v7317_v3, %v7355_v53  ;;  %v7423_v24 = vrot.slane %v7415_v39, %v17339_v45  ;;  %v7329_v30 = vrot.slane %v8679_v1, %v17339_v45  ;;  %v7397_v11 = vcombine.low %v7213_v13, %v17414_v18  ;;  %v7911_v12 = vld [vmem:[%s16726_s9 + $0x48] sm:$0xff]  ;;  %v8001_v1 = vld [vmem:[%s16728_s11] sm:$0xff]  ;;  %v8003_v39 = vld [vmem:[%s16728_s11 + $0x10] sm:$0xff] }
 0x6ed   :  { %v7367_v26 = vrot.slane %v7359_v47, %v17339_v45  ;;  %v7336_v4 = vrot.slane %v8680_v55, %v17339_v45  ;;  %v7398_v41 = vcombine.low %v16417_v48, %v17414_v18  ;;  %v8683_v17 = vcombine.high %v7265_v37, %v16379_v38  ;;  %v8002_v3 = vld [vmem:[%s16728_s11 + $0x8] sm:$0xff] }
 0x6ee   :  { %10699 = vrot.lane.b32.xlu0 %v10698_v20, %s10814_s19  ;;  %v7431_v40 = vcombine.low %v7423_v24, %v7430_v49  ;;  %v7405_v57 = vrot.slane %v7397_v11, %v17339_v45  ;;  %v8684_v44 = vcombine.high %v16427_v63, %v16379_v38  ;;  %vm10819_vm0 = vmmov 0   ;;  %v7912_v49 = vld [vmem:[%s16726_s9 + $0x50] sm:$0xff]  ;;  %v8005_v20 = vld [vmem:[%s16728_s11 + $0x20] sm:$0xff]  ;;  %v8006_v24 = vld [vmem:[%s16728_s11 + $0x28] sm:$0xff] }
 0x6ef   :  { %v7375_v0 = vcombine.low %v7367_v26, %v7374_v43  ;;  %v7337_v6 = vcombine.low %v7329_v30, %v7336_v4  ;;  %v7412_v21 = vrot.slane %v7398_v41, %v17339_v45  ;;  %v7443_v46 = vrot.slane %v8683_v17, %v17339_v45  ;;  %v8004_v43 = vld [vmem:[%s16728_s11 + $0x18] sm:$0xff]  ;;  %v7914_v30 = vld [vmem:[%s16726_s9 + $0x60] sm:$0xff]  ;;  %v7915_v11 = vld [vmem:[%s16726_s9 + $0x68] sm:$0xff] }
 0x6f0   :  { %v10703_v13 = vpack.i.bf16 %v7393_v2, %v7431_v40  ;;  %v7450_v19 = vrot.slane %v8684_v44, %v17339_v45  ;;  %v10820_v53 = vmov 0.0|0.0   ;;  %v9070_v7 = vpack.c.bf16 %v7903_v9, %v7902_v25  ;;  %v7916_v41 = vld [vmem:[%s16726_s9 + $0x70] sm:$0xff]  ;;  %v7917_v17 = vld [vmem:[%s16726_s9 + $0x78] sm:$0xff]  ;;  %v8685_v44 = vld [vmem:[%s16725_s8] ss:$0 sm:$0xff] }
 0x6f1   :  { %v7413_v48 = vcombine.low %v7405_v57, %v7412_v21  ;;  %9069 = vmatprep.subr.bf16.mxu1 %v10820_v53  ;;  %v9073_v31 = vpack.c.bf16 %v7905_v58, %v7904_v61  ;;  %v9076_v5 = vpack.c.bf16 %v7907_v29, %v7906_v16  ;;  %v9079_v36 = vpack.c.bf16 %v7909_v35, %v7908_v22  ;;  %v8007_v22 = vld [vmem:[%s16728_s11 + $0x30] sm:$0xff] }
 0x6f2   :  { %10704 = vrot.lane.b32.xlu1 %v10703_v13, %s10814_s19  ;;  %v7451_v60 = vcombine.low %v7443_v46, %v7450_v19  ;;  %v9082_v52 = vpack.c.bf16 %v7911_v12, %v7910_v14  ;;  %v9094_v2 = vpack.c.bf16 %v8002_v3, %v8001_v1  ;;  %v9097_v47 = vpack.c.bf16 %v8004_v43, %v8003_v39  ;;  %v8089_v14 = vld [vmem:[%s16730_s13] sm:$0xff]  ;;  %v8090_v12 = vld [vmem:[%s16730_s13 + $0x8] sm:$0xff] }
 0x6f3   :  { %v9100_v26 = vpack.c.bf16 %v8006_v24, %v8005_v20  ;;  %v9088_v4 = vpack.c.bf16 %v7915_v11, %v7914_v30  ;;  %v9091_v40 = vpack.c.bf16 %v7917_v17, %v7916_v41  ;;  %vm7884_vm14 = vcmask 1043456   ;;  %v8187_v11 = vld [vmem:[%s16732_s15] sm:$0xff]  ;;  %v8189_v41 = vld [vmem:[%s16732_s15 + $0x10] sm:$0x7f]  ;;  %v8268_v17 = vld [vmem:[%s16733_s16 + $0x8] sm:$0xff] }
 0x6f4   :  { %v7461_v51 = vpack.c.bf16 %v7451_v60, %v7451_v60  ;;  %v9106_v39 = vpack.c.bf16 %v8090_v12, %v8089_v14 }
 0x760   :  { %v10700_v15 = vpop.permute.xlu0 %10699 }
 0x761   :  { %v10702_v54 = vunpack.i.h.bf16 %v10700_v15  ;;  %v10701_v27 = vunpack.i.l.bf16 %v10700_v15 }
 0x763   :  { %v7453_v37 = vsel %vm5788_vm9, %v7299_v33, %v10702_v54  ;;  %v7454_v38 = vsel %vm5788_vm9, %v7337_v6, %v10701_v27  ;;  %v7913_v33 = vld [vmem:[%s16726_s9 + $0x58] sm:$0xff] }
 0x764   :  { %v7457_v63 = vpack.c.bf16 %v7453_v37, %v7453_v37  ;;  %v10705_v23 = vpop.permute.xlu1 %10704  ;;  %v7458_v56 = vpack.c.bf16 %v7454_v38, %v7454_v38  ;;  %v9085_v55 = vpack.c.bf16 %v7913_v33, %v7912_v49  ;;  %v8091_v33 = vld [vmem:[%s16730_s13 + $0x10] sm:$0xff] }
 0x765   :  { %v10707_v28 = vunpack.i.h.bf16 %v10705_v23  ;;  %v10706_v45 = vunpack.i.l.bf16 %v10705_v23 }
 0x766   :  { %7792 = vmatprep.mubr.bf16.mxu0 %v7458_v56 }
 0x767   :  { %v7455_v50 = vsel %vm5788_vm9, %v7375_v0, %v10707_v28  ;;  %7793 = vmatmul.mubr.bf16.vlgmr.msra.gmra.mrb[64].mxu0 %v7457_v63  ;;  %v7456_v62 = vsel %vm5788_vm9, %v7413_v48, %v10706_v45 }
 0x768   :  { %v7459_v42 = vpack.c.bf16 %v7455_v50, %v7455_v50  ;;  %8973 = vmatpush3.bf16.msra.mxu0 %v10770_v59  ;;  %v7460_v32 = vpack.c.bf16 %v7456_v62, %v7456_v62  ;;  %8980 = vmatprep.mubr.msk.bf16.mxu0 %vm10819_vm0, %v17414_v18 }
 0x769   :  { %8974 = vmatprep.subr.bf16.mxu0 %v17414_v18 }
 0x76a   :  { %7832 = vmatprep.mubr.bf16.mxu1 %v7460_v32 }
 0x76b   :  { %7833 = vmatmul.mubr.bf16.vlgmr.msra.gmra.mrb[44].mxu1 %v7459_v42 }
 0x76c   :  { %8975 = vmatpush3.bf16.msra.mxu0 %v10771_v8  ;;  %9016 = vmatprep.mubr.msk.f32.mxu1 %vm10819_vm0, %v17414_v18 }
 0x76d   :  { %8976 = vmatprep.subr.bf16.mxu0 %v17414_v18  ;;  %9071 = vmatpush3.bf16.msra.mxu1 %v9070_v7 }
 0x76e   :  { %9072 = vmatprep.subr.bf16.mxu1 %v10820_v53 }
 0x770   :  { %8977 = vmatpush3.bf16.msra.mxu0 %v10772_v34 }
 0x771   :  { %8978 = vmatprep.subr.bf16.mxu0 %v17414_v18  ;;  %9074 = vmatpush3.bf16.msra.mxu1 %v9073_v31 }
 0x772   :  { %9075 = vmatprep.subr.bf16.mxu1 %v10820_v53 }
 0x774   :  { %8979 = vmatpush3.bf16.msra.mxu0 %v10773_v10 }
 0x775   :  { %9093 = vmatprep.subr.bf16.mxu0 %v10820_v53  ;;  %9077 = vmatpush3.bf16.msra.mxu1 %v9076_v5  ;;  %v8008_v5 = vld [vmem:[%s16728_s11 + $0x38] sm:$0xff] }
 0x776   :  { %9078 = vmatprep.subr.bf16.mxu1 %v10820_v53  ;;  %v9103_v35 = vpack.c.bf16 %v8008_v5, %v8007_v22 }
 0x777   :  { %8981 = vmatmul.mubr.msk.bf16.vlgmr.msra.gmra.mrb[68].mxu0 %vm5788_vm9, %v7461_v51 }
 0x778   :  { %9035 = vmatprep.mubr.msk.f32.mxu0 %vm10819_vm0, %v17414_v18  ;;  %9095 = vmatpush3.bf16.msra.mxu0 %v9094_v2  ;;  %v8092_v2 = vld [vmem:[%s16730_s13 + $0x18] sm:$0xff] }
 0x779   :  { %9080 = vmatpush3.bf16.msra.mxu1 %v9079_v36  ;;  %9096 = vmatprep.subr.bf16.mxu0 %v10820_v53  ;;  %v8723_v36 = vld [vmem:[%s16727_s10] ss:$0 sm:$0xff]  ;;  %v9109_v43 = vpack.c.bf16 %v8092_v2, %v8091_v33 }
 0x77a   :  { %9081 = vmatprep.subr.bf16.mxu1 %v10820_v53 }
 0x77c   :  { %9098 = vmatpush3.bf16.msra.mxu0 %v9097_v47  ;;  %v8093_v47 = vld [vmem:[%s16730_s13 + $0x20] sm:$0xff] }
 0x77d   :  { %9083 = vmatpush3.bf16.msra.mxu1 %v9082_v52  ;;  %9099 = vmatprep.subr.bf16.mxu0 %v10820_v53 }
 0x77e   :  { %9084 = vmatprep.subr.bf16.mxu1 %v10820_v53 }
 0x780   :  { %9101 = vmatpush3.bf16.msra.mxu0 %v9100_v26  ;;  %v8188_v26 = vld [vmem:[%s16732_s15 + $0x8] sm:$0xff] }
 0x781   :  { %9086 = vmatpush3.bf16.msra.mxu1 %v9085_v55  ;;  %9102 = vmatprep.subr.bf16.mxu0 %v10820_v53  ;;  %v8724_v55 = vld [vmem:[%s16729_s12] ss:$0 sm:$0xff] }
 0x782   :  { %9087 = vmatprep.subr.bf16.mxu1 %v10820_v53 }
 0x784   :  { %9104 = vmatpush3.bf16.msra.mxu0 %v9103_v35 }
 0x785   :  { %9089 = vmatpush3.bf16.msra.mxu1 %v9088_v4  ;;  %9105 = vmatprep.subr.bf16.mxu0 %v10820_v53  ;;  %v9112_v4 = vpack.c.bf16 %v8188_v26, %v8187_v11 }
 0x786   :  { %9090 = vmatprep.subr.bf16.mxu1 %v10820_v53 }
 0x789   :  { %9092 = vmatpush3.bf16.msra.mxu1 %v9091_v40  ;;  %v8270_v40 = vld [vmem:[%s16733_s16 + $0x18] sm:$0xff] }
 0x78a   :  { %9111 = vmatprep.subr.bf16.mxu1 %v10820_v53 }
 0x83a   :  { %v8821_v57 = vpop.f32.mrb[64].mxu0 }
 0x83b   :  { %v8822_v0 = vpop.f32.mrb[65].mxu0 }
 0x83c   :  { %v8823_v6 = vadd.f32 %v8822_v0, %v8821_v57  ;;  %v8824_v21 = vpop.f32.mrb[66].mxu0  ;;  %v8267_v57 = vld [vmem:[%s16733_s16] sm:$0xff]  ;;  %v9114_v0 = vpack.c.bf16 %v8270_v40, %v8268_v17 }
 0x83d   :  { %v8825_v46 = vpop.f32.mrb[67].mxu0  ;;  %v8272_v21 = vld [vmem:[%s16733_s16 + $0x28] sm:$0x7f] }
 0x83e   :  { %v7795_v13 = vadd.f32 %v8823_v6, %v8685_v44  ;;  %v8843_v19 = vpop.f32.mrb[44].mxu1  ;;  %v8726_v44 = vld [vmem:[%s16731_s14] ss:$0 sm:$0xff]  ;;  %s10822_s14 = smov 17  }
 0x83f   :  { %v8844_v48 = vpop.f32.mrb[45].mxu1 }
 0x840   :  { %v8845_v60 = vadd.f32 %v8844_v48, %v8843_v19  ;;  %v8846_v15 = vpop.f32.mrb[46].mxu1  ;;  %v8271_v48 = vld [vmem:[%s16733_s16 + $0x20] sm:$0x7f] }
 0x841   :  { %v8847_v54 = vpop.f32.mrb[47].mxu1 }
 0x842   :  { %v7835_v27 = vadd.f32 %v8845_v60, %v7795_v13 }
 0x84a   :  { %v7874_v37 = vpop.f32.mrb[68].mxu0 }
 0x84b   :  { %v7875_v38 = vadd.f32 %v7874_v37, %v7835_v27  ;;  %v8982_v63 = vpop.f32.mrb[69].mxu0 }
 0x84c   :  { %v7877_v23 = vpop.f32.mrb[70].mxu0 }
 0x84d   :  { %v7880_v56 = vmax.f32 %v7875_v38, 0.0  ;;  %v8983_v59 = vpop.f32.mrb[71].mxu0 }
 0x84e   :  { %v10823_v59 = vmov 1966171168  }
 0x84f   :  { %v7882_v28 = vcombine.high %v7880_v56, %v7880_v56  ;;  %v7885_v45 = vsel %vm7884_vm14, %v7880_v56, 0.0 }
 0x850   :  { %v7886_v50 = vrot.slane %v7885_v45, 4 }
 0x851   :  { %v7892_v62 = vsel %vm7884_vm14, %v7882_v28, 0.0  ;;  %v8504_v28 = vunpack.c.l.s4 %v10823_v59 }
 0x852   :  { %v7887_v42 = vadd.f32 %v7886_v50, %v7885_v45  ;;  %v7893_v32 = vrot.slane %v7892_v62, 4 }
 0x853   :  { %v8505_v45 = vunpack.c.0.s8 %v8504_v28 }
 0x854   :  { %v7888_v8 = vrot.slane %v7887_v42, 2  ;;  %v7894_v34 = vadd.f32 %v7893_v32, %v7892_v62  ;;  %v17500_v62 = vld [vmem:[#allocation41_spill] sm:$0xff] }
 0x856   :  { %v7889_v10 = vadd.f32 %v7888_v8, %v7887_v42  ;;  %v7895_v51 = vrot.slane %v7894_v34, 2  ;;  %v8508_v42 = vsub.s32 %v8505_v45, %v17500_v62 }
 0x858   :  { %v7890_v25 = vrot.slane %v7889_v10, 1  ;;  %v7896_v9 = vadd.f32 %v7895_v51, %v7894_v34 }
 0x85a   :  { %v7891_v61 = vadd.f32 %v7890_v25, %v7889_v10  ;;  %v7897_v7 = vrot.slane %v7896_v9, 1  ;;  %v17501_v10 = vlaneseq }
 0x85c   :  { %v7898_v58 = vadd.f32 %v7897_v7, %v7896_v9  ;;  %v7900_v31 = vmul.f32 0.25, %v7891_v61  ;;  %vm16690_vm1 = vcmp.lt.s32.totalorder %v17501_v10, 256 }
 0x85e   :  { %v7901_v16 = vmul.f32 0.25, %v7898_v58 }
 0x860   :  { %v7928_v29 = vsel %vm7927_vm15, %v7901_v16, %v7900_v31 }
 0x861   :  { %9017 = vmatmul.mubr.f32.vlgmr.msra.gmra.mrb[48].mxu1 %v7928_v29 }
 0x862   :  { %9057 = vmatprep.mubr.msk.f32.mxu1 %vm10819_vm0, %v17414_v18  ;;  %9113 = vmatpush3.bf16.msra.mxu1 %v9112_v4 }
 0x863   :  { %9055 = vmatprep.subr.mxu1 %v17414_v18 }
 0x866   :  { %9056 = vmatpush3.msk.msra.mxu1 %vm17492_vm7, %v8189_v41 }
 0x867   :  { %9118 = vmatprep.subr.bf16.mxu1 %v10820_v53 }
 0x934   :  { %v7996_v52 = vpop.f32.mrb[48].mxu1 }
 0x935   :  { %v7997_v1 = vadd.f32 %v8723_v36, %v7996_v52  ;;  %v9018_v3 = vpop.f32.mrb[49].mxu1 }
 0x937   :  { %v8000_v49 = vmax.f32 %v7997_v1, 0.0 }
 0x939   :  { %9036 = vmatmul.mubr.msk.f32.vlgmr.msra.gmra.mrb[72].mxu0 %vm5788_vm9, %v8000_v49  ;;  %vm8101_vm9 = vcmask 326656  }
 0x93a   :  { %9107 = vmatpush3.bf16.msra.mxu0 %v9106_v39  ;;  %9048 = vmatprep.mubr.msk.f32.mxu0 %vm10819_vm0, %v17414_v18 }
 0x93b   :  { %9108 = vmatprep.subr.bf16.mxu0 %v10820_v53  ;;  %v8269_v53 = vld [vmem:[%s16733_s16 + $0x10] sm:$0xff]  ;;  %s10824_s16 = smov [#allocation2]  }
 0x93c   :  { %v9116_v6 = vpack.c.bf16 %v8269_v53, %v8267_v57 }
 0x93e   :  { %9110 = vmatpush3.bf16.msra.mxu0 %v9109_v43 }
 0x93f   :  { %9046 = vmatprep.subr.mxu0 %v17414_v18 }
 0x942   :  { %9047 = vmatpush3.msra.mxu0 %v8093_v47 }
 0x943   :  { %9115 = vmatprep.subr.bf16.mxu0 %v9114_v0 }
 0xa0c   :  { %v8085_v20 = vpop.f32.mrb[72].mxu0 }
 0xa0d   :  { %v8086_v24 = vadd.f32 %v8724_v55, %v8085_v20  ;;  %v9037_v30 = vpop.f32.mrb[73].mxu0 }
 0xa0f   :  { %8180 = vrot.lane.b32.xlu1 %v8086_v24, %s10821_s7  ;;  %9049 = vmatmul.mubr.msk.f32.vlgmr.msra.gmra.mrb[74].mxu0 %vm8101_vm9, %v8086_v24 }
 0xa10   :  { %8346 = vmatprep.mubr.f32.mxu0 %v17414_v18  ;;  %9117 = vmatpush1.bf16.msra.mxu0 %v9116_v6 }
 0xa11   :  { %8730 = vmatprep.subr.msk.mxu0 %vm17493_vm10, %v8272_v21 }
 0xa14   :  { %8731 = vmatpush1.msk.msra.mxu0 %vm17494_vm13, %v8271_v48 }
 0xa15   :  { %9122 = vmatprep.subr.bf16.mxu0 %v9114_v0 }
 0xa81   :  { %v8181_v54 = vpop.permute.xlu1 %8180 }
 0xae2   :  { %v8171_v46 = vpop.f32.mrb[74].mxu0 }
 0xae3   :  { %v8172_v13 = vadd.f32 %v8726_v44, %v8171_v46  ;;  %v9050_v19 = vpop.f32.mrb[75].mxu0 }
 0xae5   :  { %8176 = vrot.lane.b32.xlu0 %v8172_v13, %s17170_s30  ;;  %s8570_s30 = sshll.u32 %s10824_s16, 4  ;;  %s8571_s30 = int_to_ptr.vmem [resolvable:$true] %s8570_s30 }
 0xae6   :  { %s10779_s10 = scalar_lea.vmem %s8571_s30, 128  ;;  %p10784_p1 = scmp.lt.s32.totalorder %s8571_s30, %s8571_s30 }
 0xae7   :  { %p10780_p0 = scmp.ne.s32.totalorder %s8571_s30, %s10779_s10  ;;  %p10785_p2 = scmp.lt.s32.totalorder %s10779_s10, %s10779_s10 }
 0xae9   :  { %8183 = vrot.lane.b32.xlu0 %v8172_v13, %s10822_s14  ;;  %p10786_p3 = por %p10785_p2, %p10784_p1 }
 0xaeb   :  { %p10787_p4 = pnand %p10786_p3, %p10780_p0 }
 0xb57   :  { %v8177_v60 = vpop.permute.xlu0 %8176 }
 0xb58   :  { %v8179_v15 = vsel %vm17495_vm6, %v8086_v24, %v8177_v60 }
 0xb59   :  { %9058 = vmatmul.mubr.msk.f32.vlgmr.msra.gmra.mrb[50].mxu1 %vm8190_vm11, %v8179_v15 }
 0xb5a   :  { %9120 = vmatpush3.bf16.msra.mxu1 %v9112_v4  ;;  %9066 = vmatprep.mubr.msk.f32.mxu1 %vm10819_vm0, %v17414_v18 }
 0xb5b   :  { %v8184_v27 = vpop.permute.xlu0 %8183  ;;  %9064 = vmatprep.subr.mxu1 %v17414_v18 }
 0xb5c   :  { %v8186_v37 = vsel %vm17496_vm12, %v8181_v54, %v8184_v27 }
 0xb5e   :  { %9065 = vmatpush3.msk.msra.mxu1 %vm17497_vm4, %v8189_v41 }
 0xb5f   :  { %9067 = vmatmul.mubr.msk.f32.vlgmr.msra.gmra.mrb[52].mxu1 %vm8190_vm11, %v8186_v37 }
 0xc2c   :  { %v8263_v38 = vpop.f32.mrb[50].mxu1 }
 0xc2d   :  { %v9059_v63 = vpop.f32.mrb[51].mxu1  ;;  %8732 = vmatmul.mubr.msk.f32.vlgmr.msra.gmra.mrb[76].mxu0 %vm8190_vm11, %v8263_v38 }
 0xc2e   :  { %9124 = vmatpush1.bf16.msra.mxu0 %v9116_v6  ;;  %8493 = vmatprep.mubr.f32.mxu0 %v17414_v18 }
 0xc2f   :  { %8735 = vmatprep.subr.msk.mxu0 %vm17498_vm8, %v8272_v21 }
 0xc32   :  { %v8422_v23 = vpop.f32.mrb[52].mxu1  ;;  %8736 = vmatpush1.msk.msra.mxu0 %vm17499_vm3, %v8271_v48 }
 0xc33   :  { %v9068_v56 = vpop.f32.mrb[53].mxu1  ;;  %8737 = vmatmul.mubr.msk.f32.vlgmr.msra.gmra.mrb[78].mxu0 %vm8190_vm11, %v8422_v23 }
 0xd00   :  { %v8348_v50 = vpop.f32.mrb[76].mxu0 }
 0xd01   :  { %v8350_v32 = vpop.f32.mrb[77].mxu0 }
 0xd02   :  { %v8502_v8 = vcombine.low %v8348_v50, %v8350_v32 }
 0xd04   :  { %v8509_v34 = vrot.slane %v8502_v8, %v8508_v42 }
 0xd06   :  { %v8510_v51 = vcombine.high %v8509_v34, %v8509_v34  ;;  %v8517_v25 = vrot.slane %v8509_v34, %v8508_v42  ;;  %v8495_v9 = vpop.f32.mrb[78].mxu0 }
 0xd07   :  { %v8497_v61 = vpop.f32.mrb[79].mxu0 }
 0xd08   :  { %v8524_v7 = vrot.slane %v8510_v51, %v8508_v42  ;;  %8531 = vst.msk [vmem:[#allocation2] ss:$2 sm:$0x3] %vm16690_vm1, %v8517_v25  ;;  %v8536_v58 = vcombine.low %v8495_v9, %v8497_v61 }
 0xd0a   :  { %8533 = vst.msk [vmem:[#allocation2 + $0x4] ss:$2 sm:$0x3] %vm16690_vm1, %v8524_v7  ;;  %v8543_v31 = vrot.slane %v8536_v58, %v8508_v42 }
 0xd0c   :  { %v8544_v16 = vcombine.high %v8543_v31, %v8543_v31  ;;  %v8551_v29 = vrot.slane %v8543_v31, %v8508_v42 }
 0xd0e   :  { %v8558_v22 = vrot.slane %v8544_v16, %v8508_v42  ;;  %8562 = vst.msk [vmem:[#allocation2 + $0x1] ss:$2 sm:$0x3] %vm16690_vm1, %v8551_v29 }
 0xd10   :  { %8564 = vst.msk [vmem:[#allocation2 + $0x5] ss:$2 sm:$0x3] %vm16690_vm1, %v8558_v22 }
 0xd11   :  { %10790 = shalt.err (!%p10787_p4)
}
 0xd12   :  { %s10791_s2 = scalar_lea.hbm %s16734_s17, 128 }
 0xd13   :  { %p10792_p5 = scmp.ne.s32.totalorder %s16734_s17, %s10791_s2  ;;  %p10795_p6 = scmp.lt.u32.totalorder %s10791_s2, %s16734_s17 }
 0xd15   :  { %p10797_p7 = pnand %p10795_p6, %p10792_p5 }
 0xd17   :  { %10800 = shalt.err (!%p10797_p7)
}
 0xd18   :  { %8576 = dma.vmem_to_hbm [thread:$0]  %s8571_s30, 128, %s16734_s17, [#allocation3], %s10814_s19, %s10814_s19, %s10805_s1  }
 0xd19   :  { %10801 = dma.done.wait [#allocation3], 128  }
 0xd1a   :  { %10802 = vsyncadd [#allocation3], 4294967168 }
 0xd1b   :  { %8580 = vsyncpa [#allocation3], 1 }

</bundles_post_ra>
